<compile_context>
chip_gen: v6e
topology: v6e:2x2x1
jax: 0.10.0
libtpu: 0.0.40
codegen_flags: <defaults>
</compile_context>

<pallas_src>
import functools

import numpy as np
import jax
import jax.numpy as jnp
from jax.experimental import pallas as pl
from jax.experimental.pallas import tpu as pltpu

LANE = 128
SUBLANE = 8


def _round_up(n, m=LANE):
    return ((n + m - 1) // m) * m


# ----------------------------------------------------------------------------- kernel

def lstmae_kernel(x_ref,
                  e1_wih, e1_whh, e1_b, n1_g, n1_b,
                  e2_w, e2_b, n2_g, n2_b,
                  d1_wih, d1_whh, d1_b,
                  d2_w, d2_b,
                  lin_w, lin_b,
                  out_ref,
                  *, S, Bp, H2, E):
    """x_ref: (S*Bp, F) time-major, batch padded to 8 sublanes.  out_ref: (S*Bp, Fp)."""
    f32 = jnp.float32
    bf16 = jnp.bfloat16
    H2p = e1_whh.shape[0]      # padded 2*embedding_dim (multiple of 128)
    Ep = d1_whh.shape[0]       # padded embedding_dim   (multiple of 128)

    # Small params hoisted once; large weight matrices read at each dot call site
    # (keeps vreg live ranges short across the fully-unrolled loops).
    b_e1 = e1_b[...]; g_n1 = n1_g[...]; be_n1 = n1_b[...]
    b_e2 = e2_b[...]; g_n2 = n2_g[...]; be_n2 = n2_b[...]
    b_d1 = d1_b[...]; b_d2 = d2_b[...]
    b_lin = lin_b[...]

    # Lane masks: 1.0 in real feature lanes, 0.0 in padded lanes (hoisted; reused every step).
    mask_h2 = (jax.lax.broadcasted_iota(jnp.int32, (1, H2p), 1) < H2).astype(f32)
    mask_e = (jax.lax.broadcasted_iota(jnp.int32, (1, Ep), 1) < E).astype(f32)

    def gates_to_hc(gates, c):
        # Gate blocks are padded to 128-lane boundaries -> slices are lane-aligned.
        Hp = gates.shape[-1] // 4
        i = jax.nn.sigmoid(gates[:, 0 * Hp:1 * Hp])
        f = jax.nn.sigmoid(gates[:, 1 * Hp:2 * Hp])
        g = jnp.tanh(gates[:, 2 * Hp:3 * Hp])
        o = jax.nn.sigmoid(gates[:, 3 * Hp:4 * Hp])
        c_new = f * c + i * g
        h_new = o * jnp.tanh(c_new)
        # Padded lanes: gates=0 -> g=0 -> c_new=0 -> h_new=0 (invariant preserved).
        return h_new, c_new

    def lstm_step_pre(pre, h, c, whh_ref):
        # pre = x_t @ W_ih^T + b precomputed off the critical path; bf16 MXU, f32 accum.
        gates = pre + jnp.dot(h.astype(bf16), whh_ref[...], preferred_element_type=f32)
        return gates_to_hc(gates, c)

    def lstm_step_fused(x_in, h, c, w_ref, b):
        # Fused input+hidden projection: one K=256 dot per step instead of two K=128 dots.
        inp = jnp.concatenate([x_in, h], axis=-1).astype(bf16)
        gates = jnp.dot(inp, w_ref[...], preferred_element_type=f32) + b
        return gates_to_hc(gates, c)

    def layernorm(v, gamma, beta, mask, true_n):
        # Two-pass form; padded lanes masked out of the variance so the stats only see
        # real lanes.  gamma/beta are zero in padded lanes -> output padded lanes stay 0.
        mu = jnp.sum(v, axis=-1, keepdims=True) / true_n
        d = (v - mu) * mask
        var = jnp.sum(d * d, axis=-1, keepdims=True) / true_n
        return d * jax.lax.rsqrt(var + 1e-5) * gamma + beta

    # ---------------- encoder ----------------
    # Layer-1 input projection for ALL timesteps in one matmul (off the serial chain).
    xproj = jnp.dot(x_ref[...].astype(bf16), e1_wih[...],
                    preferred_element_type=f32) + b_e1                     # (S*Bp, 4*H2p)

    h1 = jnp.zeros((Bp, H2p), f32); c1 = jnp.zeros((Bp, H2p), f32)
    h2 = jnp.zeros((Bp, Ep), f32);  c2 = jnp.zeros((Bp, Ep), f32)
    for t in range(S):                       # S static -> fully unrolled
        h1, c1 = lstm_step_pre(xproj[t * Bp:(t + 1) * Bp, :], h1, c1, e1_whh)
        y = layernorm(h1, g_n1, be_n1, mask_h2, H2)
        h2, c2 = lstm_step_fused(y, h2, c2, e2_w, b_e2)
    z = layernorm(h2, g_n2, be_n2, mask_e, E)                              # (Bp, Ep)

    # ---------------- decoder ----------------
    # z is loop-invariant -> its layer-1 input projection is computed once.
    zpre = jnp.dot(z.astype(bf16), d1_wih[...], preferred_element_type=f32) + b_d1

    hd1 = jnp.zeros((Bp, Ep), f32);  cd1 = jnp.zeros((Bp, Ep), f32)
    hd2 = jnp.zeros((Bp, H2p), f32); cd2 = jnp.zeros((Bp, H2p), f32)
    hd2_steps = []
    for t in range(S):                       # fully unrolled
        hd1, cd1 = lstm_step_pre(zpre, hd1, cd1, d1_whh)
        hd2, cd2 = lstm_step_fused(hd1, hd2, cd2, d2_w, b_d2)
        hd2_steps.append(hd2)                # stays in registers; no VMEM round trip

    # Final Linear(2E -> Fp): one batched matmul + one lane-dense store.
    h2_all = jnp.concatenate(hd2_steps, axis=0)                            # (S*Bp, H2p)
    out = jnp.dot(h2_all.astype(bf16), lin_w[...], preferred_element_type=f32) + b_lin
    out_ref[...] = out.astype(out_ref.dtype)


# ----------------------------------------------------------------------------- params

PARAM_ORDER = [
    "e1_wih", "e1_whh", "e1_b", "n1_g", "n1_b",
    "e2_w", "e2_b", "n2_g", "n2_b",
    "d1_wih", "d1_whh", "d1_b",
    "d2_w", "d2_b",
    "lin_w", "lin_b",
]


def make_logical_params(key, n_features, embedding_dim):
    """Deterministic synthetic parameters in math-friendly (unpadded, f32) layout:
       LSTM weights pre-transposed to (in, 4H); ih/hh biases pre-summed to (1, 4H)."""
    F, E, H2 = n_features, embedding_dim, 2 * embedding_dim
    keys = iter(jax.random.split(key, 32))

    def w(shape, scale=0.1):
        return (scale * jax.random.normal(next(keys), shape)).astype(jnp.float32)

    def lstm(in_dim, hid):
        return (w((in_dim, 4 * hid)),          # W_ih^T
                w((hid, 4 * hid)),             # W_hh^T
                w((1, 4 * hid)))               # b_ih + b_hh (combined)

    p = {}
    p["e1_wih"], p["e1_whh"], p["e1_b"] = lstm(F, H2)
    p["n1_g"] = jnp.ones((1, H2), jnp.float32)
    p["n1_b"] = w((1, H2))
    p["e2_wih"], p["e2_whh"], p["e2_b"] = lstm(H2, E)
    p["n2_g"] = jnp.ones((1, E), jnp.float32)
    p["n2_b"] = w((1, E))
    p["d1_wih"], p["d1_whh"], p["d1_b"] = lstm(E, E)
    p["d2_wih"], p["d2_whh"], p["d2_b"] = lstm(E, H2)
    p["lin_w"] = w((H2, F))
    p["lin_b"] = w((1, F))
    return p


def pad_params_for_kernel(p, n_features, embedding_dim):
    """Repack params: gate blocks padded to 128-lane boundaries, layer-2 input/hidden weights
       stacked into one fused (K=256) matrix, matmul weights stored as bf16, Linear padded to
       128 output lanes.  All padding is exact zeros."""
    E = embedding_dim
    H2 = 2 * E
    H2p, Ep = _round_up(H2), _round_up(E)
    Fp = _round_up(n_features)
    bf16 = jnp.bfloat16

    def pad_gate_cols(w, H, Hp):
        blocks = [w[..., k * H:(k + 1) * H] for k in range(4)]
        blocks = [jnp.pad(b, [(0, 0)] * (w.ndim - 1) + [(0, Hp - H)]) for b in blocks]
        return jnp.concatenate(blocks, axis=-1)

    def pad_rows(w, rows_p):
        return jnp.pad(w, [(0, rows_p - w.shape[0]), (0, 0)])

    def pad_cols(w, cols_p):
        return jnp.pad(w, [(0, 0), (0, cols_p - w.shape[-1])])

    kp = {}
    kp["e1_wih"] = pad_gate_cols(p["e1_wih"], H2, H2p).astype(bf16)                 # (F,   4*H2p)
    kp["e1_whh"] = pad_rows(pad_gate_cols(p["e1_whh"], H2, H2p), H2p).astype(bf16)  # (H2p, 4*H2p)
    kp["e1_b"]   = pad_gate_cols(p["e1_b"], H2, H2p)
    kp["n1_g"]   = pad_cols(p["n1_g"], H2p)
    kp["n1_b"]   = pad_cols(p["n1_b"], H2p)
    # fused encoder layer-2: rows = [y (H2p) ; h2 (Ep)]
    e2_ih = pad_rows(pad_gate_cols(p["e2_wih"], E, Ep), H2p)
    e2_hh = pad_rows(pad_gate_cols(p["e2_whh"], E, Ep), Ep)
    kp["e2_w"] = jnp.concatenate([e2_ih, e2_hh], axis=0).astype(bf16)               # (H2p+Ep, 4*Ep)
    kp["e2_b"] = pad_gate_cols(p["e2_b"], E, Ep)
    kp["n2_g"] = pad_cols(p["n2_g"], Ep)
    kp["n2_b"] = pad_cols(p["n2_b"], Ep)
    kp["d1_wih"] = pad_rows(pad_gate_cols(p["d1_wih"], E, Ep), Ep).astype(bf16)     # (Ep,  4*Ep)
    kp["d1_whh"] = pad_rows(pad_gate_cols(p["d1_whh"], E, Ep), Ep).astype(bf16)
    kp["d1_b"]   = pad_gate_cols(p["d1_b"], E, Ep)
    # fused decoder layer-2: rows = [hd1 (Ep) ; hd2 (H2p)]
    d2_ih = pad_rows(pad_gate_cols(p["d2_wih"], H2, H2p), Ep)
    d2_hh = pad_rows(pad_gate_cols(p["d2_whh"], H2, H2p), H2p)
    kp["d2_w"] = jnp.concatenate([d2_ih, d2_hh], axis=0).astype(bf16)               # (Ep+H2p, 4*H2p)
    kp["d2_b"] = pad_gate_cols(p["d2_b"], H2, H2p)
    kp["lin_w"] = pad_cols(pad_rows(p["lin_w"], H2p), Fp).astype(bf16)              # (H2p, Fp)
    kp["lin_b"] = pad_cols(p["lin_b"], Fp)
    return kp


# ----------------------------------------------------------------------------- wrapper

def lstmae_forward(x, kernel_params, *, embedding_dim):
    """x: (B, S, F) float32, batch-first (PyTorch convention). Returns (B, S, F)."""
    B, S, F = x.shape
    Bp = _round_up(B, SUBLANE)            # sublane-aligned per-step row blocks
    Fp = _round_up(F, LANE)               # lane-dense output

    # time-major, batch padded to 8, flattened to (S*Bp, F) so every per-step slice is
    # a static, tile-aligned row block.
    x_tm = jnp.transpose(x, (1, 0, 2))
    x_tm = jnp.pad(x_tm, ((0, 0), (0, Bp - B), (0, 0)))
    x_flat = x_tm.reshape(S * Bp, F)

    inputs = [x_flat] + [kernel_params[k] for k in PARAM_ORDER]
    kernel = functools.partial(lstmae_kernel, S=S, Bp=Bp,
                               H2=2 * embedding_dim, E=embedding_dim)

    # Whole problem (~1 MiB of bf16 weights + tiny activations) lives in VMEM; no grid needed.
    out_flat = pl.pallas_call(
        kernel,
        out_shape=jax.ShapeDtypeStruct((S * Bp, Fp), jnp.float32),
        in_specs=[pl.BlockSpec(memory_space=pltpu.MemorySpace.VMEM)] * len(inputs),
        out_specs=pl.BlockSpec(memory_space=pltpu.MemorySpace.VMEM),
    )(*inputs)

    out = out_flat.reshape(S, Bp, Fp)[:, :B, :F]
    return jnp.transpose(out, (1, 0, 2))


# ----------------------------------------------------------------------------- pure-JAX reference
# The reference mirrors the kernel's matmul precision (bf16 operands, f32 accumulation) so
# the comparison isolates kernel-logic correctness from the intentional bf16 quantization.

def _mm(a, b, dt):
    return jnp.dot(a.astype(dt), b.astype(dt), preferred_element_type=jnp.float32)


def _lstm_ref(xs, wih_t, whh_t, bias, hid, dt):
    B = xs.shape[1]

    def step(carry, x_t):
        h, c = carry
        gates = _mm(x_t, wih_t, dt) + _mm(h, whh_t, dt) + bias
        i = jax.nn.sigmoid(gates[:, :hid])
        f = jax.nn.sigmoid(gates[:, hid:2 * hid])
        g = jnp.tanh(gates[:, 2 * hid:3 * hid])
        o = jax.nn.sigmoid(gates[:, 3 * hid:])
        c = f * c + i * g
        h = o * jnp.tanh(c)
        return (h, c), h

    init = (jnp.zeros((B, hid), jnp.float32), jnp.zeros((B, hid), jnp.float32))
    (h, _), ys = jax.lax.scan(step, init, xs)
    return ys, h


def _ln_ref(v, g, b):
    mu = jnp.mean(v, axis=-1, keepdims=True)
    var = jnp.mean((v - mu) ** 2, axis=-1, keepdims=True)
    return (v - mu) * jax.lax.rsqrt(var + 1e-5) * g + b


def lstmae_reference(x, p, E, dt=jnp.bfloat16):
    H2 = 2 * E
    xs = jnp.transpose(x, (1, 0, 2))                               # (S, B, F)
    ys1, _ = _lstm_ref(xs, p["e1_wih"], p["e1_whh"], p["e1_b"], H2, dt)
    ys1 = _ln_ref(ys1, p["n1_g"], p["n1_b"])
    _, h_enc = _lstm_ref(ys1, p["e2_wih"], p["e2_whh"], p["e2_b"], E, dt)
    z = _ln_ref(h_enc, p["n2_g"], p["n2_b"])                       # (B, E)
    S = x.shape[1]
    zs = jnp.broadcast_to(z[None], (S,) + z.shape)                 # repeat over seq
    yd1, _ = _lstm_ref(zs, p["d1_wih"], p["d1_whh"], p["d1_b"], E, dt)
    yd2, _ = _lstm_ref(yd1, p["d2_wih"], p["d2_whh"], p["d2_b"], H2, dt)
    out = _mm(yd2, p["lin_w"], dt) + p["lin_b"]
    return jnp.transpose(out, (1, 0, 2))                           # (B, S, F)


# ----------------------------------------------------------------------------- main

if __name__ == "__main__":
    batch, seq_len, n_features, embedding_dim = 2, 8, 14, 32

    key = jax.random.PRNGKey(0)
    kx, kp = jax.random.split(key)
    x = jax.random.normal(kx, (batch, seq_len, n_features), dtype=jnp.float32)

    logical_params = make_logical_params(kp, n_features, embedding_dim)
    kernel_params = pad_params_for_kernel(logical_params, n_features, embedding_dim)

    out = jax.block_until_ready(lstmae_forward(x, kernel_params, embedding_dim=embedding_dim))
    assert out.shape == (batch, seq_len, n_features), out.shape

    ref = jax.block_until_ready(lstmae_reference(x, logical_params, embedding_dim))
    np.testing.assert_allclose(np.asarray(out), np.asarray(ref), rtol=5e-3, atol=5e-3)

    print("KERNEL_OK")
</pallas_src>

<mosaic_0001>
module attributes {stable_mosaic.version = 11 : i64} {
  func.func @lstmae_kernel(%arg0: memref<64x14xf32, #tpu.memory_space<vmem>>, %arg1: memref<14x512xbf16, #tpu.memory_space<vmem>>, %arg2: memref<128x512xbf16, #tpu.memory_space<vmem>>, %arg3: memref<1x512xf32, #tpu.memory_space<vmem>>, %arg4: memref<1x128xf32, #tpu.memory_space<vmem>>, %arg5: memref<1x128xf32, #tpu.memory_space<vmem>>, %arg6: memref<256x512xbf16, #tpu.memory_space<vmem>>, %arg7: memref<1x512xf32, #tpu.memory_space<vmem>>, %arg8: memref<1x128xf32, #tpu.memory_space<vmem>>, %arg9: memref<1x128xf32, #tpu.memory_space<vmem>>, %arg10: memref<128x512xbf16, #tpu.memory_space<vmem>>, %arg11: memref<128x512xbf16, #tpu.memory_space<vmem>>, %arg12: memref<1x512xf32, #tpu.memory_space<vmem>>, %arg13: memref<256x512xbf16, #tpu.memory_space<vmem>>, %arg14: memref<1x512xf32, #tpu.memory_space<vmem>>, %arg15: memref<128x128xbf16, #tpu.memory_space<vmem>>, %arg16: memref<1x128xf32, #tpu.memory_space<vmem>>, %arg17: memref<64x128xf32, #tpu.memory_space<vmem>>) attributes {dimension_semantics = [], scalar_prefetch = 0 : i64, scratch_operands = 0 : i64, tpu.core_type = #tpu.core_type<tc>} {
    %c0 = arith.constant 0 : index
    %c0_0 = arith.constant 0 : index
    %0 = vector.load %arg3[%c0, %c0_0] : memref<1x512xf32, #tpu.memory_space<vmem>>, vector<1x512xf32>
    %c0_1 = arith.constant 0 : index
    %c0_2 = arith.constant 0 : index
    %1 = vector.load %arg4[%c0_1, %c0_2] : memref<1x128xf32, #tpu.memory_space<vmem>>, vector<1x128xf32>
    %c0_3 = arith.constant 0 : index
    %c0_4 = arith.constant 0 : index
    %2 = vector.load %arg5[%c0_3, %c0_4] : memref<1x128xf32, #tpu.memory_space<vmem>>, vector<1x128xf32>
    %c0_5 = arith.constant 0 : index
    %c0_6 = arith.constant 0 : index
    %3 = vector.load %arg7[%c0_5, %c0_6] : memref<1x512xf32, #tpu.memory_space<vmem>>, vector<1x512xf32>
    %c0_7 = arith.constant 0 : index
    %c0_8 = arith.constant 0 : index
    %4 = vector.load %arg8[%c0_7, %c0_8] : memref<1x128xf32, #tpu.memory_space<vmem>>, vector<1x128xf32>
    %c0_9 = arith.constant 0 : index
    %c0_10 = arith.constant 0 : index
    %5 = vector.load %arg9[%c0_9, %c0_10] : memref<1x128xf32, #tpu.memory_space<vmem>>, vector<1x128xf32>
    %c0_11 = arith.constant 0 : index
    %c0_12 = arith.constant 0 : index
    %6 = vector.load %arg12[%c0_11, %c0_12] : memref<1x512xf32, #tpu.memory_space<vmem>>, vector<1x512xf32>
    %c0_13 = arith.constant 0 : index
    %c0_14 = arith.constant 0 : index
    %7 = vector.load %arg14[%c0_13, %c0_14] : memref<1x512xf32, #tpu.memory_space<vmem>>, vector<1x512xf32>
    %c0_15 = arith.constant 0 : index
    %c0_16 = arith.constant 0 : index
    %8 = vector.load %arg16[%c0_15, %c0_16] : memref<1x128xf32, #tpu.memory_space<vmem>>, vector<1x128xf32>
    %9 = tpu.iota {dimensions = array<i32: 1>} : vector<1x128xi32>
    %c64_i32 = arith.constant 64 : i32
    %10 = vector.broadcast %c64_i32 : i32 to vector<1x128xi32>
    %11 = arith.cmpi slt, %9, %10 : vector<1x128xi32>
    %12 = arith.extui %11 : vector<1x128xi1> to vector<1x128xi32>
    %13 = arith.sitofp %12 : vector<1x128xi32> to vector<1x128xf32>
    %14 = tpu.iota {dimensions = array<i32: 1>} : vector<1x128xi32>
    %c32_i32 = arith.constant 32 : i32
    %15 = vector.broadcast %c32_i32 : i32 to vector<1x128xi32>
    %16 = arith.cmpi slt, %14, %15 : vector<1x128xi32>
    %17 = arith.extui %16 : vector<1x128xi1> to vector<1x128xi32>
    %18 = arith.sitofp %17 : vector<1x128xi32> to vector<1x128xf32>
    %c0_17 = arith.constant 0 : index
    %c0_18 = arith.constant 0 : index
    %19 = vector.load %arg0[%c0_17, %c0_18] : memref<64x14xf32, #tpu.memory_space<vmem>>, vector<64x14xf32>
    %20 = arith.truncf %19 : vector<64x14xf32> to vector<64x14xbf16>
    %c0_19 = arith.constant 0 : index
    %c0_20 = arith.constant 0 : index
    %21 = vector.load %arg1[%c0_19, %c0_20] : memref<14x512xbf16, #tpu.memory_space<vmem>>, vector<14x512xbf16>
    %cst = arith.constant dense<0.000000e+00> : vector<64x512xf32>
    %22 = tpu.matmul %20, %21, %cst {dimension_numbers = #tpu.dot_dimension_numbers<[1], [0], [0], [1], [0, 0, 1, 1], [], []>} : vector<64x14xbf16>, vector<14x512xbf16>, vector<64x512xf32> -> vector<64x512xf32>
    %23 = vector.broadcast %0 : vector<1x512xf32> to vector<64x512xf32>
    %24 = arith.addf %22, %23 : vector<64x512xf32>
    %cst_21 = arith.constant 0.000000e+00 : f32
    %25 = vector.broadcast %cst_21 : f32 to vector<8x128xf32>
    %cst_22 = arith.constant 0.000000e+00 : f32
    %26 = vector.broadcast %cst_22 : f32 to vector<8x128xf32>
    %cst_23 = arith.constant 0.000000e+00 : f32
    %27 = vector.broadcast %cst_23 : f32 to vector<8x128xf32>
    %cst_24 = arith.constant 0.000000e+00 : f32
    %28 = vector.broadcast %cst_24 : f32 to vector<8x128xf32>
    %29 = vector.extract_strided_slice %24 {offsets = [0, 0], sizes = [8, 512], strides = [1, 1]} : vector<64x512xf32> to vector<8x512xf32>
    %30 = arith.truncf %25 : vector<8x128xf32> to vector<8x128xbf16>
    %c0_25 = arith.constant 0 : index
    %c0_26 = arith.constant 0 : index
    %31 = vector.load %arg2[%c0_25, %c0_26] : memref<128x512xbf16, #tpu.memory_space<vmem>>, vector<128x512xbf16>
    %cst_27 = arith.constant dense<0.000000e+00> : vector<8x512xf32>
    %32 = tpu.matmul %30, %31, %cst_27 {dimension_numbers = #tpu.dot_dimension_numbers<[1], [0], [0], [1], [0, 0, 1, 1], [], []>} : vector<8x128xbf16>, vector<128x512xbf16>, vector<8x512xf32> -> vector<8x512xf32>
    %33 = arith.addf %29, %32 : vector<8x512xf32>
    %34 = vector.extract_strided_slice %33 {offsets = [0, 0], sizes = [8, 128], strides = [1, 1]} : vector<8x512xf32> to vector<8x128xf32>
    %35 = arith.negf %34 : vector<8x128xf32>
    %36 = math.exp %35 : vector<8x128xf32>
    %cst_28 = arith.constant 1.000000e+00 : f32
    %37 = vector.broadcast %cst_28 : f32 to vector<8x128xf32>
    %38 = arith.addf %37, %36 : vector<8x128xf32>
    %39 = arith.divf %37, %38 : vector<8x128xf32>
    %40 = vector.extract_strided_slice %33 {offsets = [0, 128], sizes = [8, 128], strides = [1, 1]} : vector<8x512xf32> to vector<8x128xf32>
    %41 = arith.negf %40 : vector<8x128xf32>
    %42 = math.exp %41 : vector<8x128xf32>
    %cst_29 = arith.constant 1.000000e+00 : f32
    %43 = vector.broadcast %cst_29 : f32 to vector<8x128xf32>
    %44 = arith.addf %43, %42 : vector<8x128xf32>
    %45 = arith.divf %43, %44 : vector<8x128xf32>
    %46 = vector.extract_strided_slice %33 {offsets = [0, 256], sizes = [8, 128], strides = [1, 1]} : vector<8x512xf32> to vector<8x128xf32>
    %47 = math.tanh %46 : vector<8x128xf32>
    %48 = vector.extract_strided_slice %33 {offsets = [0, 384], sizes = [8, 128], strides = [1, 1]} : vector<8x512xf32> to vector<8x128xf32>
    %49 = arith.negf %48 : vector<8x128xf32>
    %50 = math.exp %49 : vector<8x128xf32>
    %cst_30 = arith.constant 1.000000e+00 : f32
    %51 = vector.broadcast %cst_30 : f32 to vector<8x128xf32>
    %52 = arith.addf %51, %50 : vector<8x128xf32>
    %53 = arith.divf %51, %52 : vector<8x128xf32>
    %54 = arith.mulf %45, %26 : vector<8x128xf32>
    %55 = arith.mulf %39, %47 : vector<8x128xf32>
    %56 = arith.addf %54, %55 : vector<8x128xf32>
    %57 = math.tanh %56 : vector<8x128xf32>
    %58 = arith.mulf %53, %57 : vector<8x128xf32>
    %cst_31 = arith.constant dense<0.000000e+00> : vector<8xf32>
    %59 = vector.multi_reduction <add>, %58, %cst_31 [1] : vector<8x128xf32> to vector<8xf32>
    %60 = vector.shape_cast %59 : vector<8xf32> to vector<8x1xf32>
    %cst_32 = arith.constant 6.400000e+01 : f32
    %61 = vector.broadcast %cst_32 : f32 to vector<8x1xf32>
    %62 = arith.divf %60, %61 : vector<8x1xf32>
    %63 = vector.broadcast %62 : vector<8x1xf32> to vector<8x128xf32>
    %64 = arith.subf %58, %63 : vector<8x128xf32>
    %65 = vector.broadcast %13 : vector<1x128xf32> to vector<8x128xf32>
    %66 = arith.mulf %64, %65 : vector<8x128xf32>
    %67 = arith.mulf %66, %66 : vector<8x128xf32>
    %cst_33 = arith.constant dense<0.000000e+00> : vector<8xf32>
    %68 = vector.multi_reduction <add>, %67, %cst_33 [1] : vector<8x128xf32> to vector<8xf32>
    %69 = vector.shape_cast %68 : vector<8xf32> to vector<8x1xf32>
    %cst_34 = arith.constant 6.400000e+01 : f32
    %70 = vector.broadcast %cst_34 : f32 to vector<8x1xf32>
    %71 = arith.divf %69, %70 : vector<8x1xf32>
    %cst_35 = arith.constant 9.99999974E-6 : f32
    %72 = vector.broadcast %cst_35 : f32 to vector<8x1xf32>
    %73 = arith.addf %71, %72 : vector<8x1xf32>
    %74 = math.rsqrt %73 : vector<8x1xf32>
    %75 = vector.broadcast %74 : vector<8x1xf32> to vector<8x128xf32>
    %76 = arith.mulf %66, %75 : vector<8x128xf32>
    %77 = vector.broadcast %1 : vector<1x128xf32> to vector<8x128xf32>
    %78 = arith.mulf %76, %77 : vector<8x128xf32>
    %79 = vector.broadcast %2 : vector<1x128xf32> to vector<8x128xf32>
    %80 = arith.addf %78, %79 : vector<8x128xf32>
    %81 = tpu.concatenate %80, %27 in 1 : vector<8x128xf32>, vector<8x128xf32> -> vector<8x256xf32>
    %82 = arith.truncf %81 : vector<8x256xf32> to vector<8x256xbf16>
    %c0_36 = arith.constant 0 : index
    %c0_37 = arith.constant 0 : index
    %83 = vector.load %arg6[%c0_36, %c0_37] : memref<256x512xbf16, #tpu.memory_space<vmem>>, vector<256x512xbf16>
    %cst_38 = arith.constant dense<0.000000e+00> : vector<8x512xf32>
    %84 = tpu.matmul %82, %83, %cst_38 {dimension_numbers = #tpu.dot_dimension_numbers<[1], [0], [0], [1], [0, 0, 1, 1], [], []>} : vector<8x256xbf16>, vector<256x512xbf16>, vector<8x512xf32> -> vector<8x512xf32>
    %85 = vector.broadcast %3 : vector<1x512xf32> to vector<8x512xf32>
    %86 = arith.addf %84, %85 : vector<8x512xf32>
    %87 = vector.extract_strided_slice %86 {offsets = [0, 0], sizes = [8, 128], strides = [1, 1]} : vector<8x512xf32> to vector<8x128xf32>
    %88 = arith.negf %87 : vector<8x128xf32>
    %89 = math.exp %88 : vector<8x128xf32>
    %cst_39 = arith.constant 1.000000e+00 : f32
    %90 = vector.broadcast %cst_39 : f32 to vector<8x128xf32>
    %91 = arith.addf %90, %89 : vector<8x128xf32>
    %92 = arith.divf %90, %91 : vector<8x128xf32>
    %93 = vector.extract_strided_slice %86 {offsets = [0, 128], sizes = [8, 128], strides = [1, 1]} : vector<8x512xf32> to vector<8x128xf32>
    %94 = arith.negf %93 : vector<8x128xf32>
    %95 = math.exp %94 : vector<8x128xf32>
    %cst_40 = arith.constant 1.000000e+00 : f32
    %96 = vector.broadcast %cst_40 : f32 to vector<8x128xf32>
    %97 = arith.addf %96, %95 : vector<8x128xf32>
    %98 = arith.divf %96, %97 : vector<8x128xf32>
    %99 = vector.extract_strided_slice %86 {offsets = [0, 256], sizes = [8, 128], strides = [1, 1]} : vector<8x512xf32> to vector<8x128xf32>
    %100 = math.tanh %99 : vector<8x128xf32>
    %101 = vector.extract_strided_slice %86 {offsets = [0, 384], sizes = [8, 128], strides = [1, 1]} : vector<8x512xf32> to vector<8x128xf32>
    %102 = arith.negf %101 : vector<8x128xf32>
    %103 = math.exp %102 : vector<8x128xf32>
    %cst_41 = arith.constant 1.000000e+00 : f32
    %104 = vector.broadcast %cst_41 : f32 to vector<8x128xf32>
    %105 = arith.addf %104, %103 : vector<8x128xf32>
    %106 = arith.divf %104, %105 : vector<8x128xf32>
    %107 = arith.mulf %98, %28 : vector<8x128xf32>
    %108 = arith.mulf %92, %100 : vector<8x128xf32>
    %109 = arith.addf %107, %108 : vector<8x128xf32>
    %110 = math.tanh %109 : vector<8x128xf32>
    %111 = arith.mulf %106, %110 : vector<8x128xf32>
    %112 = vector.extract_strided_slice %24 {offsets = [8, 0], sizes = [8, 512], strides = [1, 1]} : vector<64x512xf32> to vector<8x512xf32>
    %113 = arith.truncf %58 : vector<8x128xf32> to vector<8x128xbf16>
    %c0_42 = arith.constant 0 : index
    %c0_43 = arith.constant 0 : index
    %114 = vector.load %arg2[%c0_42, %c0_43] : memref<128x512xbf16, #tpu.memory_space<vmem>>, vector<128x512xbf16>
    %cst_44 = arith.constant dense<0.000000e+00> : vector<8x512xf32>
    %115 = tpu.matmul %113, %114, %cst_44 {dimension_numbers = #tpu.dot_dimension_numbers<[1], [0], [0], [1], [0, 0, 1, 1], [], []>} : vector<8x128xbf16>, vector<128x512xbf16>, vector<8x512xf32> -> vector<8x512xf32>
    %116 = arith.addf %112, %115 : vector<8x512xf32>
    %117 = vector.extract_strided_slice %116 {offsets = [0, 0], sizes = [8, 128], strides = [1, 1]} : vector<8x512xf32> to vector<8x128xf32>
    %118 = arith.negf %117 : vector<8x128xf32>
    %119 = math.exp %118 : vector<8x128xf32>
    %cst_45 = arith.constant 1.000000e+00 : f32
    %120 = vector.broadcast %cst_45 : f32 to vector<8x128xf32>
    %121 = arith.addf %120, %119 : vector<8x128xf32>
    %122 = arith.divf %120, %121 : vector<8x128xf32>
    %123 = vector.extract_strided_slice %116 {offsets = [0, 128], sizes = [8, 128], strides = [1, 1]} : vector<8x512xf32> to vector<8x128xf32>
    %124 = arith.negf %123 : vector<8x128xf32>
    %125 = math.exp %124 : vector<8x128xf32>
    %cst_46 = arith.constant 1.000000e+00 : f32
    %126 = vector.broadcast %cst_46 : f32 to vector<8x128xf32>
    %127 = arith.addf %126, %125 : vector<8x128xf32>
    %128 = arith.divf %126, %127 : vector<8x128xf32>
    %129 = vector.extract_strided_slice %116 {offsets = [0, 256], sizes = [8, 128], strides = [1, 1]} : vector<8x512xf32> to vector<8x128xf32>
    %130 = math.tanh %129 : vector<8x128xf32>
    %131 = vector.extract_strided_slice %116 {offsets = [0, 384], sizes = [8, 128], strides = [1, 1]} : vector<8x512xf32> to vector<8x128xf32>
    %132 = arith.negf %131 : vector<8x128xf32>
    %133 = math.exp %132 : vector<8x128xf32>
    %cst_47 = arith.constant 1.000000e+00 : f32
    %134 = vector.broadcast %cst_47 : f32 to vector<8x128xf32>
    %135 = arith.addf %134, %133 : vector<8x128xf32>
    %136 = arith.divf %134, %135 : vector<8x128xf32>
    %137 = arith.mulf %128, %56 : vector<8x128xf32>
    %138 = arith.mulf %122, %130 : vector<8x128xf32>
    %139 = arith.addf %137, %138 : vector<8x128xf32>
    %140 = math.tanh %139 : vector<8x128xf32>
    %141 = arith.mulf %136, %140 : vector<8x128xf32>
    %cst_48 = arith.constant dense<0.000000e+00> : vector<8xf32>
    %142 = vector.multi_reduction <add>, %141, %cst_48 [1] : vector<8x128xf32> to vector<8xf32>
    %143 = vector.shape_cast %142 : vector<8xf32> to vector<8x1xf32>
    %cst_49 = arith.constant 6.400000e+01 : f32
    %144 = vector.broadcast %cst_49 : f32 to vector<8x1xf32>
    %145 = arith.divf %143, %144 : vector<8x1xf32>
    %146 = vector.broadcast %145 : vector<8x1xf32> to vector<8x128xf32>
    %147 = arith.subf %141, %146 : vector<8x128xf32>
    %148 = vector.broadcast %13 : vector<1x128xf32> to vector<8x128xf32>
    %149 = arith.mulf %147, %148 : vector<8x128xf32>
    %150 = arith.mulf %149, %149 : vector<8x128xf32>
    %cst_50 = arith.constant dense<0.000000e+00> : vector<8xf32>
    %151 = vector.multi_reduction <add>, %150, %cst_50 [1] : vector<8x128xf32> to vector<8xf32>
    %152 = vector.shape_cast %151 : vector<8xf32> to vector<8x1xf32>
    %cst_51 = arith.constant 6.400000e+01 : f32
    %153 = vector.broadcast %cst_51 : f32 to vector<8x1xf32>
    %154 = arith.divf %152, %153 : vector<8x1xf32>
    %cst_52 = arith.constant 9.99999974E-6 : f32
    %155 = vector.broadcast %cst_52 : f32 to vector<8x1xf32>
    %156 = arith.addf %154, %155 : vector<8x1xf32>
    %157 = math.rsqrt %156 : vector<8x1xf32>
    %158 = vector.broadcast %157 : vector<8x1xf32> to vector<8x128xf32>
    %159 = arith.mulf %149, %158 : vector<8x128xf32>
    %160 = vector.broadcast %1 : vector<1x128xf32> to vector<8x128xf32>
    %161 = arith.mulf %159, %160 : vector<8x128xf32>
    %162 = vector.broadcast %2 : vector<1x128xf32> to vector<8x128xf32>
    %163 = arith.addf %161, %162 : vector<8x128xf32>
    %164 = tpu.concatenate %163, %111 in 1 : vector<8x128xf32>, vector<8x128xf32> -> vector<8x256xf32>
    %165 = arith.truncf %164 : vector<8x256xf32> to vector<8x256xbf16>
    %c0_53 = arith.constant 0 : index
    %c0_54 = arith.constant 0 : index
    %166 = vector.load %arg6[%c0_53, %c0_54] : memref<256x512xbf16, #tpu.memory_space<vmem>>, vector<256x512xbf16>
    %cst_55 = arith.constant dense<0.000000e+00> : vector<8x512xf32>
    %167 = tpu.matmul %165, %166, %cst_55 {dimension_numbers = #tpu.dot_dimension_numbers<[1], [0], [0], [1], [0, 0, 1, 1], [], []>} : vector<8x256xbf16>, vector<256x512xbf16>, vector<8x512xf32> -> vector<8x512xf32>
    %168 = vector.broadcast %3 : vector<1x512xf32> to vector<8x512xf32>
    %169 = arith.addf %167, %168 : vector<8x512xf32>
    %170 = vector.extract_strided_slice %169 {offsets = [0, 0], sizes = [8, 128], strides = [1, 1]} : vector<8x512xf32> to vector<8x128xf32>
    %171 = arith.negf %170 : vector<8x128xf32>
    %172 = math.exp %171 : vector<8x128xf32>
    %cst_56 = arith.constant 1.000000e+00 : f32
    %173 = vector.broadcast %cst_56 : f32 to vector<8x128xf32>
    %174 = arith.addf %173, %172 : vector<8x128xf32>
    %175 = arith.divf %173, %174 : vector<8x128xf32>
    %176 = vector.extract_strided_slice %169 {offsets = [0, 128], sizes = [8, 128], strides = [1, 1]} : vector<8x512xf32> to vector<8x128xf32>
    %177 = arith.negf %176 : vector<8x128xf32>
    %178 = math.exp %177 : vector<8x128xf32>
    %cst_57 = arith.constant 1.000000e+00 : f32
    %179 = vector.broadcast %cst_57 : f32 to vector<8x128xf32>
    %180 = arith.addf %179, %178 : vector<8x128xf32>
    %181 = arith.divf %179, %180 : vector<8x128xf32>
    %182 = vector.extract_strided_slice %169 {offsets = [0, 256], sizes = [8, 128], strides = [1, 1]} : vector<8x512xf32> to vector<8x128xf32>
    %183 = math.tanh %182 : vector<8x128xf32>
    %184 = vector.extract_strided_slice %169 {offsets = [0, 384], sizes = [8, 128], strides = [1, 1]} : vector<8x512xf32> to vector<8x128xf32>
    %185 = arith.negf %184 : vector<8x128xf32>
    %186 = math.exp %185 : vector<8x128xf32>
    %cst_58 = arith.constant 1.000000e+00 : f32
    %187 = vector.broadcast %cst_58 : f32 to vector<8x128xf32>
    %188 = arith.addf %187, %186 : vector<8x128xf32>
    %189 = arith.divf %187, %188 : vector<8x128xf32>
    %190 = arith.mulf %181, %109 : vector<8x128xf32>
    %191 = arith.mulf %175, %183 : vector<8x128xf32>
    %192 = arith.addf %190, %191 : vector<8x128xf32>
    %193 = math.tanh %192 : vector<8x128xf32>
    %194 = arith.mulf %189, %193 : vector<8x128xf32>
    %195 = vector.extract_strided_slice %24 {offsets = [16, 0], sizes = [8, 512], strides = [1, 1]} : vector<64x512xf32> to vector<8x512xf32>
    %196 = arith.truncf %141 : vector<8x128xf32> to vector<8x128xbf16>
    %c0_59 = arith.constant 0 : index
    %c0_60 = arith.constant 0 : index
    %197 = vector.load %arg2[%c0_59, %c0_60] : memref<128x512xbf16, #tpu.memory_space<vmem>>, vector<128x512xbf16>
    %cst_61 = arith.constant dense<0.000000e+00> : vector<8x512xf32>
    %198 = tpu.matmul %196, %197, %cst_61 {dimension_numbers = #tpu.dot_dimension_numbers<[1], [0], [0], [1], [0, 0, 1, 1], [], []>} : vector<8x128xbf16>, vector<128x512xbf16>, vector<8x512xf32> -> vector<8x512xf32>
    %199 = arith.addf %195, %198 : vector<8x512xf32>
    %200 = vector.extract_strided_slice %199 {offsets = [0, 0], sizes = [8, 128], strides = [1, 1]} : vector<8x512xf32> to vector<8x128xf32>
    %201 = arith.negf %200 : vector<8x128xf32>
    %202 = math.exp %201 : vector<8x128xf32>
    %cst_62 = arith.constant 1.000000e+00 : f32
    %203 = vector.broadcast %cst_62 : f32 to vector<8x128xf32>
    %204 = arith.addf %203, %202 : vector<8x128xf32>
    %205 = arith.divf %203, %204 : vector<8x128xf32>
    %206 = vector.extract_strided_slice %199 {offsets = [0, 128], sizes = [8, 128], strides = [1, 1]} : vector<8x512xf32> to vector<8x128xf32>
    %207 = arith.negf %206 : vector<8x128xf32>
    %208 = math.exp %207 : vector<8x128xf32>
    %cst_63 = arith.constant 1.000000e+00 : f32
    %209 = vector.broadcast %cst_63 : f32 to vector<8x128xf32>
    %210 = arith.addf %209, %208 : vector<8x128xf32>
    %211 = arith.divf %209, %210 : vector<8x128xf32>
    %212 = vector.extract_strided_slice %199 {offsets = [0, 256], sizes = [8, 128], strides = [1, 1]} : vector<8x512xf32> to vector<8x128xf32>
    %213 = math.tanh %212 : vector<8x128xf32>
    %214 = vector.extract_strided_slice %199 {offsets = [0, 384], sizes = [8, 128], strides = [1, 1]} : vector<8x512xf32> to vector<8x128xf32>
    %215 = arith.negf %214 : vector<8x128xf32>
    %216 = math.exp %215 : vector<8x128xf32>
    %cst_64 = arith.constant 1.000000e+00 : f32
    %217 = vector.broadcast %cst_64 : f32 to vector<8x128xf32>
    %218 = arith.addf %217, %216 : vector<8x128xf32>
    %219 = arith.divf %217, %218 : vector<8x128xf32>
    %220 = arith.mulf %211, %139 : vector<8x128xf32>
    %221 = arith.mulf %205, %213 : vector<8x128xf32>
    %222 = arith.addf %220, %221 : vector<8x128xf32>
    %223 = math.tanh %222 : vector<8x128xf32>
    %224 = arith.mulf %219, %223 : vector<8x128xf32>
    %cst_65 = arith.constant dense<0.000000e+00> : vector<8xf32>
    %225 = vector.multi_reduction <add>, %224, %cst_65 [1] : vector<8x128xf32> to vector<8xf32>
    %226 = vector.shape_cast %225 : vector<8xf32> to vector<8x1xf32>
    %cst_66 = arith.constant 6.400000e+01 : f32
    %227 = vector.broadcast %cst_66 : f32 to vector<8x1xf32>
    %228 = arith.divf %226, %227 : vector<8x1xf32>
    %229 = vector.broadcast %228 : vector<8x1xf32> to vector<8x128xf32>
    %230 = arith.subf %224, %229 : vector<8x128xf32>
    %231 = vector.broadcast %13 : vector<1x128xf32> to vector<8x128xf32>
    %232 = arith.mulf %230, %231 : vector<8x128xf32>
    %233 = arith.mulf %232, %232 : vector<8x128xf32>
    %cst_67 = arith.constant dense<0.000000e+00> : vector<8xf32>
    %234 = vector.multi_reduction <add>, %233, %cst_67 [1] : vector<8x128xf32> to vector<8xf32>
    %235 = vector.shape_cast %234 : vector<8xf32> to vector<8x1xf32>
    %cst_68 = arith.constant 6.400000e+01 : f32
    %236 = vector.broadcast %cst_68 : f32 to vector<8x1xf32>
    %237 = arith.divf %235, %236 : vector<8x1xf32>
    %cst_69 = arith.constant 9.99999974E-6 : f32
    %238 = vector.broadcast %cst_69 : f32 to vector<8x1xf32>
    %239 = arith.addf %237, %238 : vector<8x1xf32>
    %240 = math.rsqrt %239 : vector<8x1xf32>
    %241 = vector.broadcast %240 : vector<8x1xf32> to vector<8x128xf32>
    %242 = arith.mulf %232, %241 : vector<8x128xf32>
    %243 = vector.broadcast %1 : vector<1x128xf32> to vector<8x128xf32>
    %244 = arith.mulf %242, %243 : vector<8x128xf32>
    %245 = vector.broadcast %2 : vector<1x128xf32> to vector<8x128xf32>
    %246 = arith.addf %244, %245 : vector<8x128xf32>
    %247 = tpu.concatenate %246, %194 in 1 : vector<8x128xf32>, vector<8x128xf32> -> vector<8x256xf32>
    %248 = arith.truncf %247 : vector<8x256xf32> to vector<8x256xbf16>
    %c0_70 = arith.constant 0 : index
    %c0_71 = arith.constant 0 : index
    %249 = vector.load %arg6[%c0_70, %c0_71] : memref<256x512xbf16, #tpu.memory_space<vmem>>, vector<256x512xbf16>
    %cst_72 = arith.constant dense<0.000000e+00> : vector<8x512xf32>
    %250 = tpu.matmul %248, %249, %cst_72 {dimension_numbers = #tpu.dot_dimension_numbers<[1], [0], [0], [1], [0, 0, 1, 1], [], []>} : vector<8x256xbf16>, vector<256x512xbf16>, vector<8x512xf32> -> vector<8x512xf32>
    %251 = vector.broadcast %3 : vector<1x512xf32> to vector<8x512xf32>
    %252 = arith.addf %250, %251 : vector<8x512xf32>
    %253 = vector.extract_strided_slice %252 {offsets = [0, 0], sizes = [8, 128], strides = [1, 1]} : vector<8x512xf32> to vector<8x128xf32>
    %254 = arith.negf %253 : vector<8x128xf32>
    %255 = math.exp %254 : vector<8x128xf32>
    %cst_73 = arith.constant 1.000000e+00 : f32
    %256 = vector.broadcast %cst_73 : f32 to vector<8x128xf32>
    %257 = arith.addf %256, %255 : vector<8x128xf32>
    %258 = arith.divf %256, %257 : vector<8x128xf32>
    %259 = vector.extract_strided_slice %252 {offsets = [0, 128], sizes = [8, 128], strides = [1, 1]} : vector<8x512xf32> to vector<8x128xf32>
    %260 = arith.negf %259 : vector<8x128xf32>
    %261 = math.exp %260 : vector<8x128xf32>
    %cst_74 = arith.constant 1.000000e+00 : f32
    %262 = vector.broadcast %cst_74 : f32 to vector<8x128xf32>
    %263 = arith.addf %262, %261 : vector<8x128xf32>
    %264 = arith.divf %262, %263 : vector<8x128xf32>
    %265 = vector.extract_strided_slice %252 {offsets = [0, 256], sizes = [8, 128], strides = [1, 1]} : vector<8x512xf32> to vector<8x128xf32>
    %266 = math.tanh %265 : vector<8x128xf32>
    %267 = vector.extract_strided_slice %252 {offsets = [0, 384], sizes = [8, 128], strides = [1, 1]} : vector<8x512xf32> to vector<8x128xf32>
    %268 = arith.negf %267 : vector<8x128xf32>
    %269 = math.exp %268 : vector<8x128xf32>
    %cst_75 = arith.constant 1.000000e+00 : f32
    %270 = vector.broadcast %cst_75 : f32 to vector<8x128xf32>
    %271 = arith.addf %270, %269 : vector<8x128xf32>
    %272 = arith.divf %270, %271 : vector<8x128xf32>
    %273 = arith.mulf %264, %192 : vector<8x128xf32>
    %274 = arith.mulf %258, %266 : vector<8x128xf32>
    %275 = arith.addf %273, %274 : vector<8x128xf32>
    %276 = math.tanh %275 : vector<8x128xf32>
    %277 = arith.mulf %272, %276 : vector<8x128xf32>
    %278 = vector.extract_strided_slice %24 {offsets = [24, 0], sizes = [8, 512], strides = [1, 1]} : vector<64x512xf32> to vector<8x512xf32>
    %279 = arith.truncf %224 : vector<8x128xf32> to vector<8x128xbf16>
    %c0_76 = arith.constant 0 : index
    %c0_77 = arith.constant 0 : index
    %280 = vector.load %arg2[%c0_76, %c0_77] : memref<128x512xbf16, #tpu.memory_space<vmem>>, vector<128x512xbf16>
    %cst_78 = arith.constant dense<0.000000e+00> : vector<8x512xf32>
    %281 = tpu.matmul %279, %280, %cst_78 {dimension_numbers = #tpu.dot_dimension_numbers<[1], [0], [0], [1], [0, 0, 1, 1], [], []>} : vector<8x128xbf16>, vector<128x512xbf16>, vector<8x512xf32> -> vector<8x512xf32>
    %282 = arith.addf %278, %281 : vector<8x512xf32>
    %283 = vector.extract_strided_slice %282 {offsets = [0, 0], sizes = [8, 128], strides = [1, 1]} : vector<8x512xf32> to vector<8x128xf32>
    %284 = arith.negf %283 : vector<8x128xf32>
    %285 = math.exp %284 : vector<8x128xf32>
    %cst_79 = arith.constant 1.000000e+00 : f32
    %286 = vector.broadcast %cst_79 : f32 to vector<8x128xf32>
    %287 = arith.addf %286, %285 : vector<8x128xf32>
    %288 = arith.divf %286, %287 : vector<8x128xf32>
    %289 = vector.extract_strided_slice %282 {offsets = [0, 128], sizes = [8, 128], strides = [1, 1]} : vector<8x512xf32> to vector<8x128xf32>
    %290 = arith.negf %289 : vector<8x128xf32>
    %291 = math.exp %290 : vector<8x128xf32>
    %cst_80 = arith.constant 1.000000e+00 : f32
    %292 = vector.broadcast %cst_80 : f32 to vector<8x128xf32>
    %293 = arith.addf %292, %291 : vector<8x128xf32>
    %294 = arith.divf %292, %293 : vector<8x128xf32>
    %295 = vector.extract_strided_slice %282 {offsets = [0, 256], sizes = [8, 128], strides = [1, 1]} : vector<8x512xf32> to vector<8x128xf32>
    %296 = math.tanh %295 : vector<8x128xf32>
    %297 = vector.extract_strided_slice %282 {offsets = [0, 384], sizes = [8, 128], strides = [1, 1]} : vector<8x512xf32> to vector<8x128xf32>
    %298 = arith.negf %297 : vector<8x128xf32>
    %299 = math.exp %298 : vector<8x128xf32>
    %cst_81 = arith.constant 1.000000e+00 : f32
    %300 = vector.broadcast %cst_81 : f32 to vector<8x128xf32>
    %301 = arith.addf %300, %299 : vector<8x128xf32>
    %302 = arith.divf %300, %301 : vector<8x128xf32>
    %303 = arith.mulf %294, %222 : vector<8x128xf32>
    %304 = arith.mulf %288, %296 : vector<8x128xf32>
    %305 = arith.addf %303, %304 : vector<8x128xf32>
    %306 = math.tanh %305 : vector<8x128xf32>
    %307 = arith.mulf %302, %306 : vector<8x128xf32>
    %cst_82 = arith.constant dense<0.000000e+00> : vector<8xf32>
    %308 = vector.multi_reduction <add>, %307, %cst_82 [1] : vector<8x128xf32> to vector<8xf32>
    %309 = vector.shape_cast %308 : vector<8xf32> to vector<8x1xf32>
    %cst_83 = arith.constant 6.400000e+01 : f32
    %310 = vector.broadcast %cst_83 : f32 to vector<8x1xf32>
    %311 = arith.divf %309, %310 : vector<8x1xf32>
    %312 = vector.broadcast %311 : vector<8x1xf32> to vector<8x128xf32>
    %313 = arith.subf %307, %312 : vector<8x128xf32>
    %314 = vector.broadcast %13 : vector<1x128xf32> to vector<8x128xf32>
    %315 = arith.mulf %313, %314 : vector<8x128xf32>
    %316 = arith.mulf %315, %315 : vector<8x128xf32>
    %cst_84 = arith.constant dense<0.000000e+00> : vector<8xf32>
    %317 = vector.multi_reduction <add>, %316, %cst_84 [1] : vector<8x128xf32> to vector<8xf32>
    %318 = vector.shape_cast %317 : vector<8xf32> to vector<8x1xf32>
    %cst_85 = arith.constant 6.400000e+01 : f32
    %319 = vector.broadcast %cst_85 : f32 to vector<8x1xf32>
    %320 = arith.divf %318, %319 : vector<8x1xf32>
    %cst_86 = arith.constant 9.99999974E-6 : f32
    %321 = vector.broadcast %cst_86 : f32 to vector<8x1xf32>
    %322 = arith.addf %320, %321 : vector<8x1xf32>
    %323 = math.rsqrt %322 : vector<8x1xf32>
    %324 = vector.broadcast %323 : vector<8x1xf32> to vector<8x128xf32>
    %325 = arith.mulf %315, %324 : vector<8x128xf32>
    %326 = vector.broadcast %1 : vector<1x128xf32> to vector<8x128xf32>
    %327 = arith.mulf %325, %326 : vector<8x128xf32>
    %328 = vector.broadcast %2 : vector<1x128xf32> to vector<8x128xf32>
    %329 = arith.addf %327, %328 : vector<8x128xf32>
    %330 = tpu.concatenate %329, %277 in 1 : vector<8x128xf32>, vector<8x128xf32> -> vector<8x256xf32>
    %331 = arith.truncf %330 : vector<8x256xf32> to vector<8x256xbf16>
    %c0_87 = arith.constant 0 : index
    %c0_88 = arith.constant 0 : index
    %332 = vector.load %arg6[%c0_87, %c0_88] : memref<256x512xbf16, #tpu.memory_space<vmem>>, vector<256x512xbf16>
    %cst_89 = arith.constant dense<0.000000e+00> : vector<8x512xf32>
    %333 = tpu.matmul %331, %332, %cst_89 {dimension_numbers = #tpu.dot_dimension_numbers<[1], [0], [0], [1], [0, 0, 1, 1], [], []>} : vector<8x256xbf16>, vector<256x512xbf16>, vector<8x512xf32> -> vector<8x512xf32>
    %334 = vector.broadcast %3 : vector<1x512xf32> to vector<8x512xf32>
    %335 = arith.addf %333, %334 : vector<8x512xf32>
    %336 = vector.extract_strided_slice %335 {offsets = [0, 0], sizes = [8, 128], strides = [1, 1]} : vector<8x512xf32> to vector<8x128xf32>
    %337 = arith.negf %336 : vector<8x128xf32>
    %338 = math.exp %337 : vector<8x128xf32>
    %cst_90 = arith.constant 1.000000e+00 : f32
    %339 = vector.broadcast %cst_90 : f32 to vector<8x128xf32>
    %340 = arith.addf %339, %338 : vector<8x128xf32>
    %341 = arith.divf %339, %340 : vector<8x128xf32>
    %342 = vector.extract_strided_slice %335 {offsets = [0, 128], sizes = [8, 128], strides = [1, 1]} : vector<8x512xf32> to vector<8x128xf32>
    %343 = arith.negf %342 : vector<8x128xf32>
    %344 = math.exp %343 : vector<8x128xf32>
    %cst_91 = arith.constant 1.000000e+00 : f32
    %345 = vector.broadcast %cst_91 : f32 to vector<8x128xf32>
    %346 = arith.addf %345, %344 : vector<8x128xf32>
    %347 = arith.divf %345, %346 : vector<8x128xf32>
    %348 = vector.extract_strided_slice %335 {offsets = [0, 256], sizes = [8, 128], strides = [1, 1]} : vector<8x512xf32> to vector<8x128xf32>
    %349 = math.tanh %348 : vector<8x128xf32>
    %350 = vector.extract_strided_slice %335 {offsets = [0, 384], sizes = [8, 128], strides = [1, 1]} : vector<8x512xf32> to vector<8x128xf32>
    %351 = arith.negf %350 : vector<8x128xf32>
    %352 = math.exp %351 : vector<8x128xf32>
    %cst_92 = arith.constant 1.000000e+00 : f32
    %353 = vector.broadcast %cst_92 : f32 to vector<8x128xf32>
    %354 = arith.addf %353, %352 : vector<8x128xf32>
    %355 = arith.divf %353, %354 : vector<8x128xf32>
    %356 = arith.mulf %347, %275 : vector<8x128xf32>
    %357 = arith.mulf %341, %349 : vector<8x128xf32>
    %358 = arith.addf %356, %357 : vector<8x128xf32>
    %359 = math.tanh %358 : vector<8x128xf32>
    %360 = arith.mulf %355, %359 : vector<8x128xf32>
    %361 = vector.extract_strided_slice %24 {offsets = [32, 0], sizes = [8, 512], strides = [1, 1]} : vector<64x512xf32> to vector<8x512xf32>
    %362 = arith.truncf %307 : vector<8x128xf32> to vector<8x128xbf16>
    %c0_93 = arith.constant 0 : index
    %c0_94 = arith.constant 0 : index
    %363 = vector.load %arg2[%c0_93, %c0_94] : memref<128x512xbf16, #tpu.memory_space<vmem>>, vector<128x512xbf16>
    %cst_95 = arith.constant dense<0.000000e+00> : vector<8x512xf32>
    %364 = tpu.matmul %362, %363, %cst_95 {dimension_numbers = #tpu.dot_dimension_numbers<[1], [0], [0], [1], [0, 0, 1, 1], [], []>} : vector<8x128xbf16>, vector<128x512xbf16>, vector<8x512xf32> -> vector<8x512xf32>
    %365 = arith.addf %361, %364 : vector<8x512xf32>
    %366 = vector.extract_strided_slice %365 {offsets = [0, 0], sizes = [8, 128], strides = [1, 1]} : vector<8x512xf32> to vector<8x128xf32>
    %367 = arith.negf %366 : vector<8x128xf32>
    %368 = math.exp %367 : vector<8x128xf32>
    %cst_96 = arith.constant 1.000000e+00 : f32
    %369 = vector.broadcast %cst_96 : f32 to vector<8x128xf32>
    %370 = arith.addf %369, %368 : vector<8x128xf32>
    %371 = arith.divf %369, %370 : vector<8x128xf32>
    %372 = vector.extract_strided_slice %365 {offsets = [0, 128], sizes = [8, 128], strides = [1, 1]} : vector<8x512xf32> to vector<8x128xf32>
    %373 = arith.negf %372 : vector<8x128xf32>
    %374 = math.exp %373 : vector<8x128xf32>
    %cst_97 = arith.constant 1.000000e+00 : f32
    %375 = vector.broadcast %cst_97 : f32 to vector<8x128xf32>
    %376 = arith.addf %375, %374 : vector<8x128xf32>
    %377 = arith.divf %375, %376 : vector<8x128xf32>
    %378 = vector.extract_strided_slice %365 {offsets = [0, 256], sizes = [8, 128], strides = [1, 1]} : vector<8x512xf32> to vector<8x128xf32>
    %379 = math.tanh %378 : vector<8x128xf32>
    %380 = vector.extract_strided_slice %365 {offsets = [0, 384], sizes = [8, 128], strides = [1, 1]} : vector<8x512xf32> to vector<8x128xf32>
    %381 = arith.negf %380 : vector<8x128xf32>
    %382 = math.exp %381 : vector<8x128xf32>
    %cst_98 = arith.constant 1.000000e+00 : f32
    %383 = vector.broadcast %cst_98 : f32 to vector<8x128xf32>
    %384 = arith.addf %383, %382 : vector<8x128xf32>
    %385 = arith.divf %383, %384 : vector<8x128xf32>
    %386 = arith.mulf %377, %305 : vector<8x128xf32>
    %387 = arith.mulf %371, %379 : vector<8x128xf32>
    %388 = arith.addf %386, %387 : vector<8x128xf32>
    %389 = math.tanh %388 : vector<8x128xf32>
    %390 = arith.mulf %385, %389 : vector<8x128xf32>
    %cst_99 = arith.constant dense<0.000000e+00> : vector<8xf32>
    %391 = vector.multi_reduction <add>, %390, %cst_99 [1] : vector<8x128xf32> to vector<8xf32>
    %392 = vector.shape_cast %391 : vector<8xf32> to vector<8x1xf32>
    %cst_100 = arith.constant 6.400000e+01 : f32
    %393 = vector.broadcast %cst_100 : f32 to vector<8x1xf32>
    %394 = arith.divf %392, %393 : vector<8x1xf32>
    %395 = vector.broadcast %394 : vector<8x1xf32> to vector<8x128xf32>
    %396 = arith.subf %390, %395 : vector<8x128xf32>
    %397 = vector.broadcast %13 : vector<1x128xf32> to vector<8x128xf32>
    %398 = arith.mulf %396, %397 : vector<8x128xf32>
    %399 = arith.mulf %398, %398 : vector<8x128xf32>
    %cst_101 = arith.constant dense<0.000000e+00> : vector<8xf32>
    %400 = vector.multi_reduction <add>, %399, %cst_101 [1] : vector<8x128xf32> to vector<8xf32>
    %401 = vector.shape_cast %400 : vector<8xf32> to vector<8x1xf32>
    %cst_102 = arith.constant 6.400000e+01 : f32
    %402 = vector.broadcast %cst_102 : f32 to vector<8x1xf32>
    %403 = arith.divf %401, %402 : vector<8x1xf32>
    %cst_103 = arith.constant 9.99999974E-6 : f32
    %404 = vector.broadcast %cst_103 : f32 to vector<8x1xf32>
    %405 = arith.addf %403, %404 : vector<8x1xf32>
    %406 = math.rsqrt %405 : vector<8x1xf32>
    %407 = vector.broadcast %406 : vector<8x1xf32> to vector<8x128xf32>
    %408 = arith.mulf %398, %407 : vector<8x128xf32>
    %409 = vector.broadcast %1 : vector<1x128xf32> to vector<8x128xf32>
    %410 = arith.mulf %408, %409 : vector<8x128xf32>
    %411 = vector.broadcast %2 : vector<1x128xf32> to vector<8x128xf32>
    %412 = arith.addf %410, %411 : vector<8x128xf32>
    %413 = tpu.concatenate %412, %360 in 1 : vector<8x128xf32>, vector<8x128xf32> -> vector<8x256xf32>
    %414 = arith.truncf %413 : vector<8x256xf32> to vector<8x256xbf16>
    %c0_104 = arith.constant 0 : index
    %c0_105 = arith.constant 0 : index
    %415 = vector.load %arg6[%c0_104, %c0_105] : memref<256x512xbf16, #tpu.memory_space<vmem>>, vector<256x512xbf16>
    %cst_106 = arith.constant dense<0.000000e+00> : vector<8x512xf32>
    %416 = tpu.matmul %414, %415, %cst_106 {dimension_numbers = #tpu.dot_dimension_numbers<[1], [0], [0], [1], [0, 0, 1, 1], [], []>} : vector<8x256xbf16>, vector<256x512xbf16>, vector<8x512xf32> -> vector<8x512xf32>
    %417 = vector.broadcast %3 : vector<1x512xf32> to vector<8x512xf32>
    %418 = arith.addf %416, %417 : vector<8x512xf32>
    %419 = vector.extract_strided_slice %418 {offsets = [0, 0], sizes = [8, 128], strides = [1, 1]} : vector<8x512xf32> to vector<8x128xf32>
    %420 = arith.negf %419 : vector<8x128xf32>
    %421 = math.exp %420 : vector<8x128xf32>
    %cst_107 = arith.constant 1.000000e+00 : f32
    %422 = vector.broadcast %cst_107 : f32 to vector<8x128xf32>
    %423 = arith.addf %422, %421 : vector<8x128xf32>
    %424 = arith.divf %422, %423 : vector<8x128xf32>
    %425 = vector.extract_strided_slice %418 {offsets = [0, 128], sizes = [8, 128], strides = [1, 1]} : vector<8x512xf32> to vector<8x128xf32>
    %426 = arith.negf %425 : vector<8x128xf32>
    %427 = math.exp %426 : vector<8x128xf32>
    %cst_108 = arith.constant 1.000000e+00 : f32
    %428 = vector.broadcast %cst_108 : f32 to vector<8x128xf32>
    %429 = arith.addf %428, %427 : vector<8x128xf32>
    %430 = arith.divf %428, %429 : vector<8x128xf32>
    %431 = vector.extract_strided_slice %418 {offsets = [0, 256], sizes = [8, 128], strides = [1, 1]} : vector<8x512xf32> to vector<8x128xf32>
    %432 = math.tanh %431 : vector<8x128xf32>
    %433 = vector.extract_strided_slice %418 {offsets = [0, 384], sizes = [8, 128], strides = [1, 1]} : vector<8x512xf32> to vector<8x128xf32>
    %434 = arith.negf %433 : vector<8x128xf32>
    %435 = math.exp %434 : vector<8x128xf32>
    %cst_109 = arith.constant 1.000000e+00 : f32
    %436 = vector.broadcast %cst_109 : f32 to vector<8x128xf32>
    %437 = arith.addf %436, %435 : vector<8x128xf32>
    %438 = arith.divf %436, %437 : vector<8x128xf32>
    %439 = arith.mulf %430, %358 : vector<8x128xf32>
    %440 = arith.mulf %424, %432 : vector<8x128xf32>
    %441 = arith.addf %439, %440 : vector<8x128xf32>
    %442 = math.tanh %441 : vector<8x128xf32>
    %443 = arith.mulf %438, %442 : vector<8x128xf32>
    %444 = vector.extract_strided_slice %24 {offsets = [40, 0], sizes = [8, 512], strides = [1, 1]} : vector<64x512xf32> to vector<8x512xf32>
    %445 = arith.truncf %390 : vector<8x128xf32> to vector<8x128xbf16>
    %c0_110 = arith.constant 0 : index
    %c0_111 = arith.constant 0 : index
    %446 = vector.load %arg2[%c0_110, %c0_111] : memref<128x512xbf16, #tpu.memory_space<vmem>>, vector<128x512xbf16>
    %cst_112 = arith.constant dense<0.000000e+00> : vector<8x512xf32>
    %447 = tpu.matmul %445, %446, %cst_112 {dimension_numbers = #tpu.dot_dimension_numbers<[1], [0], [0], [1], [0, 0, 1, 1], [], []>} : vector<8x128xbf16>, vector<128x512xbf16>, vector<8x512xf32> -> vector<8x512xf32>
    %448 = arith.addf %444, %447 : vector<8x512xf32>
    %449 = vector.extract_strided_slice %448 {offsets = [0, 0], sizes = [8, 128], strides = [1, 1]} : vector<8x512xf32> to vector<8x128xf32>
    %450 = arith.negf %449 : vector<8x128xf32>
    %451 = math.exp %450 : vector<8x128xf32>
    %cst_113 = arith.constant 1.000000e+00 : f32
    %452 = vector.broadcast %cst_113 : f32 to vector<8x128xf32>
    %453 = arith.addf %452, %451 : vector<8x128xf32>
    %454 = arith.divf %452, %453 : vector<8x128xf32>
    %455 = vector.extract_strided_slice %448 {offsets = [0, 128], sizes = [8, 128], strides = [1, 1]} : vector<8x512xf32> to vector<8x128xf32>
    %456 = arith.negf %455 : vector<8x128xf32>
    %457 = math.exp %456 : vector<8x128xf32>
    %cst_114 = arith.constant 1.000000e+00 : f32
    %458 = vector.broadcast %cst_114 : f32 to vector<8x128xf32>
    %459 = arith.addf %458, %457 : vector<8x128xf32>
    %460 = arith.divf %458, %459 : vector<8x128xf32>
    %461 = vector.extract_strided_slice %448 {offsets = [0, 256], sizes = [8, 128], strides = [1, 1]} : vector<8x512xf32> to vector<8x128xf32>
    %462 = math.tanh %461 : vector<8x128xf32>
    %463 = vector.extract_strided_slice %448 {offsets = [0, 384], sizes = [8, 128], strides = [1, 1]} : vector<8x512xf32> to vector<8x128xf32>
    %464 = arith.negf %463 : vector<8x128xf32>
    %465 = math.exp %464 : vector<8x128xf32>
    %cst_115 = arith.constant 1.000000e+00 : f32
    %466 = vector.broadcast %cst_115 : f32 to vector<8x128xf32>
    %467 = arith.addf %466, %465 : vector<8x128xf32>
    %468 = arith.divf %466, %467 : vector<8x128xf32>
    %469 = arith.mulf %460, %388 : vector<8x128xf32>
    %470 = arith.mulf %454, %462 : vector<8x128xf32>
    %471 = arith.addf %469, %470 : vector<8x128xf32>
    %472 = math.tanh %471 : vector<8x128xf32>
    %473 = arith.mulf %468, %472 : vector<8x128xf32>
    %cst_116 = arith.constant dense<0.000000e+00> : vector<8xf32>
    %474 = vector.multi_reduction <add>, %473, %cst_116 [1] : vector<8x128xf32> to vector<8xf32>
    %475 = vector.shape_cast %474 : vector<8xf32> to vector<8x1xf32>
    %cst_117 = arith.constant 6.400000e+01 : f32
    %476 = vector.broadcast %cst_117 : f32 to vector<8x1xf32>
    %477 = arith.divf %475, %476 : vector<8x1xf32>
    %478 = vector.broadcast %477 : vector<8x1xf32> to vector<8x128xf32>
    %479 = arith.subf %473, %478 : vector<8x128xf32>
    %480 = vector.broadcast %13 : vector<1x128xf32> to vector<8x128xf32>
    %481 = arith.mulf %479, %480 : vector<8x128xf32>
    %482 = arith.mulf %481, %481 : vector<8x128xf32>
    %cst_118 = arith.constant dense<0.000000e+00> : vector<8xf32>
    %483 = vector.multi_reduction <add>, %482, %cst_118 [1] : vector<8x128xf32> to vector<8xf32>
    %484 = vector.shape_cast %483 : vector<8xf32> to vector<8x1xf32>
    %cst_119 = arith.constant 6.400000e+01 : f32
    %485 = vector.broadcast %cst_119 : f32 to vector<8x1xf32>
    %486 = arith.divf %484, %485 : vector<8x1xf32>
    %cst_120 = arith.constant 9.99999974E-6 : f32
    %487 = vector.broadcast %cst_120 : f32 to vector<8x1xf32>
    %488 = arith.addf %486, %487 : vector<8x1xf32>
    %489 = math.rsqrt %488 : vector<8x1xf32>
    %490 = vector.broadcast %489 : vector<8x1xf32> to vector<8x128xf32>
    %491 = arith.mulf %481, %490 : vector<8x128xf32>
    %492 = vector.broadcast %1 : vector<1x128xf32> to vector<8x128xf32>
    %493 = arith.mulf %491, %492 : vector<8x128xf32>
    %494 = vector.broadcast %2 : vector<1x128xf32> to vector<8x128xf32>
    %495 = arith.addf %493, %494 : vector<8x128xf32>
    %496 = tpu.concatenate %495, %443 in 1 : vector<8x128xf32>, vector<8x128xf32> -> vector<8x256xf32>
    %497 = arith.truncf %496 : vector<8x256xf32> to vector<8x256xbf16>
    %c0_121 = arith.constant 0 : index
    %c0_122 = arith.constant 0 : index
    %498 = vector.load %arg6[%c0_121, %c0_122] : memref<256x512xbf16, #tpu.memory_space<vmem>>, vector<256x512xbf16>
    %cst_123 = arith.constant dense<0.000000e+00> : vector<8x512xf32>
    %499 = tpu.matmul %497, %498, %cst_123 {dimension_numbers = #tpu.dot_dimension_numbers<[1], [0], [0], [1], [0, 0, 1, 1], [], []>} : vector<8x256xbf16>, vector<256x512xbf16>, vector<8x512xf32> -> vector<8x512xf32>
    %500 = vector.broadcast %3 : vector<1x512xf32> to vector<8x512xf32>
    %501 = arith.addf %499, %500 : vector<8x512xf32>
    %502 = vector.extract_strided_slice %501 {offsets = [0, 0], sizes = [8, 128], strides = [1, 1]} : vector<8x512xf32> to vector<8x128xf32>
    %503 = arith.negf %502 : vector<8x128xf32>
    %504 = math.exp %503 : vector<8x128xf32>
    %cst_124 = arith.constant 1.000000e+00 : f32
    %505 = vector.broadcast %cst_124 : f32 to vector<8x128xf32>
    %506 = arith.addf %505, %504 : vector<8x128xf32>
    %507 = arith.divf %505, %506 : vector<8x128xf32>
    %508 = vector.extract_strided_slice %501 {offsets = [0, 128], sizes = [8, 128], strides = [1, 1]} : vector<8x512xf32> to vector<8x128xf32>
    %509 = arith.negf %508 : vector<8x128xf32>
    %510 = math.exp %509 : vector<8x128xf32>
    %cst_125 = arith.constant 1.000000e+00 : f32
    %511 = vector.broadcast %cst_125 : f32 to vector<8x128xf32>
    %512 = arith.addf %511, %510 : vector<8x128xf32>
    %513 = arith.divf %511, %512 : vector<8x128xf32>
    %514 = vector.extract_strided_slice %501 {offsets = [0, 256], sizes = [8, 128], strides = [1, 1]} : vector<8x512xf32> to vector<8x128xf32>
    %515 = math.tanh %514 : vector<8x128xf32>
    %516 = vector.extract_strided_slice %501 {offsets = [0, 384], sizes = [8, 128], strides = [1, 1]} : vector<8x512xf32> to vector<8x128xf32>
    %517 = arith.negf %516 : vector<8x128xf32>
    %518 = math.exp %517 : vector<8x128xf32>
    %cst_126 = arith.constant 1.000000e+00 : f32
    %519 = vector.broadcast %cst_126 : f32 to vector<8x128xf32>
    %520 = arith.addf %519, %518 : vector<8x128xf32>
    %521 = arith.divf %519, %520 : vector<8x128xf32>
    %522 = arith.mulf %513, %441 : vector<8x128xf32>
    %523 = arith.mulf %507, %515 : vector<8x128xf32>
    %524 = arith.addf %522, %523 : vector<8x128xf32>
    %525 = math.tanh %524 : vector<8x128xf32>
    %526 = arith.mulf %521, %525 : vector<8x128xf32>
    %527 = vector.extract_strided_slice %24 {offsets = [48, 0], sizes = [8, 512], strides = [1, 1]} : vector<64x512xf32> to vector<8x512xf32>
    %528 = arith.truncf %473 : vector<8x128xf32> to vector<8x128xbf16>
    %c0_127 = arith.constant 0 : index
    %c0_128 = arith.constant 0 : index
    %529 = vector.load %arg2[%c0_127, %c0_128] : memref<128x512xbf16, #tpu.memory_space<vmem>>, vector<128x512xbf16>
    %cst_129 = arith.constant dense<0.000000e+00> : vector<8x512xf32>
    %530 = tpu.matmul %528, %529, %cst_129 {dimension_numbers = #tpu.dot_dimension_numbers<[1], [0], [0], [1], [0, 0, 1, 1], [], []>} : vector<8x128xbf16>, vector<128x512xbf16>, vector<8x512xf32> -> vector<8x512xf32>
    %531 = arith.addf %527, %530 : vector<8x512xf32>
    %532 = vector.extract_strided_slice %531 {offsets = [0, 0], sizes = [8, 128], strides = [1, 1]} : vector<8x512xf32> to vector<8x128xf32>
    %533 = arith.negf %532 : vector<8x128xf32>
    %534 = math.exp %533 : vector<8x128xf32>
    %cst_130 = arith.constant 1.000000e+00 : f32
    %535 = vector.broadcast %cst_130 : f32 to vector<8x128xf32>
    %536 = arith.addf %535, %534 : vector<8x128xf32>
    %537 = arith.divf %535, %536 : vector<8x128xf32>
    %538 = vector.extract_strided_slice %531 {offsets = [0, 128], sizes = [8, 128], strides = [1, 1]} : vector<8x512xf32> to vector<8x128xf32>
    %539 = arith.negf %538 : vector<8x128xf32>
    %540 = math.exp %539 : vector<8x128xf32>
    %cst_131 = arith.constant 1.000000e+00 : f32
    %541 = vector.broadcast %cst_131 : f32 to vector<8x128xf32>
    %542 = arith.addf %541, %540 : vector<8x128xf32>
    %543 = arith.divf %541, %542 : vector<8x128xf32>
    %544 = vector.extract_strided_slice %531 {offsets = [0, 256], sizes = [8, 128], strides = [1, 1]} : vector<8x512xf32> to vector<8x128xf32>
    %545 = math.tanh %544 : vector<8x128xf32>
    %546 = vector.extract_strided_slice %531 {offsets = [0, 384], sizes = [8, 128], strides = [1, 1]} : vector<8x512xf32> to vector<8x128xf32>
    %547 = arith.negf %546 : vector<8x128xf32>
    %548 = math.exp %547 : vector<8x128xf32>
    %cst_132 = arith.constant 1.000000e+00 : f32
    %549 = vector.broadcast %cst_132 : f32 to vector<8x128xf32>
    %550 = arith.addf %549, %548 : vector<8x128xf32>
    %551 = arith.divf %549, %550 : vector<8x128xf32>
    %552 = arith.mulf %543, %471 : vector<8x128xf32>
    %553 = arith.mulf %537, %545 : vector<8x128xf32>
    %554 = arith.addf %552, %553 : vector<8x128xf32>
    %555 = math.tanh %554 : vector<8x128xf32>
    %556 = arith.mulf %551, %555 : vector<8x128xf32>
    %cst_133 = arith.constant dense<0.000000e+00> : vector<8xf32>
    %557 = vector.multi_reduction <add>, %556, %cst_133 [1] : vector<8x128xf32> to vector<8xf32>
    %558 = vector.shape_cast %557 : vector<8xf32> to vector<8x1xf32>
    %cst_134 = arith.constant 6.400000e+01 : f32
    %559 = vector.broadcast %cst_134 : f32 to vector<8x1xf32>
    %560 = arith.divf %558, %559 : vector<8x1xf32>
    %561 = vector.broadcast %560 : vector<8x1xf32> to vector<8x128xf32>
    %562 = arith.subf %556, %561 : vector<8x128xf32>
    %563 = vector.broadcast %13 : vector<1x128xf32> to vector<8x128xf32>
    %564 = arith.mulf %562, %563 : vector<8x128xf32>
    %565 = arith.mulf %564, %564 : vector<8x128xf32>
    %cst_135 = arith.constant dense<0.000000e+00> : vector<8xf32>
    %566 = vector.multi_reduction <add>, %565, %cst_135 [1] : vector<8x128xf32> to vector<8xf32>
    %567 = vector.shape_cast %566 : vector<8xf32> to vector<8x1xf32>
    %cst_136 = arith.constant 6.400000e+01 : f32
    %568 = vector.broadcast %cst_136 : f32 to vector<8x1xf32>
    %569 = arith.divf %567, %568 : vector<8x1xf32>
    %cst_137 = arith.constant 9.99999974E-6 : f32
    %570 = vector.broadcast %cst_137 : f32 to vector<8x1xf32>
    %571 = arith.addf %569, %570 : vector<8x1xf32>
    %572 = math.rsqrt %571 : vector<8x1xf32>
    %573 = vector.broadcast %572 : vector<8x1xf32> to vector<8x128xf32>
    %574 = arith.mulf %564, %573 : vector<8x128xf32>
    %575 = vector.broadcast %1 : vector<1x128xf32> to vector<8x128xf32>
    %576 = arith.mulf %574, %575 : vector<8x128xf32>
    %577 = vector.broadcast %2 : vector<1x128xf32> to vector<8x128xf32>
    %578 = arith.addf %576, %577 : vector<8x128xf32>
    %579 = tpu.concatenate %578, %526 in 1 : vector<8x128xf32>, vector<8x128xf32> -> vector<8x256xf32>
    %580 = arith.truncf %579 : vector<8x256xf32> to vector<8x256xbf16>
    %c0_138 = arith.constant 0 : index
    %c0_139 = arith.constant 0 : index
    %581 = vector.load %arg6[%c0_138, %c0_139] : memref<256x512xbf16, #tpu.memory_space<vmem>>, vector<256x512xbf16>
    %cst_140 = arith.constant dense<0.000000e+00> : vector<8x512xf32>
    %582 = tpu.matmul %580, %581, %cst_140 {dimension_numbers = #tpu.dot_dimension_numbers<[1], [0], [0], [1], [0, 0, 1, 1], [], []>} : vector<8x256xbf16>, vector<256x512xbf16>, vector<8x512xf32> -> vector<8x512xf32>
    %583 = vector.broadcast %3 : vector<1x512xf32> to vector<8x512xf32>
    %584 = arith.addf %582, %583 : vector<8x512xf32>
    %585 = vector.extract_strided_slice %584 {offsets = [0, 0], sizes = [8, 128], strides = [1, 1]} : vector<8x512xf32> to vector<8x128xf32>
    %586 = arith.negf %585 : vector<8x128xf32>
    %587 = math.exp %586 : vector<8x128xf32>
    %cst_141 = arith.constant 1.000000e+00 : f32
    %588 = vector.broadcast %cst_141 : f32 to vector<8x128xf32>
    %589 = arith.addf %588, %587 : vector<8x128xf32>
    %590 = arith.divf %588, %589 : vector<8x128xf32>
    %591 = vector.extract_strided_slice %584 {offsets = [0, 128], sizes = [8, 128], strides = [1, 1]} : vector<8x512xf32> to vector<8x128xf32>
    %592 = arith.negf %591 : vector<8x128xf32>
    %593 = math.exp %592 : vector<8x128xf32>
    %cst_142 = arith.constant 1.000000e+00 : f32
    %594 = vector.broadcast %cst_142 : f32 to vector<8x128xf32>
    %595 = arith.addf %594, %593 : vector<8x128xf32>
    %596 = arith.divf %594, %595 : vector<8x128xf32>
    %597 = vector.extract_strided_slice %584 {offsets = [0, 256], sizes = [8, 128], strides = [1, 1]} : vector<8x512xf32> to vector<8x128xf32>
    %598 = math.tanh %597 : vector<8x128xf32>
    %599 = vector.extract_strided_slice %584 {offsets = [0, 384], sizes = [8, 128], strides = [1, 1]} : vector<8x512xf32> to vector<8x128xf32>
    %600 = arith.negf %599 : vector<8x128xf32>
    %601 = math.exp %600 : vector<8x128xf32>
    %cst_143 = arith.constant 1.000000e+00 : f32
    %602 = vector.broadcast %cst_143 : f32 to vector<8x128xf32>
    %603 = arith.addf %602, %601 : vector<8x128xf32>
    %604 = arith.divf %602, %603 : vector<8x128xf32>
    %605 = arith.mulf %596, %524 : vector<8x128xf32>
    %606 = arith.mulf %590, %598 : vector<8x128xf32>
    %607 = arith.addf %605, %606 : vector<8x128xf32>
    %608 = math.tanh %607 : vector<8x128xf32>
    %609 = arith.mulf %604, %608 : vector<8x128xf32>
    %610 = vector.extract_strided_slice %24 {offsets = [56, 0], sizes = [8, 512], strides = [1, 1]} : vector<64x512xf32> to vector<8x512xf32>
    %611 = arith.truncf %556 : vector<8x128xf32> to vector<8x128xbf16>
    %c0_144 = arith.constant 0 : index
    %c0_145 = arith.constant 0 : index
    %612 = vector.load %arg2[%c0_144, %c0_145] : memref<128x512xbf16, #tpu.memory_space<vmem>>, vector<128x512xbf16>
    %cst_146 = arith.constant dense<0.000000e+00> : vector<8x512xf32>
    %613 = tpu.matmul %611, %612, %cst_146 {dimension_numbers = #tpu.dot_dimension_numbers<[1], [0], [0], [1], [0, 0, 1, 1], [], []>} : vector<8x128xbf16>, vector<128x512xbf16>, vector<8x512xf32> -> vector<8x512xf32>
    %614 = arith.addf %610, %613 : vector<8x512xf32>
    %615 = vector.extract_strided_slice %614 {offsets = [0, 0], sizes = [8, 128], strides = [1, 1]} : vector<8x512xf32> to vector<8x128xf32>
    %616 = arith.negf %615 : vector<8x128xf32>
    %617 = math.exp %616 : vector<8x128xf32>
    %cst_147 = arith.constant 1.000000e+00 : f32
    %618 = vector.broadcast %cst_147 : f32 to vector<8x128xf32>
    %619 = arith.addf %618, %617 : vector<8x128xf32>
    %620 = arith.divf %618, %619 : vector<8x128xf32>
    %621 = vector.extract_strided_slice %614 {offsets = [0, 128], sizes = [8, 128], strides = [1, 1]} : vector<8x512xf32> to vector<8x128xf32>
    %622 = arith.negf %621 : vector<8x128xf32>
    %623 = math.exp %622 : vector<8x128xf32>
    %cst_148 = arith.constant 1.000000e+00 : f32
    %624 = vector.broadcast %cst_148 : f32 to vector<8x128xf32>
    %625 = arith.addf %624, %623 : vector<8x128xf32>
    %626 = arith.divf %624, %625 : vector<8x128xf32>
    %627 = vector.extract_strided_slice %614 {offsets = [0, 256], sizes = [8, 128], strides = [1, 1]} : vector<8x512xf32> to vector<8x128xf32>
    %628 = math.tanh %627 : vector<8x128xf32>
    %629 = vector.extract_strided_slice %614 {offsets = [0, 384], sizes = [8, 128], strides = [1, 1]} : vector<8x512xf32> to vector<8x128xf32>
    %630 = arith.negf %629 : vector<8x128xf32>
    %631 = math.exp %630 : vector<8x128xf32>
    %cst_149 = arith.constant 1.000000e+00 : f32
    %632 = vector.broadcast %cst_149 : f32 to vector<8x128xf32>
    %633 = arith.addf %632, %631 : vector<8x128xf32>
    %634 = arith.divf %632, %633 : vector<8x128xf32>
    %635 = arith.mulf %626, %554 : vector<8x128xf32>
    %636 = arith.mulf %620, %628 : vector<8x128xf32>
    %637 = arith.addf %635, %636 : vector<8x128xf32>
    %638 = math.tanh %637 : vector<8x128xf32>
    %639 = arith.mulf %634, %638 : vector<8x128xf32>
    %cst_150 = arith.constant dense<0.000000e+00> : vector<8xf32>
    %640 = vector.multi_reduction <add>, %639, %cst_150 [1] : vector<8x128xf32> to vector<8xf32>
    %641 = vector.shape_cast %640 : vector<8xf32> to vector<8x1xf32>
    %cst_151 = arith.constant 6.400000e+01 : f32
    %642 = vector.broadcast %cst_151 : f32 to vector<8x1xf32>
    %643 = arith.divf %641, %642 : vector<8x1xf32>
    %644 = vector.broadcast %643 : vector<8x1xf32> to vector<8x128xf32>
    %645 = arith.subf %639, %644 : vector<8x128xf32>
    %646 = vector.broadcast %13 : vector<1x128xf32> to vector<8x128xf32>
    %647 = arith.mulf %645, %646 : vector<8x128xf32>
    %648 = arith.mulf %647, %647 : vector<8x128xf32>
    %cst_152 = arith.constant dense<0.000000e+00> : vector<8xf32>
    %649 = vector.multi_reduction <add>, %648, %cst_152 [1] : vector<8x128xf32> to vector<8xf32>
    %650 = vector.shape_cast %649 : vector<8xf32> to vector<8x1xf32>
    %cst_153 = arith.constant 6.400000e+01 : f32
    %651 = vector.broadcast %cst_153 : f32 to vector<8x1xf32>
    %652 = arith.divf %650, %651 : vector<8x1xf32>
    %cst_154 = arith.constant 9.99999974E-6 : f32
    %653 = vector.broadcast %cst_154 : f32 to vector<8x1xf32>
    %654 = arith.addf %652, %653 : vector<8x1xf32>
    %655 = math.rsqrt %654 : vector<8x1xf32>
    %656 = vector.broadcast %655 : vector<8x1xf32> to vector<8x128xf32>
    %657 = arith.mulf %647, %656 : vector<8x128xf32>
    %658 = vector.broadcast %1 : vector<1x128xf32> to vector<8x128xf32>
    %659 = arith.mulf %657, %658 : vector<8x128xf32>
    %660 = vector.broadcast %2 : vector<1x128xf32> to vector<8x128xf32>
    %661 = arith.addf %659, %660 : vector<8x128xf32>
    %662 = tpu.concatenate %661, %609 in 1 : vector<8x128xf32>, vector<8x128xf32> -> vector<8x256xf32>
    %663 = arith.truncf %662 : vector<8x256xf32> to vector<8x256xbf16>
    %c0_155 = arith.constant 0 : index
    %c0_156 = arith.constant 0 : index
    %664 = vector.load %arg6[%c0_155, %c0_156] : memref<256x512xbf16, #tpu.memory_space<vmem>>, vector<256x512xbf16>
    %cst_157 = arith.constant dense<0.000000e+00> : vector<8x512xf32>
    %665 = tpu.matmul %663, %664, %cst_157 {dimension_numbers = #tpu.dot_dimension_numbers<[1], [0], [0], [1], [0, 0, 1, 1], [], []>} : vector<8x256xbf16>, vector<256x512xbf16>, vector<8x512xf32> -> vector<8x512xf32>
    %666 = vector.broadcast %3 : vector<1x512xf32> to vector<8x512xf32>
    %667 = arith.addf %665, %666 : vector<8x512xf32>
    %668 = vector.extract_strided_slice %667 {offsets = [0, 0], sizes = [8, 128], strides = [1, 1]} : vector<8x512xf32> to vector<8x128xf32>
    %669 = arith.negf %668 : vector<8x128xf32>
    %670 = math.exp %669 : vector<8x128xf32>
    %cst_158 = arith.constant 1.000000e+00 : f32
    %671 = vector.broadcast %cst_158 : f32 to vector<8x128xf32>
    %672 = arith.addf %671, %670 : vector<8x128xf32>
    %673 = arith.divf %671, %672 : vector<8x128xf32>
    %674 = vector.extract_strided_slice %667 {offsets = [0, 128], sizes = [8, 128], strides = [1, 1]} : vector<8x512xf32> to vector<8x128xf32>
    %675 = arith.negf %674 : vector<8x128xf32>
    %676 = math.exp %675 : vector<8x128xf32>
    %cst_159 = arith.constant 1.000000e+00 : f32
    %677 = vector.broadcast %cst_159 : f32 to vector<8x128xf32>
    %678 = arith.addf %677, %676 : vector<8x128xf32>
    %679 = arith.divf %677, %678 : vector<8x128xf32>
    %680 = vector.extract_strided_slice %667 {offsets = [0, 256], sizes = [8, 128], strides = [1, 1]} : vector<8x512xf32> to vector<8x128xf32>
    %681 = math.tanh %680 : vector<8x128xf32>
    %682 = vector.extract_strided_slice %667 {offsets = [0, 384], sizes = [8, 128], strides = [1, 1]} : vector<8x512xf32> to vector<8x128xf32>
    %683 = arith.negf %682 : vector<8x128xf32>
    %684 = math.exp %683 : vector<8x128xf32>
    %cst_160 = arith.constant 1.000000e+00 : f32
    %685 = vector.broadcast %cst_160 : f32 to vector<8x128xf32>
    %686 = arith.addf %685, %684 : vector<8x128xf32>
    %687 = arith.divf %685, %686 : vector<8x128xf32>
    %688 = arith.mulf %679, %607 : vector<8x128xf32>
    %689 = arith.mulf %673, %681 : vector<8x128xf32>
    %690 = arith.addf %688, %689 : vector<8x128xf32>
    %691 = math.tanh %690 : vector<8x128xf32>
    %692 = arith.mulf %687, %691 : vector<8x128xf32>
    %cst_161 = arith.constant dense<0.000000e+00> : vector<8xf32>
    %693 = vector.multi_reduction <add>, %692, %cst_161 [1] : vector<8x128xf32> to vector<8xf32>
    %694 = vector.shape_cast %693 : vector<8xf32> to vector<8x1xf32>
    %cst_162 = arith.constant 3.200000e+01 : f32
    %695 = vector.broadcast %cst_162 : f32 to vector<8x1xf32>
    %696 = arith.divf %694, %695 : vector<8x1xf32>
    %697 = vector.broadcast %696 : vector<8x1xf32> to vector<8x128xf32>
    %698 = arith.subf %692, %697 : vector<8x128xf32>
    %699 = vector.broadcast %18 : vector<1x128xf32> to vector<8x128xf32>
    %700 = arith.mulf %698, %699 : vector<8x128xf32>
    %701 = arith.mulf %700, %700 : vector<8x128xf32>
    %cst_163 = arith.constant dense<0.000000e+00> : vector<8xf32>
    %702 = vector.multi_reduction <add>, %701, %cst_163 [1] : vector<8x128xf32> to vector<8xf32>
    %703 = vector.shape_cast %702 : vector<8xf32> to vector<8x1xf32>
    %cst_164 = arith.constant 3.200000e+01 : f32
    %704 = vector.broadcast %cst_164 : f32 to vector<8x1xf32>
    %705 = arith.divf %703, %704 : vector<8x1xf32>
    %cst_165 = arith.constant 9.99999974E-6 : f32
    %706 = vector.broadcast %cst_165 : f32 to vector<8x1xf32>
    %707 = arith.addf %705, %706 : vector<8x1xf32>
    %708 = math.rsqrt %707 : vector<8x1xf32>
    %709 = vector.broadcast %708 : vector<8x1xf32> to vector<8x128xf32>
    %710 = arith.mulf %700, %709 : vector<8x128xf32>
    %711 = vector.broadcast %4 : vector<1x128xf32> to vector<8x128xf32>
    %712 = arith.mulf %710, %711 : vector<8x128xf32>
    %713 = vector.broadcast %5 : vector<1x128xf32> to vector<8x128xf32>
    %714 = arith.addf %712, %713 : vector<8x128xf32>
    %715 = arith.truncf %714 : vector<8x128xf32> to vector<8x128xbf16>
    %c0_166 = arith.constant 0 : index
    %c0_167 = arith.constant 0 : index
    %716 = vector.load %arg10[%c0_166, %c0_167] : memref<128x512xbf16, #tpu.memory_space<vmem>>, vector<128x512xbf16>
    %cst_168 = arith.constant dense<0.000000e+00> : vector<8x512xf32>
    %717 = tpu.matmul %715, %716, %cst_168 {dimension_numbers = #tpu.dot_dimension_numbers<[1], [0], [0], [1], [0, 0, 1, 1], [], []>} : vector<8x128xbf16>, vector<128x512xbf16>, vector<8x512xf32> -> vector<8x512xf32>
    %718 = vector.broadcast %6 : vector<1x512xf32> to vector<8x512xf32>
    %719 = arith.addf %717, %718 : vector<8x512xf32>
    %cst_169 = arith.constant 0.000000e+00 : f32
    %720 = vector.broadcast %cst_169 : f32 to vector<8x128xf32>
    %cst_170 = arith.constant 0.000000e+00 : f32
    %721 = vector.broadcast %cst_170 : f32 to vector<8x128xf32>
    %cst_171 = arith.constant 0.000000e+00 : f32
    %722 = vector.broadcast %cst_171 : f32 to vector<8x128xf32>
    %cst_172 = arith.constant 0.000000e+00 : f32
    %723 = vector.broadcast %cst_172 : f32 to vector<8x128xf32>
    %724 = arith.truncf %720 : vector<8x128xf32> to vector<8x128xbf16>
    %c0_173 = arith.constant 0 : index
    %c0_174 = arith.constant 0 : index
    %725 = vector.load %arg11[%c0_173, %c0_174] : memref<128x512xbf16, #tpu.memory_space<vmem>>, vector<128x512xbf16>
    %cst_175 = arith.constant dense<0.000000e+00> : vector<8x512xf32>
    %726 = tpu.matmul %724, %725, %cst_175 {dimension_numbers = #tpu.dot_dimension_numbers<[1], [0], [0], [1], [0, 0, 1, 1], [], []>} : vector<8x128xbf16>, vector<128x512xbf16>, vector<8x512xf32> -> vector<8x512xf32>
    %727 = arith.addf %719, %726 : vector<8x512xf32>
    %728 = vector.extract_strided_slice %727 {offsets = [0, 0], sizes = [8, 128], strides = [1, 1]} : vector<8x512xf32> to vector<8x128xf32>
    %729 = arith.negf %728 : vector<8x128xf32>
    %730 = math.exp %729 : vector<8x128xf32>
    %cst_176 = arith.constant 1.000000e+00 : f32
    %731 = vector.broadcast %cst_176 : f32 to vector<8x128xf32>
    %732 = arith.addf %731, %730 : vector<8x128xf32>
    %733 = arith.divf %731, %732 : vector<8x128xf32>
    %734 = vector.extract_strided_slice %727 {offsets = [0, 128], sizes = [8, 128], strides = [1, 1]} : vector<8x512xf32> to vector<8x128xf32>
    %735 = arith.negf %734 : vector<8x128xf32>
    %736 = math.exp %735 : vector<8x128xf32>
    %cst_177 = arith.constant 1.000000e+00 : f32
    %737 = vector.broadcast %cst_177 : f32 to vector<8x128xf32>
    %738 = arith.addf %737, %736 : vector<8x128xf32>
    %739 = arith.divf %737, %738 : vector<8x128xf32>
    %740 = vector.extract_strided_slice %727 {offsets = [0, 256], sizes = [8, 128], strides = [1, 1]} : vector<8x512xf32> to vector<8x128xf32>
    %741 = math.tanh %740 : vector<8x128xf32>
    %742 = vector.extract_strided_slice %727 {offsets = [0, 384], sizes = [8, 128], strides = [1, 1]} : vector<8x512xf32> to vector<8x128xf32>
    %743 = arith.negf %742 : vector<8x128xf32>
    %744 = math.exp %743 : vector<8x128xf32>
    %cst_178 = arith.constant 1.000000e+00 : f32
    %745 = vector.broadcast %cst_178 : f32 to vector<8x128xf32>
    %746 = arith.addf %745, %744 : vector<8x128xf32>
    %747 = arith.divf %745, %746 : vector<8x128xf32>
    %748 = arith.mulf %739, %721 : vector<8x128xf32>
    %749 = arith.mulf %733, %741 : vector<8x128xf32>
    %750 = arith.addf %748, %749 : vector<8x128xf32>
    %751 = math.tanh %750 : vector<8x128xf32>
    %752 = arith.mulf %747, %751 : vector<8x128xf32>
    %753 = tpu.concatenate %752, %722 in 1 : vector<8x128xf32>, vector<8x128xf32> -> vector<8x256xf32>
    %754 = arith.truncf %753 : vector<8x256xf32> to vector<8x256xbf16>
    %c0_179 = arith.constant 0 : index
    %c0_180 = arith.constant 0 : index
    %755 = vector.load %arg13[%c0_179, %c0_180] : memref<256x512xbf16, #tpu.memory_space<vmem>>, vector<256x512xbf16>
    %cst_181 = arith.constant dense<0.000000e+00> : vector<8x512xf32>
    %756 = tpu.matmul %754, %755, %cst_181 {dimension_numbers = #tpu.dot_dimension_numbers<[1], [0], [0], [1], [0, 0, 1, 1], [], []>} : vector<8x256xbf16>, vector<256x512xbf16>, vector<8x512xf32> -> vector<8x512xf32>
    %757 = vector.broadcast %7 : vector<1x512xf32> to vector<8x512xf32>
    %758 = arith.addf %756, %757 : vector<8x512xf32>
    %759 = vector.extract_strided_slice %758 {offsets = [0, 0], sizes = [8, 128], strides = [1, 1]} : vector<8x512xf32> to vector<8x128xf32>
    %760 = arith.negf %759 : vector<8x128xf32>
    %761 = math.exp %760 : vector<8x128xf32>
    %cst_182 = arith.constant 1.000000e+00 : f32
    %762 = vector.broadcast %cst_182 : f32 to vector<8x128xf32>
    %763 = arith.addf %762, %761 : vector<8x128xf32>
    %764 = arith.divf %762, %763 : vector<8x128xf32>
    %765 = vector.extract_strided_slice %758 {offsets = [0, 128], sizes = [8, 128], strides = [1, 1]} : vector<8x512xf32> to vector<8x128xf32>
    %766 = arith.negf %765 : vector<8x128xf32>
    %767 = math.exp %766 : vector<8x128xf32>
    %cst_183 = arith.constant 1.000000e+00 : f32
    %768 = vector.broadcast %cst_183 : f32 to vector<8x128xf32>
    %769 = arith.addf %768, %767 : vector<8x128xf32>
    %770 = arith.divf %768, %769 : vector<8x128xf32>
    %771 = vector.extract_strided_slice %758 {offsets = [0, 256], sizes = [8, 128], strides = [1, 1]} : vector<8x512xf32> to vector<8x128xf32>
    %772 = math.tanh %771 : vector<8x128xf32>
    %773 = vector.extract_strided_slice %758 {offsets = [0, 384], sizes = [8, 128], strides = [1, 1]} : vector<8x512xf32> to vector<8x128xf32>
    %774 = arith.negf %773 : vector<8x128xf32>
    %775 = math.exp %774 : vector<8x128xf32>
    %cst_184 = arith.constant 1.000000e+00 : f32
    %776 = vector.broadcast %cst_184 : f32 to vector<8x128xf32>
    %777 = arith.addf %776, %775 : vector<8x128xf32>
    %778 = arith.divf %776, %777 : vector<8x128xf32>
    %779 = arith.mulf %770, %723 : vector<8x128xf32>
    %780 = arith.mulf %764, %772 : vector<8x128xf32>
    %781 = arith.addf %779, %780 : vector<8x128xf32>
    %782 = math.tanh %781 : vector<8x128xf32>
    %783 = arith.mulf %778, %782 : vector<8x128xf32>
    %784 = arith.truncf %752 : vector<8x128xf32> to vector<8x128xbf16>
    %c0_185 = arith.constant 0 : index
    %c0_186 = arith.constant 0 : index
    %785 = vector.load %arg11[%c0_185, %c0_186] : memref<128x512xbf16, #tpu.memory_space<vmem>>, vector<128x512xbf16>
    %cst_187 = arith.constant dense<0.000000e+00> : vector<8x512xf32>
    %786 = tpu.matmul %784, %785, %cst_187 {dimension_numbers = #tpu.dot_dimension_numbers<[1], [0], [0], [1], [0, 0, 1, 1], [], []>} : vector<8x128xbf16>, vector<128x512xbf16>, vector<8x512xf32> -> vector<8x512xf32>
    %787 = arith.addf %719, %786 : vector<8x512xf32>
    %788 = vector.extract_strided_slice %787 {offsets = [0, 0], sizes = [8, 128], strides = [1, 1]} : vector<8x512xf32> to vector<8x128xf32>
    %789 = arith.negf %788 : vector<8x128xf32>
    %790 = math.exp %789 : vector<8x128xf32>
    %cst_188 = arith.constant 1.000000e+00 : f32
    %791 = vector.broadcast %cst_188 : f32 to vector<8x128xf32>
    %792 = arith.addf %791, %790 : vector<8x128xf32>
    %793 = arith.divf %791, %792 : vector<8x128xf32>
    %794 = vector.extract_strided_slice %787 {offsets = [0, 128], sizes = [8, 128], strides = [1, 1]} : vector<8x512xf32> to vector<8x128xf32>
    %795 = arith.negf %794 : vector<8x128xf32>
    %796 = math.exp %795 : vector<8x128xf32>
    %cst_189 = arith.constant 1.000000e+00 : f32
    %797 = vector.broadcast %cst_189 : f32 to vector<8x128xf32>
    %798 = arith.addf %797, %796 : vector<8x128xf32>
    %799 = arith.divf %797, %798 : vector<8x128xf32>
    %800 = vector.extract_strided_slice %787 {offsets = [0, 256], sizes = [8, 128], strides = [1, 1]} : vector<8x512xf32> to vector<8x128xf32>
    %801 = math.tanh %800 : vector<8x128xf32>
    %802 = vector.extract_strided_slice %787 {offsets = [0, 384], sizes = [8, 128], strides = [1, 1]} : vector<8x512xf32> to vector<8x128xf32>
    %803 = arith.negf %802 : vector<8x128xf32>
    %804 = math.exp %803 : vector<8x128xf32>
    %cst_190 = arith.constant 1.000000e+00 : f32
    %805 = vector.broadcast %cst_190 : f32 to vector<8x128xf32>
    %806 = arith.addf %805, %804 : vector<8x128xf32>
    %807 = arith.divf %805, %806 : vector<8x128xf32>
    %808 = arith.mulf %799, %750 : vector<8x128xf32>
    %809 = arith.mulf %793, %801 : vector<8x128xf32>
    %810 = arith.addf %808, %809 : vector<8x128xf32>
    %811 = math.tanh %810 : vector<8x128xf32>
    %812 = arith.mulf %807, %811 : vector<8x128xf32>
    %813 = tpu.concatenate %812, %783 in 1 : vector<8x128xf32>, vector<8x128xf32> -> vector<8x256xf32>
    %814 = arith.truncf %813 : vector<8x256xf32> to vector<8x256xbf16>
    %c0_191 = arith.constant 0 : index
    %c0_192 = arith.constant 0 : index
    %815 = vector.load %arg13[%c0_191, %c0_192] : memref<256x512xbf16, #tpu.memory_space<vmem>>, vector<256x512xbf16>
    %cst_193 = arith.constant dense<0.000000e+00> : vector<8x512xf32>
    %816 = tpu.matmul %814, %815, %cst_193 {dimension_numbers = #tpu.dot_dimension_numbers<[1], [0], [0], [1], [0, 0, 1, 1], [], []>} : vector<8x256xbf16>, vector<256x512xbf16>, vector<8x512xf32> -> vector<8x512xf32>
    %817 = vector.broadcast %7 : vector<1x512xf32> to vector<8x512xf32>
    %818 = arith.addf %816, %817 : vector<8x512xf32>
    %819 = vector.extract_strided_slice %818 {offsets = [0, 0], sizes = [8, 128], strides = [1, 1]} : vector<8x512xf32> to vector<8x128xf32>
    %820 = arith.negf %819 : vector<8x128xf32>
    %821 = math.exp %820 : vector<8x128xf32>
    %cst_194 = arith.constant 1.000000e+00 : f32
    %822 = vector.broadcast %cst_194 : f32 to vector<8x128xf32>
    %823 = arith.addf %822, %821 : vector<8x128xf32>
    %824 = arith.divf %822, %823 : vector<8x128xf32>
    %825 = vector.extract_strided_slice %818 {offsets = [0, 128], sizes = [8, 128], strides = [1, 1]} : vector<8x512xf32> to vector<8x128xf32>
    %826 = arith.negf %825 : vector<8x128xf32>
    %827 = math.exp %826 : vector<8x128xf32>
    %cst_195 = arith.constant 1.000000e+00 : f32
    %828 = vector.broadcast %cst_195 : f32 to vector<8x128xf32>
    %829 = arith.addf %828, %827 : vector<8x128xf32>
    %830 = arith.divf %828, %829 : vector<8x128xf32>
    %831 = vector.extract_strided_slice %818 {offsets = [0, 256], sizes = [8, 128], strides = [1, 1]} : vector<8x512xf32> to vector<8x128xf32>
    %832 = math.tanh %831 : vector<8x128xf32>
    %833 = vector.extract_strided_slice %818 {offsets = [0, 384], sizes = [8, 128], strides = [1, 1]} : vector<8x512xf32> to vector<8x128xf32>
    %834 = arith.negf %833 : vector<8x128xf32>
    %835 = math.exp %834 : vector<8x128xf32>
    %cst_196 = arith.constant 1.000000e+00 : f32
    %836 = vector.broadcast %cst_196 : f32 to vector<8x128xf32>
    %837 = arith.addf %836, %835 : vector<8x128xf32>
    %838 = arith.divf %836, %837 : vector<8x128xf32>
    %839 = arith.mulf %830, %781 : vector<8x128xf32>
    %840 = arith.mulf %824, %832 : vector<8x128xf32>
    %841 = arith.addf %839, %840 : vector<8x128xf32>
    %842 = math.tanh %841 : vector<8x128xf32>
    %843 = arith.mulf %838, %842 : vector<8x128xf32>
    %844 = arith.truncf %812 : vector<8x128xf32> to vector<8x128xbf16>
    %c0_197 = arith.constant 0 : index
    %c0_198 = arith.constant 0 : index
    %845 = vector.load %arg11[%c0_197, %c0_198] : memref<128x512xbf16, #tpu.memory_space<vmem>>, vector<128x512xbf16>
    %cst_199 = arith.constant dense<0.000000e+00> : vector<8x512xf32>
    %846 = tpu.matmul %844, %845, %cst_199 {dimension_numbers = #tpu.dot_dimension_numbers<[1], [0], [0], [1], [0, 0, 1, 1], [], []>} : vector<8x128xbf16>, vector<128x512xbf16>, vector<8x512xf32> -> vector<8x512xf32>
    %847 = arith.addf %719, %846 : vector<8x512xf32>
    %848 = vector.extract_strided_slice %847 {offsets = [0, 0], sizes = [8, 128], strides = [1, 1]} : vector<8x512xf32> to vector<8x128xf32>
    %849 = arith.negf %848 : vector<8x128xf32>
    %850 = math.exp %849 : vector<8x128xf32>
    %cst_200 = arith.constant 1.000000e+00 : f32
    %851 = vector.broadcast %cst_200 : f32 to vector<8x128xf32>
    %852 = arith.addf %851, %850 : vector<8x128xf32>
    %853 = arith.divf %851, %852 : vector<8x128xf32>
    %854 = vector.extract_strided_slice %847 {offsets = [0, 128], sizes = [8, 128], strides = [1, 1]} : vector<8x512xf32> to vector<8x128xf32>
    %855 = arith.negf %854 : vector<8x128xf32>
    %856 = math.exp %855 : vector<8x128xf32>
    %cst_201 = arith.constant 1.000000e+00 : f32
    %857 = vector.broadcast %cst_201 : f32 to vector<8x128xf32>
    %858 = arith.addf %857, %856 : vector<8x128xf32>
    %859 = arith.divf %857, %858 : vector<8x128xf32>
    %860 = vector.extract_strided_slice %847 {offsets = [0, 256], sizes = [8, 128], strides = [1, 1]} : vector<8x512xf32> to vector<8x128xf32>
    %861 = math.tanh %860 : vector<8x128xf32>
    %862 = vector.extract_strided_slice %847 {offsets = [0, 384], sizes = [8, 128], strides = [1, 1]} : vector<8x512xf32> to vector<8x128xf32>
    %863 = arith.negf %862 : vector<8x128xf32>
    %864 = math.exp %863 : vector<8x128xf32>
    %cst_202 = arith.constant 1.000000e+00 : f32
    %865 = vector.broadcast %cst_202 : f32 to vector<8x128xf32>
    %866 = arith.addf %865, %864 : vector<8x128xf32>
    %867 = arith.divf %865, %866 : vector<8x128xf32>
    %868 = arith.mulf %859, %810 : vector<8x128xf32>
    %869 = arith.mulf %853, %861 : vector<8x128xf32>
    %870 = arith.addf %868, %869 : vector<8x128xf32>
    %871 = math.tanh %870 : vector<8x128xf32>
    %872 = arith.mulf %867, %871 : vector<8x128xf32>
    %873 = tpu.concatenate %872, %843 in 1 : vector<8x128xf32>, vector<8x128xf32> -> vector<8x256xf32>
    %874 = arith.truncf %873 : vector<8x256xf32> to vector<8x256xbf16>
    %c0_203 = arith.constant 0 : index
    %c0_204 = arith.constant 0 : index
    %875 = vector.load %arg13[%c0_203, %c0_204] : memref<256x512xbf16, #tpu.memory_space<vmem>>, vector<256x512xbf16>
    %cst_205 = arith.constant dense<0.000000e+00> : vector<8x512xf32>
    %876 = tpu.matmul %874, %875, %cst_205 {dimension_numbers = #tpu.dot_dimension_numbers<[1], [0], [0], [1], [0, 0, 1, 1], [], []>} : vector<8x256xbf16>, vector<256x512xbf16>, vector<8x512xf32> -> vector<8x512xf32>
    %877 = vector.broadcast %7 : vector<1x512xf32> to vector<8x512xf32>
    %878 = arith.addf %876, %877 : vector<8x512xf32>
    %879 = vector.extract_strided_slice %878 {offsets = [0, 0], sizes = [8, 128], strides = [1, 1]} : vector<8x512xf32> to vector<8x128xf32>
    %880 = arith.negf %879 : vector<8x128xf32>
    %881 = math.exp %880 : vector<8x128xf32>
    %cst_206 = arith.constant 1.000000e+00 : f32
    %882 = vector.broadcast %cst_206 : f32 to vector<8x128xf32>
    %883 = arith.addf %882, %881 : vector<8x128xf32>
    %884 = arith.divf %882, %883 : vector<8x128xf32>
    %885 = vector.extract_strided_slice %878 {offsets = [0, 128], sizes = [8, 128], strides = [1, 1]} : vector<8x512xf32> to vector<8x128xf32>
    %886 = arith.negf %885 : vector<8x128xf32>
    %887 = math.exp %886 : vector<8x128xf32>
    %cst_207 = arith.constant 1.000000e+00 : f32
    %888 = vector.broadcast %cst_207 : f32 to vector<8x128xf32>
    %889 = arith.addf %888, %887 : vector<8x128xf32>
    %890 = arith.divf %888, %889 : vector<8x128xf32>
    %891 = vector.extract_strided_slice %878 {offsets = [0, 256], sizes = [8, 128], strides = [1, 1]} : vector<8x512xf32> to vector<8x128xf32>
    %892 = math.tanh %891 : vector<8x128xf32>
    %893 = vector.extract_strided_slice %878 {offsets = [0, 384], sizes = [8, 128], strides = [1, 1]} : vector<8x512xf32> to vector<8x128xf32>
    %894 = arith.negf %893 : vector<8x128xf32>
    %895 = math.exp %894 : vector<8x128xf32>
    %cst_208 = arith.constant 1.000000e+00 : f32
    %896 = vector.broadcast %cst_208 : f32 to vector<8x128xf32>
    %897 = arith.addf %896, %895 : vector<8x128xf32>
    %898 = arith.divf %896, %897 : vector<8x128xf32>
    %899 = arith.mulf %890, %841 : vector<8x128xf32>
    %900 = arith.mulf %884, %892 : vector<8x128xf32>
    %901 = arith.addf %899, %900 : vector<8x128xf32>
    %902 = math.tanh %901 : vector<8x128xf32>
    %903 = arith.mulf %898, %902 : vector<8x128xf32>
    %904 = arith.truncf %872 : vector<8x128xf32> to vector<8x128xbf16>
    %c0_209 = arith.constant 0 : index
    %c0_210 = arith.constant 0 : index
    %905 = vector.load %arg11[%c0_209, %c0_210] : memref<128x512xbf16, #tpu.memory_space<vmem>>, vector<128x512xbf16>
    %cst_211 = arith.constant dense<0.000000e+00> : vector<8x512xf32>
    %906 = tpu.matmul %904, %905, %cst_211 {dimension_numbers = #tpu.dot_dimension_numbers<[1], [0], [0], [1], [0, 0, 1, 1], [], []>} : vector<8x128xbf16>, vector<128x512xbf16>, vector<8x512xf32> -> vector<8x512xf32>
    %907 = arith.addf %719, %906 : vector<8x512xf32>
    %908 = vector.extract_strided_slice %907 {offsets = [0, 0], sizes = [8, 128], strides = [1, 1]} : vector<8x512xf32> to vector<8x128xf32>
    %909 = arith.negf %908 : vector<8x128xf32>
    %910 = math.exp %909 : vector<8x128xf32>
    %cst_212 = arith.constant 1.000000e+00 : f32
    %911 = vector.broadcast %cst_212 : f32 to vector<8x128xf32>
    %912 = arith.addf %911, %910 : vector<8x128xf32>
    %913 = arith.divf %911, %912 : vector<8x128xf32>
    %914 = vector.extract_strided_slice %907 {offsets = [0, 128], sizes = [8, 128], strides = [1, 1]} : vector<8x512xf32> to vector<8x128xf32>
    %915 = arith.negf %914 : vector<8x128xf32>
    %916 = math.exp %915 : vector<8x128xf32>
    %cst_213 = arith.constant 1.000000e+00 : f32
    %917 = vector.broadcast %cst_213 : f32 to vector<8x128xf32>
    %918 = arith.addf %917, %916 : vector<8x128xf32>
    %919 = arith.divf %917, %918 : vector<8x128xf32>
    %920 = vector.extract_strided_slice %907 {offsets = [0, 256], sizes = [8, 128], strides = [1, 1]} : vector<8x512xf32> to vector<8x128xf32>
    %921 = math.tanh %920 : vector<8x128xf32>
    %922 = vector.extract_strided_slice %907 {offsets = [0, 384], sizes = [8, 128], strides = [1, 1]} : vector<8x512xf32> to vector<8x128xf32>
    %923 = arith.negf %922 : vector<8x128xf32>
    %924 = math.exp %923 : vector<8x128xf32>
    %cst_214 = arith.constant 1.000000e+00 : f32
    %925 = vector.broadcast %cst_214 : f32 to vector<8x128xf32>
    %926 = arith.addf %925, %924 : vector<8x128xf32>
    %927 = arith.divf %925, %926 : vector<8x128xf32>
    %928 = arith.mulf %919, %870 : vector<8x128xf32>
    %929 = arith.mulf %913, %921 : vector<8x128xf32>
    %930 = arith.addf %928, %929 : vector<8x128xf32>
    %931 = math.tanh %930 : vector<8x128xf32>
    %932 = arith.mulf %927, %931 : vector<8x128xf32>
    %933 = tpu.concatenate %932, %903 in 1 : vector<8x128xf32>, vector<8x128xf32> -> vector<8x256xf32>
    %934 = arith.truncf %933 : vector<8x256xf32> to vector<8x256xbf16>
    %c0_215 = arith.constant 0 : index
    %c0_216 = arith.constant 0 : index
    %935 = vector.load %arg13[%c0_215, %c0_216] : memref<256x512xbf16, #tpu.memory_space<vmem>>, vector<256x512xbf16>
    %cst_217 = arith.constant dense<0.000000e+00> : vector<8x512xf32>
    %936 = tpu.matmul %934, %935, %cst_217 {dimension_numbers = #tpu.dot_dimension_numbers<[1], [0], [0], [1], [0, 0, 1, 1], [], []>} : vector<8x256xbf16>, vector<256x512xbf16>, vector<8x512xf32> -> vector<8x512xf32>
    %937 = vector.broadcast %7 : vector<1x512xf32> to vector<8x512xf32>
    %938 = arith.addf %936, %937 : vector<8x512xf32>
    %939 = vector.extract_strided_slice %938 {offsets = [0, 0], sizes = [8, 128], strides = [1, 1]} : vector<8x512xf32> to vector<8x128xf32>
    %940 = arith.negf %939 : vector<8x128xf32>
    %941 = math.exp %940 : vector<8x128xf32>
    %cst_218 = arith.constant 1.000000e+00 : f32
    %942 = vector.broadcast %cst_218 : f32 to vector<8x128xf32>
    %943 = arith.addf %942, %941 : vector<8x128xf32>
    %944 = arith.divf %942, %943 : vector<8x128xf32>
    %945 = vector.extract_strided_slice %938 {offsets = [0, 128], sizes = [8, 128], strides = [1, 1]} : vector<8x512xf32> to vector<8x128xf32>
    %946 = arith.negf %945 : vector<8x128xf32>
    %947 = math.exp %946 : vector<8x128xf32>
    %cst_219 = arith.constant 1.000000e+00 : f32
    %948 = vector.broadcast %cst_219 : f32 to vector<8x128xf32>
    %949 = arith.addf %948, %947 : vector<8x128xf32>
    %950 = arith.divf %948, %949 : vector<8x128xf32>
    %951 = vector.extract_strided_slice %938 {offsets = [0, 256], sizes = [8, 128], strides = [1, 1]} : vector<8x512xf32> to vector<8x128xf32>
    %952 = math.tanh %951 : vector<8x128xf32>
    %953 = vector.extract_strided_slice %938 {offsets = [0, 384], sizes = [8, 128], strides = [1, 1]} : vector<8x512xf32> to vector<8x128xf32>
    %954 = arith.negf %953 : vector<8x128xf32>
    %955 = math.exp %954 : vector<8x128xf32>
    %cst_220 = arith.constant 1.000000e+00 : f32
    %956 = vector.broadcast %cst_220 : f32 to vector<8x128xf32>
    %957 = arith.addf %956, %955 : vector<8x128xf32>
    %958 = arith.divf %956, %957 : vector<8x128xf32>
    %959 = arith.mulf %950, %901 : vector<8x128xf32>
    %960 = arith.mulf %944, %952 : vector<8x128xf32>
    %961 = arith.addf %959, %960 : vector<8x128xf32>
    %962 = math.tanh %961 : vector<8x128xf32>
    %963 = arith.mulf %958, %962 : vector<8x128xf32>
    %964 = arith.truncf %932 : vector<8x128xf32> to vector<8x128xbf16>
    %c0_221 = arith.constant 0 : index
    %c0_222 = arith.constant 0 : index
    %965 = vector.load %arg11[%c0_221, %c0_222] : memref<128x512xbf16, #tpu.memory_space<vmem>>, vector<128x512xbf16>
    %cst_223 = arith.constant dense<0.000000e+00> : vector<8x512xf32>
    %966 = tpu.matmul %964, %965, %cst_223 {dimension_numbers = #tpu.dot_dimension_numbers<[1], [0], [0], [1], [0, 0, 1, 1], [], []>} : vector<8x128xbf16>, vector<128x512xbf16>, vector<8x512xf32> -> vector<8x512xf32>
    %967 = arith.addf %719, %966 : vector<8x512xf32>
    %968 = vector.extract_strided_slice %967 {offsets = [0, 0], sizes = [8, 128], strides = [1, 1]} : vector<8x512xf32> to vector<8x128xf32>
    %969 = arith.negf %968 : vector<8x128xf32>
    %970 = math.exp %969 : vector<8x128xf32>
    %cst_224 = arith.constant 1.000000e+00 : f32
    %971 = vector.broadcast %cst_224 : f32 to vector<8x128xf32>
    %972 = arith.addf %971, %970 : vector<8x128xf32>
    %973 = arith.divf %971, %972 : vector<8x128xf32>
    %974 = vector.extract_strided_slice %967 {offsets = [0, 128], sizes = [8, 128], strides = [1, 1]} : vector<8x512xf32> to vector<8x128xf32>
    %975 = arith.negf %974 : vector<8x128xf32>
    %976 = math.exp %975 : vector<8x128xf32>
    %cst_225 = arith.constant 1.000000e+00 : f32
    %977 = vector.broadcast %cst_225 : f32 to vector<8x128xf32>
    %978 = arith.addf %977, %976 : vector<8x128xf32>
    %979 = arith.divf %977, %978 : vector<8x128xf32>
    %980 = vector.extract_strided_slice %967 {offsets = [0, 256], sizes = [8, 128], strides = [1, 1]} : vector<8x512xf32> to vector<8x128xf32>
    %981 = math.tanh %980 : vector<8x128xf32>
    %982 = vector.extract_strided_slice %967 {offsets = [0, 384], sizes = [8, 128], strides = [1, 1]} : vector<8x512xf32> to vector<8x128xf32>
    %983 = arith.negf %982 : vector<8x128xf32>
    %984 = math.exp %983 : vector<8x128xf32>
    %cst_226 = arith.constant 1.000000e+00 : f32
    %985 = vector.broadcast %cst_226 : f32 to vector<8x128xf32>
    %986 = arith.addf %985, %984 : vector<8x128xf32>
    %987 = arith.divf %985, %986 : vector<8x128xf32>
    %988 = arith.mulf %979, %930 : vector<8x128xf32>
    %989 = arith.mulf %973, %981 : vector<8x128xf32>
    %990 = arith.addf %988, %989 : vector<8x128xf32>
    %991 = math.tanh %990 : vector<8x128xf32>
    %992 = arith.mulf %987, %991 : vector<8x128xf32>
    %993 = tpu.concatenate %992, %963 in 1 : vector<8x128xf32>, vector<8x128xf32> -> vector<8x256xf32>
    %994 = arith.truncf %993 : vector<8x256xf32> to vector<8x256xbf16>
    %c0_227 = arith.constant 0 : index
    %c0_228 = arith.constant 0 : index
    %995 = vector.load %arg13[%c0_227, %c0_228] : memref<256x512xbf16, #tpu.memory_space<vmem>>, vector<256x512xbf16>
    %cst_229 = arith.constant dense<0.000000e+00> : vector<8x512xf32>
    %996 = tpu.matmul %994, %995, %cst_229 {dimension_numbers = #tpu.dot_dimension_numbers<[1], [0], [0], [1], [0, 0, 1, 1], [], []>} : vector<8x256xbf16>, vector<256x512xbf16>, vector<8x512xf32> -> vector<8x512xf32>
    %997 = vector.broadcast %7 : vector<1x512xf32> to vector<8x512xf32>
    %998 = arith.addf %996, %997 : vector<8x512xf32>
    %999 = vector.extract_strided_slice %998 {offsets = [0, 0], sizes = [8, 128], strides = [1, 1]} : vector<8x512xf32> to vector<8x128xf32>
    %1000 = arith.negf %999 : vector<8x128xf32>
    %1001 = math.exp %1000 : vector<8x128xf32>
    %cst_230 = arith.constant 1.000000e+00 : f32
    %1002 = vector.broadcast %cst_230 : f32 to vector<8x128xf32>
    %1003 = arith.addf %1002, %1001 : vector<8x128xf32>
    %1004 = arith.divf %1002, %1003 : vector<8x128xf32>
    %1005 = vector.extract_strided_slice %998 {offsets = [0, 128], sizes = [8, 128], strides = [1, 1]} : vector<8x512xf32> to vector<8x128xf32>
    %1006 = arith.negf %1005 : vector<8x128xf32>
    %1007 = math.exp %1006 : vector<8x128xf32>
    %cst_231 = arith.constant 1.000000e+00 : f32
    %1008 = vector.broadcast %cst_231 : f32 to vector<8x128xf32>
    %1009 = arith.addf %1008, %1007 : vector<8x128xf32>
    %1010 = arith.divf %1008, %1009 : vector<8x128xf32>
    %1011 = vector.extract_strided_slice %998 {offsets = [0, 256], sizes = [8, 128], strides = [1, 1]} : vector<8x512xf32> to vector<8x128xf32>
    %1012 = math.tanh %1011 : vector<8x128xf32>
    %1013 = vector.extract_strided_slice %998 {offsets = [0, 384], sizes = [8, 128], strides = [1, 1]} : vector<8x512xf32> to vector<8x128xf32>
    %1014 = arith.negf %1013 : vector<8x128xf32>
    %1015 = math.exp %1014 : vector<8x128xf32>
    %cst_232 = arith.constant 1.000000e+00 : f32
    %1016 = vector.broadcast %cst_232 : f32 to vector<8x128xf32>
    %1017 = arith.addf %1016, %1015 : vector<8x128xf32>
    %1018 = arith.divf %1016, %1017 : vector<8x128xf32>
    %1019 = arith.mulf %1010, %961 : vector<8x128xf32>
    %1020 = arith.mulf %1004, %1012 : vector<8x128xf32>
    %1021 = arith.addf %1019, %1020 : vector<8x128xf32>
    %1022 = math.tanh %1021 : vector<8x128xf32>
    %1023 = arith.mulf %1018, %1022 : vector<8x128xf32>
    %1024 = arith.truncf %992 : vector<8x128xf32> to vector<8x128xbf16>
    %c0_233 = arith.constant 0 : index
    %c0_234 = arith.constant 0 : index
    %1025 = vector.load %arg11[%c0_233, %c0_234] : memref<128x512xbf16, #tpu.memory_space<vmem>>, vector<128x512xbf16>
    %cst_235 = arith.constant dense<0.000000e+00> : vector<8x512xf32>
    %1026 = tpu.matmul %1024, %1025, %cst_235 {dimension_numbers = #tpu.dot_dimension_numbers<[1], [0], [0], [1], [0, 0, 1, 1], [], []>} : vector<8x128xbf16>, vector<128x512xbf16>, vector<8x512xf32> -> vector<8x512xf32>
    %1027 = arith.addf %719, %1026 : vector<8x512xf32>
    %1028 = vector.extract_strided_slice %1027 {offsets = [0, 0], sizes = [8, 128], strides = [1, 1]} : vector<8x512xf32> to vector<8x128xf32>
    %1029 = arith.negf %1028 : vector<8x128xf32>
    %1030 = math.exp %1029 : vector<8x128xf32>
    %cst_236 = arith.constant 1.000000e+00 : f32
    %1031 = vector.broadcast %cst_236 : f32 to vector<8x128xf32>
    %1032 = arith.addf %1031, %1030 : vector<8x128xf32>
    %1033 = arith.divf %1031, %1032 : vector<8x128xf32>
    %1034 = vector.extract_strided_slice %1027 {offsets = [0, 128], sizes = [8, 128], strides = [1, 1]} : vector<8x512xf32> to vector<8x128xf32>
    %1035 = arith.negf %1034 : vector<8x128xf32>
    %1036 = math.exp %1035 : vector<8x128xf32>
    %cst_237 = arith.constant 1.000000e+00 : f32
    %1037 = vector.broadcast %cst_237 : f32 to vector<8x128xf32>
    %1038 = arith.addf %1037, %1036 : vector<8x128xf32>
    %1039 = arith.divf %1037, %1038 : vector<8x128xf32>
    %1040 = vector.extract_strided_slice %1027 {offsets = [0, 256], sizes = [8, 128], strides = [1, 1]} : vector<8x512xf32> to vector<8x128xf32>
    %1041 = math.tanh %1040 : vector<8x128xf32>
    %1042 = vector.extract_strided_slice %1027 {offsets = [0, 384], sizes = [8, 128], strides = [1, 1]} : vector<8x512xf32> to vector<8x128xf32>
    %1043 = arith.negf %1042 : vector<8x128xf32>
    %1044 = math.exp %1043 : vector<8x128xf32>
    %cst_238 = arith.constant 1.000000e+00 : f32
    %1045 = vector.broadcast %cst_238 : f32 to vector<8x128xf32>
    %1046 = arith.addf %1045, %1044 : vector<8x128xf32>
    %1047 = arith.divf %1045, %1046 : vector<8x128xf32>
    %1048 = arith.mulf %1039, %990 : vector<8x128xf32>
    %1049 = arith.mulf %1033, %1041 : vector<8x128xf32>
    %1050 = arith.addf %1048, %1049 : vector<8x128xf32>
    %1051 = math.tanh %1050 : vector<8x128xf32>
    %1052 = arith.mulf %1047, %1051 : vector<8x128xf32>
    %1053 = tpu.concatenate %1052, %1023 in 1 : vector<8x128xf32>, vector<8x128xf32> -> vector<8x256xf32>
    %1054 = arith.truncf %1053 : vector<8x256xf32> to vector<8x256xbf16>
    %c0_239 = arith.constant 0 : index
    %c0_240 = arith.constant 0 : index
    %1055 = vector.load %arg13[%c0_239, %c0_240] : memref<256x512xbf16, #tpu.memory_space<vmem>>, vector<256x512xbf16>
    %cst_241 = arith.constant dense<0.000000e+00> : vector<8x512xf32>
    %1056 = tpu.matmul %1054, %1055, %cst_241 {dimension_numbers = #tpu.dot_dimension_numbers<[1], [0], [0], [1], [0, 0, 1, 1], [], []>} : vector<8x256xbf16>, vector<256x512xbf16>, vector<8x512xf32> -> vector<8x512xf32>
    %1057 = vector.broadcast %7 : vector<1x512xf32> to vector<8x512xf32>
    %1058 = arith.addf %1056, %1057 : vector<8x512xf32>
    %1059 = vector.extract_strided_slice %1058 {offsets = [0, 0], sizes = [8, 128], strides = [1, 1]} : vector<8x512xf32> to vector<8x128xf32>
    %1060 = arith.negf %1059 : vector<8x128xf32>
    %1061 = math.exp %1060 : vector<8x128xf32>
    %cst_242 = arith.constant 1.000000e+00 : f32
    %1062 = vector.broadcast %cst_242 : f32 to vector<8x128xf32>
    %1063 = arith.addf %1062, %1061 : vector<8x128xf32>
    %1064 = arith.divf %1062, %1063 : vector<8x128xf32>
    %1065 = vector.extract_strided_slice %1058 {offsets = [0, 128], sizes = [8, 128], strides = [1, 1]} : vector<8x512xf32> to vector<8x128xf32>
    %1066 = arith.negf %1065 : vector<8x128xf32>
    %1067 = math.exp %1066 : vector<8x128xf32>
    %cst_243 = arith.constant 1.000000e+00 : f32
    %1068 = vector.broadcast %cst_243 : f32 to vector<8x128xf32>
    %1069 = arith.addf %1068, %1067 : vector<8x128xf32>
    %1070 = arith.divf %1068, %1069 : vector<8x128xf32>
    %1071 = vector.extract_strided_slice %1058 {offsets = [0, 256], sizes = [8, 128], strides = [1, 1]} : vector<8x512xf32> to vector<8x128xf32>
    %1072 = math.tanh %1071 : vector<8x128xf32>
    %1073 = vector.extract_strided_slice %1058 {offsets = [0, 384], sizes = [8, 128], strides = [1, 1]} : vector<8x512xf32> to vector<8x128xf32>
    %1074 = arith.negf %1073 : vector<8x128xf32>
    %1075 = math.exp %1074 : vector<8x128xf32>
    %cst_244 = arith.constant 1.000000e+00 : f32
    %1076 = vector.broadcast %cst_244 : f32 to vector<8x128xf32>
    %1077 = arith.addf %1076, %1075 : vector<8x128xf32>
    %1078 = arith.divf %1076, %1077 : vector<8x128xf32>
    %1079 = arith.mulf %1070, %1021 : vector<8x128xf32>
    %1080 = arith.mulf %1064, %1072 : vector<8x128xf32>
    %1081 = arith.addf %1079, %1080 : vector<8x128xf32>
    %1082 = math.tanh %1081 : vector<8x128xf32>
    %1083 = arith.mulf %1078, %1082 : vector<8x128xf32>
    %1084 = arith.truncf %1052 : vector<8x128xf32> to vector<8x128xbf16>
    %c0_245 = arith.constant 0 : index
    %c0_246 = arith.constant 0 : index
    %1085 = vector.load %arg11[%c0_245, %c0_246] : memref<128x512xbf16, #tpu.memory_space<vmem>>, vector<128x512xbf16>
    %cst_247 = arith.constant dense<0.000000e+00> : vector<8x512xf32>
    %1086 = tpu.matmul %1084, %1085, %cst_247 {dimension_numbers = #tpu.dot_dimension_numbers<[1], [0], [0], [1], [0, 0, 1, 1], [], []>} : vector<8x128xbf16>, vector<128x512xbf16>, vector<8x512xf32> -> vector<8x512xf32>
    %1087 = arith.addf %719, %1086 : vector<8x512xf32>
    %1088 = vector.extract_strided_slice %1087 {offsets = [0, 0], sizes = [8, 128], strides = [1, 1]} : vector<8x512xf32> to vector<8x128xf32>
    %1089 = arith.negf %1088 : vector<8x128xf32>
    %1090 = math.exp %1089 : vector<8x128xf32>
    %cst_248 = arith.constant 1.000000e+00 : f32
    %1091 = vector.broadcast %cst_248 : f32 to vector<8x128xf32>
    %1092 = arith.addf %1091, %1090 : vector<8x128xf32>
    %1093 = arith.divf %1091, %1092 : vector<8x128xf32>
    %1094 = vector.extract_strided_slice %1087 {offsets = [0, 128], sizes = [8, 128], strides = [1, 1]} : vector<8x512xf32> to vector<8x128xf32>
    %1095 = arith.negf %1094 : vector<8x128xf32>
    %1096 = math.exp %1095 : vector<8x128xf32>
    %cst_249 = arith.constant 1.000000e+00 : f32
    %1097 = vector.broadcast %cst_249 : f32 to vector<8x128xf32>
    %1098 = arith.addf %1097, %1096 : vector<8x128xf32>
    %1099 = arith.divf %1097, %1098 : vector<8x128xf32>
    %1100 = vector.extract_strided_slice %1087 {offsets = [0, 256], sizes = [8, 128], strides = [1, 1]} : vector<8x512xf32> to vector<8x128xf32>
    %1101 = math.tanh %1100 : vector<8x128xf32>
    %1102 = vector.extract_strided_slice %1087 {offsets = [0, 384], sizes = [8, 128], strides = [1, 1]} : vector<8x512xf32> to vector<8x128xf32>
    %1103 = arith.negf %1102 : vector<8x128xf32>
    %1104 = math.exp %1103 : vector<8x128xf32>
    %cst_250 = arith.constant 1.000000e+00 : f32
    %1105 = vector.broadcast %cst_250 : f32 to vector<8x128xf32>
    %1106 = arith.addf %1105, %1104 : vector<8x128xf32>
    %1107 = arith.divf %1105, %1106 : vector<8x128xf32>
    %1108 = arith.mulf %1099, %1050 : vector<8x128xf32>
    %1109 = arith.mulf %1093, %1101 : vector<8x128xf32>
    %1110 = arith.addf %1108, %1109 : vector<8x128xf32>
    %1111 = math.tanh %1110 : vector<8x128xf32>
    %1112 = arith.mulf %1107, %1111 : vector<8x128xf32>
    %1113 = tpu.concatenate %1112, %1083 in 1 : vector<8x128xf32>, vector<8x128xf32> -> vector<8x256xf32>
    %1114 = arith.truncf %1113 : vector<8x256xf32> to vector<8x256xbf16>
    %c0_251 = arith.constant 0 : index
    %c0_252 = arith.constant 0 : index
    %1115 = vector.load %arg13[%c0_251, %c0_252] : memref<256x512xbf16, #tpu.memory_space<vmem>>, vector<256x512xbf16>
    %cst_253 = arith.constant dense<0.000000e+00> : vector<8x512xf32>
    %1116 = tpu.matmul %1114, %1115, %cst_253 {dimension_numbers = #tpu.dot_dimension_numbers<[1], [0], [0], [1], [0, 0, 1, 1], [], []>} : vector<8x256xbf16>, vector<256x512xbf16>, vector<8x512xf32> -> vector<8x512xf32>
    %1117 = vector.broadcast %7 : vector<1x512xf32> to vector<8x512xf32>
    %1118 = arith.addf %1116, %1117 : vector<8x512xf32>
    %1119 = vector.extract_strided_slice %1118 {offsets = [0, 0], sizes = [8, 128], strides = [1, 1]} : vector<8x512xf32> to vector<8x128xf32>
    %1120 = arith.negf %1119 : vector<8x128xf32>
    %1121 = math.exp %1120 : vector<8x128xf32>
    %cst_254 = arith.constant 1.000000e+00 : f32
    %1122 = vector.broadcast %cst_254 : f32 to vector<8x128xf32>
    %1123 = arith.addf %1122, %1121 : vector<8x128xf32>
    %1124 = arith.divf %1122, %1123 : vector<8x128xf32>
    %1125 = vector.extract_strided_slice %1118 {offsets = [0, 128], sizes = [8, 128], strides = [1, 1]} : vector<8x512xf32> to vector<8x128xf32>
    %1126 = arith.negf %1125 : vector<8x128xf32>
    %1127 = math.exp %1126 : vector<8x128xf32>
    %cst_255 = arith.constant 1.000000e+00 : f32
    %1128 = vector.broadcast %cst_255 : f32 to vector<8x128xf32>
    %1129 = arith.addf %1128, %1127 : vector<8x128xf32>
    %1130 = arith.divf %1128, %1129 : vector<8x128xf32>
    %1131 = vector.extract_strided_slice %1118 {offsets = [0, 256], sizes = [8, 128], strides = [1, 1]} : vector<8x512xf32> to vector<8x128xf32>
    %1132 = math.tanh %1131 : vector<8x128xf32>
    %1133 = vector.extract_strided_slice %1118 {offsets = [0, 384], sizes = [8, 128], strides = [1, 1]} : vector<8x512xf32> to vector<8x128xf32>
    %1134 = arith.negf %1133 : vector<8x128xf32>
    %1135 = math.exp %1134 : vector<8x128xf32>
    %cst_256 = arith.constant 1.000000e+00 : f32
    %1136 = vector.broadcast %cst_256 : f32 to vector<8x128xf32>
    %1137 = arith.addf %1136, %1135 : vector<8x128xf32>
    %1138 = arith.divf %1136, %1137 : vector<8x128xf32>
    %1139 = arith.mulf %1130, %1081 : vector<8x128xf32>
    %1140 = arith.mulf %1124, %1132 : vector<8x128xf32>
    %1141 = arith.addf %1139, %1140 : vector<8x128xf32>
    %1142 = math.tanh %1141 : vector<8x128xf32>
    %1143 = arith.mulf %1138, %1142 : vector<8x128xf32>
    %1144 = arith.truncf %1112 : vector<8x128xf32> to vector<8x128xbf16>
    %c0_257 = arith.constant 0 : index
    %c0_258 = arith.constant 0 : index
    %1145 = vector.load %arg11[%c0_257, %c0_258] : memref<128x512xbf16, #tpu.memory_space<vmem>>, vector<128x512xbf16>
    %cst_259 = arith.constant dense<0.000000e+00> : vector<8x512xf32>
    %1146 = tpu.matmul %1144, %1145, %cst_259 {dimension_numbers = #tpu.dot_dimension_numbers<[1], [0], [0], [1], [0, 0, 1, 1], [], []>} : vector<8x128xbf16>, vector<128x512xbf16>, vector<8x512xf32> -> vector<8x512xf32>
    %1147 = arith.addf %719, %1146 : vector<8x512xf32>
    %1148 = vector.extract_strided_slice %1147 {offsets = [0, 0], sizes = [8, 128], strides = [1, 1]} : vector<8x512xf32> to vector<8x128xf32>
    %1149 = arith.negf %1148 : vector<8x128xf32>
    %1150 = math.exp %1149 : vector<8x128xf32>
    %cst_260 = arith.constant 1.000000e+00 : f32
    %1151 = vector.broadcast %cst_260 : f32 to vector<8x128xf32>
    %1152 = arith.addf %1151, %1150 : vector<8x128xf32>
    %1153 = arith.divf %1151, %1152 : vector<8x128xf32>
    %1154 = vector.extract_strided_slice %1147 {offsets = [0, 128], sizes = [8, 128], strides = [1, 1]} : vector<8x512xf32> to vector<8x128xf32>
    %1155 = arith.negf %1154 : vector<8x128xf32>
    %1156 = math.exp %1155 : vector<8x128xf32>
    %cst_261 = arith.constant 1.000000e+00 : f32
    %1157 = vector.broadcast %cst_261 : f32 to vector<8x128xf32>
    %1158 = arith.addf %1157, %1156 : vector<8x128xf32>
    %1159 = arith.divf %1157, %1158 : vector<8x128xf32>
    %1160 = vector.extract_strided_slice %1147 {offsets = [0, 256], sizes = [8, 128], strides = [1, 1]} : vector<8x512xf32> to vector<8x128xf32>
    %1161 = math.tanh %1160 : vector<8x128xf32>
    %1162 = vector.extract_strided_slice %1147 {offsets = [0, 384], sizes = [8, 128], strides = [1, 1]} : vector<8x512xf32> to vector<8x128xf32>
    %1163 = arith.negf %1162 : vector<8x128xf32>
    %1164 = math.exp %1163 : vector<8x128xf32>
    %cst_262 = arith.constant 1.000000e+00 : f32
    %1165 = vector.broadcast %cst_262 : f32 to vector<8x128xf32>
    %1166 = arith.addf %1165, %1164 : vector<8x128xf32>
    %1167 = arith.divf %1165, %1166 : vector<8x128xf32>
    %1168 = arith.mulf %1159, %1110 : vector<8x128xf32>
    %1169 = arith.mulf %1153, %1161 : vector<8x128xf32>
    %1170 = arith.addf %1168, %1169 : vector<8x128xf32>
    %1171 = math.tanh %1170 : vector<8x128xf32>
    %1172 = arith.mulf %1167, %1171 : vector<8x128xf32>
    %1173 = tpu.concatenate %1172, %1143 in 1 : vector<8x128xf32>, vector<8x128xf32> -> vector<8x256xf32>
    %1174 = arith.truncf %1173 : vector<8x256xf32> to vector<8x256xbf16>
    %c0_263 = arith.constant 0 : index
    %c0_264 = arith.constant 0 : index
    %1175 = vector.load %arg13[%c0_263, %c0_264] : memref<256x512xbf16, #tpu.memory_space<vmem>>, vector<256x512xbf16>
    %cst_265 = arith.constant dense<0.000000e+00> : vector<8x512xf32>
    %1176 = tpu.matmul %1174, %1175, %cst_265 {dimension_numbers = #tpu.dot_dimension_numbers<[1], [0], [0], [1], [0, 0, 1, 1], [], []>} : vector<8x256xbf16>, vector<256x512xbf16>, vector<8x512xf32> -> vector<8x512xf32>
    %1177 = vector.broadcast %7 : vector<1x512xf32> to vector<8x512xf32>
    %1178 = arith.addf %1176, %1177 : vector<8x512xf32>
    %1179 = vector.extract_strided_slice %1178 {offsets = [0, 0], sizes = [8, 128], strides = [1, 1]} : vector<8x512xf32> to vector<8x128xf32>
    %1180 = arith.negf %1179 : vector<8x128xf32>
    %1181 = math.exp %1180 : vector<8x128xf32>
    %cst_266 = arith.constant 1.000000e+00 : f32
    %1182 = vector.broadcast %cst_266 : f32 to vector<8x128xf32>
    %1183 = arith.addf %1182, %1181 : vector<8x128xf32>
    %1184 = arith.divf %1182, %1183 : vector<8x128xf32>
    %1185 = vector.extract_strided_slice %1178 {offsets = [0, 128], sizes = [8, 128], strides = [1, 1]} : vector<8x512xf32> to vector<8x128xf32>
    %1186 = arith.negf %1185 : vector<8x128xf32>
    %1187 = math.exp %1186 : vector<8x128xf32>
    %cst_267 = arith.constant 1.000000e+00 : f32
    %1188 = vector.broadcast %cst_267 : f32 to vector<8x128xf32>
    %1189 = arith.addf %1188, %1187 : vector<8x128xf32>
    %1190 = arith.divf %1188, %1189 : vector<8x128xf32>
    %1191 = vector.extract_strided_slice %1178 {offsets = [0, 256], sizes = [8, 128], strides = [1, 1]} : vector<8x512xf32> to vector<8x128xf32>
    %1192 = math.tanh %1191 : vector<8x128xf32>
    %1193 = vector.extract_strided_slice %1178 {offsets = [0, 384], sizes = [8, 128], strides = [1, 1]} : vector<8x512xf32> to vector<8x128xf32>
    %1194 = arith.negf %1193 : vector<8x128xf32>
    %1195 = math.exp %1194 : vector<8x128xf32>
    %cst_268 = arith.constant 1.000000e+00 : f32
    %1196 = vector.broadcast %cst_268 : f32 to vector<8x128xf32>
    %1197 = arith.addf %1196, %1195 : vector<8x128xf32>
    %1198 = arith.divf %1196, %1197 : vector<8x128xf32>
    %1199 = arith.mulf %1190, %1141 : vector<8x128xf32>
    %1200 = arith.mulf %1184, %1192 : vector<8x128xf32>
    %1201 = arith.addf %1199, %1200 : vector<8x128xf32>
    %1202 = math.tanh %1201 : vector<8x128xf32>
    %1203 = arith.mulf %1198, %1202 : vector<8x128xf32>
    %1204 = tpu.concatenate %783, %843, %903, %963, %1023, %1083, %1143, %1203 in 0 : vector<8x128xf32>, vector<8x128xf32>, vector<8x128xf32>, vector<8x128xf32>, vector<8x128xf32>, vector<8x128xf32>, vector<8x128xf32>, vector<8x128xf32> -> vector<64x128xf32>
    %1205 = arith.truncf %1204 : vector<64x128xf32> to vector<64x128xbf16>
    %c0_269 = arith.constant 0 : index
    %c0_270 = arith.constant 0 : index
    %1206 = vector.load %arg15[%c0_269, %c0_270] : memref<128x128xbf16, #tpu.memory_space<vmem>>, vector<128x128xbf16>
    %cst_271 = arith.constant dense<0.000000e+00> : vector<64x128xf32>
    %1207 = tpu.matmul %1205, %1206, %cst_271 {dimension_numbers = #tpu.dot_dimension_numbers<[1], [0], [0], [1], [0, 0, 1, 1], [], []>} : vector<64x128xbf16>, vector<128x128xbf16>, vector<64x128xf32> -> vector<64x128xf32>
    %1208 = vector.broadcast %8 : vector<1x128xf32> to vector<64x128xf32>
    %1209 = arith.addf %1207, %1208 : vector<64x128xf32>
    %c0_272 = arith.constant 0 : index
    %c0_273 = arith.constant 0 : index
    %1210 = vector.load %arg17[%c0_272, %c0_273] : memref<64x128xf32, #tpu.memory_space<vmem>>, vector<64x128xf32>
    tpu.vector_store %arg17[%c0_272, %c0_273], %1209 {strides = array<i32>} : memref<64x128xf32, #tpu.memory_space<vmem>>, vector<64x128xf32>,
    return
  }
}

</mosaic_0001>

<bundles_post_ra>
// kernel: tpu_custom_call.1
= control target key start
LH: loop header
LB: loop body
LE: loop exit
PB: predicated region body
PF: predicated region fallthrough
CT: control target
= control target key end

     0   :  { %s11004_s0 = inlined_call_operand.vmem [shape: f32[64,14], index: 0, kind: input, shape index: {}]   ;;  %s11005_s1 = inlined_call_operand.vmem [shape: bf16[14,512], index: 1, kind: input, shape index: {}]   ;;  %s11006_s2 = inlined_call_operand.hbm [shape: bf16[128,512], index: 2, kind: input, shape index: {}]   ;;  %s11007_s3 = inlined_call_operand.vmem [shape: f32[1,512], index: 3, kind: input, shape index: {}]   ;;  %s11008_s4 = inlined_call_operand.vmem [shape: f32[1,128], index: 4, kind: input, shape index: {}]   ;;  %s11009_s5 = inlined_call_operand.vmem [shape: f32[1,128], index: 5, kind: input, shape index: {}]   ;;  %s11010_s6 = inlined_call_operand.hbm [shape: bf16[256,512], index: 6, kind: input, shape index: {}]   ;;  %s11011_s7 = inlined_call_operand.vmem [shape: f32[1,512], index: 7, kind: input, shape index: {}]   ;;  %s11012_s8 = inlined_call_operand.vmem [shape: f32[1,128], index: 8, kind: input, shape index: {}]   ;;  %s11013_s9 = inlined_call_operand.hbm [shape: f32[1,128], index: 9, kind: input, shape index: {}]   ;;  %s11014_s10 = inlined_call_operand.hbm [shape: bf16[128,512], index: 10, kind: input, shape index: {}]   ;;  %s11015_s11 = inlined_call_operand.hbm [shape: bf16[128,512], index: 11, kind: input, shape index: {}]   ;;  %s11016_s12 = inlined_call_operand.hbm [shape: f32[1,512], index: 12, kind: input, shape index: {}]   ;;  %s11017_s13 = inlined_call_operand.hbm [shape: bf16[256,512], index: 13, kind: input, shape index: {}]   ;;  %s11018_s14 = inlined_call_operand.hbm [shape: f32[1,512], index: 14, kind: input, shape index: {}]   ;;  %s11019_s15 = inlined_call_operand.vmem [shape: bf16[128,128], index: 15, kind: input, shape index: {}]   ;;  %s11020_s16 = inlined_call_operand.vmem [shape: f32[1,128], index: 16, kind: input, shape index: {}]   ;;  %s11021_s17 = inlined_call_operand.hbm [shape: f32[64,128], index: 17, kind: output, shape index: {}]  }
   0x1   :  { %11577 = sst [smem:[#allocation107_spill]] %s11004_s0 }
   0x2   :  { %11578 = sst [smem:[#allocation108_spill]] %s11005_s1 }
   0x3   :  { %22 = vsyncpa [#allocation3], 0 }
   0x4   :  { %23 = vsyncpa [#allocation6], 0 }
   0x5   :  { %24 = vsyncpa [#allocation9], 0 }
   0x6   :  { %25 = vsyncpa [#allocation12], 0 }
   0x7   :  { %26 = vsyncpa [#allocation15], 0 }
   0x8   :  { %27 = vsyncpa [#allocation4], 0  ;;  %s7584_s24 = smov [#allocation5]   ;;  %s7585_s26 = smov [#allocation8]  }
   0x9   :  { %s55_s25 = sshll.u32 %s7584_s24, 4  ;;  %s81_s27 = sshll.u32 %s7585_s26, 4  ;;  %s56_s25 = int_to_ptr.vmem [resolvable:$true] %s55_s25  ;;  %s82_s27 = int_to_ptr.vmem [resolvable:$true] %s81_s27 }
   0xa   :  { %s7400_s28 = scalar_lea.vmem %s56_s25, 8192  ;;  %p7405_p1 = scmp.lt.s32.totalorder %s56_s25, %s56_s25 }
   0xb   :  { %p7401_p0 = scmp.ne.s32.totalorder %s56_s25, %s7400_s28  ;;  %p7406_p2 = scmp.lt.s32.totalorder %s7400_s28, %s7400_s28 }
   0xd   :  { %p7407_p3 = por %p7406_p2, %p7405_p1 }
   0xf   :  { %p7408_p4 = pnand %p7407_p3, %p7401_p0 }
  0x11   :  { %7411 = shalt.err (!%p7408_p4)
}
  0x12   :  { %s7586_s29 = smov 256   ;;  %s7587_s0 = smov 16  }
  0x13   :  { %61 = dma.hbm_to_vmem [thread:$0]  %s11010_s6, 8192, %s56_s25, [#allocation6], %s7586_s29, %s7586_s29, %s7587_s0  }
  0x14   :  { %s7420_s19 = scalar_lea.vmem %s82_s27, 4096  ;;  %p7425_p6 = scmp.lt.s32.totalorder %s82_s27, %s82_s27 }
  0x15   :  { %p7421_p5 = scmp.ne.s32.totalorder %s82_s27, %s7420_s19  ;;  %p7426_p7 = scmp.lt.s32.totalorder %s7420_s19, %s7420_s19 }
  0x17   :  { %p7427_p8 = por %p7426_p7, %p7425_p6 }
  0x19   :  { %p7428_p9 = pnand %p7427_p8, %p7421_p5 }
  0x1b   :  { %7431 = shalt.err (!%p7428_p9)
}
  0x1c   :  { %87 = dma.hbm_to_vmem [thread:$0]  %s11014_s10, 4096, %s82_s27, [#allocation9], %s7586_s29, %s7586_s29, %s7587_s0  }
  0x1d   :  { %s7588_s21 = smov [#allocation11]   ;;  %s7589_s23 = smov [#allocation2]  }
  0x1e   :  { %s106_s22 = sshll.u32 %s7588_s21, 4  ;;  %s37_s24 = sshll.u32 %s7589_s23, 4  ;;  %s107_s22 = int_to_ptr.vmem [resolvable:$true] %s106_s22  ;;  %s38_s24 = int_to_ptr.vmem [resolvable:$true] %s37_s24 }
  0x1f   :  { %s7440_s6 = scalar_lea.vmem %s107_s22, 64  ;;  %p7445_p11 = scmp.lt.s32.totalorder %s107_s22, %s107_s22 }
  0x20   :  { %p7441_p10 = scmp.ne.s32.totalorder %s107_s22, %s7440_s6  ;;  %p7446_p12 = scmp.lt.s32.totalorder %s7440_s6, %s7440_s6 }
  0x22   :  { %p7447_p13 = por %p7446_p12, %p7445_p11 }
  0x24   :  { %p7448_p0 = pnand %p7447_p13, %p7441_p10 }
  0x26   :  { %7451 = shalt.err (!%p7448_p0)
}
  0x27   :  { %109 = dma.hbm_to_vmem [thread:$0]  %s11016_s12, 64, %s107_s22, [#allocation12]  }
  0x28   :  { %s7460_s28 = scalar_lea.vmem %s38_s24, 4096  ;;  %p7465_p2 = scmp.lt.s32.totalorder %s38_s24, %s38_s24 }
  0x29   :  { %p7461_p1 = scmp.ne.s32.totalorder %s38_s24, %s7460_s28  ;;  %p7466_p3 = scmp.lt.s32.totalorder %s7460_s28, %s7460_s28 }
  0x2b   :  { %p7467_p4 = por %p7466_p3, %p7465_p2 }
  0x2d   :  { %p7468_p5 = pnand %p7467_p4, %p7461_p1 }
  0x2f   :  { %7471 = shalt.err (!%p7468_p5)
}
  0x30   :  { %43 = dma.hbm_to_vmem [thread:$0]  %s11006_s2, 4096, %s38_s24, [#allocation3], %s7586_s29, %s7586_s29, %s7587_s0  }
  0x31   :  { %s7590_s30 = smov [#allocation7]   ;;  %s7591_s19 = smov [#allocation10]  }
  0x32   :  { %s72_s18 = sshll.u32 %s7590_s30, 4  ;;  %s93_s1 = sshll.u32 %s7591_s19, 4  ;;  %s73_s18 = int_to_ptr.vmem [resolvable:$true] %s72_s18  ;;  %s94_s1 = int_to_ptr.vmem [resolvable:$true] %s93_s1 }
  0x33   :  { %s7480_s12 = scalar_lea.vmem %s73_s18, 16  ;;  %s7484_s20 = scalar_lea.vmem %s73_s18, 32 }
  0x34   :  { %p7481_p6 = scmp.ne.s32.totalorder %s73_s18, %s7480_s12  ;;  %p7485_p7 = scmp.lt.s32.totalorder %s73_s18, %s73_s18 }
  0x35   :  { %p7486_p8 = scmp.lt.s32.totalorder %s7484_s20, %s7480_s12 }
  0x37   :  { %p7487_p9 = por %p7486_p8, %p7485_p7 }
  0x39   :  { %p7488_p10 = pnand %p7487_p9, %p7481_p6 }
  0x3b   :  { %7491 = shalt.err (!%p7488_p10)
}
  0x3c   :  { %75 = dma.hbm_to_vmem [thread:$0]  %s11013_s9, 16, %s73_s18, [#allocation6]  }
  0x3d   :  { %s7500_s23 = scalar_lea.vmem %s94_s1, 4096  ;;  %p7505_p12 = scmp.lt.s32.totalorder %s94_s1, %s94_s1 }
  0x3e   :  { %p7501_p11 = scmp.ne.s32.totalorder %s94_s1, %s7500_s23  ;;  %p7506_p13 = scmp.lt.s32.totalorder %s7500_s23, %s7500_s23 }
  0x40   :  { %p7507_p0 = por %p7506_p13, %p7505_p12 }
  0x42   :  { %p7508_p1 = pnand %p7507_p0, %p7501_p11 }
  0x44   :  { %7511 = shalt.err (!%p7508_p1)
}
  0x45   :  { %99 = dma.hbm_to_vmem [thread:$0]  %s11015_s11, 4096, %s94_s1, [#allocation9], %s7586_s29, %s7586_s29, %s7587_s0  }
  0x46   :  { %s7592_s6 = smov [#allocation13]   ;;  %s7593_s26 = smov [#allocation14]  }
  0x47   :  { %s115_s25 = sshll.u32 %s7592_s6, 4  ;;  %s128_s28 = sshll.u32 %s7593_s26, 4  ;;  %s116_s25 = int_to_ptr.vmem [resolvable:$true] %s115_s25  ;;  %s129_s28 = int_to_ptr.vmem [resolvable:$true] %s128_s28 }
  0x48   :  { %s7520_s9 = scalar_lea.vmem %s116_s25, 8192  ;;  %p7525_p3 = scmp.lt.s32.totalorder %s116_s25, %s116_s25 }
  0x49   :  { %p7521_p2 = scmp.ne.s32.totalorder %s116_s25, %s7520_s9  ;;  %p7526_p4 = scmp.lt.s32.totalorder %s7520_s9, %s7520_s9 }
  0x4b   :  { %p7527_p5 = por %p7526_p4, %p7525_p3 }
  0x4d   :  { %p7528_p6 = pnand %p7527_p5, %p7521_p2 }
  0x4f   :  { %7531 = shalt.err (!%p7528_p6)
}
  0x50   :  { %121 = dma.hbm_to_vmem [thread:$0]  %s11017_s13, 8192, %s116_s25, [#allocation12], %s7586_s29, %s7586_s29, %s7587_s0  }
  0x51   :  { %s7540_s11 = scalar_lea.vmem %s129_s28, 64  ;;  %p7545_p8 = scmp.lt.s32.totalorder %s129_s28, %s129_s28 }
  0x52   :  { %p7541_p7 = scmp.ne.s32.totalorder %s129_s28, %s7540_s11  ;;  %p7546_p9 = scmp.lt.s32.totalorder %s7540_s11, %s7540_s11 }
  0x54   :  { %p7547_p10 = por %p7546_p9, %p7545_p8 }
  0x56   :  { %p7548_p11 = pnand %p7547_p10, %p7541_p7 }
  0x58   :  { %7551 = shalt.err (!%p7548_p11)
}
  0x59   :  { %131 = dma.hbm_to_vmem [thread:$0]  %s11018_s14, 64, %s129_s28, [#allocation15]  }
  0x5a   :  { %7572 = dma.done.wait [#allocation3], 4096  }
  0x5b   :  { %7573 = vsyncadd [#allocation3], 4294963200 }
  0x5c   :  { %7574 = dma.done.wait [#allocation6], 8208  }
  0x5d   :  { %7575 = vsyncadd [#allocation6], 4294959088 }
  0x5e   :  { %7576 = dma.done.wait [#allocation9], 8192  }
  0x5f   :  { %7577 = vsyncadd [#allocation9], 4294959104 }
  0x60   :  { %7578 = dma.done.wait [#allocation12], 8256  }
  0x61   :  { %7579 = vsyncadd [#allocation12], 4294959040 }
  0x62   :  { %7580 = dma.done.wait [#allocation15], 64  }
  0x63   :  { %7581 = vsyncadd [#allocation15], 4294967232  ;;  %v11024_v0 = vmov 0   ;;  %vm244_vm0 = vcmask 1046528   ;;  %s11579_s0 = sld [smem:[#allocation108_spill]]  ;;  %vm231_vm1 = vcmask 113664   ;;  %v11026_v51 = vlaneseq }
  0x64   :  { %362 = vmatprep.mubr.bf16.mxu1 %v11024_v0  ;;  %289 = vmatprep.mubr.bf16.mxu0 %v11024_v0  ;;  %s11580_s20 = sld [smem:[#allocation107_spill]]  ;;  %v6111_v5 = vld [vmem:[#allocation2 + $0xe4] ss:$16 sps:$4 sm:$0xff]   ;;  %v6113_v8 = vld [vmem:[#allocation2 + $0xe0] ss:$16 sps:$4 sm:$0xff]  }
  0x65   :  { %v6114_v9 = vld [vmem:[#allocation2 + $0xc4] ss:$16 sps:$4 sm:$0xff]   ;;  %v6116_v10 = vld [vmem:[#allocation2 + $0xc0] ss:$16 sps:$4 sm:$0xff]   ;;  %v7782_v35 = vld [vmem:[#allocation2 + $0xec] ss:$16 sps:$4 sm:$0xff]  }
  0x66   :  { %v6117_v13 = vld [vmem:[#allocation2 + $0xa4] ss:$16 sps:$4 sm:$0xff]   ;;  %v6119_v15 = vld [vmem:[#allocation2 + $0xa0] ss:$16 sps:$4 sm:$0xff]   ;;  %v7785_v36 = vld [vmem:[#allocation2 + $0xe8] ss:$16 sps:$4 sm:$0xff]  }
  0x67   :  { %v6120_v16 = vld [vmem:[#allocation2 + $0x84] ss:$16 sps:$4 sm:$0xff]   ;;  %v6122_v17 = vld [vmem:[#allocation2 + $0x80] ss:$16 sps:$4 sm:$0xff]   ;;  %v7787_v37 = vld [vmem:[#allocation2 + $0xcc] ss:$16 sps:$4 sm:$0xff]  }
  0x68   :  { %v6123_v23 = vld [vmem:[#allocation2 + $0x64] ss:$16 sps:$4 sm:$0xff]   ;;  %v6125_v25 = vld [vmem:[#allocation2 + $0x60] ss:$16 sps:$4 sm:$0xff]   ;;  %v7791_v38 = vld [vmem:[#allocation2 + $0xc8] ss:$16 sps:$4 sm:$0xff]  }
  0x69   :  { %v6108_v1 = vld [vmem:[%s11579_s0 + $0xc] ss:$16 sps:$4 sm:$0x7f]   ;;  %v6110_v2 = vld [vmem:[%s11579_s0 + $0x8] ss:$16 sps:$4 sm:$0x7f]  }
  0x6a   :  { %v178_v3 = vld [vmem:[%s11580_s20] sm:$0xff]  ;;  %v179_v4 = vld [vmem:[%s11580_s20 + $0x8] sm:$0xff]  ;;  %5718 = vmatprep.subr.msk.bf16.mxu1 %vm244_vm0, %v6108_v1  ;;  %v252_v6 = vsel %vm244_vm0, %v6110_v2, 0  ;;  %v180_v11 = vld [vmem:[%s11580_s20 + $0x10] sm:$0xff]  ;;  %v196_v52 = vshrl.u32 %v11026_v51, 7 }
  0x6b   :  { %v186_v7 = vpack.c.bf16 %v179_v4, %v178_v3  ;;  %345 = vmatpush1.bf16.msra.mxu1 %v252_v6  ;;  %v181_v12 = vld [vmem:[%s11580_s20 + $0x18] sm:$0xff]  ;;  %v6132_v18 = vld [vmem:[%s11579_s0 + $0x4] ss:$16 sps:$4 sm:$0x7f]   ;;  %v183_v21 = vld [vmem:[%s11580_s20 + $0x28] sm:$0xff] }
  0x6c   :  { %595 = vmatprep.subr.bf16.mxu1 %v6111_v5  ;;  %v187_v14 = vpack.c.bf16 %v181_v12, %v180_v11  ;;  %v6134_v19 = vld [vmem:[%s11579_s0] ss:$16 sps:$4 sm:$0x7f]   ;;  %5713 = vmatprep.subr.msk.bf16.mxu0 %vm244_vm0, %v6132_v18  ;;  %v6126_v26 = vld [vmem:[#allocation2 + $0x44] ss:$16 sps:$4 sm:$0xff]   ;;  %v185_v29 = vld [vmem:[%s11580_s20 + $0x38] sm:$0xff] }
  0x6d   :  { %v182_v20 = vld [vmem:[%s11580_s20 + $0x20] sm:$0xff]  ;;  %v246_v22 = vsel %vm244_vm0, %v6134_v19, 0  ;;  %v184_v28 = vld [vmem:[%s11580_s20 + $0x30] sm:$0xff]  ;;  %v7795_v39 = vld [vmem:[#allocation2 + $0xac] ss:$16 sps:$4 sm:$0xff]   ;;  %v7838_v53 = vsub.s32 2, %v196_v52 }
  0x6e   :  { %5719 = vmatmul.mubr.msk.bf16.vlgmr.msra.gmra.mxu1 %vm231_vm1, %v186_v7  ;;  %272 = vmatpush1.bf16.msra.mxu0 %v246_v22  ;;  %v188_v24 = vpack.c.bf16 %v183_v21, %v182_v20  ;;  %v6128_v27 = vld [vmem:[#allocation2 + $0x40] ss:$16 sps:$4 sm:$0xff]   ;;  %v6129_v30 = vld [vmem:[#allocation2 + $0x24] ss:$16 sps:$4 sm:$0xff]   ;;  %v189_v32 = vpack.c.bf16 %v185_v29, %v184_v28  ;;  %v7800_v40 = vld [vmem:[#allocation2 + $0xa8] ss:$16 sps:$4 sm:$0xff]  }
  0x6f   :  { %596 = vmatpush1.bf16.msra.mxu1 %v6113_v8  ;;  %372 = vmatprep.mubr.bf16.mxu1 %v11024_v0  ;;  %v6131_v31 = vld [vmem:[#allocation2 + $0x20] ss:$16 sps:$4 sm:$0xff]   ;;  %v6135_v33 = vld [vmem:[#allocation2 + $0x4] ss:$16 sps:$4 sm:$0xff]   ;;  %v7802_v41 = vld [vmem:[#allocation2 + $0x8c] ss:$16 sps:$4 sm:$0xff]  }
  0x70   :  { %597 = vmatprep.subr.bf16.mxu1 %v6114_v9  ;;  %v6137_v34 = vld [vmem:[#allocation2] ss:$16 sps:$4 sm:$0xff]   ;;  %v7807_v42 = vld [vmem:[#allocation2 + $0x88] ss:$16 sps:$4 sm:$0xff]   ;;  %v7809_v43 = vld [vmem:[#allocation2 + $0x6c] ss:$16 sps:$4 sm:$0xff]  }
  0x71   :  { %5714 = vmatmul.mubr.msk.bf16.vlgmr.msra.gmra.mxu0 %vm231_vm1, %v186_v7  ;;  %v7813_v44 = vld [vmem:[#allocation2 + $0x68] ss:$16 sps:$4 sm:$0xff]   ;;  %v7815_v45 = vld [vmem:[#allocation2 + $0x4c] ss:$16 sps:$4 sm:$0xff]   ;;  %11581 = vst [vmem:[#allocation23_spill] sm:$0xff] %v7838_v53  ;;  %v7844_v59 = vsub.s32 3, %v196_v52 }
  0x72   :  { %299 = vmatprep.mubr.bf16.mxu0 %v11024_v0  ;;  %v7819_v46 = vld [vmem:[#allocation2 + $0x48] ss:$16 sps:$4 sm:$0xff]   ;;  %v7821_v47 = vld [vmem:[#allocation2 + $0x2c] ss:$16 sps:$4 sm:$0xff]   ;;  %v161_v54 = vld [vmem:[%s11007_s3] sm:$0xf] }
  0x73   :  { %598 = vmatpush1.bf16.msra.mxu1 %v6116_v10  ;;  %v7825_v48 = vld [vmem:[#allocation2 + $0x28] ss:$16 sps:$4 sm:$0xff]   ;;  %v7827_v49 = vld [vmem:[#allocation2 + $0xc] ss:$16 sps:$4 sm:$0xff]   ;;  %v206_v57 = vrot.slane %v161_v54, %v7838_v53  ;;  %11582 = vst [vmem:[#allocation24_spill] sm:$0xff] %v7844_v59  ;;  %v7851_v63 = vrot.slane %v161_v54, %v7844_v59  ;;  %v7875_v18 = vsub.s32 0, %v196_v52 }
  0x74   :  { %599 = vmatprep.subr.bf16.mxu1 %v6117_v13  ;;  %v7831_v50 = vld [vmem:[#allocation2 + $0x8] ss:$16 sps:$4 sm:$0xff]   ;;  %v7969_v51 = vld [vmem:[#allocation5 + $0x24] ss:$16 sps:$4 sm:$0xff]   ;;  %v11049_v59 = vmov 0.0  }
  0x75   :  { %11585 = vst [vmem:[#allocation27_spill] sm:$0xff] %v7851_v63  ;;  %11596 = vst [vmem:[#allocation38_spill] sm:$0xff] %v7875_v18 }
  0x76   :  { %5720 = vmatmul.mubr.msk.bf16.gmra.mxu1 %vm231_vm1, %v187_v14  ;;  %11605 = vst [vmem:[#allocation47_spill] sm:$0xff] %v7969_v51 }
  0x77   :  { %600 = vmatpush1.bf16.msra.mxu1 %v6119_v15  ;;  %382 = vmatprep.mubr.bf16.mxu1 %v11024_v0 }
  0x78   :  { %601 = vmatprep.subr.bf16.mxu1 %v6120_v16  ;;  %v7873_v16 = vsub.s32 1, %v196_v52 }
  0x79   :  { %5715 = vmatmul.mubr.msk.bf16.gmra.mxu0 %vm231_vm1, %v187_v14 }
  0x7a   :  { %309 = vmatprep.mubr.bf16.mxu0 %v11024_v0  ;;  %11595 = vst [vmem:[#allocation37_spill] sm:$0xff] %v7873_v16 }
  0x7b   :  { %602 = vmatpush1.bf16.msra.mxu1 %v6122_v17 }
  0x7c   :  { %603 = vmatprep.subr.bf16.mxu1 %v6123_v23  ;;  %v7883_v23 = vrot.slane %v161_v54, %v7873_v16 }
  0x7e   :  { %5721 = vmatmul.mubr.msk.bf16.gmra.mxu1 %vm231_vm1, %v188_v24  ;;  %11599 = vst [vmem:[#allocation41_spill] sm:$0xff] %v7883_v23 }
  0x7f   :  { %604 = vmatpush1.bf16.msra.mxu1 %v6125_v25  ;;  %392 = vmatprep.mubr.bf16.mxu1 %v11024_v0 }
  0x80   :  { %605 = vmatprep.subr.bf16.mxu1 %v6126_v26 }
  0x81   :  { %5716 = vmatmul.mubr.msk.bf16.gmra.mxu0 %vm231_vm1, %v188_v24  ;;  %v7886_v24 = vrot.slane %v161_v54, %v7875_v18 }
  0x82   :  { %319 = vmatprep.mubr.bf16.mxu0 %v11024_v0 }
  0x83   :  { %606 = vmatpush1.bf16.msra.mxu1 %v6128_v27  ;;  %11600 = vst [vmem:[#allocation42_spill] sm:$0xff] %v7886_v24 }
  0x84   :  { %607 = vmatprep.subr.bf16.mxu1 %v6129_v30 }
  0x86   :  { %5722 = vmatmul.mubr.msk.bf16.gmra.mxu1 %vm231_vm1, %v189_v32 }
  0x87   :  { %608 = vmatpush1.bf16.msra.mxu1 %v6131_v31  ;;  %627 = vmatprep.mubr.bf16.mxu1 %v11024_v0 }
  0x88   :  { %609 = vmatprep.subr.bf16.mxu1 %v6135_v33 }
  0x89   :  { %5717 = vmatmul.mubr.msk.bf16.gmra.mxu0 %vm231_vm1, %v189_v32 }
  0x8b   :  { %610 = vmatpush1.bf16.msra.mxu1 %v6137_v34 }
  0x8c   :  { %636 = vmatprep.subr.bf16.mxu1 %v7782_v35 }
  0x8e   :  { %628 = vmatmul.mubr.bf16.vlgmr.msra.gmra.mxu1 %v11024_v0 }
  0x8f   :  { %637 = vmatpush1.bf16.msra.mxu1 %v7785_v36  ;;  %668 = vmatprep.mubr.bf16.mxu1 %v11024_v0 }
  0x90   :  { %638 = vmatprep.subr.bf16.mxu1 %v7787_v37 }
  0x93   :  { %639 = vmatpush1.bf16.msra.mxu1 %v7791_v38 }
  0x94   :  { %640 = vmatprep.subr.bf16.mxu1 %v7795_v39 }
  0x97   :  { %641 = vmatpush1.bf16.msra.mxu1 %v7800_v40 }
  0x98   :  { %642 = vmatprep.subr.bf16.mxu1 %v7802_v41 }
  0x9b   :  { %643 = vmatpush1.bf16.msra.mxu1 %v7807_v42 }
  0x9c   :  { %644 = vmatprep.subr.bf16.mxu1 %v7809_v43 }
  0x9f   :  { %645 = vmatpush1.bf16.msra.mxu1 %v7813_v44 }
  0xa0   :  { %646 = vmatprep.subr.bf16.mxu1 %v7815_v45 }
  0xa3   :  { %647 = vmatpush1.bf16.msra.mxu1 %v7819_v46 }
  0xa4   :  { %648 = vmatprep.subr.bf16.mxu1 %v7821_v47 }
  0xa7   :  { %649 = vmatpush1.bf16.msra.mxu1 %v7825_v48 }
  0xa8   :  { %650 = vmatprep.subr.bf16.mxu1 %v7827_v49 }
  0xab   :  { %651 = vmatpush1.bf16.msra.mxu1 %v7831_v50 }
  0xae   :  { %669 = vmatmul.mubr.bf16.vlgmr.msra.gmra.mxu1 %v11024_v0  ;;  %v7965_v0 = vld [vmem:[#allocation5 + $0x48] ss:$16 sps:$4 sm:$0xff]  }
  0xaf   :  { %11604 = vst [vmem:[#allocation46_spill] sm:$0xff] %v7965_v0 }
 0x12e   :  { %v364_v55 = vpop.f32.mrf.mxu1 }
 0x130   :  { %v366_v56 = vpop.f32.mrf.mxu1 }
 0x131   :  { %v291_v19 = vpop.f32.mrf.mxu0 }
 0x132   :  { %v368_v58 = vpop.f32.mrf.mxu1  ;;  %v292_v29 = vadd.f32 %v291_v19, %v7886_v24 }
 0x133   :  { %v7846_v60 = vadd.f32 %v368_v58, %v206_v57  ;;  %v293_v26 = vpop.f32.mrf.mxu0 }
 0x134   :  { %v7848_v61 = vpop.f32.mrf.mxu1  ;;  %v294_v28 = vadd.f32 %v293_v26, %v7883_v23 }
 0x135   :  { %11583 = vst [vmem:[#allocation25_spill] sm:$0xff] %v7846_v60  ;;  %11584 = vst [vmem:[#allocation26_spill] sm:$0xff] %v7848_v61  ;;  %v8011_v60 = vld [vmem:[#allocation5 + $0x1c0] ss:$16 sps:$4 sm:$0xff]   ;;  %v8013_v61 = vld [vmem:[#allocation5 + $0x1c8] ss:$16 sps:$4 sm:$0xff]  }
 0x136   :  { %v374_v62 = vpop.f32.mrf.mxu1  ;;  %11619 = vst [vmem:[#allocation61_spill] sm:$0xff] %v8011_v60  ;;  %11620 = vst [vmem:[#allocation62_spill] sm:$0xff] %v8013_v61 }
 0x137   :  { %v7853_v1 = vadd.f32 %v374_v62, %v206_v57 }
 0x138   :  { %v376_v2 = vpop.f32.mrf.mxu1 }
 0x139   :  { %11586 = vst [vmem:[#allocation28_spill] sm:$0xff] %v7853_v1  ;;  %v7856_v3 = vadd.f32 %v376_v2, %v7851_v63  ;;  %v8001_v1 = vld [vmem:[#allocation5 + $0x1e8] ss:$16 sps:$4 sm:$0xff]  }
 0x13a   :  { %v378_v4 = vpop.f32.mrf.mxu1  ;;  %11616 = vst [vmem:[#allocation58_spill] sm:$0xff] %v8001_v1 }
 0x13b   :  { %11587 = vst [vmem:[#allocation29_spill] sm:$0xff] %v7856_v3  ;;  %v7858_v5 = vadd.f32 %v378_v4, %v206_v57  ;;  %v8005_v3 = vld [vmem:[#allocation5 + $0x1c4] ss:$16 sps:$4 sm:$0xff]  }
 0x13c   :  { %v7860_v6 = vpop.f32.mrf.mxu1  ;;  %11617 = vst [vmem:[#allocation59_spill] sm:$0xff] %v8005_v3 }
 0x13d   :  { %11588 = vst [vmem:[#allocation30_spill] sm:$0xff] %v7858_v5  ;;  %11589 = vst [vmem:[#allocation31_spill] sm:$0xff] %v7860_v6  ;;  %v7995_v5 = vld [vmem:[#allocation5 + $0x1ec] ss:$16 sps:$4 sm:$0xff]   ;;  %v7999_v6 = vld [vmem:[#allocation5 + $0x1e0] ss:$16 sps:$4 sm:$0xff]  }
 0x13e   :  { %v384_v7 = vpop.f32.mrf.mxu1  ;;  %11614 = vst [vmem:[#allocation56_spill] sm:$0xff] %v7995_v5  ;;  %11615 = vst [vmem:[#allocation57_spill] sm:$0xff] %v7999_v6 }
 0x13f   :  { %v7862_v8 = vadd.f32 %v384_v7, %v206_v57  ;;  %v365_v7 = vadd.f32 %v364_v55, %v206_v57 }
 0x140   :  { %v386_v9 = vpop.f32.mrf.mxu1 }
 0x141   :  { %11590 = vst [vmem:[#allocation32_spill] sm:$0xff] %v7862_v8  ;;  %v7865_v10 = vadd.f32 %v386_v9, %v7851_v63  ;;  %v7989_v8 = vld [vmem:[#allocation5 + $0x8] ss:$16 sps:$4 sm:$0xff]  }
 0x142   :  { %v388_v11 = vpop.f32.mrf.mxu1  ;;  %11612 = vst [vmem:[#allocation54_spill] sm:$0xff] %v7989_v8 }
 0x143   :  { %11591 = vst [vmem:[#allocation33_spill] sm:$0xff] %v7865_v10  ;;  %v7867_v12 = vadd.f32 %v388_v11, %v206_v57  ;;  %v367_v11 = vadd.f32 %v366_v56, %v7851_v63  ;;  %v7993_v10 = vld [vmem:[#allocation5 + $0x1e4] ss:$16 sps:$4 sm:$0xff]  }
 0x144   :  { %v7869_v13 = vpop.f32.mrf.mxu1  ;;  %11613 = vst [vmem:[#allocation55_spill] sm:$0xff] %v7993_v10 }
 0x145   :  { %11592 = vst [vmem:[#allocation34_spill] sm:$0xff] %v7867_v12  ;;  %11593 = vst [vmem:[#allocation35_spill] sm:$0xff] %v7869_v13  ;;  %v7983_v12 = vld [vmem:[#allocation5 + $0xc] ss:$16 sps:$4 sm:$0xff]   ;;  %v7987_v13 = vld [vmem:[#allocation5] ss:$16 sps:$4 sm:$0xff]  }
 0x146   :  { %v394_v14 = vpop.f32.mrf.mxu1  ;;  %11610 = vst [vmem:[#allocation52_spill] sm:$0xff] %v7983_v12  ;;  %11611 = vst [vmem:[#allocation53_spill] sm:$0xff] %v7987_v13 }
 0x147   :  { %v7871_v15 = vadd.f32 %v394_v14, %v206_v57 }
 0x148   :  { %v396_v17 = vpop.f32.mrf.mxu1 }
 0x149   :  { %11594 = vst [vmem:[#allocation36_spill] sm:$0xff] %v7871_v15  ;;  %v7878_v20 = vadd.f32 %v396_v17, %v7851_v63  ;;  %v7977_v15 = vld [vmem:[#allocation5 + $0x28] ss:$16 sps:$4 sm:$0xff]   ;;  %v11621_v63 = vlaneseq }
 0x14a   :  { %v398_v21 = vpop.f32.mrf.mxu1  ;;  %11608 = vst [vmem:[#allocation50_spill] sm:$0xff] %v7977_v15 }
 0x14b   :  { %11597 = vst [vmem:[#allocation39_spill] sm:$0xff] %v7878_v20  ;;  %v7880_v22 = vadd.f32 %v398_v21, %v206_v57  ;;  %v7981_v20 = vld [vmem:[#allocation5 + $0x4] ss:$16 sps:$4 sm:$0xff]   ;;  %v8020_v23 = vand.u32 127, %v11621_v63  ;;  %v8034_v63 = vld [vmem:[#allocation5 + $0x1ac] ss:$16 sps:$4 sm:$0xff]  }
 0x14c   :  { %v7888_v25 = vpop.f32.mrf.mxu1  ;;  %11609 = vst [vmem:[#allocation51_spill] sm:$0xff] %v7981_v20  ;;  %11625 = vst [vmem:[#allocation66_spill] sm:$0xff] %v8034_v63 }
 0x14d   :  { %11598 = vst [vmem:[#allocation40_spill] sm:$0xff] %v7880_v22  ;;  %11601 = vst [vmem:[#allocation43_spill] sm:$0xff] %v7888_v25  ;;  %v7971_v22 = vld [vmem:[#allocation5 + $0x2c] ss:$16 sps:$4 sm:$0xff]   ;;  %v7975_v25 = vld [vmem:[#allocation5 + $0x20] ss:$16 sps:$4 sm:$0xff]  }
 0x14e   :  { %v629_v27 = vpop.f32.mrf.mxu1  ;;  %11606 = vst [vmem:[#allocation48_spill] sm:$0xff] %v7971_v22  ;;  %11607 = vst [vmem:[#allocation49_spill] sm:$0xff] %v7975_v25  ;;  %vm172_vm2 = vcmp.lt.s32.totalorder %v8020_v23, 64 }
 0x14f   :  { %v677_v33 = vadd.f32 %v629_v27, %v292_v29  ;;  %11622 = vst [vmem:[#allocation63_spill] sm:$0xff] %v8020_v23  ;;  %v8024_v16 = vsel %vm172_vm2, 1.0, %v11049_v59  ;;  %v8036_v23 = vld [vmem:[#allocation5 + $0x1a0] ss:$16 sps:$4 sm:$0xff]   ;;  %v8050_v59 = vld [vmem:[#allocation5 + $0x188] ss:$16 sps:$4 sm:$0xff]  }
 0x150   :  { %v631_v30 = vpop.f32.mrf.mxu1  ;;  %11623 = vst [vmem:[#allocation64_spill] sm:$0xff] %v8024_v16  ;;  %11626 = vst [vmem:[#allocation67_spill] sm:$0xff] %v8036_v23 }
 0x151   :  { %v678_v32 = vadd.f32 %v631_v30, %v294_v28  ;;  %v5755_v58 = vmul.f32 -1.442695, %v677_v33  ;;  %11631 = vst [vmem:[#allocation72_spill] sm:$0xff] %v8050_v59 }
 0x152   :  { %v633_v31 = vpop.f32.mrf.mxu1 }
 0x153   :  { %v5756_v52 = vmul.f32 -1.442695, %v678_v32 }
 0x154   :  { %v634_v34 = vpop.f32.mrf.mxu1 }
 0x155   :  { %6458 = vpow2.f32 %v5756_v52 }
 0x156   :  { %6460 = vpow2.f32 %v5755_v58  ;;  %v7899_v58 = vld [vmem:[#allocation5 + $0xe4] ss:$16 sps:$4 sm:$0xff]  }
 0x157   :  { %1139 = vmatprep.subr.bf16.mxu0 %v7899_v58 }
 0x162   :  { %v6459_v62 = vpop.eup %6458 }
 0x163   :  { %v6461_v54 = vpop.eup %6460  ;;  %v690_v2 = vadd.f32 1.0, %v6459_v62  ;;  %v7901_v62 = vld [vmem:[#allocation5 + $0xec] ss:$16 sps:$4 sm:$0xff]  }
 0x164   :  { %v684_v4 = vadd.f32 1.0, %v6461_v54  ;;  %v7903_v54 = vld [vmem:[#allocation5 + $0xe0] ss:$16 sps:$4 sm:$0xff]   ;;  %1180 = vmatprep.subr.bf16.mxu1 %v7901_v62 }
 0x165   :  { %6462 = vrcp.f32 %v690_v2  ;;  %v7905_v2 = vld [vmem:[#allocation5 + $0xe8] ss:$16 sps:$4 sm:$0xff]   ;;  %1140 = vmatpush1.bf16.msra.mxu0 %v7903_v54 }
 0x166   :  { %6464 = vrcp.f32 %v684_v4  ;;  %v7907_v4 = vld [vmem:[#allocation5 + $0xc4] ss:$16 sps:$4 sm:$0xff]   ;;  %1181 = vmatpush1.bf16.msra.mxu1 %v7905_v2 }
 0x167   :  { %1141 = vmatprep.subr.bf16.mxu0 %v7907_v4 }
 0x16e   :  { %v670_v9 = vpop.f32.mrf.mxu1 }
 0x16f   :  { %v679_v14 = vadd.f32 %v670_v9, %v365_v7  ;;  %v7909_v7 = vld [vmem:[#allocation5 + $0xcc] ss:$16 sps:$4 sm:$0xff]   ;;  %v7915_v9 = vld [vmem:[#allocation5 + $0xc0] ss:$16 sps:$4 sm:$0xff]  }
 0x170   :  { %v672_v17 = vpop.f32.mrf.mxu1  ;;  %1182 = vmatprep.subr.bf16.mxu1 %v7909_v7  ;;  %1142 = vmatpush1.bf16.msra.mxu0 %v7915_v9 }
 0x171   :  { %6466 = vtanh.f32 %v679_v14  ;;  %v680_v19 = vadd.f32 %v672_v17, %v367_v11  ;;  %v7917_v11 = vld [vmem:[#allocation5 + $0xc8] ss:$16 sps:$4 sm:$0xff]   ;;  %v7921_v14 = vld [vmem:[#allocation5 + $0xa4] ss:$16 sps:$4 sm:$0xff]   ;;  %v7923_v17 = vld [vmem:[#allocation5 + $0xac] ss:$16 sps:$4 sm:$0xff]  }
 0x172   :  { %v674_v21 = vpop.f32.mrf.mxu1  ;;  %v6463_v28 = vpop.eup %6462  ;;  %1183 = vmatpush1.bf16.msra.mxu1 %v7917_v11  ;;  %1143 = vmatprep.subr.bf16.mxu0 %v7921_v14 }
 0x173   :  { %v5757_v26 = vmul.f32 -1.442695, %v680_v19  ;;  %v6465_v29 = vpop.eup %6464  ;;  %v700_v31 = vmul.f32 0.0, %v6463_v28  ;;  %v7927_v19 = vld [vmem:[#allocation5 + $0xa0] ss:$16 sps:$4 sm:$0xff]   ;;  %1184 = vmatprep.subr.bf16.mxu1 %v7923_v17 }
 0x174   :  { %v675_v27 = vpop.f32.mrf.mxu1  ;;  %v7929_v21 = vld [vmem:[#allocation5 + $0xa8] ss:$16 sps:$4 sm:$0xff]   ;;  %1144 = vmatpush1.bf16.msra.mxu0 %v7927_v19  ;;  %v7939_v28 = vld [vmem:[#allocation5 + $0x80] ss:$16 sps:$4 sm:$0xff]  }
 0x175   :  { %6468 = vpow2.f32 %v5757_v26  ;;  %v7933_v26 = vld [vmem:[#allocation5 + $0x84] ss:$16 sps:$4 sm:$0xff]   ;;  %v7935_v27 = vld [vmem:[#allocation5 + $0x8c] ss:$16 sps:$4 sm:$0xff]  }
 0x176   :  { %1185 = vmatpush1.bf16.msra.mxu1 %v7929_v21  ;;  %1145 = vmatprep.subr.bf16.mxu0 %v7933_v26 }
 0x177   :  { %1186 = vmatprep.subr.bf16.mxu1 %v7935_v27 }
 0x178   :  { %1146 = vmatpush1.bf16.msra.mxu0 %v7939_v28 }
 0x17e   :  { %v6467_v30 = vpop.eup %6466 }
 0x17f   :  { %v701_v32 = vmul.f32 %v6467_v30, %v6465_v29  ;;  %v7941_v29 = vld [vmem:[#allocation5 + $0x88] ss:$16 sps:$4 sm:$0xff]   ;;  %v7945_v30 = vld [vmem:[#allocation5 + $0x64] ss:$16 sps:$4 sm:$0xff]  }
 0x180   :  { %1187 = vmatpush1.bf16.msra.mxu1 %v7941_v29  ;;  %1147 = vmatprep.subr.bf16.mxu0 %v7945_v30 }
 0x181   :  { %v7893_v33 = vadd.f32 %v701_v32, %v700_v31  ;;  %v7947_v31 = vld [vmem:[#allocation5 + $0x6c] ss:$16 sps:$4 sm:$0xff]   ;;  %v7951_v32 = vld [vmem:[#allocation5 + $0x60] ss:$16 sps:$4 sm:$0xff]  }
 0x182   :  { %v6469_v55 = vpop.eup %6468  ;;  %1188 = vmatprep.subr.bf16.mxu1 %v7947_v31  ;;  %1148 = vmatpush1.bf16.msra.mxu0 %v7951_v32 }
 0x183   :  { %11602 = vst [vmem:[#allocation44_spill] sm:$0xff] %v7893_v33  ;;  %v697_v57 = vadd.f32 1.0, %v6469_v55  ;;  %6470 = vtanh.f32 %v7893_v33  ;;  %v7953_v55 = vld [vmem:[#allocation5 + $0x68] ss:$16 sps:$4 sm:$0xff]   ;;  %v8007_v33 = vld [vmem:[#allocation5 + $0x1cc] ss:$16 sps:$4 sm:$0xff]  }
 0x184   :  { %1189 = vmatpush1.bf16.msra.mxu1 %v7953_v55  ;;  %11618 = vst [vmem:[#allocation60_spill] sm:$0xff] %v8007_v33 }
 0x185   :  { %6472 = vrcp.f32 %v697_v57  ;;  %v7957_v57 = vld [vmem:[#allocation5 + $0x44] ss:$16 sps:$4 sm:$0xff]  }
 0x186   :  { %1149 = vmatprep.subr.bf16.mxu0 %v7957_v57 }
 0x190   :  { %v6471_v56 = vpop.eup %6470 }
 0x192   :  { %v6473_v34 = vpop.eup %6472 }
 0x193   :  { %v7896_v52 = vmul.f32 %v6473_v34, %v6471_v56  ;;  %v7959_v56 = vld [vmem:[#allocation5 + $0x4c] ss:$16 sps:$4 sm:$0xff]   ;;  %v7963_v34 = vld [vmem:[#allocation5 + $0x40] ss:$16 sps:$4 sm:$0xff]  }
 0x194   :  { %11603 = vst [vmem:[#allocation45_spill] sm:$0xff] %v7963_v34  ;;  %1190 = vmatprep.subr.bf16.mxu1 %v7959_v56  ;;  %1150 = vmatpush1.bf16.msra.mxu0 %v7963_v34 }
 0x195   :  { %705 = vadd.xlane.f32.xlu0 %v7896_v52  ;;  %1191 = vmatpush1.bf16.msra.mxu1 %v7965_v0 }
 0x196   :  { %1151 = vmatprep.subr.bf16.mxu0 %v7969_v51  ;;  %1192 = vmatprep.subr.bf16.mxu1 %v7971_v22 }
 0x198   :  { %1152 = vmatpush1.bf16.msra.mxu0 %v7975_v25 }
 0x199   :  { %1193 = vmatpush1.bf16.msra.mxu1 %v7977_v15  ;;  %1153 = vmatprep.subr.bf16.mxu0 %v7981_v20 }
 0x19a   :  { %1194 = vmatprep.subr.bf16.mxu1 %v7983_v12 }
 0x19c   :  { %1154 = vmatpush1.bf16.msra.mxu0 %v7987_v13 }
 0x19d   :  { %1195 = vmatpush1.bf16.msra.mxu1 %v7989_v8  ;;  %1155 = vmatprep.subr.bf16.mxu0 %v7993_v10 }
 0x19e   :  { %1196 = vmatprep.subr.bf16.mxu1 %v7995_v5 }
 0x1a0   :  { %1156 = vmatpush2.bf16.msra.mxu0 %v7999_v6 }
 0x1a1   :  { %1197 = vmatpush2.bf16.msra.mxu1 %v8001_v1  ;;  %1157 = vmatprep.subr.bf16.mxu0 %v8005_v3 }
 0x1a2   :  { %1198 = vmatprep.subr.bf16.mxu1 %v8007_v33 }
 0x1a4   :  { %1158 = vmatpush2.bf16.msra.mxu0 %v8011_v60 }
 0x1a5   :  { %1199 = vmatpush2.bf16.msra.mxu1 %v8013_v61  ;;  %v8032_v61 = vld [vmem:[#allocation5 + $0x1a4] ss:$16 sps:$4 sm:$0xff]  }
 0x1a6   :  { %11624 = vst [vmem:[#allocation65_spill] sm:$0xff] %v8032_v61  ;;  %1159 = vmatprep.subr.bf16.mxu0 %v8032_v61  ;;  %1200 = vmatprep.subr.bf16.mxu1 %v8034_v63  ;;  %v8062_v63 = vld [vmem:[#allocation5 + $0x168] ss:$16 sps:$4 sm:$0xff]   ;;  %v11096_v61 = vmov 0.0|0.0  }
 0x1a7   :  { %11635 = vst [vmem:[#allocation76_spill] sm:$0xff] %v8062_v63  ;;  %1171 = vmatprep.mubr.bf16.mxu0 %v11096_v61  ;;  %1212 = vmatprep.mubr.bf16.mxu1 %v11096_v61 }
 0x1a8   :  { %1160 = vmatpush2.bf16.msra.mxu0 %v8036_v23  ;;  %v8058_v23 = vld [vmem:[#allocation5 + $0x16c] ss:$16 sps:$4 sm:$0xff]  }
 0x1a9   :  { %11633 = vst [vmem:[#allocation74_spill] sm:$0xff] %v8058_v23 }
 0x21e   :  { %v706_v24 = vpop.xlane.xlu0 %705 }
 0x21f   :  { %v708_v53 = vmul.f32 0.015625, %v706_v24  ;;  %v8038_v24 = vld [vmem:[#allocation5 + $0x1a8] ss:$16 sps:$4 sm:$0xff]  }
 0x220   :  { %11627 = vst [vmem:[#allocation68_spill] sm:$0xff] %v8038_v24  ;;  %1201 = vmatpush2.bf16.msra.mxu1 %v8038_v24  ;;  %v8060_v24 = vld [vmem:[#allocation5 + $0x160] ss:$16 sps:$4 sm:$0xff]  }
 0x221   :  { %v709_v18 = vsub.f32 %v7896_v52, %v708_v53  ;;  %v8044_v53 = vld [vmem:[#allocation5 + $0x184] ss:$16 sps:$4 sm:$0xff]   ;;  %11634 = vst [vmem:[#allocation75_spill] sm:$0xff] %v8060_v24 }
 0x222   :  { %11628 = vst [vmem:[#allocation69_spill] sm:$0xff] %v8044_v53  ;;  %1161 = vmatprep.subr.bf16.mxu0 %v8044_v53  ;;  %v8074_v53 = vld [vmem:[#allocation5 + $0x148] ss:$16 sps:$4 sm:$0xff]  }
 0x223   :  { %v8028_v3 = vmul.f32 %v8024_v16, %v709_v18  ;;  %v8046_v18 = vld [vmem:[#allocation5 + $0x18c] ss:$16 sps:$4 sm:$0xff]   ;;  %v8056_v16 = vld [vmem:[#allocation5 + $0x164] ss:$16 sps:$4 sm:$0xff]   ;;  %11639 = vst [vmem:[#allocation80_spill] sm:$0xff] %v8074_v53 }
 0x224   :  { %11629 = vst [vmem:[#allocation70_spill] sm:$0xff] %v8046_v18  ;;  %1202 = vmatprep.subr.bf16.mxu1 %v8046_v18  ;;  %11632 = vst [vmem:[#allocation73_spill] sm:$0xff] %v8056_v16  ;;  %v8068_v18 = vld [vmem:[#allocation5 + $0x144] ss:$16 sps:$4 sm:$0xff]  }
 0x225   :  { %v711_v60 = vmul.f32 %v8028_v3, %v8028_v3  ;;  %1203 = vmatpush2.bf16.msra.mxu1 %v8050_v59  ;;  %11636 = vst [vmem:[#allocation77_spill] sm:$0xff] %v8068_v18  ;;  %v8072_v59 = vld [vmem:[#allocation5 + $0x140] ss:$16 sps:$4 sm:$0xff]  }
 0x226   :  { %1204 = vmatprep.subr.bf16.mxu1 %v8058_v23  ;;  %11638 = vst [vmem:[#allocation79_spill] sm:$0xff] %v8072_v59  ;;  %v8080_v23 = vld [vmem:[#allocation5 + $0x124] ss:$16 sps:$4 sm:$0xff]  }
 0x227   :  { %712 = vadd.xlane.f32.xlu0 %v711_v60  ;;  %v8048_v60 = vld [vmem:[#allocation5 + $0x180] ss:$16 sps:$4 sm:$0xff]   ;;  %11640 = vst [vmem:[#allocation81_spill] sm:$0xff] %v8080_v23 }
 0x228   :  { %11630 = vst [vmem:[#allocation71_spill] sm:$0xff] %v8048_v60  ;;  %1162 = vmatpush2.bf16.msra.mxu0 %v8048_v60  ;;  %v8070_v60 = vld [vmem:[#allocation5 + $0x14c] ss:$16 sps:$4 sm:$0xff]  }
 0x229   :  { %1163 = vmatprep.subr.bf16.mxu0 %v8056_v16  ;;  %1205 = vmatpush2.bf16.msra.mxu1 %v8062_v63  ;;  %11637 = vst [vmem:[#allocation78_spill] sm:$0xff] %v8070_v60  ;;  %v8084_v63 = vld [vmem:[#allocation5 + $0x120] ss:$16 sps:$4 sm:$0xff]   ;;  %v8086_v16 = vld [vmem:[#allocation5 + $0x128] ss:$16 sps:$4 sm:$0xff]  }
 0x22a   :  { %1206 = vmatprep.subr.bf16.mxu1 %v8070_v60  ;;  %11642 = vst [vmem:[#allocation83_spill] sm:$0xff] %v8084_v63  ;;  %11643 = vst [vmem:[#allocation84_spill] sm:$0xff] %v8086_v16  ;;  %v8092_v60 = vld [vmem:[#allocation5 + $0x104] ss:$16 sps:$4 sm:$0xff]  }
 0x22b   :  { %11644 = vst [vmem:[#allocation85_spill] sm:$0xff] %v8092_v60 }
 0x22c   :  { %1164 = vmatpush2.bf16.msra.mxu0 %v8060_v24  ;;  %v8082_v24 = vld [vmem:[#allocation5 + $0x12c] ss:$16 sps:$4 sm:$0xff]  }
 0x22d   :  { %1165 = vmatprep.subr.bf16.mxu0 %v8068_v18  ;;  %1207 = vmatpush2.bf16.msra.mxu1 %v8074_v53  ;;  %11641 = vst [vmem:[#allocation82_spill] sm:$0xff] %v8082_v24  ;;  %v8096_v53 = vld [vmem:[#allocation5 + $0x100] ss:$16 sps:$4 sm:$0xff]   ;;  %v8098_v18 = vld [vmem:[#allocation5 + $0x108] ss:$16 sps:$4 sm:$0xff]  }
 0x22e   :  { %1208 = vmatprep.subr.bf16.mxu1 %v8082_v24  ;;  %11646 = vst [vmem:[#allocation87_spill] sm:$0xff] %v8096_v53  ;;  %11647 = vst [vmem:[#allocation88_spill] sm:$0xff] %v8098_v18 }
 0x230   :  { %1166 = vmatpush2.bf16.msra.mxu0 %v8072_v59  ;;  %v8094_v59 = vld [vmem:[#allocation5 + $0x10c] ss:$16 sps:$4 sm:$0xff]  }
 0x231   :  { %1167 = vmatprep.subr.bf16.mxu0 %v8080_v23  ;;  %1209 = vmatpush2.bf16.msra.mxu1 %v8086_v16  ;;  %11645 = vst [vmem:[#allocation86_spill] sm:$0xff] %v8094_v59  ;;  %v8106_v16 = vld [vmem:[#allocation2 + $0xe4] ss:$16 sps:$4 sm:$0xff]   ;;  %v8113_v23 = vld [vmem:[%s11008_s4] ss:$0 sm:$0xff] }
 0x232   :  { %1210 = vmatprep.subr.bf16.mxu1 %v8094_v59  ;;  %11648 = vst [vmem:[#allocation89_spill] sm:$0xff] %v8106_v16 }
 0x234   :  { %1168 = vmatpush2.bf16.msra.mxu0 %v8084_v63 }
 0x235   :  { %1169 = vmatprep.subr.bf16.mxu0 %v8092_v60  ;;  %1211 = vmatpush2.bf16.msra.mxu1 %v8098_v18  ;;  %v8119_v18 = vld [vmem:[%s11009_s5] ss:$0 sm:$0xff] }
 0x236   :  { %1287 = vmatprep.subr.bf16.mxu1 %v7782_v35 }
 0x238   :  { %1170 = vmatpush2.bf16.msra.mxu0 %v8096_v53 }
 0x239   :  { %1246 = vmatprep.subr.bf16.mxu0 %v8106_v16 }
 0x2b0   :  { %v713_v63 = vpop.xlane.xlu0 %712 }
 0x2b1   :  { %v714_v24 = vmul.f32 0.015625, %v713_v63 }
 0x2b3   :  { %v715_v60 = vadd.f32 1e-05, %v714_v24  ;;  %v8123_v24 = vld [vmem:[#allocation2 + $0xe0] ss:$16 sps:$4 sm:$0xff]  }
 0x2b5   :  { %6474 = vrsqrt.f32 %v715_v60  ;;  %v8127_v60 = vld [vmem:[#allocation2 + $0xc4] ss:$16 sps:$4 sm:$0xff]  }
 0x2c2   :  { %v6475_v59 = vpop.eup %6474 }
 0x2c3   :  { %v717_v61 = vmul.f32 %v6475_v59, %v8028_v3  ;;  %v11649_v59 = vmov 0   ;;  %v8137_v3 = vld [vmem:[#allocation2 + $0xa4] ss:$16 sps:$4 sm:$0xff]  }
 0x2c5   :  { %v724_v16 = vmul.f32 %v8113_v23, %v717_v61  ;;  %v8133_v61 = vld [vmem:[#allocation2 + $0xc0] ss:$16 sps:$4 sm:$0xff]  }
 0x2c7   :  { %v731_v35 = vadd.f32 %v8119_v18, %v724_v16  ;;  %v8149_v16 = vld [vmem:[#allocation2 + $0x80] ss:$16 sps:$4 sm:$0xff]  }
 0x2c9   :  { %v732_v63 = vpack.c.bf16 %v731_v35, %v731_v35  ;;  %v11655_v35 = vld [vmem:[#allocation67_spill] sm:$0xff] }
 0x2cb   :  { %1172 = vmatmul.mubr.bf16.vlgmr.msra.gmra.mxu0 %v732_v63  ;;  %1213 = vmatmul.mubr.bf16.vlgmr.msra.gmra.mxu1 %v732_v63  ;;  %v11656_v63 = vld [vmem:[#allocation68_spill] sm:$0xff] }
 0x2cc   :  { %1247 = vmatpush1.bf16.msra.mxu0 %v8123_v24  ;;  %1288 = vmatpush1.bf16.msra.mxu1 %v7785_v36  ;;  %v8141_v36 = vld [vmem:[#allocation2 + $0xa0] ss:$16 sps:$4 sm:$0xff]  }
 0x2cd   :  { %1248 = vmatprep.subr.bf16.mxu0 %v8127_v60  ;;  %1289 = vmatprep.subr.bf16.mxu1 %v7787_v37  ;;  %v8145_v37 = vld [vmem:[#allocation2 + $0x84] ss:$16 sps:$4 sm:$0xff]  }
 0x2ce   :  { %1278 = vmatprep.mubr.bf16.mxu0 %v11649_v59  ;;  %1319 = vmatprep.mubr.bf16.mxu1 %v11649_v59 }
 0x2d0   :  { %1249 = vmatpush1.bf16.msra.mxu0 %v8133_v61  ;;  %1290 = vmatpush1.bf16.msra.mxu1 %v7791_v38  ;;  %v8153_v38 = vld [vmem:[#allocation2 + $0x64] ss:$16 sps:$4 sm:$0xff]  }
 0x2d1   :  { %1250 = vmatprep.subr.bf16.mxu0 %v8137_v3  ;;  %1291 = vmatprep.subr.bf16.mxu1 %v7795_v39  ;;  %v8157_v39 = vld [vmem:[#allocation2 + $0x60] ss:$16 sps:$4 sm:$0xff]  }
 0x2d4   :  { %1251 = vmatpush1.bf16.msra.mxu0 %v8141_v36  ;;  %1292 = vmatpush1.bf16.msra.mxu1 %v7800_v40  ;;  %v8161_v40 = vld [vmem:[#allocation2 + $0x44] ss:$16 sps:$4 sm:$0xff]  }
 0x2d5   :  { %1252 = vmatprep.subr.bf16.mxu0 %v8145_v37  ;;  %1293 = vmatprep.subr.bf16.mxu1 %v7802_v41  ;;  %v8165_v41 = vld [vmem:[#allocation2 + $0x40] ss:$16 sps:$4 sm:$0xff]  }
 0x2d8   :  { %1253 = vmatpush1.bf16.msra.mxu0 %v8149_v16  ;;  %1294 = vmatpush1.bf16.msra.mxu1 %v7807_v42  ;;  %v8169_v42 = vld [vmem:[#allocation2 + $0x24] ss:$16 sps:$4 sm:$0xff]  }
 0x2d9   :  { %1254 = vmatprep.subr.bf16.mxu0 %v8153_v38  ;;  %1295 = vmatprep.subr.bf16.mxu1 %v7809_v43  ;;  %v8173_v43 = vld [vmem:[#allocation2 + $0x20] ss:$16 sps:$4 sm:$0xff]  }
 0x2dc   :  { %1255 = vmatpush1.bf16.msra.mxu0 %v8157_v39  ;;  %1296 = vmatpush1.bf16.msra.mxu1 %v7813_v44  ;;  %v8177_v44 = vld [vmem:[#allocation2 + $0x4] ss:$16 sps:$4 sm:$0xff]  }
 0x2dd   :  { %1256 = vmatprep.subr.bf16.mxu0 %v8161_v40  ;;  %1297 = vmatprep.subr.bf16.mxu1 %v7815_v45  ;;  %v8181_v45 = vld [vmem:[#allocation2] ss:$16 sps:$4 sm:$0xff]  }
 0x2e0   :  { %1257 = vmatpush1.bf16.msra.mxu0 %v8165_v41  ;;  %1298 = vmatpush1.bf16.msra.mxu1 %v7819_v46  ;;  %v1245_v46 = vpack.c.bf16 %v7896_v52, %v7896_v52  ;;  %v11654_v52 = vld [vmem:[#allocation66_spill] sm:$0xff] }
 0x2e1   :  { %1258 = vmatprep.subr.bf16.mxu0 %v8169_v42  ;;  %1299 = vmatprep.subr.bf16.mxu1 %v7821_v47  ;;  %v11650_v47 = vld [vmem:[#allocation59_spill] sm:$0xff] }
 0x2e4   :  { %1259 = vmatpush1.bf16.msra.mxu0 %v8173_v43  ;;  %1300 = vmatpush1.bf16.msra.mxu1 %v7825_v48  ;;  %v11651_v48 = vld [vmem:[#allocation61_spill] sm:$0xff] }
 0x2e5   :  { %1260 = vmatprep.subr.bf16.mxu0 %v8177_v44  ;;  %1301 = vmatprep.subr.bf16.mxu1 %v7827_v49  ;;  %v11652_v49 = vld [vmem:[#allocation62_spill] sm:$0xff] }
 0x2e8   :  { %1261 = vmatpush1.bf16.msra.mxu0 %v8181_v45  ;;  %1302 = vmatpush1.bf16.msra.mxu1 %v7831_v50  ;;  %v11653_v50 = vld [vmem:[#allocation65_spill] sm:$0xff] }
 0x2e9   :  { %1372 = vmatprep.subr.bf16.mxu0 %v7899_v58  ;;  %1413 = vmatprep.subr.bf16.mxu1 %v7901_v62 }
 0x2eb   :  { %1279 = vmatmul.mubr.bf16.vlgmr.msra.gmra.mxu0 %v1245_v46  ;;  %1320 = vmatmul.mubr.bf16.vlgmr.msra.gmra.mxu1 %v1245_v46  ;;  %v11657_v46 = vld [vmem:[#allocation69_spill] sm:$0xff] }
 0x2ec   :  { %1373 = vmatpush1.bf16.msra.mxu0 %v7903_v54  ;;  %1414 = vmatpush1.bf16.msra.mxu1 %v7905_v2 }
 0x2ed   :  { %1374 = vmatprep.subr.bf16.mxu0 %v7907_v4  ;;  %1415 = vmatprep.subr.bf16.mxu1 %v7909_v7 }
 0x2f0   :  { %1375 = vmatpush1.bf16.msra.mxu0 %v7915_v9  ;;  %1416 = vmatpush1.bf16.msra.mxu1 %v7917_v11 }
 0x2f1   :  { %1376 = vmatprep.subr.bf16.mxu0 %v7921_v14  ;;  %1417 = vmatprep.subr.bf16.mxu1 %v7923_v17 }
 0x2f4   :  { %1377 = vmatpush1.bf16.msra.mxu0 %v7927_v19  ;;  %1418 = vmatpush1.bf16.msra.mxu1 %v7929_v21 }
 0x2f5   :  { %1378 = vmatprep.subr.bf16.mxu0 %v7933_v26  ;;  %1419 = vmatprep.subr.bf16.mxu1 %v7935_v27 }
 0x2f8   :  { %1379 = vmatpush1.bf16.msra.mxu0 %v7939_v28  ;;  %1420 = vmatpush1.bf16.msra.mxu1 %v7941_v29 }
 0x2f9   :  { %1380 = vmatprep.subr.bf16.mxu0 %v7945_v30  ;;  %1421 = vmatprep.subr.bf16.mxu1 %v7947_v31 }
 0x2fc   :  { %1381 = vmatpush1.bf16.msra.mxu0 %v7951_v32  ;;  %1422 = vmatpush1.bf16.msra.mxu1 %v7953_v55 }
 0x2fd   :  { %1382 = vmatprep.subr.bf16.mxu0 %v7957_v57  ;;  %1423 = vmatprep.subr.bf16.mxu1 %v7959_v56 }
 0x300   :  { %1383 = vmatpush1.bf16.msra.mxu0 %v7963_v34  ;;  %1424 = vmatpush1.bf16.msra.mxu1 %v7965_v0 }
 0x301   :  { %1384 = vmatprep.subr.bf16.mxu0 %v7969_v51  ;;  %1425 = vmatprep.subr.bf16.mxu1 %v7971_v22  ;;  %v11696_v22 = vld [vmem:[#allocation23_spill] sm:$0xff] }
 0x304   :  { %1385 = vmatpush1.bf16.msra.mxu0 %v7975_v25  ;;  %1426 = vmatpush1.bf16.msra.mxu1 %v7977_v15 }
 0x305   :  { %1386 = vmatprep.subr.bf16.mxu0 %v7981_v20  ;;  %1427 = vmatprep.subr.bf16.mxu1 %v7983_v12 }
 0x308   :  { %1387 = vmatpush1.bf16.msra.mxu0 %v7987_v13  ;;  %1428 = vmatpush1.bf16.msra.mxu1 %v7989_v8 }
 0x309   :  { %1388 = vmatprep.subr.bf16.mxu0 %v7993_v10  ;;  %1429 = vmatprep.subr.bf16.mxu1 %v7995_v5 }
 0x30c   :  { %1389 = vmatpush2.bf16.msra.mxu0 %v7999_v6  ;;  %1430 = vmatpush2.bf16.msra.mxu1 %v8001_v1  ;;  %v11658_v6 = vld [vmem:[#allocation70_spill] sm:$0xff]  ;;  %v11659_v1 = vld [vmem:[#allocation71_spill] sm:$0xff] }
 0x30d   :  { %1390 = vmatprep.subr.bf16.mxu0 %v11650_v47  ;;  %1431 = vmatprep.subr.bf16.mxu1 %v8007_v33  ;;  %v11660_v47 = vld [vmem:[#allocation72_spill] sm:$0xff]  ;;  %v11661_v33 = vld [vmem:[#allocation73_spill] sm:$0xff] }
 0x310   :  { %1391 = vmatpush2.bf16.msra.mxu0 %v11651_v48  ;;  %1432 = vmatpush2.bf16.msra.mxu1 %v11652_v49  ;;  %v11662_v48 = vld [vmem:[#allocation74_spill] sm:$0xff]  ;;  %v11663_v49 = vld [vmem:[#allocation75_spill] sm:$0xff] }
 0x311   :  { %1392 = vmatprep.subr.bf16.mxu0 %v11653_v50  ;;  %1433 = vmatprep.subr.bf16.mxu1 %v11654_v52  ;;  %v11664_v50 = vld [vmem:[#allocation76_spill] sm:$0xff]  ;;  %v11665_v52 = vld [vmem:[#allocation77_spill] sm:$0xff] }
 0x314   :  { %1393 = vmatpush2.bf16.msra.mxu0 %v11655_v35  ;;  %1434 = vmatpush2.bf16.msra.mxu1 %v11656_v63  ;;  %v11666_v35 = vld [vmem:[#allocation78_spill] sm:$0xff]  ;;  %v11667_v63 = vld [vmem:[#allocation79_spill] sm:$0xff] }
 0x315   :  { %1394 = vmatprep.subr.bf16.mxu0 %v11657_v46  ;;  %1435 = vmatprep.subr.bf16.mxu1 %v11658_v6  ;;  %v11668_v46 = vld [vmem:[#allocation80_spill] sm:$0xff]  ;;  %v11669_v6 = vld [vmem:[#allocation81_spill] sm:$0xff] }
 0x318   :  { %1395 = vmatpush2.bf16.msra.mxu0 %v11659_v1  ;;  %1436 = vmatpush2.bf16.msra.mxu1 %v11660_v47  ;;  %v11670_v1 = vld [vmem:[#allocation82_spill] sm:$0xff]  ;;  %v11671_v47 = vld [vmem:[#allocation83_spill] sm:$0xff] }
 0x319   :  { %1396 = vmatprep.subr.bf16.mxu0 %v11661_v33  ;;  %1437 = vmatprep.subr.bf16.mxu1 %v11662_v48  ;;  %v11672_v33 = vld [vmem:[#allocation84_spill] sm:$0xff]  ;;  %v11673_v48 = vld [vmem:[#allocation85_spill] sm:$0xff] }
 0x31c   :  { %1397 = vmatpush2.bf16.msra.mxu0 %v11663_v49  ;;  %1438 = vmatpush2.bf16.msra.mxu1 %v11664_v50  ;;  %v11674_v49 = vld [vmem:[#allocation86_spill] sm:$0xff] }
 0x31d   :  { %1398 = vmatprep.subr.bf16.mxu0 %v11665_v52  ;;  %1439 = vmatprep.subr.bf16.mxu1 %v11666_v35  ;;  %v11675_v52 = vld [vmem:[#allocation88_spill] sm:$0xff]  ;;  %v11676_v35 = vld [vmem:[#allocation89_spill] sm:$0xff] }
 0x320   :  { %1399 = vmatpush2.bf16.msra.mxu0 %v11667_v63  ;;  %1440 = vmatpush2.bf16.msra.mxu1 %v11668_v46  ;;  %v8252_v63 = vld [vmem:[#allocation2 + $0xec] ss:$16 sps:$4 sm:$0xff]  }
 0x321   :  { %1400 = vmatprep.subr.bf16.mxu0 %v11669_v6  ;;  %1441 = vmatprep.subr.bf16.mxu1 %v11670_v1  ;;  %11677 = vst [vmem:[#allocation90_spill] sm:$0xff] %v8252_v63  ;;  %v295_v6 = vpop.f32.mrf.mxu0 }
 0x323   :  { %v297_v1 = vpop.f32.mrf.mxu0 }
 0x324   :  { %1401 = vmatpush2.bf16.msra.mxu0 %v11671_v47  ;;  %1442 = vmatpush2.bf16.msra.mxu1 %v11672_v33 }
 0x325   :  { %1402 = vmatprep.subr.bf16.mxu0 %v11673_v48  ;;  %1443 = vmatprep.subr.bf16.mxu1 %v11674_v49  ;;  %v8255_v46 = vpop.f32.mrf.mxu0 }
 0x326   :  { %11678 = vst [vmem:[#allocation91_spill] sm:$0xff] %v8255_v46 }
 0x327   :  { %v8257_v47 = vpop.f32.mrf.mxu0 }
 0x328   :  { %1403 = vmatpush2.bf16.msra.mxu0 %v8096_v53  ;;  %1444 = vmatpush2.bf16.msra.mxu1 %v11675_v52  ;;  %11679 = vst [vmem:[#allocation92_spill] sm:$0xff] %v8257_v47  ;;  %v11689_v47 = vld [vmem:[#allocation38_spill] sm:$0xff] }
 0x329   :  { %1479 = vmatprep.subr.bf16.mxu0 %v11676_v35  ;;  %1520 = vmatprep.subr.bf16.mxu1 %v8252_v63  ;;  %v8259_v33 = vpop.f32.mrf.mxu0 }
 0x32a   :  { %11680 = vst [vmem:[#allocation93_spill] sm:$0xff] %v8259_v33  ;;  %v164_v33 = vld [vmem:[%s11011_s7] sm:$0xf] }
 0x32b   :  { %v8261_v48 = vpop.f32.mrf.mxu0  ;;  %v8295_v51 = vrot.slane %v164_v33, %v11696_v22 }
 0x32c   :  { %11681 = vst [vmem:[#allocation94_spill] sm:$0xff] %v8261_v48  ;;  %v8281_v48 = vrot.slane %v164_v33, %v11689_v47 }
 0x32d   :  { %v8263_v49 = vpop.f32.mrf.mxu0  ;;  %11697 = vst [vmem:[#allocation106_spill] sm:$0xff] %v8295_v51 }
 0x32e   :  { %11682 = vst [vmem:[#allocation95_spill] sm:$0xff] %v8263_v49  ;;  %11690 = vst [vmem:[#allocation102_spill] sm:$0xff] %v8281_v48 }
 0x32f   :  { %v8265_v53 = vpop.f32.mrf.mxu0 }
 0x330   :  { %11683 = vst [vmem:[#allocation96_spill] sm:$0xff] %v8265_v53  ;;  %v11692_v53 = vld [vmem:[#allocation37_spill] sm:$0xff] }
 0x331   :  { %v8267_v52 = vpop.f32.mrf.mxu0  ;;  %v8286_v46 = vrot.slane %v164_v33, %v11692_v53 }
 0x332   :  { %11684 = vst [vmem:[#allocation97_spill] sm:$0xff] %v8267_v52 }
 0x333   :  { %v8269_v35 = vpop.f32.mrf.mxu0  ;;  %11693 = vst [vmem:[#allocation104_spill] sm:$0xff] %v8286_v46 }
 0x334   :  { %11685 = vst [vmem:[#allocation98_spill] sm:$0xff] %v8269_v35 }
 0x335   :  { %v8271_v50 = vpop.f32.mrf.mxu0 }
 0x336   :  { %11686 = vst [vmem:[#allocation99_spill] sm:$0xff] %v8271_v50 }
 0x337   :  { %v8273_v63 = vpop.f32.mrf.mxu0 }
 0x338   :  { %11687 = vst [vmem:[#allocation100_spill] sm:$0xff] %v8273_v63 }
 0x339   :  { %v8275_v5 = vpop.f32.mrf.mxu0 }
 0x33a   :  { %11688 = vst [vmem:[#allocation101_spill] sm:$0xff] %v8275_v5 }
 0x33b   :  { %v8283_v49 = vpop.f32.mrf.mxu0 }
 0x33c   :  { %11691 = vst [vmem:[#allocation103_spill] sm:$0xff] %v8283_v49  ;;  %v11694_v49 = vld [vmem:[#allocation24_spill] sm:$0xff] }
 0x33d   :  { %v8291_v25 = vrot.slane %v164_v33, %v11694_v49 }
 0x33f   :  { %11695 = vst [vmem:[#allocation105_spill] sm:$0xff] %v8291_v25 }
 0x38b   :  { %v1173_v52 = vpop.f32.mrf.mxu0  ;;  %v1214_v35 = vpop.f32.mrf.mxu1 }
 0x38c   :  { %v1174_v50 = vadd.f32 %v1173_v52, %v8281_v48 }
 0x38d   :  { %v1175_v10 = vpop.f32.mrf.mxu0  ;;  %v1216_v63 = vpop.f32.mrf.mxu1 }
 0x38e   :  { %v5824_v8 = vmul.f32 -1.442695, %v1174_v50  ;;  %v1176_v5 = vadd.f32 %v1175_v10, %v8286_v46  ;;  %v1217_v53 = vadd.f32 %v1216_v63, %v8291_v25  ;;  %v1215_v50 = vadd.f32 %v1214_v35, %v8295_v51  ;;  %v11699_v63 = vld [vmem:[#allocation41_spill] sm:$0xff] }
 0x38f   :  { %v1177_v13 = vpop.f32.mrf.mxu0  ;;  %v1218_v12 = vpop.f32.mrf.mxu1  ;;  %v298_v49 = vadd.f32 %v297_v1, %v11699_v63  ;;  %v11700_v1 = vld [vmem:[#allocation27_spill] sm:$0xff] }
 0x390   :  { %6476 = vpow2.f32 %v5824_v8  ;;  %v5825_v20 = vmul.f32 -1.442695, %v1176_v5  ;;  %v5826_v52 = vmul.f32 -1.442695, %v1217_v53  ;;  %v11698_v8 = vld [vmem:[#allocation42_spill] sm:$0xff] }
 0x391   :  { %v1178_v47 = vpop.f32.mrf.mxu0  ;;  %v1219_v15 = vpop.f32.mrf.mxu1  ;;  %v296_v12 = vadd.f32 %v295_v6, %v11698_v8 }
 0x392   :  { %6478 = vpow2.f32 %v5825_v20 }
 0x393   :  { %6480 = vpow2.f32 %v5826_v52 }
 0x39d   :  { %v6477_v48 = vpop.eup %6476 }
 0x39e   :  { %v1224_v10 = vadd.f32 1.0, %v6477_v48 }
 0x39f   :  { %v6479_v13 = vpop.eup %6478 }
 0x3a0   :  { %6482 = vrcp.f32 %v1224_v10  ;;  %v1230_v5 = vadd.f32 1.0, %v6479_v13  ;;  %v6481_v47 = vpop.eup %6480 }
 0x3a1   :  { %6484 = vtanh.f32 %v1215_v50  ;;  %v1237_v52 = vadd.f32 1.0, %v6481_v47 }
 0x3a2   :  { %6486 = vrcp.f32 %v1230_v5 }
 0x3ab   :  { %v1280_v15 = vpop.f32.mrf.mxu0  ;;  %v1321_v20 = vpop.f32.mrf.mxu1 }
 0x3ac   :  { %v1328_v33 = vadd.f32 %v1280_v15, %v296_v12  ;;  %v11701_v12 = vld [vmem:[#allocation26_spill] sm:$0xff] }
 0x3ad   :  { %v6483_v22 = vpop.eup %6482  ;;  %v1282_v53 = vpop.f32.mrf.mxu0  ;;  %v371_v15 = vadd.f32 %v11701_v12, %v11700_v1 }
 0x3ae   :  { %v1323_v25 = vpop.f32.mrf.mxu1  ;;  %v6485_v46 = vpop.eup %6484  ;;  %v5827_v35 = vmul.f32 -1.442695, %v1328_v33  ;;  %v1329_v48 = vadd.f32 %v1282_v53, %v298_v49  ;;  %v11702_v53 = vld [vmem:[#allocation25_spill] sm:$0xff] }
 0x3af   :  { %v6487_v51 = vpop.eup %6486  ;;  %v1284_v10 = vpop.f32.mrf.mxu0  ;;  %v1241_v5 = vmul.f32 %v6485_v46, %v6483_v22  ;;  %v1331_v49 = vadd.f32 %v1323_v25, %v371_v15 }
 0x3b0   :  { %v1325_v13 = vpop.f32.mrf.mxu1  ;;  %v1240_v50 = vmul.f32 0.0, %v6487_v51  ;;  %6488 = vpow2.f32 %v5827_v35  ;;  %v5828_v6 = vmul.f32 -1.442695, %v1329_v48  ;;  %v1330_v10 = vadd.f32 %v1321_v20, %v11702_v53  ;;  %v11703_v20 = vld [vmem:[#allocation44_spill] sm:$0xff] }
 0x3b1   :  { %v1285_v8 = vpop.f32.mrf.mxu0  ;;  %v5829_v33 = vmul.f32 -1.442695, %v1331_v49 }
 0x3b2   :  { %v1326_v0 = vpop.f32.mrf.mxu1  ;;  %v8300_v34 = vadd.f32 %v1241_v5, %v1240_v50  ;;  %6490 = vpow2.f32 %v5828_v6 }
 0x3b3   :  { %6492 = vrcp.f32 %v1237_v52 }
 0x3b4   :  { %6494 = vtanh.f32 %v8300_v34 }
 0x3b5   :  { %6496 = vpow2.f32 %v5829_v33 }
 0x3bd   :  { %v6489_v47 = vpop.eup %6488 }
 0x3be   :  { %v1335_v51 = vadd.f32 1.0, %v6489_v47 }
 0x3bf   :  { %v6491_v22 = vpop.eup %6490 }
 0x3c0   :  { %v6493_v46 = vpop.eup %6492  ;;  %6498 = vrcp.f32 %v1335_v51  ;;  %v1341_v0 = vadd.f32 1.0, %v6491_v22  ;;  %v11704_v22 = vld [vmem:[#allocation64_spill] sm:$0xff] }
 0x3c1   :  { %v6495_v8 = vpop.eup %6494  ;;  %6500 = vtanh.f32 %v1330_v10 }
 0x3c2   :  { %6502 = vrcp.f32 %v1341_v0  ;;  %v1244_v35 = vmul.f32 %v6495_v8, %v6493_v46  ;;  %v6497_v52 = vpop.eup %6496 }
 0x3c3   :  { %v1348_v5 = vadd.f32 1.0, %v6497_v52 }
 0x3c4   :  { %v1371_v48 = vpack.c.bf16 %v1244_v35, %v1244_v35 }
 0x3c5   :  { %6504 = vrcp.f32 %v1348_v5 }
 0x3c6   :  { %1404 = vmatprep.mubr.bf16.mxu0 %v1371_v48  ;;  %1445 = vmatprep.mubr.bf16.mxu1 %v1371_v48 }
 0x3cd   :  { %v6499_v13 = vpop.eup %6498 }
 0x3ce   :  { %v6501_v25 = vpop.eup %6500 }
 0x3cf   :  { %v6503_v50 = vpop.eup %6502  ;;  %v1352_v6 = vmul.f32 %v6501_v25, %v6499_v13 }
 0x3d0   :  { %v1351_v12 = vmul.f32 %v6503_v50, %v11703_v20  ;;  %v8322_v20 = vld [vmem:[#allocation2 + $0xcc] ss:$16 sps:$4 sm:$0xff]  }
 0x3d2   :  { %v8307_v15 = vadd.f32 %v1352_v6, %v1351_v12  ;;  %v6505_v49 = vpop.eup %6504  ;;  %v8318_v6 = vld [vmem:[#allocation2 + $0xe8] ss:$16 sps:$4 sm:$0xff]  }
 0x3d3   :  { %v8328_v12 = vld [vmem:[#allocation2 + $0xc8] ss:$16 sps:$4 sm:$0xff]  }
 0x3d4   :  { %6506 = vtanh.f32 %v8307_v15 }
 0x3e1   :  { %v6507_v33 = vpop.eup %6506 }
 0x3e2   :  { %v8310_v47 = vmul.f32 %v6507_v33, %v6505_v49  ;;  %v8332_v49 = vld [vmem:[#allocation2 + $0xac] ss:$16 sps:$4 sm:$0xff]   ;;  %v8336_v33 = vld [vmem:[#allocation2 + $0xa8] ss:$16 sps:$4 sm:$0xff]  }
 0x3e4   :  { %1356 = vadd.xlane.f32.xlu1 %v8310_v47 }
 0x46d   :  { %v1357_v53 = vpop.xlane.xlu1 %1356 }
 0x46e   :  { %v1358_v10 = vmul.f32 0.015625, %v1357_v53  ;;  %v8340_v53 = vld [vmem:[#allocation2 + $0x8c] ss:$16 sps:$4 sm:$0xff]  }
 0x470   :  { %v1359_v51 = vsub.f32 %v8310_v47, %v1358_v10  ;;  %v8344_v10 = vld [vmem:[#allocation2 + $0x88] ss:$16 sps:$4 sm:$0xff]  }
 0x472   :  { %v1360_v46 = vmul.f32 %v11704_v22, %v1359_v51  ;;  %v8348_v51 = vld [vmem:[#allocation2 + $0x6c] ss:$16 sps:$4 sm:$0xff]  }
 0x474   :  { %v1361_v0 = vmul.f32 %v1360_v46, %v1360_v46 }
 0x476   :  { %1362 = vadd.xlane.f32.xlu1 %v1361_v0  ;;  %v8356_v0 = vld [vmem:[#allocation2 + $0x4c] ss:$16 sps:$4 sm:$0xff]  }
 0x4ff   :  { %v1363_v8 = vpop.xlane.xlu1 %1362 }
 0x500   :  { %v1364_v35 = vmul.f32 0.015625, %v1363_v8  ;;  %v8360_v8 = vld [vmem:[#allocation2 + $0x48] ss:$16 sps:$4 sm:$0xff]  }
 0x502   :  { %v1365_v48 = vadd.f32 1e-05, %v1364_v35  ;;  %v8364_v35 = vld [vmem:[#allocation2 + $0x2c] ss:$16 sps:$4 sm:$0xff]  }
 0x504   :  { %6508 = vrsqrt.f32 %v1365_v48  ;;  %v8368_v48 = vld [vmem:[#allocation2 + $0x28] ss:$16 sps:$4 sm:$0xff]  }
 0x511   :  { %v6509_v52 = vpop.eup %6508 }
 0x512   :  { %v1367_v13 = vmul.f32 %v6509_v52, %v1360_v46  ;;  %v8352_v46 = vld [vmem:[#allocation2 + $0x68] ss:$16 sps:$4 sm:$0xff]   ;;  %v8372_v52 = vld [vmem:[#allocation2 + $0xc] ss:$16 sps:$4 sm:$0xff]  }
 0x514   :  { %v1368_v25 = vmul.f32 %v8113_v23, %v1367_v13  ;;  %v8376_v13 = vld [vmem:[#allocation2 + $0x8] ss:$16 sps:$4 sm:$0xff]  }
 0x516   :  { %v1369_v50 = vadd.f32 %v8119_v18, %v1368_v25  ;;  %v1478_v25 = vpack.c.bf16 %v8310_v47, %v8310_v47  ;;  %v11727_v47 = vld [vmem:[#allocation69_spill] sm:$0xff] }
 0x518   :  { %v1370_v5 = vpack.c.bf16 %v1369_v50, %v1369_v50  ;;  %v11728_v50 = vld [vmem:[#allocation70_spill] sm:$0xff] }
 0x51a   :  { %1405 = vmatmul.mubr.bf16.vlgmr.msra.gmra.mxu0 %v1370_v5  ;;  %1446 = vmatmul.mubr.bf16.vlgmr.msra.gmra.mxu1 %v1370_v5  ;;  %v11729_v5 = vld [vmem:[#allocation71_spill] sm:$0xff] }
 0x51b   :  { %1480 = vmatpush1.bf16.msra.mxu0 %v8123_v24  ;;  %1521 = vmatpush1.bf16.msra.mxu1 %v8318_v6 }
 0x51c   :  { %1481 = vmatprep.subr.bf16.mxu0 %v8127_v60  ;;  %1522 = vmatprep.subr.bf16.mxu1 %v8322_v20 }
 0x51d   :  { %1511 = vmatprep.mubr.bf16.mxu0 %v11649_v59  ;;  %1552 = vmatprep.mubr.bf16.mxu1 %v11649_v59 }
 0x51f   :  { %1482 = vmatpush1.bf16.msra.mxu0 %v8133_v61  ;;  %1523 = vmatpush1.bf16.msra.mxu1 %v8328_v12 }
 0x520   :  { %1483 = vmatprep.subr.bf16.mxu0 %v8137_v3  ;;  %1524 = vmatprep.subr.bf16.mxu1 %v8332_v49 }
 0x523   :  { %1484 = vmatpush1.bf16.msra.mxu0 %v8141_v36  ;;  %1525 = vmatpush1.bf16.msra.mxu1 %v8336_v33 }
 0x524   :  { %1485 = vmatprep.subr.bf16.mxu0 %v8145_v37  ;;  %1526 = vmatprep.subr.bf16.mxu1 %v8340_v53 }
 0x527   :  { %1486 = vmatpush1.bf16.msra.mxu0 %v8149_v16  ;;  %1527 = vmatpush1.bf16.msra.mxu1 %v8344_v10 }
 0x528   :  { %1487 = vmatprep.subr.bf16.mxu0 %v8153_v38  ;;  %1528 = vmatprep.subr.bf16.mxu1 %v8348_v51 }
 0x52b   :  { %1488 = vmatpush1.bf16.msra.mxu0 %v8157_v39  ;;  %1529 = vmatpush1.bf16.msra.mxu1 %v8352_v46 }
 0x52c   :  { %1489 = vmatprep.subr.bf16.mxu0 %v8161_v40  ;;  %1530 = vmatprep.subr.bf16.mxu1 %v8356_v0 }
 0x52f   :  { %1490 = vmatpush1.bf16.msra.mxu0 %v8165_v41  ;;  %1531 = vmatpush1.bf16.msra.mxu1 %v8360_v8 }
 0x530   :  { %1491 = vmatprep.subr.bf16.mxu0 %v8169_v42  ;;  %1532 = vmatprep.subr.bf16.mxu1 %v8364_v35 }
 0x533   :  { %1492 = vmatpush1.bf16.msra.mxu0 %v8173_v43  ;;  %1533 = vmatpush1.bf16.msra.mxu1 %v8368_v48 }
 0x534   :  { %1493 = vmatprep.subr.bf16.mxu0 %v8177_v44  ;;  %1534 = vmatprep.subr.bf16.mxu1 %v8372_v52 }
 0x537   :  { %1494 = vmatpush1.bf16.msra.mxu0 %v8181_v45  ;;  %1535 = vmatpush1.bf16.msra.mxu1 %v8376_v13 }
 0x538   :  { %1605 = vmatprep.subr.bf16.mxu0 %v7899_v58  ;;  %1646 = vmatprep.subr.bf16.mxu1 %v7901_v62  ;;  %v11705_v58 = vld [vmem:[#allocation45_spill] sm:$0xff]  ;;  %v11706_v62 = vld [vmem:[#allocation46_spill] sm:$0xff] }
 0x53a   :  { %1512 = vmatmul.mubr.bf16.vlgmr.msra.gmra.mxu0 %v1478_v25  ;;  %1553 = vmatmul.mubr.bf16.vlgmr.msra.gmra.mxu1 %v1478_v25  ;;  %v11730_v25 = vld [vmem:[#allocation72_spill] sm:$0xff] }
 0x53b   :  { %1606 = vmatpush1.bf16.msra.mxu0 %v7903_v54  ;;  %1647 = vmatpush1.bf16.msra.mxu1 %v7905_v2  ;;  %v11707_v54 = vld [vmem:[#allocation47_spill] sm:$0xff]  ;;  %v11708_v2 = vld [vmem:[#allocation48_spill] sm:$0xff] }
 0x53c   :  { %1607 = vmatprep.subr.bf16.mxu0 %v7907_v4  ;;  %1648 = vmatprep.subr.bf16.mxu1 %v7909_v7  ;;  %v11709_v4 = vld [vmem:[#allocation49_spill] sm:$0xff]  ;;  %v11710_v7 = vld [vmem:[#allocation50_spill] sm:$0xff] }
 0x53f   :  { %1608 = vmatpush1.bf16.msra.mxu0 %v7915_v9  ;;  %1649 = vmatpush1.bf16.msra.mxu1 %v7917_v11  ;;  %v11711_v9 = vld [vmem:[#allocation51_spill] sm:$0xff]  ;;  %v11712_v11 = vld [vmem:[#allocation52_spill] sm:$0xff] }
 0x540   :  { %1609 = vmatprep.subr.bf16.mxu0 %v7921_v14  ;;  %1650 = vmatprep.subr.bf16.mxu1 %v7923_v17  ;;  %v11713_v14 = vld [vmem:[#allocation53_spill] sm:$0xff]  ;;  %v11714_v17 = vld [vmem:[#allocation54_spill] sm:$0xff] }
 0x543   :  { %1610 = vmatpush1.bf16.msra.mxu0 %v7927_v19  ;;  %1651 = vmatpush1.bf16.msra.mxu1 %v7929_v21  ;;  %v11715_v19 = vld [vmem:[#allocation55_spill] sm:$0xff]  ;;  %v11716_v21 = vld [vmem:[#allocation56_spill] sm:$0xff] }
 0x544   :  { %1611 = vmatprep.subr.bf16.mxu0 %v7933_v26  ;;  %1652 = vmatprep.subr.bf16.mxu1 %v7935_v27  ;;  %v11717_v26 = vld [vmem:[#allocation57_spill] sm:$0xff]  ;;  %v11718_v27 = vld [vmem:[#allocation58_spill] sm:$0xff] }
 0x547   :  { %1612 = vmatpush1.bf16.msra.mxu0 %v7939_v28  ;;  %1653 = vmatpush1.bf16.msra.mxu1 %v7941_v29  ;;  %v11719_v28 = vld [vmem:[#allocation59_spill] sm:$0xff]  ;;  %v11720_v29 = vld [vmem:[#allocation60_spill] sm:$0xff] }
 0x548   :  { %1613 = vmatprep.subr.bf16.mxu0 %v7945_v30  ;;  %1654 = vmatprep.subr.bf16.mxu1 %v7947_v31  ;;  %v11721_v30 = vld [vmem:[#allocation61_spill] sm:$0xff]  ;;  %v11722_v31 = vld [vmem:[#allocation62_spill] sm:$0xff] }
 0x54b   :  { %1614 = vmatpush1.bf16.msra.mxu0 %v7951_v32  ;;  %1655 = vmatpush1.bf16.msra.mxu1 %v7953_v55  ;;  %v11723_v32 = vld [vmem:[#allocation65_spill] sm:$0xff]  ;;  %v11724_v55 = vld [vmem:[#allocation66_spill] sm:$0xff] }
 0x54c   :  { %1615 = vmatprep.subr.bf16.mxu0 %v7957_v57  ;;  %1656 = vmatprep.subr.bf16.mxu1 %v7959_v56  ;;  %v11725_v57 = vld [vmem:[#allocation67_spill] sm:$0xff]  ;;  %v11726_v56 = vld [vmem:[#allocation68_spill] sm:$0xff] }
 0x54f   :  { %1616 = vmatpush1.bf16.msra.mxu0 %v11705_v58  ;;  %1657 = vmatpush1.bf16.msra.mxu1 %v11706_v62  ;;  %v11731_v58 = vld [vmem:[#allocation73_spill] sm:$0xff]  ;;  %v11732_v62 = vld [vmem:[#allocation74_spill] sm:$0xff] }
 0x550   :  { %1617 = vmatprep.subr.bf16.mxu0 %v11707_v54  ;;  %1658 = vmatprep.subr.bf16.mxu1 %v11708_v2  ;;  %v11733_v54 = vld [vmem:[#allocation75_spill] sm:$0xff]  ;;  %v11734_v2 = vld [vmem:[#allocation76_spill] sm:$0xff] }
 0x553   :  { %1618 = vmatpush1.bf16.msra.mxu0 %v11709_v4  ;;  %1659 = vmatpush1.bf16.msra.mxu1 %v11710_v7  ;;  %v11735_v4 = vld [vmem:[#allocation77_spill] sm:$0xff]  ;;  %v11736_v7 = vld [vmem:[#allocation78_spill] sm:$0xff] }
 0x554   :  { %1619 = vmatprep.subr.bf16.mxu0 %v11711_v9  ;;  %1660 = vmatprep.subr.bf16.mxu1 %v11712_v11  ;;  %v11737_v9 = vld [vmem:[#allocation79_spill] sm:$0xff]  ;;  %v11738_v11 = vld [vmem:[#allocation80_spill] sm:$0xff] }
 0x557   :  { %1620 = vmatpush1.bf16.msra.mxu0 %v11713_v14  ;;  %1661 = vmatpush1.bf16.msra.mxu1 %v11714_v17  ;;  %v11739_v14 = vld [vmem:[#allocation81_spill] sm:$0xff]  ;;  %v11740_v17 = vld [vmem:[#allocation82_spill] sm:$0xff] }
 0x558   :  { %1621 = vmatprep.subr.bf16.mxu0 %v11715_v19  ;;  %1662 = vmatprep.subr.bf16.mxu1 %v11716_v21  ;;  %v11741_v19 = vld [vmem:[#allocation83_spill] sm:$0xff]  ;;  %v11742_v21 = vld [vmem:[#allocation84_spill] sm:$0xff] }
 0x55b   :  { %1622 = vmatpush2.bf16.msra.mxu0 %v11717_v26  ;;  %1663 = vmatpush2.bf16.msra.mxu1 %v11718_v27  ;;  %v11743_v26 = vld [vmem:[#allocation85_spill] sm:$0xff]  ;;  %v11744_v27 = vld [vmem:[#allocation86_spill] sm:$0xff] }
 0x55c   :  { %1623 = vmatprep.subr.bf16.mxu0 %v11719_v28  ;;  %1664 = vmatprep.subr.bf16.mxu1 %v11720_v29  ;;  %v11745_v28 = vld [vmem:[#allocation87_spill] sm:$0xff]  ;;  %v11746_v29 = vld [vmem:[#allocation88_spill] sm:$0xff] }
 0x55f   :  { %1624 = vmatpush2.bf16.msra.mxu0 %v11721_v30  ;;  %1665 = vmatpush2.bf16.msra.mxu1 %v11722_v31  ;;  %v11747_v30 = vld [vmem:[#allocation89_spill] sm:$0xff]  ;;  %v11748_v31 = vld [vmem:[#allocation90_spill] sm:$0xff] }
 0x560   :  { %1625 = vmatprep.subr.bf16.mxu0 %v11723_v32  ;;  %1666 = vmatprep.subr.bf16.mxu1 %v11724_v55 }
 0x563   :  { %1626 = vmatpush2.bf16.msra.mxu0 %v11725_v57  ;;  %1667 = vmatpush2.bf16.msra.mxu1 %v11726_v56  ;;  %v11749_v57 = vld [vmem:[#allocation102_spill] sm:$0xff] }
 0x564   :  { %1627 = vmatprep.subr.bf16.mxu0 %v11727_v47  ;;  %1668 = vmatprep.subr.bf16.mxu1 %v11728_v50 }
 0x567   :  { %1628 = vmatpush2.bf16.msra.mxu0 %v11729_v5  ;;  %1669 = vmatpush2.bf16.msra.mxu1 %v11730_v25  ;;  %v11750_v25 = vld [vmem:[#allocation104_spill] sm:$0xff] }
 0x568   :  { %1629 = vmatprep.subr.bf16.mxu0 %v11731_v58  ;;  %1670 = vmatprep.subr.bf16.mxu1 %v11732_v62 }
 0x56b   :  { %1630 = vmatpush2.bf16.msra.mxu0 %v11733_v54  ;;  %1671 = vmatpush2.bf16.msra.mxu1 %v11734_v2 }
 0x56c   :  { %1631 = vmatprep.subr.bf16.mxu0 %v11735_v4  ;;  %1672 = vmatprep.subr.bf16.mxu1 %v11736_v7 }
 0x56f   :  { %1632 = vmatpush2.bf16.msra.mxu0 %v11737_v9  ;;  %1673 = vmatpush2.bf16.msra.mxu1 %v11738_v11  ;;  %v11751_v9 = vld [vmem:[#allocation105_spill] sm:$0xff] }
 0x570   :  { %1633 = vmatprep.subr.bf16.mxu0 %v11739_v14  ;;  %1674 = vmatprep.subr.bf16.mxu1 %v11740_v17 }
 0x573   :  { %1634 = vmatpush2.bf16.msra.mxu0 %v11741_v19  ;;  %1675 = vmatpush2.bf16.msra.mxu1 %v11742_v21  ;;  %v11752_v19 = vld [vmem:[#allocation106_spill] sm:$0xff] }
 0x574   :  { %1635 = vmatprep.subr.bf16.mxu0 %v11743_v26  ;;  %1676 = vmatprep.subr.bf16.mxu1 %v11744_v27 }
 0x577   :  { %1636 = vmatpush2.bf16.msra.mxu0 %v11745_v28  ;;  %1677 = vmatpush2.bf16.msra.mxu1 %v11746_v29  ;;  %v11753_v29 = vld [vmem:[#allocation42_spill] sm:$0xff] }
 0x578   :  { %1712 = vmatprep.subr.bf16.mxu0 %v11747_v30  ;;  %1753 = vmatprep.subr.bf16.mxu1 %v11748_v31  ;;  %v11754_v30 = vld [vmem:[#allocation91_spill] sm:$0xff] }
 0x5da   :  { %v1406_v32 = vpop.f32.mrf.mxu0  ;;  %v1447_v55 = vpop.f32.mrf.mxu1 }
 0x5db   :  { %v1407_v56 = vadd.f32 %v1406_v32, %v11749_v57  ;;  %v1448_v21 = vadd.f32 %v1447_v55, %v11752_v19  ;;  %v302_v32 = vadd.f32 %v11754_v30, %v11753_v29 }
 0x5dc   :  { %v1408_v47 = vpop.f32.mrf.mxu0  ;;  %v1449_v50 = vpop.f32.mrf.mxu1 }
 0x5dd   :  { %v5830_v5 = vmul.f32 -1.442695, %v1407_v56  ;;  %v1409_v58 = vadd.f32 %v1408_v47, %v11750_v25  ;;  %v1450_v11 = vadd.f32 %v1449_v50, %v11751_v9 }
 0x5de   :  { %v1410_v62 = vpop.f32.mrf.mxu0  ;;  %v1451_v54 = vpop.f32.mrf.mxu1 }
 0x5df   :  { %6510 = vpow2.f32 %v5830_v5  ;;  %v5831_v2 = vmul.f32 -1.442695, %v1409_v58  ;;  %v5832_v14 = vmul.f32 -1.442695, %v1450_v11  ;;  %v11755_v58 = vld [vmem:[#allocation92_spill] sm:$0xff] }
 0x5e0   :  { %v1411_v4 = vpop.f32.mrf.mxu0  ;;  %v1452_v7 = vpop.f32.mrf.mxu1  ;;  %v304_v50 = vadd.f32 %v11755_v58, %v11699_v63 }
 0x5e1   :  { %6512 = vpow2.f32 %v5831_v2 }
 0x5e2   :  { %6514 = vpow2.f32 %v5832_v14 }
 0x5ec   :  { %v6511_v17 = vpop.eup %6510 }
 0x5ed   :  { %v1457_v26 = vadd.f32 1.0, %v6511_v17 }
 0x5ee   :  { %v6513_v27 = vpop.eup %6512 }
 0x5ef   :  { %6516 = vrcp.f32 %v1457_v26  ;;  %v1463_v28 = vadd.f32 1.0, %v6513_v27  ;;  %v6515_v5 = vpop.eup %6514 }
 0x5f0   :  { %6518 = vtanh.f32 %v1448_v21  ;;  %v1470_v17 = vadd.f32 1.0, %v6515_v5 }
 0x5f1   :  { %6520 = vrcp.f32 %v1463_v28 }
 0x5fa   :  { %v1513_v56 = vpop.f32.mrf.mxu0  ;;  %v1554_v47 = vpop.f32.mrf.mxu1 }
 0x5fb   :  { %v1561_v62 = vadd.f32 %v1513_v56, %v302_v32  ;;  %v11756_v32 = vld [vmem:[#allocation29_spill] sm:$0xff] }
 0x5fc   :  { %v6517_v54 = vpop.eup %6516  ;;  %v1515_v2 = vpop.f32.mrf.mxu0 }
 0x5fd   :  { %v1556_v55 = vpop.f32.mrf.mxu1  ;;  %v6519_v4 = vpop.eup %6518  ;;  %v5833_v7 = vmul.f32 -1.442695, %v1561_v62  ;;  %v1562_v11 = vadd.f32 %v1515_v2, %v304_v50  ;;  %v11757_v50 = vld [vmem:[#allocation28_spill] sm:$0xff] }
 0x5fe   :  { %v6521_v14 = vpop.eup %6520  ;;  %v1517_v21 = vpop.f32.mrf.mxu0  ;;  %v1474_v27 = vmul.f32 %v6519_v4, %v6517_v54  ;;  %v1564_v56 = vadd.f32 %v1556_v55, %v11756_v32  ;;  %v1563_v62 = vadd.f32 %v1554_v47, %v11757_v50 }
 0x5ff   :  { %v1558_v26 = vpop.f32.mrf.mxu1  ;;  %v1473_v28 = vmul.f32 %v6521_v14, %v8300_v34  ;;  %6522 = vpow2.f32 %v5833_v7  ;;  %v5834_v30 = vmul.f32 -1.442695, %v1562_v11 }
 0x600   :  { %v1518_v1 = vpop.f32.mrf.mxu0  ;;  %v5835_v5 = vmul.f32 -1.442695, %v1564_v56 }
 0x601   :  { %v1559_v29 = vpop.f32.mrf.mxu1  ;;  %6524 = vpow2.f32 %v5834_v30  ;;  %v8456_v58 = vadd.f32 %v1474_v27, %v1473_v28 }
 0x602   :  { %6526 = vrcp.f32 %v1470_v17 }
 0x603   :  { %6528 = vtanh.f32 %v8456_v58 }
 0x604   :  { %6530 = vtanh.f32 %v1563_v62 }
 0x605   :  { %6532 = vpow2.f32 %v5835_v5 }
 0x60c   :  { %v6523_v2 = vpop.eup %6522 }
 0x60d   :  { %v1568_v21 = vadd.f32 1.0, %v6523_v2 }
 0x60e   :  { %v6525_v54 = vpop.eup %6524 }
 0x60f   :  { %v6527_v34 = vpop.eup %6526  ;;  %6534 = vrcp.f32 %v1568_v21  ;;  %v1574_v1 = vadd.f32 1.0, %v6525_v54 }
 0x610   :  { %v6529_v29 = vpop.eup %6528 }
 0x611   :  { %6536 = vrcp.f32 %v1574_v1  ;;  %v1477_v4 = vmul.f32 %v6529_v29, %v6527_v34  ;;  %v6531_v11 = vpop.eup %6530 }
 0x612   :  { %v6533_v14 = vpop.eup %6532 }
 0x613   :  { %v1604_v7 = vpack.c.bf16 %v1477_v4, %v1477_v4  ;;  %v1581_v26 = vadd.f32 1.0, %v6533_v14  ;;  %v8548_v14 = vld [vmem:[#allocation5 + $0x64] ss:$16 sps:$4 sm:$0xff]  }
 0x615   :  { %1637 = vmatprep.mubr.bf16.mxu0 %v1604_v7  ;;  %1678 = vmatprep.mubr.bf16.mxu1 %v1604_v7  ;;  %6538 = vrcp.f32 %v1581_v26  ;;  %v8560_v26 = vld [vmem:[#allocation5 + $0x44] ss:$16 sps:$4 sm:$0xff]  }
 0x616   :  { %11758 = vst [vmem:[#allocation41_spill] sm:$0xff] %v8560_v26 }
 0x61c   :  { %v6535_v55 = vpop.eup %6534 }
 0x61d   :  { %v1585_v17 = vmul.f32 %v6535_v55, %v6531_v11  ;;  %v8551_v55 = vld [vmem:[#allocation5 + $0x6c] ss:$16 sps:$4 sm:$0xff]  }
 0x61e   :  { %v6537_v47 = vpop.eup %6536 }
 0x61f   :  { %v1584_v27 = vmul.f32 %v6537_v47, %v8307_v15  ;;  %v8557_v47 = vld [vmem:[#allocation5 + $0x68] ss:$16 sps:$4 sm:$0xff]  }
 0x621   :  { %v8462_v28 = vadd.f32 %v1585_v17, %v1584_v27  ;;  %v8554_v17 = vld [vmem:[#allocation5 + $0x60] ss:$16 sps:$4 sm:$0xff]   ;;  %v8563_v27 = vld [vmem:[#allocation5 + $0x4c] ss:$16 sps:$4 sm:$0xff]  }
 0x622   :  { %v6539_v30 = vpop.eup %6538  ;;  %11759 = vst [vmem:[#allocation26_spill] sm:$0xff] %v8563_v27 }
 0x623   :  { %6540 = vtanh.f32 %v8462_v28 }
 0x630   :  { %v6541_v32 = vpop.eup %6540 }
 0x631   :  { %v1588_v56 = vmul.f32 %v6541_v32, %v6539_v30  ;;  %v8566_v30 = vld [vmem:[#allocation5 + $0x40] ss:$16 sps:$4 sm:$0xff]   ;;  %v8569_v32 = vld [vmem:[#allocation5 + $0x48] ss:$16 sps:$4 sm:$0xff]  }
 0x632   :  { %11760 = vst [vmem:[#allocation25_spill] sm:$0xff] %v8566_v30  ;;  %11761 = vst [vmem:[#allocation44_spill] sm:$0xff] %v8569_v32 }
 0x633   :  { %1589 = vadd.xlane.f32.xlu0 %v1588_v56 }
 0x6bc   :  { %v1590_v50 = vpop.xlane.xlu0 %1589 }
 0x6bd   :  { %v1591_v62 = vmul.f32 0.015625, %v1590_v50  ;;  %v8575_v50 = vld [vmem:[#allocation5 + $0x2c] ss:$16 sps:$4 sm:$0xff]  }
 0x6be   :  { %11763 = vst [vmem:[#allocation45_spill] sm:$0xff] %v8575_v50 }
 0x6bf   :  { %v1592_v5 = vsub.f32 %v1588_v56, %v1591_v62  ;;  %v8578_v62 = vld [vmem:[#allocation5 + $0x20] ss:$16 sps:$4 sm:$0xff]  }
 0x6c0   :  { %11764 = vst [vmem:[#allocation46_spill] sm:$0xff] %v8578_v62 }
 0x6c1   :  { %v1593_v2 = vmul.f32 %v11704_v22, %v1592_v5  ;;  %v8581_v5 = vld [vmem:[#allocation5 + $0x28] ss:$16 sps:$4 sm:$0xff]  }
 0x6c2   :  { %11765 = vst [vmem:[#allocation47_spill] sm:$0xff] %v8581_v5 }
 0x6c3   :  { %v1594_v21 = vmul.f32 %v1593_v2, %v1593_v2 }
 0x6c5   :  { %1595 = vadd.xlane.f32.xlu1 %v1594_v21  ;;  %v8587_v21 = vld [vmem:[#allocation5 + $0xc] ss:$16 sps:$4 sm:$0xff]  }
 0x6c6   :  { %11767 = vst [vmem:[#allocation49_spill] sm:$0xff] %v8587_v21 }
 0x74e   :  { %v1596_v54 = vpop.xlane.xlu1 %1595 }
 0x74f   :  { %v1597_v34 = vmul.f32 0.015625, %v1596_v54  ;;  %v8590_v54 = vld [vmem:[#allocation5] ss:$16 sps:$4 sm:$0xff]  }
 0x750   :  { %11768 = vst [vmem:[#allocation50_spill] sm:$0xff] %v8590_v54 }
 0x751   :  { %v1598_v1 = vadd.f32 1e-05, %v1597_v34  ;;  %v8593_v34 = vld [vmem:[#allocation5 + $0x8] ss:$16 sps:$4 sm:$0xff]  }
 0x752   :  { %11769 = vst [vmem:[#allocation51_spill] sm:$0xff] %v8593_v34 }
 0x753   :  { %6542 = vrsqrt.f32 %v1598_v1  ;;  %v8596_v1 = vld [vmem:[#allocation5 + $0x1e4] ss:$16 sps:$4 sm:$0xff]  }
 0x754   :  { %11770 = vst [vmem:[#allocation52_spill] sm:$0xff] %v8596_v1 }
 0x760   :  { %v6543_v15 = vpop.eup %6542 }
 0x761   :  { %v1600_v29 = vmul.f32 %v6543_v15, %v1593_v2  ;;  %v8584_v2 = vld [vmem:[#allocation5 + $0x4] ss:$16 sps:$4 sm:$0xff]   ;;  %v8599_v15 = vld [vmem:[#allocation5 + $0x1ec] ss:$16 sps:$4 sm:$0xff]  }
 0x762   :  { %11766 = vst [vmem:[#allocation48_spill] sm:$0xff] %v8584_v2  ;;  %11771 = vst [vmem:[#allocation53_spill] sm:$0xff] %v8599_v15 }
 0x763   :  { %v1601_v4 = vmul.f32 %v8113_v23, %v1600_v29  ;;  %v1711_v23 = vpack.c.bf16 %v1588_v56, %v1588_v56  ;;  %v8572_v56 = vld [vmem:[#allocation5 + $0x24] ss:$16 sps:$4 sm:$0xff]   ;;  %v8602_v29 = vld [vmem:[#allocation5 + $0x1e0] ss:$16 sps:$4 sm:$0xff]  }
 0x764   :  { %11762 = vst [vmem:[#allocation64_spill] sm:$0xff] %v8572_v56  ;;  %11772 = vst [vmem:[#allocation54_spill] sm:$0xff] %v8602_v29 }
 0x765   :  { %v1602_v7 = vadd.f32 %v8119_v18, %v1601_v4  ;;  %v8500_v18 = vld [vmem:[#allocation5 + $0xe4] ss:$16 sps:$4 sm:$0xff]   ;;  %v8605_v4 = vld [vmem:[#allocation5 + $0x1e8] ss:$16 sps:$4 sm:$0xff]  }
 0x766   :  { %11773 = vst [vmem:[#allocation55_spill] sm:$0xff] %v8605_v4 }
 0x767   :  { %v1603_v11 = vpack.c.bf16 %v1602_v7, %v1602_v7  ;;  %v8608_v7 = vld [vmem:[#allocation5 + $0x1c4] ss:$16 sps:$4 sm:$0xff]  }
 0x768   :  { %11774 = vst [vmem:[#allocation56_spill] sm:$0xff] %v8608_v7 }
 0x769   :  { %1638 = vmatmul.mubr.bf16.vlgmr.msra.gmra.mxu0 %v1603_v11  ;;  %1679 = vmatmul.mubr.bf16.vlgmr.msra.gmra.mxu1 %v1603_v11  ;;  %v8611_v11 = vld [vmem:[#allocation5 + $0x1cc] ss:$16 sps:$4 sm:$0xff]  }
 0x76a   :  { %1713 = vmatpush1.bf16.msra.mxu0 %v8123_v24  ;;  %1754 = vmatpush1.bf16.msra.mxu1 %v8318_v6  ;;  %v8503_v24 = vld [vmem:[#allocation5 + $0xec] ss:$16 sps:$4 sm:$0xff]   ;;  %11775 = vst [vmem:[#allocation57_spill] sm:$0xff] %v8611_v11 }
 0x76b   :  { %1714 = vmatprep.subr.bf16.mxu0 %v8127_v60  ;;  %1755 = vmatprep.subr.bf16.mxu1 %v8322_v20  ;;  %v8506_v60 = vld [vmem:[#allocation5 + $0xe0] ss:$16 sps:$4 sm:$0xff]  }
 0x76c   :  { %1744 = vmatprep.mubr.bf16.mxu0 %v11649_v59  ;;  %1785 = vmatprep.mubr.bf16.mxu1 %v11649_v59 }
 0x76e   :  { %1715 = vmatpush1.bf16.msra.mxu0 %v8133_v61  ;;  %1756 = vmatpush1.bf16.msra.mxu1 %v8328_v12  ;;  %v8509_v61 = vld [vmem:[#allocation5 + $0xe8] ss:$16 sps:$4 sm:$0xff]  }
 0x76f   :  { %1716 = vmatprep.subr.bf16.mxu0 %v8137_v3  ;;  %1757 = vmatprep.subr.bf16.mxu1 %v8332_v49  ;;  %v8512_v3 = vld [vmem:[#allocation5 + $0xc4] ss:$16 sps:$4 sm:$0xff]  }
 0x772   :  { %1717 = vmatpush1.bf16.msra.mxu0 %v8141_v36  ;;  %1758 = vmatpush1.bf16.msra.mxu1 %v8336_v33  ;;  %v8515_v36 = vld [vmem:[#allocation5 + $0xcc] ss:$16 sps:$4 sm:$0xff]  }
 0x773   :  { %1718 = vmatprep.subr.bf16.mxu0 %v8145_v37  ;;  %1759 = vmatprep.subr.bf16.mxu1 %v8340_v53  ;;  %v8518_v37 = vld [vmem:[#allocation5 + $0xc0] ss:$16 sps:$4 sm:$0xff]  }
 0x776   :  { %1719 = vmatpush1.bf16.msra.mxu0 %v8149_v16  ;;  %1760 = vmatpush1.bf16.msra.mxu1 %v8344_v10  ;;  %v8521_v16 = vld [vmem:[#allocation5 + $0xc8] ss:$16 sps:$4 sm:$0xff]  }
 0x777   :  { %1720 = vmatprep.subr.bf16.mxu0 %v8153_v38  ;;  %1761 = vmatprep.subr.bf16.mxu1 %v8348_v51  ;;  %v8524_v38 = vld [vmem:[#allocation5 + $0xa4] ss:$16 sps:$4 sm:$0xff]  }
 0x77a   :  { %1721 = vmatpush1.bf16.msra.mxu0 %v8157_v39  ;;  %1762 = vmatpush1.bf16.msra.mxu1 %v8352_v46  ;;  %v8527_v39 = vld [vmem:[#allocation5 + $0xac] ss:$16 sps:$4 sm:$0xff]  }
 0x77b   :  { %1722 = vmatprep.subr.bf16.mxu0 %v8161_v40  ;;  %1763 = vmatprep.subr.bf16.mxu1 %v8356_v0  ;;  %v8530_v40 = vld [vmem:[#allocation5 + $0xa0] ss:$16 sps:$4 sm:$0xff]  }
 0x77e   :  { %1723 = vmatpush1.bf16.msra.mxu0 %v8165_v41  ;;  %1764 = vmatpush1.bf16.msra.mxu1 %v8360_v8  ;;  %v8533_v41 = vld [vmem:[#allocation5 + $0xa8] ss:$16 sps:$4 sm:$0xff]  }
 0x77f   :  { %1724 = vmatprep.subr.bf16.mxu0 %v8169_v42  ;;  %1765 = vmatprep.subr.bf16.mxu1 %v8364_v35  ;;  %v8536_v42 = vld [vmem:[#allocation5 + $0x84] ss:$16 sps:$4 sm:$0xff]  }
 0x782   :  { %1725 = vmatpush1.bf16.msra.mxu0 %v8173_v43  ;;  %1766 = vmatpush1.bf16.msra.mxu1 %v8368_v48  ;;  %v8539_v43 = vld [vmem:[#allocation5 + $0x8c] ss:$16 sps:$4 sm:$0xff]  }
 0x783   :  { %1726 = vmatprep.subr.bf16.mxu0 %v8177_v44  ;;  %1767 = vmatprep.subr.bf16.mxu1 %v8372_v52  ;;  %v8542_v44 = vld [vmem:[#allocation5 + $0x80] ss:$16 sps:$4 sm:$0xff]  }
 0x786   :  { %1727 = vmatpush1.bf16.msra.mxu0 %v8181_v45  ;;  %1768 = vmatpush1.bf16.msra.mxu1 %v8376_v13  ;;  %v8545_v45 = vld [vmem:[#allocation5 + $0x88] ss:$16 sps:$4 sm:$0xff]  }
 0x787   :  { %1838 = vmatprep.subr.bf16.mxu0 %v8500_v18  ;;  %1879 = vmatprep.subr.bf16.mxu1 %v8503_v24 }
 0x789   :  { %1745 = vmatmul.mubr.bf16.vlgmr.msra.gmra.mxu0 %v1711_v23  ;;  %1786 = vmatmul.mubr.bf16.vlgmr.msra.gmra.mxu1 %v1711_v23  ;;  %v8614_v23 = vld [vmem:[#allocation5 + $0x1c0] ss:$16 sps:$4 sm:$0xff]  }
 0x78a   :  { %1839 = vmatpush1.bf16.msra.mxu0 %v8506_v60  ;;  %1880 = vmatpush1.bf16.msra.mxu1 %v8509_v61  ;;  %11776 = vst [vmem:[#allocation58_spill] sm:$0xff] %v8614_v23 }
 0x78b   :  { %1840 = vmatprep.subr.bf16.mxu0 %v8512_v3  ;;  %1881 = vmatprep.subr.bf16.mxu1 %v8515_v36 }
 0x78e   :  { %1841 = vmatpush1.bf16.msra.mxu0 %v8518_v37  ;;  %1882 = vmatpush1.bf16.msra.mxu1 %v8521_v16 }
 0x78f   :  { %1842 = vmatprep.subr.bf16.mxu0 %v8524_v38  ;;  %1883 = vmatprep.subr.bf16.mxu1 %v8527_v39 }
 0x792   :  { %1843 = vmatpush1.bf16.msra.mxu0 %v8530_v40  ;;  %1884 = vmatpush1.bf16.msra.mxu1 %v8533_v41 }
 0x793   :  { %1844 = vmatprep.subr.bf16.mxu0 %v8536_v42  ;;  %1885 = vmatprep.subr.bf16.mxu1 %v8539_v43 }
 0x796   :  { %1845 = vmatpush1.bf16.msra.mxu0 %v8542_v44  ;;  %1886 = vmatpush1.bf16.msra.mxu1 %v8545_v45 }
 0x797   :  { %1846 = vmatprep.subr.bf16.mxu0 %v8548_v14  ;;  %1887 = vmatprep.subr.bf16.mxu1 %v8551_v55 }
 0x79a   :  { %1847 = vmatpush1.bf16.msra.mxu0 %v8554_v17  ;;  %1888 = vmatpush1.bf16.msra.mxu1 %v8557_v47 }
 0x79b   :  { %1848 = vmatprep.subr.bf16.mxu0 %v8560_v26  ;;  %1889 = vmatprep.subr.bf16.mxu1 %v8563_v27 }
 0x79e   :  { %1849 = vmatpush1.bf16.msra.mxu0 %v8566_v30  ;;  %1890 = vmatpush1.bf16.msra.mxu1 %v8569_v32 }
 0x79f   :  { %1850 = vmatprep.subr.bf16.mxu0 %v8572_v56  ;;  %1891 = vmatprep.subr.bf16.mxu1 %v8575_v50 }
 0x7a2   :  { %1851 = vmatpush1.bf16.msra.mxu0 %v8578_v62  ;;  %1892 = vmatpush1.bf16.msra.mxu1 %v8581_v5 }
 0x7a3   :  { %1852 = vmatprep.subr.bf16.mxu0 %v8584_v2  ;;  %1893 = vmatprep.subr.bf16.mxu1 %v8587_v21 }
 0x7a6   :  { %1853 = vmatpush1.bf16.msra.mxu0 %v8590_v54  ;;  %1894 = vmatpush1.bf16.msra.mxu1 %v8593_v34 }
 0x7a7   :  { %1854 = vmatprep.subr.bf16.mxu0 %v8596_v1  ;;  %1895 = vmatprep.subr.bf16.mxu1 %v8599_v15  ;;  %v8617_v15 = vld [vmem:[#allocation5 + $0x1c8] ss:$16 sps:$4 sm:$0xff]  }
 0x7a8   :  { %11777 = vst [vmem:[#allocation59_spill] sm:$0xff] %v8617_v15 }
 0x7aa   :  { %1855 = vmatpush2.bf16.msra.mxu0 %v8602_v29  ;;  %1896 = vmatpush2.bf16.msra.mxu1 %v8605_v4  ;;  %v8620_v29 = vld [vmem:[#allocation5 + $0x1a4] ss:$16 sps:$4 sm:$0xff]   ;;  %v8623_v4 = vld [vmem:[#allocation5 + $0x1ac] ss:$16 sps:$4 sm:$0xff]  }
 0x7ab   :  { %1856 = vmatprep.subr.bf16.mxu0 %v8608_v7  ;;  %1897 = vmatprep.subr.bf16.mxu1 %v8611_v11  ;;  %11778 = vst [vmem:[#allocation60_spill] sm:$0xff] %v8620_v29  ;;  %11779 = vst [vmem:[#allocation61_spill] sm:$0xff] %v8623_v4  ;;  %v8626_v7 = vld [vmem:[#allocation5 + $0x1a0] ss:$16 sps:$4 sm:$0xff]   ;;  %v8629_v11 = vld [vmem:[#allocation5 + $0x1a8] ss:$16 sps:$4 sm:$0xff]  }
 0x7ac   :  { %11780 = vst [vmem:[#allocation62_spill] sm:$0xff] %v8626_v7  ;;  %11781 = vst [vmem:[#allocation65_spill] sm:$0xff] %v8629_v11 }
 0x7ae   :  { %1857 = vmatpush2.bf16.msra.mxu0 %v8614_v23  ;;  %1898 = vmatpush2.bf16.msra.mxu1 %v8617_v15  ;;  %v8632_v23 = vld [vmem:[#allocation5 + $0x184] ss:$16 sps:$4 sm:$0xff]   ;;  %v8635_v15 = vld [vmem:[#allocation5 + $0x18c] ss:$16 sps:$4 sm:$0xff]  }
 0x7af   :  { %1858 = vmatprep.subr.bf16.mxu0 %v8620_v29  ;;  %1899 = vmatprep.subr.bf16.mxu1 %v8623_v4  ;;  %11782 = vst [vmem:[#allocation66_spill] sm:$0xff] %v8632_v23  ;;  %11783 = vst [vmem:[#allocation67_spill] sm:$0xff] %v8635_v15  ;;  %v8638_v29 = vld [vmem:[#allocation5 + $0x180] ss:$16 sps:$4 sm:$0xff]   ;;  %v8641_v4 = vld [vmem:[#allocation5 + $0x188] ss:$16 sps:$4 sm:$0xff]  }
 0x7b0   :  { %11784 = vst [vmem:[#allocation68_spill] sm:$0xff] %v8638_v29  ;;  %11785 = vst [vmem:[#allocation69_spill] sm:$0xff] %v8641_v4 }
 0x7b2   :  { %1859 = vmatpush2.bf16.msra.mxu0 %v8626_v7  ;;  %1900 = vmatpush2.bf16.msra.mxu1 %v8629_v11  ;;  %v8644_v7 = vld [vmem:[#allocation5 + $0x164] ss:$16 sps:$4 sm:$0xff]   ;;  %v8647_v11 = vld [vmem:[#allocation5 + $0x16c] ss:$16 sps:$4 sm:$0xff]  }
 0x7b3   :  { %1860 = vmatprep.subr.bf16.mxu0 %v8632_v23  ;;  %1901 = vmatprep.subr.bf16.mxu1 %v8635_v15  ;;  %11786 = vst [vmem:[#allocation70_spill] sm:$0xff] %v8644_v7  ;;  %11787 = vst [vmem:[#allocation71_spill] sm:$0xff] %v8647_v11  ;;  %v8650_v23 = vld [vmem:[#allocation5 + $0x160] ss:$16 sps:$4 sm:$0xff]   ;;  %v8653_v15 = vld [vmem:[#allocation5 + $0x168] ss:$16 sps:$4 sm:$0xff]  }
 0x7b4   :  { %11788 = vst [vmem:[#allocation72_spill] sm:$0xff] %v8650_v23  ;;  %11789 = vst [vmem:[#allocation73_spill] sm:$0xff] %v8653_v15 }
 0x7b6   :  { %1861 = vmatpush2.bf16.msra.mxu0 %v8638_v29  ;;  %1902 = vmatpush2.bf16.msra.mxu1 %v8641_v4  ;;  %v8656_v29 = vld [vmem:[#allocation5 + $0x144] ss:$16 sps:$4 sm:$0xff]   ;;  %v8659_v4 = vld [vmem:[#allocation5 + $0x14c] ss:$16 sps:$4 sm:$0xff]  }
 0x7b7   :  { %1862 = vmatprep.subr.bf16.mxu0 %v8644_v7  ;;  %1903 = vmatprep.subr.bf16.mxu1 %v8647_v11  ;;  %11790 = vst [vmem:[#allocation74_spill] sm:$0xff] %v8656_v29  ;;  %11791 = vst [vmem:[#allocation75_spill] sm:$0xff] %v8659_v4  ;;  %v8662_v7 = vld [vmem:[#allocation5 + $0x140] ss:$16 sps:$4 sm:$0xff]   ;;  %v8665_v11 = vld [vmem:[#allocation5 + $0x148] ss:$16 sps:$4 sm:$0xff]  }
 0x7b8   :  { %11792 = vst [vmem:[#allocation76_spill] sm:$0xff] %v8662_v7  ;;  %11793 = vst [vmem:[#allocation77_spill] sm:$0xff] %v8665_v11 }
 0x7ba   :  { %1863 = vmatpush2.bf16.msra.mxu0 %v8650_v23  ;;  %1904 = vmatpush2.bf16.msra.mxu1 %v8653_v15  ;;  %v8668_v23 = vld [vmem:[#allocation5 + $0x124] ss:$16 sps:$4 sm:$0xff]   ;;  %v8671_v15 = vld [vmem:[#allocation5 + $0x12c] ss:$16 sps:$4 sm:$0xff]  }
 0x7bb   :  { %1864 = vmatprep.subr.bf16.mxu0 %v8656_v29  ;;  %1905 = vmatprep.subr.bf16.mxu1 %v8659_v4  ;;  %11794 = vst [vmem:[#allocation78_spill] sm:$0xff] %v8668_v23  ;;  %11795 = vst [vmem:[#allocation79_spill] sm:$0xff] %v8671_v15  ;;  %v8674_v29 = vld [vmem:[#allocation5 + $0x120] ss:$16 sps:$4 sm:$0xff]   ;;  %v8677_v4 = vld [vmem:[#allocation5 + $0x128] ss:$16 sps:$4 sm:$0xff]  }
 0x7bc   :  { %11796 = vst [vmem:[#allocation80_spill] sm:$0xff] %v8674_v29  ;;  %11797 = vst [vmem:[#allocation81_spill] sm:$0xff] %v8677_v4 }
 0x7be   :  { %1865 = vmatpush2.bf16.msra.mxu0 %v8662_v7  ;;  %1906 = vmatpush2.bf16.msra.mxu1 %v8665_v11  ;;  %v8680_v7 = vld [vmem:[#allocation5 + $0x104] ss:$16 sps:$4 sm:$0xff]   ;;  %v8683_v11 = vld [vmem:[#allocation5 + $0x10c] ss:$16 sps:$4 sm:$0xff]  }
 0x7bf   :  { %1866 = vmatprep.subr.bf16.mxu0 %v8668_v23  ;;  %1907 = vmatprep.subr.bf16.mxu1 %v8671_v15  ;;  %11798 = vst [vmem:[#allocation82_spill] sm:$0xff] %v8680_v7  ;;  %11799 = vst [vmem:[#allocation83_spill] sm:$0xff] %v8683_v11  ;;  %v8686_v23 = vld [vmem:[#allocation5 + $0x100] ss:$16 sps:$4 sm:$0xff]   ;;  %v8689_v15 = vld [vmem:[#allocation5 + $0x108] ss:$16 sps:$4 sm:$0xff]  }
 0x7c0   :  { %11800 = vst [vmem:[#allocation84_spill] sm:$0xff] %v8686_v23  ;;  %11801 = vst [vmem:[#allocation85_spill] sm:$0xff] %v8689_v15 }
 0x7c2   :  { %1867 = vmatpush2.bf16.msra.mxu0 %v8674_v29  ;;  %1908 = vmatpush2.bf16.msra.mxu1 %v8677_v4  ;;  %v8692_v29 = vld [vmem:[#allocation2 + $0xe4] ss:$16 sps:$4 sm:$0xff]  }
 0x7c3   :  { %1868 = vmatprep.subr.bf16.mxu0 %v8680_v7  ;;  %1909 = vmatprep.subr.bf16.mxu1 %v8683_v11  ;;  %11802 = vst [vmem:[#allocation86_spill] sm:$0xff] %v8692_v29 }
 0x7c6   :  { %1869 = vmatpush2.bf16.msra.mxu0 %v8686_v23  ;;  %1910 = vmatpush2.bf16.msra.mxu1 %v8689_v15 }
 0x7c7   :  { %1945 = vmatprep.subr.bf16.mxu0 %v8692_v29  ;;  %1986 = vmatprep.subr.bf16.mxu1 %v11748_v31 }
 0x829   :  { %v1639_v4 = vpop.f32.mrf.mxu0  ;;  %v1680_v7 = vpop.f32.mrf.mxu1 }
 0x82a   :  { %v1640_v1 = vadd.f32 %v1639_v4, %v11749_v57  ;;  %v1681_v56 = vadd.f32 %v1680_v7, %v11752_v19 }
 0x82b   :  { %v1641_v34 = vpop.f32.mrf.mxu0  ;;  %v1682_v11 = vpop.f32.mrf.mxu1 }
 0x82c   :  { %v5836_v54 = vmul.f32 -1.442695, %v1640_v1  ;;  %v1642_v21 = vadd.f32 %v1641_v34, %v11750_v25  ;;  %v1683_v29 = vadd.f32 %v1682_v11, %v11751_v9  ;;  %v11803_v34 = vld [vmem:[#allocation42_spill] sm:$0xff] }
 0x82d   :  { %v1643_v23 = vpop.f32.mrf.mxu0  ;;  %v1684_v2 = vpop.f32.mrf.mxu1 }
 0x82e   :  { %6544 = vpow2.f32 %v5836_v54  ;;  %v5837_v5 = vmul.f32 -1.442695, %v1642_v21  ;;  %v5838_v50 = vmul.f32 -1.442695, %v1683_v29  ;;  %v11804_v2 = vld [vmem:[#allocation93_spill] sm:$0xff] }
 0x82f   :  { %v1644_v15 = vpop.f32.mrf.mxu0  ;;  %v1685_v62 = vpop.f32.mrf.mxu1  ;;  %v306_v54 = vadd.f32 %v11804_v2, %v11803_v34 }
 0x830   :  { %6546 = vpow2.f32 %v5837_v5  ;;  %v11805_v5 = vld [vmem:[#allocation94_spill] sm:$0xff] }
 0x831   :  { %6548 = vpow2.f32 %v5838_v50  ;;  %v308_v11 = vadd.f32 %v11805_v5, %v11699_v63 }
 0x83b   :  { %v6545_v31 = vpop.eup %6544 }
 0x83c   :  { %v1690_v32 = vadd.f32 1.0, %v6545_v31 }
 0x83d   :  { %v6547_v4 = vpop.eup %6546 }
 0x83e   :  { %6550 = vrcp.f32 %v1690_v32  ;;  %v1696_v1 = vadd.f32 1.0, %v6547_v4  ;;  %v6549_v62 = vpop.eup %6548 }
 0x83f   :  { %6552 = vtanh.f32 %v1681_v56  ;;  %v1703_v4 = vadd.f32 1.0, %v6549_v62  ;;  %v11808_v62 = vld [vmem:[#allocation30_spill] sm:$0xff] }
 0x840   :  { %6554 = vrcp.f32 %v1696_v1 }
 0x849   :  { %v1746_v21 = vpop.f32.mrf.mxu0  ;;  %v1787_v15 = vpop.f32.mrf.mxu1 }
 0x84a   :  { %v1794_v29 = vadd.f32 %v1746_v21, %v306_v54  ;;  %v11806_v54 = vld [vmem:[#allocation27_spill] sm:$0xff] }
 0x84b   :  { %v6551_v23 = vpop.eup %6550  ;;  %v1748_v9 = vpop.f32.mrf.mxu0  ;;  %v11807_v21 = vld [vmem:[#allocation31_spill] sm:$0xff] }
 0x84c   :  { %v1789_v7 = vpop.f32.mrf.mxu1  ;;  %v6553_v31 = vpop.eup %6552  ;;  %v5839_v19 = vmul.f32 -1.442695, %v1794_v29  ;;  %v1795_v50 = vadd.f32 %v1748_v9, %v308_v11  ;;  %v381_v9 = vadd.f32 %v11807_v21, %v11806_v54  ;;  %v1796_v29 = vadd.f32 %v1787_v15, %v11808_v62  ;;  %v11828_v54 = vld [vmem:[#allocation61_spill] sm:$0xff] }
 0x84d   :  { %v6555_v32 = vpop.eup %6554  ;;  %v1750_v56 = vpop.f32.mrf.mxu0  ;;  %v1707_v25 = vmul.f32 %v6553_v31, %v6551_v23 }
 0x84e   :  { %v1791_v1 = vpop.f32.mrf.mxu1  ;;  %v1706_v2 = vmul.f32 %v6555_v32, %v8456_v58  ;;  %6556 = vpow2.f32 %v5839_v19  ;;  %v5840_v34 = vmul.f32 -1.442695, %v1795_v50  ;;  %v1797_v11 = vadd.f32 %v1789_v7, %v381_v9 }
 0x84f   :  { %v1751_v57 = vpop.f32.mrf.mxu0 }
 0x850   :  { %v1792_v30 = vpop.f32.mrf.mxu1  ;;  %6558 = vpow2.f32 %v5840_v34  ;;  %v8705_v5 = vadd.f32 %v1707_v25, %v1706_v2  ;;  %v5841_v56 = vmul.f32 -1.442695, %v1797_v11 }
 0x851   :  { %6560 = vrcp.f32 %v1703_v4 }
 0x852   :  { %6562 = vtanh.f32 %v8705_v5 }
 0x853   :  { %6564 = vtanh.f32 %v1796_v29 }
 0x854   :  { %6566 = vpow2.f32 %v5841_v56 }
 0x85b   :  { %v6557_v23 = vpop.eup %6556 }
 0x85c   :  { %v1801_v31 = vadd.f32 1.0, %v6557_v23 }
 0x85d   :  { %v6559_v19 = vpop.eup %6558 }
 0x85e   :  { %v6561_v57 = vpop.eup %6560  ;;  %6568 = vrcp.f32 %v1801_v31  ;;  %v1807_v58 = vadd.f32 1.0, %v6559_v19 }
 0x85f   :  { %v6563_v25 = vpop.eup %6562 }
 0x860   :  { %6570 = vrcp.f32 %v1807_v58  ;;  %v1710_v30 = vmul.f32 %v6563_v25, %v6561_v57  ;;  %v6565_v50 = vpop.eup %6564 }
 0x861   :  { %v6567_v32 = vpop.eup %6566 }
 0x862   :  { %v1837_v34 = vpack.c.bf16 %v1710_v30, %v1710_v30  ;;  %v1814_v1 = vadd.f32 1.0, %v6567_v32  ;;  %v8729_v32 = vld [vmem:[%s11009_s5] ss:$0 sm:$0xff] }
 0x864   :  { %1870 = vmatprep.mubr.bf16.mxu0 %v1837_v34  ;;  %1911 = vmatprep.mubr.bf16.mxu1 %v1837_v34  ;;  %6572 = vrcp.f32 %v1814_v1  ;;  %v8723_v34 = vld [vmem:[%s11008_s4] ss:$0 sm:$0xff]  ;;  %v8736_v1 = vld [vmem:[#allocation2 + $0xc4] ss:$16 sps:$4 sm:$0xff]  }
 0x86b   :  { %v6569_v7 = vpop.eup %6568 }
 0x86c   :  { %v1818_v4 = vmul.f32 %v6569_v7, %v6565_v50 }
 0x86d   :  { %v6571_v15 = vpop.eup %6570 }
 0x86e   :  { %v1817_v2 = vmul.f32 %v6571_v15, %v8462_v28  ;;  %v8732_v15 = vld [vmem:[#allocation2 + $0xe0] ss:$16 sps:$4 sm:$0xff]  }
 0x870   :  { %v8712_v21 = vadd.f32 %v1818_v4, %v1817_v2  ;;  %v8742_v2 = vld [vmem:[#allocation2 + $0xc0] ss:$16 sps:$4 sm:$0xff]  }
 0x871   :  { %v6573_v9 = vpop.eup %6572 }
 0x872   :  { %6574 = vtanh.f32 %v8712_v21 }
 0x87f   :  { %v6575_v11 = vpop.eup %6574 }
 0x880   :  { %v8715_v62 = vmul.f32 %v6575_v11, %v6573_v9  ;;  %v8746_v9 = vld [vmem:[#allocation2 + $0xa4] ss:$16 sps:$4 sm:$0xff]   ;;  %v8758_v11 = vld [vmem:[#allocation2 + $0x80] ss:$16 sps:$4 sm:$0xff]  }
 0x882   :  { %1822 = vadd.xlane.f32.xlu0 %v8715_v62 }
 0x90b   :  { %v1823_v29 = vpop.xlane.xlu0 %1822 }
 0x90c   :  { %v1824_v56 = vmul.f32 0.015625, %v1823_v29  ;;  %v11814_v29 = vld [vmem:[#allocation47_spill] sm:$0xff] }
 0x90e   :  { %v1825_v23 = vsub.f32 %v8715_v62, %v1824_v56  ;;  %v11815_v56 = vld [vmem:[#allocation48_spill] sm:$0xff] }
 0x910   :  { %v1826_v31 = vmul.f32 %v11704_v22, %v1825_v23  ;;  %v11816_v23 = vld [vmem:[#allocation49_spill] sm:$0xff] }
 0x912   :  { %v1827_v19 = vmul.f32 %v1826_v31, %v1826_v31 }
 0x914   :  { %1828 = vadd.xlane.f32.xlu1 %v1827_v19  ;;  %v11818_v19 = vld [vmem:[#allocation51_spill] sm:$0xff] }
 0x99d   :  { %v1829_v28 = vpop.xlane.xlu1 %1828 }
 0x99e   :  { %v1830_v57 = vmul.f32 0.015625, %v1829_v28  ;;  %v11819_v28 = vld [vmem:[#allocation52_spill] sm:$0xff] }
 0x9a0   :  { %v1831_v58 = vadd.f32 1e-05, %v1830_v57  ;;  %v11820_v57 = vld [vmem:[#allocation53_spill] sm:$0xff] }
 0x9a2   :  { %6576 = vrsqrt.f32 %v1831_v58  ;;  %v11821_v58 = vld [vmem:[#allocation54_spill] sm:$0xff] }
 0x9af   :  { %v6577_v25 = vpop.eup %6576 }
 0x9b0   :  { %v1833_v30 = vmul.f32 %v6577_v25, %v1826_v31  ;;  %v11817_v31 = vld [vmem:[#allocation50_spill] sm:$0xff]  ;;  %v11822_v25 = vld [vmem:[#allocation55_spill] sm:$0xff] }
 0x9b2   :  { %v1834_v50 = vmul.f32 %v8723_v34, %v1833_v30  ;;  %v11823_v30 = vld [vmem:[#allocation56_spill] sm:$0xff] }
 0x9b4   :  { %v1835_v7 = vadd.f32 %v8729_v32, %v1834_v50  ;;  %v11824_v50 = vld [vmem:[#allocation57_spill] sm:$0xff] }
 0x9b6   :  { %v1836_v4 = vpack.c.bf16 %v1835_v7, %v1835_v7  ;;  %v11825_v7 = vld [vmem:[#allocation58_spill] sm:$0xff] }
 0x9b8   :  { %1871 = vmatmul.mubr.bf16.vlgmr.msra.gmra.mxu0 %v1836_v4  ;;  %1912 = vmatmul.mubr.bf16.vlgmr.msra.gmra.mxu1 %v1836_v4  ;;  %v11826_v4 = vld [vmem:[#allocation59_spill] sm:$0xff] }
 0x9b9   :  { %1946 = vmatpush1.bf16.msra.mxu0 %v8732_v15  ;;  %1987 = vmatpush1.bf16.msra.mxu1 %v8318_v6  ;;  %v8750_v6 = vld [vmem:[#allocation2 + $0xa0] ss:$16 sps:$4 sm:$0xff]  }
 0x9ba   :  { %1947 = vmatprep.subr.bf16.mxu0 %v8736_v1  ;;  %1988 = vmatprep.subr.bf16.mxu1 %v8322_v20  ;;  %v8754_v20 = vld [vmem:[#allocation2 + $0x84] ss:$16 sps:$4 sm:$0xff]  }
 0x9bb   :  { %1977 = vmatprep.mubr.bf16.mxu0 %v11649_v59  ;;  %2018 = vmatprep.mubr.bf16.mxu1 %v11649_v59 }
 0x9bd   :  { %1948 = vmatpush1.bf16.msra.mxu0 %v8742_v2  ;;  %1989 = vmatpush1.bf16.msra.mxu1 %v8328_v12  ;;  %v8762_v12 = vld [vmem:[#allocation2 + $0x64] ss:$16 sps:$4 sm:$0xff]  }
 0x9be   :  { %1949 = vmatprep.subr.bf16.mxu0 %v8746_v9  ;;  %1990 = vmatprep.subr.bf16.mxu1 %v8332_v49  ;;  %v8766_v49 = vld [vmem:[#allocation2 + $0x60] ss:$16 sps:$4 sm:$0xff]  }
 0x9c1   :  { %1950 = vmatpush1.bf16.msra.mxu0 %v8750_v6  ;;  %1991 = vmatpush1.bf16.msra.mxu1 %v8336_v33  ;;  %v8770_v33 = vld [vmem:[#allocation2 + $0x44] ss:$16 sps:$4 sm:$0xff]  }
 0x9c2   :  { %1951 = vmatprep.subr.bf16.mxu0 %v8754_v20  ;;  %1992 = vmatprep.subr.bf16.mxu1 %v8340_v53  ;;  %v8774_v53 = vld [vmem:[#allocation2 + $0x40] ss:$16 sps:$4 sm:$0xff]  }
 0x9c5   :  { %1952 = vmatpush1.bf16.msra.mxu0 %v8758_v11  ;;  %1993 = vmatpush1.bf16.msra.mxu1 %v8344_v10  ;;  %v8778_v10 = vld [vmem:[#allocation2 + $0x24] ss:$16 sps:$4 sm:$0xff]  }
 0x9c6   :  { %1953 = vmatprep.subr.bf16.mxu0 %v8762_v12  ;;  %1994 = vmatprep.subr.bf16.mxu1 %v8348_v51  ;;  %v8782_v51 = vld [vmem:[#allocation2 + $0x20] ss:$16 sps:$4 sm:$0xff]  }
 0x9c9   :  { %1954 = vmatpush1.bf16.msra.mxu0 %v8766_v49  ;;  %1995 = vmatpush1.bf16.msra.mxu1 %v8352_v46  ;;  %v8786_v46 = vld [vmem:[#allocation2 + $0x4] ss:$16 sps:$4 sm:$0xff]  }
 0x9ca   :  { %1955 = vmatprep.subr.bf16.mxu0 %v8770_v33  ;;  %1996 = vmatprep.subr.bf16.mxu1 %v8356_v0  ;;  %v8790_v0 = vld [vmem:[#allocation2] ss:$16 sps:$4 sm:$0xff]  }
 0x9cd   :  { %1956 = vmatpush1.bf16.msra.mxu0 %v8774_v53  ;;  %1997 = vmatpush1.bf16.msra.mxu1 %v8360_v8  ;;  %v1944_v8 = vpack.c.bf16 %v8715_v62, %v8715_v62  ;;  %v11813_v62 = vld [vmem:[#allocation46_spill] sm:$0xff] }
 0x9ce   :  { %1957 = vmatprep.subr.bf16.mxu0 %v8778_v10  ;;  %1998 = vmatprep.subr.bf16.mxu1 %v8364_v35  ;;  %v11809_v35 = vld [vmem:[#allocation25_spill] sm:$0xff] }
 0x9d1   :  { %1958 = vmatpush1.bf16.msra.mxu0 %v8782_v51  ;;  %1999 = vmatpush1.bf16.msra.mxu1 %v8368_v48  ;;  %v11810_v48 = vld [vmem:[#allocation44_spill] sm:$0xff] }
 0x9d2   :  { %1959 = vmatprep.subr.bf16.mxu0 %v8786_v46  ;;  %2000 = vmatprep.subr.bf16.mxu1 %v8372_v52  ;;  %v11811_v52 = vld [vmem:[#allocation64_spill] sm:$0xff] }
 0x9d5   :  { %1960 = vmatpush1.bf16.msra.mxu0 %v8790_v0  ;;  %2001 = vmatpush1.bf16.msra.mxu1 %v8376_v13  ;;  %v11812_v13 = vld [vmem:[#allocation45_spill] sm:$0xff] }
 0x9d6   :  { %2071 = vmatprep.subr.bf16.mxu0 %v8500_v18  ;;  %2112 = vmatprep.subr.bf16.mxu1 %v8503_v24 }
 0x9d8   :  { %1978 = vmatmul.mubr.bf16.vlgmr.msra.gmra.mxu0 %v1944_v8  ;;  %2019 = vmatmul.mubr.bf16.vlgmr.msra.gmra.mxu1 %v1944_v8  ;;  %v11827_v8 = vld [vmem:[#allocation60_spill] sm:$0xff] }
 0x9d9   :  { %2072 = vmatpush1.bf16.msra.mxu0 %v8506_v60  ;;  %2113 = vmatpush1.bf16.msra.mxu1 %v8509_v61 }
 0x9da   :  { %2073 = vmatprep.subr.bf16.mxu0 %v8512_v3  ;;  %2114 = vmatprep.subr.bf16.mxu1 %v8515_v36 }
 0x9dd   :  { %2074 = vmatpush1.bf16.msra.mxu0 %v8518_v37  ;;  %2115 = vmatpush1.bf16.msra.mxu1 %v8521_v16 }
 0x9de   :  { %2075 = vmatprep.subr.bf16.mxu0 %v8524_v38  ;;  %2116 = vmatprep.subr.bf16.mxu1 %v8527_v39 }
 0x9e1   :  { %2076 = vmatpush1.bf16.msra.mxu0 %v8530_v40  ;;  %2117 = vmatpush1.bf16.msra.mxu1 %v8533_v41 }
 0x9e2   :  { %2077 = vmatprep.subr.bf16.mxu0 %v8536_v42  ;;  %2118 = vmatprep.subr.bf16.mxu1 %v8539_v43 }
 0x9e5   :  { %2078 = vmatpush1.bf16.msra.mxu0 %v8542_v44  ;;  %2119 = vmatpush1.bf16.msra.mxu1 %v8545_v45 }
 0x9e6   :  { %2079 = vmatprep.subr.bf16.mxu0 %v8548_v14  ;;  %2120 = vmatprep.subr.bf16.mxu1 %v8551_v55 }
 0x9e9   :  { %2080 = vmatpush1.bf16.msra.mxu0 %v8554_v17  ;;  %2121 = vmatpush1.bf16.msra.mxu1 %v8557_v47 }
 0x9ea   :  { %2081 = vmatprep.subr.bf16.mxu0 %v8560_v26  ;;  %2122 = vmatprep.subr.bf16.mxu1 %v8563_v27 }
 0x9ed   :  { %2082 = vmatpush1.bf16.msra.mxu0 %v11809_v35  ;;  %2123 = vmatpush1.bf16.msra.mxu1 %v11810_v48  ;;  %v11856_v48 = vld [vmem:[#allocation106_spill] sm:$0xff] }
 0x9ee   :  { %2083 = vmatprep.subr.bf16.mxu0 %v11811_v52  ;;  %2124 = vmatprep.subr.bf16.mxu1 %v11812_v13 }
 0x9f1   :  { %2084 = vmatpush1.bf16.msra.mxu0 %v11813_v62  ;;  %2125 = vmatpush1.bf16.msra.mxu1 %v11814_v29 }
 0x9f2   :  { %2085 = vmatprep.subr.bf16.mxu0 %v11815_v56  ;;  %2126 = vmatprep.subr.bf16.mxu1 %v11816_v23 }
 0x9f5   :  { %2086 = vmatpush1.bf16.msra.mxu0 %v11817_v31  ;;  %2127 = vmatpush1.bf16.msra.mxu1 %v11818_v19  ;;  %v11829_v19 = vld [vmem:[#allocation62_spill] sm:$0xff] }
 0x9f6   :  { %2087 = vmatprep.subr.bf16.mxu0 %v11819_v28  ;;  %2128 = vmatprep.subr.bf16.mxu1 %v11820_v57  ;;  %v11830_v28 = vld [vmem:[#allocation65_spill] sm:$0xff]  ;;  %v11831_v57 = vld [vmem:[#allocation66_spill] sm:$0xff] }
 0x9f9   :  { %2088 = vmatpush2.bf16.msra.mxu0 %v11821_v58  ;;  %2129 = vmatpush2.bf16.msra.mxu1 %v11822_v25  ;;  %v11832_v58 = vld [vmem:[#allocation67_spill] sm:$0xff]  ;;  %v11833_v25 = vld [vmem:[#allocation68_spill] sm:$0xff] }
 0x9fa   :  { %2089 = vmatprep.subr.bf16.mxu0 %v11823_v30  ;;  %2130 = vmatprep.subr.bf16.mxu1 %v11824_v50  ;;  %v11834_v30 = vld [vmem:[#allocation69_spill] sm:$0xff]  ;;  %v11835_v50 = vld [vmem:[#allocation70_spill] sm:$0xff] }
 0x9fd   :  { %2090 = vmatpush2.bf16.msra.mxu0 %v11825_v7  ;;  %2131 = vmatpush2.bf16.msra.mxu1 %v11826_v4  ;;  %v11836_v7 = vld [vmem:[#allocation71_spill] sm:$0xff]  ;;  %v11837_v4 = vld [vmem:[#allocation72_spill] sm:$0xff] }
 0x9fe   :  { %2091 = vmatprep.subr.bf16.mxu0 %v11827_v8  ;;  %2132 = vmatprep.subr.bf16.mxu1 %v11828_v54  ;;  %v11838_v8 = vld [vmem:[#allocation73_spill] sm:$0xff]  ;;  %v11839_v54 = vld [vmem:[#allocation74_spill] sm:$0xff] }
 0xa01   :  { %2092 = vmatpush2.bf16.msra.mxu0 %v11829_v19  ;;  %2133 = vmatpush2.bf16.msra.mxu1 %v11830_v28  ;;  %v11840_v19 = vld [vmem:[#allocation75_spill] sm:$0xff]  ;;  %v11841_v28 = vld [vmem:[#allocation76_spill] sm:$0xff] }
 0xa02   :  { %2093 = vmatprep.subr.bf16.mxu0 %v11831_v57  ;;  %2134 = vmatprep.subr.bf16.mxu1 %v11832_v58  ;;  %v11842_v57 = vld [vmem:[#allocation77_spill] sm:$0xff]  ;;  %v11843_v58 = vld [vmem:[#allocation78_spill] sm:$0xff] }
 0xa05   :  { %2094 = vmatpush2.bf16.msra.mxu0 %v11833_v25  ;;  %2135 = vmatpush2.bf16.msra.mxu1 %v11834_v30  ;;  %v11844_v25 = vld [vmem:[#allocation79_spill] sm:$0xff]  ;;  %v11845_v30 = vld [vmem:[#allocation80_spill] sm:$0xff] }
 0xa06   :  { %2095 = vmatprep.subr.bf16.mxu0 %v11835_v50  ;;  %2136 = vmatprep.subr.bf16.mxu1 %v11836_v7  ;;  %v11846_v50 = vld [vmem:[#allocation81_spill] sm:$0xff]  ;;  %v11847_v7 = vld [vmem:[#allocation82_spill] sm:$0xff] }
 0xa09   :  { %2096 = vmatpush2.bf16.msra.mxu0 %v11837_v4  ;;  %2137 = vmatpush2.bf16.msra.mxu1 %v11838_v8  ;;  %v11848_v4 = vld [vmem:[#allocation83_spill] sm:$0xff]  ;;  %v11849_v8 = vld [vmem:[#allocation84_spill] sm:$0xff] }
 0xa0a   :  { %2097 = vmatprep.subr.bf16.mxu0 %v11839_v54  ;;  %2138 = vmatprep.subr.bf16.mxu1 %v11840_v19  ;;  %v11850_v54 = vld [vmem:[#allocation85_spill] sm:$0xff]  ;;  %v11851_v19 = vld [vmem:[#allocation86_spill] sm:$0xff] }
 0xa0d   :  { %2098 = vmatpush2.bf16.msra.mxu0 %v11841_v28  ;;  %2139 = vmatpush2.bf16.msra.mxu1 %v11842_v57  ;;  %v8861_v28 = vld [vmem:[#allocation2 + $0xec] ss:$16 sps:$4 sm:$0xff]   ;;  %v11853_v57 = vld [vmem:[#allocation102_spill] sm:$0xff] }
 0xa0e   :  { %2099 = vmatprep.subr.bf16.mxu0 %v11843_v58  ;;  %2140 = vmatprep.subr.bf16.mxu1 %v11844_v25  ;;  %11852 = vst [vmem:[#allocation87_spill] sm:$0xff] %v8861_v28 }
 0xa11   :  { %2100 = vmatpush2.bf16.msra.mxu0 %v11845_v30  ;;  %2141 = vmatpush2.bf16.msra.mxu1 %v11846_v50 }
 0xa12   :  { %2101 = vmatprep.subr.bf16.mxu0 %v11847_v7  ;;  %2142 = vmatprep.subr.bf16.mxu1 %v11848_v4  ;;  %v11854_v7 = vld [vmem:[#allocation104_spill] sm:$0xff] }
 0xa15   :  { %2102 = vmatpush2.bf16.msra.mxu0 %v11849_v8  ;;  %2143 = vmatpush2.bf16.msra.mxu1 %v11850_v54 }
 0xa16   :  { %2178 = vmatprep.subr.bf16.mxu0 %v11851_v19  ;;  %2219 = vmatprep.subr.bf16.mxu1 %v8861_v28  ;;  %v11855_v19 = vld [vmem:[#allocation105_spill] sm:$0xff] }
 0xa78   :  { %v1872_v58 = vpop.f32.mrf.mxu0  ;;  %v1913_v25 = vpop.f32.mrf.mxu1 }
 0xa79   :  { %v1873_v30 = vadd.f32 %v1872_v58, %v11853_v57  ;;  %v1914_v35 = vadd.f32 %v1913_v25, %v11856_v48 }
 0xa7a   :  { %v1874_v31 = vpop.f32.mrf.mxu0  ;;  %v1915_v50 = vpop.f32.mrf.mxu1 }
 0xa7b   :  { %v5842_v23 = vmul.f32 -1.442695, %v1873_v30  ;;  %v1875_v56 = vadd.f32 %v1874_v31, %v11854_v7  ;;  %v1916_v13 = vadd.f32 %v1915_v50, %v11855_v19  ;;  %v11857_v31 = vld [vmem:[#allocation42_spill] sm:$0xff] }
 0xa7c   :  { %v1876_v4 = vpop.f32.mrf.mxu0  ;;  %v1917_v29 = vpop.f32.mrf.mxu1 }
 0xa7d   :  { %6578 = vpow2.f32 %v5842_v23  ;;  %v5843_v8 = vmul.f32 -1.442695, %v1875_v56  ;;  %v5844_v52 = vmul.f32 -1.442695, %v1916_v13  ;;  %v11858_v29 = vld [vmem:[#allocation95_spill] sm:$0xff]  ;;  %v11859_v4 = vld [vmem:[#allocation96_spill] sm:$0xff] }
 0xa7e   :  { %v1877_v54 = vpop.f32.mrf.mxu0  ;;  %v1918_v62 = vpop.f32.mrf.mxu1  ;;  %v312_v23 = vadd.f32 %v11858_v29, %v11857_v31  ;;  %v314_v50 = vadd.f32 %v11859_v4, %v11699_v63 }
 0xa7f   :  { %6580 = vpow2.f32 %v5843_v8 }
 0xa80   :  { %6582 = vpow2.f32 %v5844_v52 }
 0xa8a   :  { %v6579_v28 = vpop.eup %6578 }
 0xa8b   :  { %v1923_v27 = vadd.f32 1.0, %v6579_v28 }
 0xa8c   :  { %v6581_v58 = vpop.eup %6580 }
 0xa8d   :  { %6584 = vrcp.f32 %v1923_v27  ;;  %v1929_v30 = vadd.f32 1.0, %v6581_v58  ;;  %v6583_v62 = vpop.eup %6582 }
 0xa8e   :  { %6586 = vtanh.f32 %v1914_v35  ;;  %v1936_v58 = vadd.f32 1.0, %v6583_v62 }
 0xa8f   :  { %6588 = vrcp.f32 %v1929_v30 }
 0xa98   :  { %v1979_v56 = vpop.f32.mrf.mxu0  ;;  %v2020_v54 = vpop.f32.mrf.mxu1 }
 0xa99   :  { %v2027_v13 = vadd.f32 %v1979_v56, %v312_v23  ;;  %v11860_v23 = vld [vmem:[#allocation33_spill] sm:$0xff] }
 0xa9a   :  { %v6585_v8 = vpop.eup %6584  ;;  %v1981_v19 = vpop.f32.mrf.mxu0 }
 0xa9b   :  { %v2022_v25 = vpop.f32.mrf.mxu1  ;;  %v6587_v28 = vpop.eup %6586  ;;  %v5845_v48 = vmul.f32 -1.442695, %v2027_v13  ;;  %v2028_v52 = vadd.f32 %v1981_v19, %v314_v50  ;;  %v11861_v19 = vld [vmem:[#allocation32_spill] sm:$0xff] }
 0xa9c   :  { %v6589_v27 = vpop.eup %6588  ;;  %v1983_v35 = vpop.f32.mrf.mxu0  ;;  %v1940_v7 = vmul.f32 %v6587_v28, %v6585_v8  ;;  %v2030_v56 = vadd.f32 %v2022_v25, %v11860_v23  ;;  %v2029_v50 = vadd.f32 %v2020_v54, %v11861_v19 }
 0xa9d   :  { %v2024_v30 = vpop.f32.mrf.mxu1  ;;  %v1939_v29 = vmul.f32 %v6589_v27, %v8705_v5  ;;  %6590 = vpow2.f32 %v5845_v48  ;;  %v5846_v31 = vmul.f32 -1.442695, %v2028_v52 }
 0xa9e   :  { %v1984_v57 = vpop.f32.mrf.mxu0  ;;  %v5847_v62 = vmul.f32 -1.442695, %v2030_v56 }
 0xa9f   :  { %v2025_v26 = vpop.f32.mrf.mxu1  ;;  %6592 = vpow2.f32 %v5846_v31  ;;  %v8873_v4 = vadd.f32 %v1940_v7, %v1939_v29 }
 0xaa0   :  { %6594 = vrcp.f32 %v1936_v58 }
 0xaa1   :  { %6596 = vtanh.f32 %v8873_v4 }
 0xaa2   :  { %6598 = vtanh.f32 %v2029_v50 }
 0xaa3   :  { %6600 = vpow2.f32 %v5847_v62 }
 0xaaa   :  { %v6591_v13 = vpop.eup %6590 }
 0xaab   :  { %v2034_v35 = vadd.f32 1.0, %v6591_v13 }
 0xaac   :  { %v6593_v8 = vpop.eup %6592 }
 0xaad   :  { %v6595_v5 = vpop.eup %6594  ;;  %6602 = vrcp.f32 %v2034_v35  ;;  %v2040_v48 = vadd.f32 1.0, %v6593_v8 }
 0xaae   :  { %v6597_v26 = vpop.eup %6596 }
 0xaaf   :  { %6604 = vrcp.f32 %v2040_v48  ;;  %v1943_v57 = vmul.f32 %v6597_v26, %v6595_v5  ;;  %v6599_v31 = vpop.eup %6598 }
 0xab0   :  { %v6601_v28 = vpop.eup %6600 }
 0xab1   :  { %v2070_v7 = vpack.c.bf16 %v1943_v57, %v1943_v57  ;;  %v2047_v27 = vadd.f32 1.0, %v6601_v28  ;;  %v8890_v28 = vld [vmem:[#allocation2 + $0xe8] ss:$16 sps:$4 sm:$0xff]  }
 0xab3   :  { %2103 = vmatprep.mubr.bf16.mxu0 %v2070_v7  ;;  %2144 = vmatprep.mubr.bf16.mxu1 %v2070_v7  ;;  %6606 = vrcp.f32 %v2047_v27  ;;  %v8908_v27 = vld [vmem:[#allocation2 + $0xa8] ss:$16 sps:$4 sm:$0xff]  }
 0xaba   :  { %v6603_v25 = vpop.eup %6602 }
 0xabb   :  { %v2051_v52 = vmul.f32 %v6603_v25, %v6599_v31  ;;  %v8894_v25 = vld [vmem:[#allocation2 + $0xcc] ss:$16 sps:$4 sm:$0xff]  }
 0xabc   :  { %v6605_v54 = vpop.eup %6604 }
 0xabd   :  { %v2050_v58 = vmul.f32 %v6605_v54, %v8712_v21  ;;  %v8904_v54 = vld [vmem:[#allocation2 + $0xac] ss:$16 sps:$4 sm:$0xff]  }
 0xabf   :  { %v8879_v30 = vadd.f32 %v2051_v52, %v2050_v58  ;;  %v8900_v52 = vld [vmem:[#allocation2 + $0xc8] ss:$16 sps:$4 sm:$0xff]   ;;  %v8912_v58 = vld [vmem:[#allocation2 + $0x8c] ss:$16 sps:$4 sm:$0xff]  }
 0xac0   :  { %v6607_v29 = vpop.eup %6606 }
 0xac1   :  { %6608 = vtanh.f32 %v8879_v30 }
 0xace   :  { %v6609_v23 = vpop.eup %6608 }
 0xacf   :  { %v8882_v56 = vmul.f32 %v6609_v23, %v6607_v29  ;;  %v8916_v29 = vld [vmem:[#allocation2 + $0x88] ss:$16 sps:$4 sm:$0xff]   ;;  %v8920_v23 = vld [vmem:[#allocation2 + $0x6c] ss:$16 sps:$4 sm:$0xff]  }
 0xad1   :  { %2055 = vadd.xlane.f32.xlu0 %v8882_v56 }
 0xb5a   :  { %v2056_v19 = vpop.xlane.xlu0 %2055 }
 0xb5b   :  { %v2057_v50 = vmul.f32 0.015625, %v2056_v19  ;;  %v8924_v19 = vld [vmem:[#allocation2 + $0x68] ss:$16 sps:$4 sm:$0xff]  }
 0xb5d   :  { %v2058_v62 = vsub.f32 %v8882_v56, %v2057_v50  ;;  %v8928_v50 = vld [vmem:[#allocation2 + $0x4c] ss:$16 sps:$4 sm:$0xff]  }
 0xb5f   :  { %v2059_v13 = vmul.f32 %v11704_v22, %v2058_v62  ;;  %v8932_v62 = vld [vmem:[#allocation2 + $0x48] ss:$16 sps:$4 sm:$0xff]  }
 0xb61   :  { %v2060_v35 = vmul.f32 %v2059_v13, %v2059_v13 }
 0xb63   :  { %2061 = vadd.xlane.f32.xlu1 %v2060_v35  ;;  %v8940_v35 = vld [vmem:[#allocation2 + $0x28] ss:$16 sps:$4 sm:$0xff]  }
 0xbec   :  { %v2062_v21 = vpop.xlane.xlu1 %2061 }
 0xbed   :  { %v2063_v8 = vmul.f32 0.015625, %v2062_v21  ;;  %v8944_v21 = vld [vmem:[#allocation2 + $0xc] ss:$16 sps:$4 sm:$0xff]  }
 0xbef   :  { %v2064_v5 = vadd.f32 1e-05, %v2063_v8  ;;  %v8948_v8 = vld [vmem:[#allocation2 + $0x8] ss:$16 sps:$4 sm:$0xff]  }
 0xbf1   :  { %6610 = vrsqrt.f32 %v2064_v5  ;;  %v2177_v5 = vpack.c.bf16 %v8882_v56, %v8882_v56  ;;  %v11882_v56 = vld [vmem:[#allocation60_spill] sm:$0xff] }
 0xbfe   :  { %v6611_v48 = vpop.eup %6610 }
 0xbff   :  { %v2066_v26 = vmul.f32 %v6611_v48, %v2059_v13  ;;  %v8936_v13 = vld [vmem:[#allocation2 + $0x2c] ss:$16 sps:$4 sm:$0xff]  }
 0xc00   :  { %v11883_v48 = vld [vmem:[#allocation61_spill] sm:$0xff] }
 0xc01   :  { %v2067_v57 = vmul.f32 %v8723_v34, %v2066_v26  ;;  %v11884_v26 = vld [vmem:[#allocation62_spill] sm:$0xff] }
 0xc03   :  { %v2068_v7 = vadd.f32 %v8729_v32, %v2067_v57  ;;  %v11885_v57 = vld [vmem:[#allocation65_spill] sm:$0xff] }
 0xc05   :  { %v2069_v31 = vpack.c.bf16 %v2068_v7, %v2068_v7  ;;  %v11886_v7 = vld [vmem:[#allocation66_spill] sm:$0xff] }
 0xc07   :  { %2104 = vmatmul.mubr.bf16.vlgmr.msra.gmra.mxu0 %v2069_v31  ;;  %2145 = vmatmul.mubr.bf16.vlgmr.msra.gmra.mxu1 %v2069_v31  ;;  %v11887_v31 = vld [vmem:[#allocation67_spill] sm:$0xff] }
 0xc08   :  { %2179 = vmatpush1.bf16.msra.mxu0 %v8732_v15  ;;  %2220 = vmatpush1.bf16.msra.mxu1 %v8890_v28 }
 0xc09   :  { %2180 = vmatprep.subr.bf16.mxu0 %v8736_v1  ;;  %2221 = vmatprep.subr.bf16.mxu1 %v8894_v25 }
 0xc0a   :  { %2210 = vmatprep.mubr.bf16.mxu0 %v11649_v59  ;;  %2251 = vmatprep.mubr.bf16.mxu1 %v11649_v59 }
 0xc0c   :  { %2181 = vmatpush1.bf16.msra.mxu0 %v8742_v2  ;;  %2222 = vmatpush1.bf16.msra.mxu1 %v8900_v52 }
 0xc0d   :  { %2182 = vmatprep.subr.bf16.mxu0 %v8746_v9  ;;  %2223 = vmatprep.subr.bf16.mxu1 %v8904_v54 }
 0xc10   :  { %2183 = vmatpush1.bf16.msra.mxu0 %v8750_v6  ;;  %2224 = vmatpush1.bf16.msra.mxu1 %v8908_v27 }
 0xc11   :  { %2184 = vmatprep.subr.bf16.mxu0 %v8754_v20  ;;  %2225 = vmatprep.subr.bf16.mxu1 %v8912_v58 }
 0xc14   :  { %2185 = vmatpush1.bf16.msra.mxu0 %v8758_v11  ;;  %2226 = vmatpush1.bf16.msra.mxu1 %v8916_v29 }
 0xc15   :  { %2186 = vmatprep.subr.bf16.mxu0 %v8762_v12  ;;  %2227 = vmatprep.subr.bf16.mxu1 %v8920_v23 }
 0xc18   :  { %2187 = vmatpush1.bf16.msra.mxu0 %v8766_v49  ;;  %2228 = vmatpush1.bf16.msra.mxu1 %v8924_v19 }
 0xc19   :  { %2188 = vmatprep.subr.bf16.mxu0 %v8770_v33  ;;  %2229 = vmatprep.subr.bf16.mxu1 %v8928_v50 }
 0xc1c   :  { %2189 = vmatpush1.bf16.msra.mxu0 %v8774_v53  ;;  %2230 = vmatpush1.bf16.msra.mxu1 %v8932_v62 }
 0xc1d   :  { %2190 = vmatprep.subr.bf16.mxu0 %v8778_v10  ;;  %2231 = vmatprep.subr.bf16.mxu1 %v8936_v13 }
 0xc20   :  { %2191 = vmatpush1.bf16.msra.mxu0 %v8782_v51  ;;  %2232 = vmatpush1.bf16.msra.mxu1 %v8940_v35 }
 0xc21   :  { %2192 = vmatprep.subr.bf16.mxu0 %v8786_v46  ;;  %2233 = vmatprep.subr.bf16.mxu1 %v8944_v21 }
 0xc24   :  { %2193 = vmatpush1.bf16.msra.mxu0 %v8790_v0  ;;  %2234 = vmatpush1.bf16.msra.mxu1 %v8948_v8 }
 0xc25   :  { %2304 = vmatprep.subr.bf16.mxu0 %v8500_v18  ;;  %2345 = vmatprep.subr.bf16.mxu1 %v8503_v24  ;;  %v11862_v18 = vld [vmem:[#allocation41_spill] sm:$0xff]  ;;  %v11863_v24 = vld [vmem:[#allocation26_spill] sm:$0xff] }
 0xc27   :  { %2211 = vmatmul.mubr.bf16.vlgmr.msra.gmra.mxu0 %v2177_v5  ;;  %2252 = vmatmul.mubr.bf16.vlgmr.msra.gmra.mxu1 %v2177_v5  ;;  %v11888_v5 = vld [vmem:[#allocation68_spill] sm:$0xff] }
 0xc28   :  { %2305 = vmatpush1.bf16.msra.mxu0 %v8506_v60  ;;  %2346 = vmatpush1.bf16.msra.mxu1 %v8509_v61  ;;  %v11864_v60 = vld [vmem:[#allocation25_spill] sm:$0xff]  ;;  %v11865_v61 = vld [vmem:[#allocation44_spill] sm:$0xff] }
 0xc29   :  { %2306 = vmatprep.subr.bf16.mxu0 %v8512_v3  ;;  %2347 = vmatprep.subr.bf16.mxu1 %v8515_v36  ;;  %v11866_v3 = vld [vmem:[#allocation64_spill] sm:$0xff]  ;;  %v11867_v36 = vld [vmem:[#allocation45_spill] sm:$0xff] }
 0xc2c   :  { %2307 = vmatpush1.bf16.msra.mxu0 %v8518_v37  ;;  %2348 = vmatpush1.bf16.msra.mxu1 %v8521_v16  ;;  %v11868_v37 = vld [vmem:[#allocation46_spill] sm:$0xff]  ;;  %v11869_v16 = vld [vmem:[#allocation47_spill] sm:$0xff] }
 0xc2d   :  { %2308 = vmatprep.subr.bf16.mxu0 %v8524_v38  ;;  %2349 = vmatprep.subr.bf16.mxu1 %v8527_v39  ;;  %v11870_v38 = vld [vmem:[#allocation48_spill] sm:$0xff]  ;;  %v11871_v39 = vld [vmem:[#allocation49_spill] sm:$0xff] }
 0xc30   :  { %2309 = vmatpush1.bf16.msra.mxu0 %v8530_v40  ;;  %2350 = vmatpush1.bf16.msra.mxu1 %v8533_v41  ;;  %v11872_v40 = vld [vmem:[#allocation50_spill] sm:$0xff]  ;;  %v11873_v41 = vld [vmem:[#allocation51_spill] sm:$0xff] }
 0xc31   :  { %2310 = vmatprep.subr.bf16.mxu0 %v8536_v42  ;;  %2351 = vmatprep.subr.bf16.mxu1 %v8539_v43  ;;  %v11874_v42 = vld [vmem:[#allocation52_spill] sm:$0xff]  ;;  %v11875_v43 = vld [vmem:[#allocation53_spill] sm:$0xff] }
 0xc34   :  { %2311 = vmatpush1.bf16.msra.mxu0 %v8542_v44  ;;  %2352 = vmatpush1.bf16.msra.mxu1 %v8545_v45  ;;  %v11876_v44 = vld [vmem:[#allocation54_spill] sm:$0xff]  ;;  %v11877_v45 = vld [vmem:[#allocation55_spill] sm:$0xff] }
 0xc35   :  { %2312 = vmatprep.subr.bf16.mxu0 %v8548_v14  ;;  %2353 = vmatprep.subr.bf16.mxu1 %v8551_v55  ;;  %v11878_v14 = vld [vmem:[#allocation56_spill] sm:$0xff]  ;;  %v11879_v55 = vld [vmem:[#allocation57_spill] sm:$0xff] }
 0xc38   :  { %2313 = vmatpush1.bf16.msra.mxu0 %v8554_v17  ;;  %2354 = vmatpush1.bf16.msra.mxu1 %v8557_v47  ;;  %v11880_v17 = vld [vmem:[#allocation58_spill] sm:$0xff]  ;;  %v11881_v47 = vld [vmem:[#allocation59_spill] sm:$0xff] }
 0xc39   :  { %2314 = vmatprep.subr.bf16.mxu0 %v11862_v18  ;;  %2355 = vmatprep.subr.bf16.mxu1 %v11863_v24  ;;  %v11889_v18 = vld [vmem:[#allocation69_spill] sm:$0xff]  ;;  %v11890_v24 = vld [vmem:[#allocation70_spill] sm:$0xff] }
 0xc3c   :  { %2315 = vmatpush1.bf16.msra.mxu0 %v11864_v60  ;;  %2356 = vmatpush1.bf16.msra.mxu1 %v11865_v61  ;;  %v11891_v60 = vld [vmem:[#allocation71_spill] sm:$0xff]  ;;  %v11892_v61 = vld [vmem:[#allocation72_spill] sm:$0xff] }
 0xc3d   :  { %2316 = vmatprep.subr.bf16.mxu0 %v11866_v3  ;;  %2357 = vmatprep.subr.bf16.mxu1 %v11867_v36  ;;  %v11893_v3 = vld [vmem:[#allocation73_spill] sm:$0xff]  ;;  %v11894_v36 = vld [vmem:[#allocation74_spill] sm:$0xff] }
 0xc40   :  { %2317 = vmatpush1.bf16.msra.mxu0 %v11868_v37  ;;  %2358 = vmatpush1.bf16.msra.mxu1 %v11869_v16  ;;  %v11895_v37 = vld [vmem:[#allocation75_spill] sm:$0xff]  ;;  %v11896_v16 = vld [vmem:[#allocation76_spill] sm:$0xff] }
 0xc41   :  { %2318 = vmatprep.subr.bf16.mxu0 %v11870_v38  ;;  %2359 = vmatprep.subr.bf16.mxu1 %v11871_v39  ;;  %v11897_v38 = vld [vmem:[#allocation77_spill] sm:$0xff]  ;;  %v11898_v39 = vld [vmem:[#allocation78_spill] sm:$0xff] }
 0xc44   :  { %2319 = vmatpush1.bf16.msra.mxu0 %v11872_v40  ;;  %2360 = vmatpush1.bf16.msra.mxu1 %v11873_v41  ;;  %v11899_v40 = vld [vmem:[#allocation79_spill] sm:$0xff]  ;;  %v11900_v41 = vld [vmem:[#allocation80_spill] sm:$0xff] }
 0xc45   :  { %2320 = vmatprep.subr.bf16.mxu0 %v11874_v42  ;;  %2361 = vmatprep.subr.bf16.mxu1 %v11875_v43  ;;  %v11901_v42 = vld [vmem:[#allocation81_spill] sm:$0xff]  ;;  %v11902_v43 = vld [vmem:[#allocation82_spill] sm:$0xff] }
 0xc48   :  { %2321 = vmatpush2.bf16.msra.mxu0 %v11876_v44  ;;  %2362 = vmatpush2.bf16.msra.mxu1 %v11877_v45  ;;  %v11903_v44 = vld [vmem:[#allocation83_spill] sm:$0xff]  ;;  %v11904_v45 = vld [vmem:[#allocation84_spill] sm:$0xff] }
 0xc49   :  { %2322 = vmatprep.subr.bf16.mxu0 %v11878_v14  ;;  %2363 = vmatprep.subr.bf16.mxu1 %v11879_v55  ;;  %v11905_v14 = vld [vmem:[#allocation85_spill] sm:$0xff]  ;;  %v11906_v55 = vld [vmem:[#allocation86_spill] sm:$0xff] }
 0xc4c   :  { %2323 = vmatpush2.bf16.msra.mxu0 %v11880_v17  ;;  %2364 = vmatpush2.bf16.msra.mxu1 %v11881_v47  ;;  %v11907_v17 = vld [vmem:[#allocation87_spill] sm:$0xff] }
 0xc4d   :  { %2324 = vmatprep.subr.bf16.mxu0 %v11882_v56  ;;  %2365 = vmatprep.subr.bf16.mxu1 %v11883_v48  ;;  %v11908_v48 = vld [vmem:[#allocation102_spill] sm:$0xff] }
 0xc50   :  { %2325 = vmatpush2.bf16.msra.mxu0 %v11884_v26  ;;  %2366 = vmatpush2.bf16.msra.mxu1 %v11885_v57 }
 0xc51   :  { %2326 = vmatprep.subr.bf16.mxu0 %v11886_v7  ;;  %2367 = vmatprep.subr.bf16.mxu1 %v11887_v31 }
 0xc54   :  { %2327 = vmatpush2.bf16.msra.mxu0 %v11888_v5  ;;  %2368 = vmatpush2.bf16.msra.mxu1 %v11889_v18  ;;  %v11909_v5 = vld [vmem:[#allocation104_spill] sm:$0xff] }
 0xc55   :  { %2328 = vmatprep.subr.bf16.mxu0 %v11890_v24  ;;  %2369 = vmatprep.subr.bf16.mxu1 %v11891_v60 }
 0xc58   :  { %2329 = vmatpush2.bf16.msra.mxu0 %v11892_v61  ;;  %2370 = vmatpush2.bf16.msra.mxu1 %v11893_v3 }
 0xc59   :  { %2330 = vmatprep.subr.bf16.mxu0 %v11894_v36  ;;  %2371 = vmatprep.subr.bf16.mxu1 %v11895_v37  ;;  %v11910_v37 = vld [vmem:[#allocation105_spill] sm:$0xff] }
 0xc5c   :  { %2331 = vmatpush2.bf16.msra.mxu0 %v11896_v16  ;;  %2372 = vmatpush2.bf16.msra.mxu1 %v11897_v38 }
 0xc5d   :  { %2332 = vmatprep.subr.bf16.mxu0 %v11898_v39  ;;  %2373 = vmatprep.subr.bf16.mxu1 %v11899_v40  ;;  %v11911_v40 = vld [vmem:[#allocation106_spill] sm:$0xff] }
 0xc60   :  { %2333 = vmatpush2.bf16.msra.mxu0 %v11900_v41  ;;  %2374 = vmatpush2.bf16.msra.mxu1 %v11901_v42 }
 0xc61   :  { %2334 = vmatprep.subr.bf16.mxu0 %v11902_v43  ;;  %2375 = vmatprep.subr.bf16.mxu1 %v11903_v44 }
 0xc64   :  { %2335 = vmatpush2.bf16.msra.mxu0 %v11904_v45  ;;  %2376 = vmatpush2.bf16.msra.mxu1 %v11905_v14  ;;  %v11912_v45 = vld [vmem:[#allocation42_spill] sm:$0xff]  ;;  %v11913_v14 = vld [vmem:[#allocation97_spill] sm:$0xff] }
 0xc65   :  { %2411 = vmatprep.subr.bf16.mxu0 %v11906_v55  ;;  %2452 = vmatprep.subr.bf16.mxu1 %v11907_v17  ;;  %v316_v55 = vadd.f32 %v11913_v14, %v11912_v45 }
 0xcc7   :  { %v2105_v47 = vpop.f32.mrf.mxu0  ;;  %v2146_v56 = vpop.f32.mrf.mxu1 }
 0xcc8   :  { %v2106_v26 = vadd.f32 %v2105_v47, %v11908_v48  ;;  %v2147_v41 = vadd.f32 %v2146_v56, %v11911_v40 }
 0xcc9   :  { %v2107_v57 = vpop.f32.mrf.mxu0  ;;  %v2148_v7 = vpop.f32.mrf.mxu1 }
 0xcca   :  { %v5848_v31 = vmul.f32 -1.442695, %v2106_v26  ;;  %v2108_v18 = vadd.f32 %v2107_v57, %v11909_v5  ;;  %v2149_v16 = vadd.f32 %v2148_v7, %v11910_v37 }
 0xccb   :  { %v2109_v24 = vpop.f32.mrf.mxu0  ;;  %v2150_v60 = vpop.f32.mrf.mxu1 }
 0xccc   :  { %6612 = vpow2.f32 %v5848_v31  ;;  %v5849_v61 = vmul.f32 -1.442695, %v2108_v18  ;;  %v5850_v38 = vmul.f32 -1.442695, %v2149_v16  ;;  %v11914_v31 = vld [vmem:[#allocation98_spill] sm:$0xff] }
 0xccd   :  { %v2110_v3 = vpop.f32.mrf.mxu0  ;;  %v2151_v36 = vpop.f32.mrf.mxu1  ;;  %v318_v7 = vadd.f32 %v11914_v31, %v11699_v63 }
 0xcce   :  { %6614 = vpow2.f32 %v5849_v61 }
 0xccf   :  { %6616 = vpow2.f32 %v5850_v38 }
 0xcd9   :  { %v6613_v39 = vpop.eup %6612 }
 0xcda   :  { %v2156_v42 = vadd.f32 1.0, %v6613_v39 }
 0xcdb   :  { %v6615_v43 = vpop.eup %6614 }
 0xcdc   :  { %6618 = vrcp.f32 %v2156_v42  ;;  %v2162_v44 = vadd.f32 1.0, %v6615_v43  ;;  %v6617_v57 = vpop.eup %6616 }
 0xcdd   :  { %6620 = vtanh.f32 %v2147_v41  ;;  %v2169_v38 = vadd.f32 1.0, %v6617_v57  ;;  %v11917_v57 = vld [vmem:[#allocation34_spill] sm:$0xff] }
 0xcde   :  { %6622 = vrcp.f32 %v2162_v44 }
 0xce7   :  { %v2212_v47 = vpop.f32.mrf.mxu0  ;;  %v2253_v26 = vpop.f32.mrf.mxu1 }
 0xce8   :  { %v2260_v18 = vadd.f32 %v2212_v47, %v316_v55  ;;  %v11915_v55 = vld [vmem:[#allocation27_spill] sm:$0xff] }
 0xce9   :  { %v6619_v24 = vpop.eup %6618  ;;  %v2214_v60 = vpop.f32.mrf.mxu0  ;;  %v11916_v47 = vld [vmem:[#allocation35_spill] sm:$0xff] }
 0xcea   :  { %v2255_v56 = vpop.f32.mrf.mxu1  ;;  %v6621_v61 = vpop.eup %6620  ;;  %v5851_v3 = vmul.f32 -1.442695, %v2260_v18  ;;  %v2261_v36 = vadd.f32 %v2214_v60, %v318_v7  ;;  %v391_v7 = vadd.f32 %v11916_v47, %v11915_v55  ;;  %v2262_v60 = vadd.f32 %v2253_v26, %v11917_v57  ;;  %v9187_v55 = vld [vmem:[#allocation5 + $0x1c0] ss:$16 sps:$4 sm:$0xff]  }
 0xceb   :  { %v6623_v16 = vpop.eup %6622  ;;  %v2216_v39 = vpop.f32.mrf.mxu0  ;;  %v2173_v42 = vmul.f32 %v6621_v61, %v6619_v24  ;;  %11934 = vst [vmem:[#allocation26_spill] sm:$0xff] %v9187_v55 }
 0xcec   :  { %v2257_v41 = vpop.f32.mrf.mxu1  ;;  %v2172_v43 = vmul.f32 %v6623_v16, %v8873_v4  ;;  %6624 = vpow2.f32 %v5851_v3  ;;  %v5852_v44 = vmul.f32 -1.442695, %v2261_v36  ;;  %v2263_v18 = vadd.f32 %v2255_v56, %v391_v7 }
 0xced   :  { %v2217_v14 = vpop.f32.mrf.mxu0 }
 0xcee   :  { %v2258_v45 = vpop.f32.mrf.mxu1  ;;  %6626 = vpow2.f32 %v5852_v44  ;;  %v9028_v31 = vadd.f32 %v2173_v42, %v2172_v43  ;;  %v5853_v39 = vmul.f32 -1.442695, %v2263_v18 }
 0xcef   :  { %6628 = vrcp.f32 %v2169_v38 }
 0xcf0   :  { %6630 = vtanh.f32 %v9028_v31 }
 0xcf1   :  { %6632 = vtanh.f32 %v2262_v60 }
 0xcf2   :  { %6634 = vpow2.f32 %v5853_v39 }
 0xcf9   :  { %v6625_v24 = vpop.eup %6624 }
 0xcfa   :  { %v2267_v61 = vadd.f32 1.0, %v6625_v24 }
 0xcfb   :  { %v6627_v4 = vpop.eup %6626 }
 0xcfc   :  { %v6629_v3 = vpop.eup %6628  ;;  %6636 = vrcp.f32 %v2267_v61  ;;  %v2273_v45 = vadd.f32 1.0, %v6627_v4 }
 0xcfd   :  { %v6631_v36 = vpop.eup %6630 }
 0xcfe   :  { %6638 = vrcp.f32 %v2273_v45  ;;  %v2176_v16 = vmul.f32 %v6631_v36, %v6629_v3  ;;  %v6633_v41 = vpop.eup %6632 }
 0xcff   :  { %v6635_v42 = vpop.eup %6634 }
 0xd00   :  { %v2303_v38 = vpack.c.bf16 %v2176_v16, %v2176_v16  ;;  %v2280_v44 = vadd.f32 1.0, %v6635_v42 }
 0xd02   :  { %2336 = vmatprep.mubr.bf16.mxu0 %v2303_v38  ;;  %2377 = vmatprep.mubr.bf16.mxu1 %v2303_v38  ;;  %6640 = vrcp.f32 %v2280_v44  ;;  %v9130_v44 = vld [vmem:[#allocation5 + $0x68] ss:$16 sps:$4 sm:$0xff]  }
 0xd09   :  { %v6637_v56 = vpop.eup %6636 }
 0xd0a   :  { %v2284_v43 = vmul.f32 %v6637_v56, %v6633_v41  ;;  %v9121_v56 = vld [vmem:[#allocation5 + $0x64] ss:$16 sps:$4 sm:$0xff]  }
 0xd0b   :  { %v6639_v26 = vpop.eup %6638 }
 0xd0c   :  { %v2283_v14 = vmul.f32 %v6639_v26, %v8879_v30  ;;  %v9127_v26 = vld [vmem:[#allocation5 + $0x60] ss:$16 sps:$4 sm:$0xff]  }
 0xd0e   :  { %v9035_v47 = vadd.f32 %v2284_v43, %v2283_v14  ;;  %v9124_v43 = vld [vmem:[#allocation5 + $0x6c] ss:$16 sps:$4 sm:$0xff]   ;;  %v9133_v14 = vld [vmem:[#allocation5 + $0x44] ss:$16 sps:$4 sm:$0xff]  }
 0xd0f   :  { %v6641_v7 = vpop.eup %6640 }
 0xd10   :  { %6642 = vtanh.f32 %v9035_v47 }
 0xd1d   :  { %v6643_v18 = vpop.eup %6642 }
 0xd1e   :  { %v2287_v57 = vmul.f32 %v6643_v18, %v6641_v7  ;;  %v9136_v7 = vld [vmem:[#allocation5 + $0x4c] ss:$16 sps:$4 sm:$0xff]   ;;  %v9139_v18 = vld [vmem:[#allocation5 + $0x40] ss:$16 sps:$4 sm:$0xff]  }
 0xd1f   :  { %11918 = vst [vmem:[#allocation88_spill] sm:$0xff] %v9139_v18 }
 0xd20   :  { %2288 = vadd.xlane.f32.xlu0 %v2287_v57 }
 0xda9   :  { %v2289_v60 = vpop.xlane.xlu0 %2288 }
 0xdaa   :  { %v2290_v39 = vmul.f32 0.015625, %v2289_v60  ;;  %v9145_v60 = vld [vmem:[#allocation5 + $0x24] ss:$16 sps:$4 sm:$0xff]  }
 0xdab   :  { %11920 = vst [vmem:[#allocation90_spill] sm:$0xff] %v9145_v60 }
 0xdac   :  { %v2291_v24 = vsub.f32 %v2287_v57, %v2290_v39  ;;  %v9148_v39 = vld [vmem:[#allocation5 + $0x2c] ss:$16 sps:$4 sm:$0xff]  }
 0xdad   :  { %11921 = vst [vmem:[#allocation91_spill] sm:$0xff] %v9148_v39 }
 0xdae   :  { %v2292_v61 = vmul.f32 %v11704_v22, %v2291_v24  ;;  %v9151_v24 = vld [vmem:[#allocation5 + $0x20] ss:$16 sps:$4 sm:$0xff]  }
 0xdaf   :  { %11922 = vst [vmem:[#allocation92_spill] sm:$0xff] %v9151_v24 }
 0xdb0   :  { %v2293_v4 = vmul.f32 %v2292_v61, %v2292_v61 }
 0xdb2   :  { %2294 = vadd.xlane.f32.xlu1 %v2293_v4  ;;  %v9157_v4 = vld [vmem:[#allocation5 + $0x4] ss:$16 sps:$4 sm:$0xff]  }
 0xdb3   :  { %11924 = vst [vmem:[#allocation28_spill] sm:$0xff] %v9157_v4 }
 0xe3b   :  { %v2295_v3 = vpop.xlane.xlu1 %2294 }
 0xe3c   :  { %v2296_v45 = vmul.f32 0.015625, %v2295_v3  ;;  %v9160_v3 = vld [vmem:[#allocation5 + $0xc] ss:$16 sps:$4 sm:$0xff]  }
 0xe3d   :  { %11925 = vst [vmem:[#allocation93_spill] sm:$0xff] %v9160_v3 }
 0xe3e   :  { %v2297_v36 = vadd.f32 1e-05, %v2296_v45  ;;  %v9163_v45 = vld [vmem:[#allocation5] ss:$16 sps:$4 sm:$0xff]  }
 0xe3f   :  { %11926 = vst [vmem:[#allocation94_spill] sm:$0xff] %v9163_v45 }
 0xe40   :  { %6644 = vrsqrt.f32 %v2297_v36  ;;  %v9166_v36 = vld [vmem:[#allocation5 + $0x8] ss:$16 sps:$4 sm:$0xff]  }
 0xe41   :  { %11927 = vst [vmem:[#allocation31_spill] sm:$0xff] %v9166_v36 }
 0xe4d   :  { %v6645_v30 = vpop.eup %6644 }
 0xe4e   :  { %v2299_v16 = vmul.f32 %v6645_v30, %v2292_v61  ;;  %v9154_v61 = vld [vmem:[#allocation5 + $0x28] ss:$16 sps:$4 sm:$0xff]   ;;  %v9169_v30 = vld [vmem:[#allocation5 + $0x1e4] ss:$16 sps:$4 sm:$0xff]  }
 0xe4f   :  { %11923 = vst [vmem:[#allocation29_spill] sm:$0xff] %v9154_v61  ;;  %11928 = vst [vmem:[#allocation30_spill] sm:$0xff] %v9169_v30 }
 0xe50   :  { %v2300_v38 = vmul.f32 %v8723_v34, %v2299_v16  ;;  %v2410_v34 = vpack.c.bf16 %v2287_v57, %v2287_v57  ;;  %v9142_v57 = vld [vmem:[#allocation5 + $0x48] ss:$16 sps:$4 sm:$0xff]   ;;  %v9172_v16 = vld [vmem:[#allocation5 + $0x1ec] ss:$16 sps:$4 sm:$0xff]  }
 0xe51   :  { %11919 = vst [vmem:[#allocation89_spill] sm:$0xff] %v9142_v57  ;;  %11929 = vst [vmem:[#allocation95_spill] sm:$0xff] %v9172_v16 }
 0xe52   :  { %v2301_v41 = vadd.f32 %v8729_v32, %v2300_v38  ;;  %v9073_v32 = vld [vmem:[#allocation5 + $0xe4] ss:$16 sps:$4 sm:$0xff]   ;;  %v9175_v38 = vld [vmem:[#allocation5 + $0x1e0] ss:$16 sps:$4 sm:$0xff]  }
 0xe53   :  { %11930 = vst [vmem:[#allocation96_spill] sm:$0xff] %v9175_v38 }
 0xe54   :  { %v2302_v42 = vpack.c.bf16 %v2301_v41, %v2301_v41  ;;  %v9178_v41 = vld [vmem:[#allocation5 + $0x1e8] ss:$16 sps:$4 sm:$0xff]  }
 0xe55   :  { %11931 = vst [vmem:[#allocation33_spill] sm:$0xff] %v9178_v41 }
 0xe56   :  { %2337 = vmatmul.mubr.bf16.vlgmr.msra.gmra.mxu0 %v2302_v42  ;;  %2378 = vmatmul.mubr.bf16.vlgmr.msra.gmra.mxu1 %v2302_v42  ;;  %v9181_v42 = vld [vmem:[#allocation5 + $0x1c4] ss:$16 sps:$4 sm:$0xff]  }
 0xe57   :  { %2412 = vmatpush1.bf16.msra.mxu0 %v8732_v15  ;;  %2453 = vmatpush1.bf16.msra.mxu1 %v8890_v28  ;;  %v9076_v15 = vld [vmem:[#allocation5 + $0xec] ss:$16 sps:$4 sm:$0xff]   ;;  %11932 = vst [vmem:[#allocation32_spill] sm:$0xff] %v9181_v42 }
 0xe58   :  { %2413 = vmatprep.subr.bf16.mxu0 %v8736_v1  ;;  %2454 = vmatprep.subr.bf16.mxu1 %v8894_v25  ;;  %v9079_v1 = vld [vmem:[#allocation5 + $0xe0] ss:$16 sps:$4 sm:$0xff]  }
 0xe59   :  { %2443 = vmatprep.mubr.bf16.mxu0 %v11649_v59  ;;  %2484 = vmatprep.mubr.bf16.mxu1 %v11649_v59 }
 0xe5b   :  { %2414 = vmatpush1.bf16.msra.mxu0 %v8742_v2  ;;  %2455 = vmatpush1.bf16.msra.mxu1 %v8900_v52  ;;  %v9082_v2 = vld [vmem:[#allocation5 + $0xe8] ss:$16 sps:$4 sm:$0xff]  }
 0xe5c   :  { %2415 = vmatprep.subr.bf16.mxu0 %v8746_v9  ;;  %2456 = vmatprep.subr.bf16.mxu1 %v8904_v54  ;;  %v9085_v9 = vld [vmem:[#allocation5 + $0xc4] ss:$16 sps:$4 sm:$0xff]  }
 0xe5f   :  { %2416 = vmatpush1.bf16.msra.mxu0 %v8750_v6  ;;  %2457 = vmatpush1.bf16.msra.mxu1 %v8908_v27  ;;  %v9088_v6 = vld [vmem:[#allocation5 + $0xcc] ss:$16 sps:$4 sm:$0xff]  }
 0xe60   :  { %2417 = vmatprep.subr.bf16.mxu0 %v8754_v20  ;;  %2458 = vmatprep.subr.bf16.mxu1 %v8912_v58  ;;  %v9091_v20 = vld [vmem:[#allocation5 + $0xc0] ss:$16 sps:$4 sm:$0xff]  }
 0xe63   :  { %2418 = vmatpush1.bf16.msra.mxu0 %v8758_v11  ;;  %2459 = vmatpush1.bf16.msra.mxu1 %v8916_v29  ;;  %v9094_v11 = vld [vmem:[#allocation5 + $0xc8] ss:$16 sps:$4 sm:$0xff]  }
 0xe64   :  { %2419 = vmatprep.subr.bf16.mxu0 %v8762_v12  ;;  %2460 = vmatprep.subr.bf16.mxu1 %v8920_v23  ;;  %v9097_v12 = vld [vmem:[#allocation5 + $0xa4] ss:$16 sps:$4 sm:$0xff]  }
 0xe67   :  { %2420 = vmatpush1.bf16.msra.mxu0 %v8766_v49  ;;  %2461 = vmatpush1.bf16.msra.mxu1 %v8924_v19  ;;  %v9100_v49 = vld [vmem:[#allocation5 + $0xac] ss:$16 sps:$4 sm:$0xff]  }
 0xe68   :  { %2421 = vmatprep.subr.bf16.mxu0 %v8770_v33  ;;  %2462 = vmatprep.subr.bf16.mxu1 %v8928_v50  ;;  %v9103_v33 = vld [vmem:[#allocation5 + $0xa0] ss:$16 sps:$4 sm:$0xff]  }
 0xe6b   :  { %2422 = vmatpush1.bf16.msra.mxu0 %v8774_v53  ;;  %2463 = vmatpush1.bf16.msra.mxu1 %v8932_v62  ;;  %v9106_v53 = vld [vmem:[#allocation5 + $0xa8] ss:$16 sps:$4 sm:$0xff]  }
 0xe6c   :  { %2423 = vmatprep.subr.bf16.mxu0 %v8778_v10  ;;  %2464 = vmatprep.subr.bf16.mxu1 %v8936_v13  ;;  %v9109_v10 = vld [vmem:[#allocation5 + $0x84] ss:$16 sps:$4 sm:$0xff]  }
 0xe6f   :  { %2424 = vmatpush1.bf16.msra.mxu0 %v8782_v51  ;;  %2465 = vmatpush1.bf16.msra.mxu1 %v8940_v35  ;;  %v9112_v51 = vld [vmem:[#allocation5 + $0x8c] ss:$16 sps:$4 sm:$0xff]  }
 0xe70   :  { %2425 = vmatprep.subr.bf16.mxu0 %v8786_v46  ;;  %2466 = vmatprep.subr.bf16.mxu1 %v8944_v21  ;;  %v9115_v46 = vld [vmem:[#allocation5 + $0x80] ss:$16 sps:$4 sm:$0xff]  }
 0xe73   :  { %2426 = vmatpush1.bf16.msra.mxu0 %v8790_v0  ;;  %2467 = vmatpush1.bf16.msra.mxu1 %v8948_v8  ;;  %v9118_v0 = vld [vmem:[#allocation5 + $0x88] ss:$16 sps:$4 sm:$0xff]  }
 0xe74   :  { %2537 = vmatprep.subr.bf16.mxu0 %v9073_v32  ;;  %2578 = vmatprep.subr.bf16.mxu1 %v9076_v15 }
 0xe76   :  { %2444 = vmatmul.mubr.bf16.vlgmr.msra.gmra.mxu0 %v2410_v34  ;;  %2485 = vmatmul.mubr.bf16.vlgmr.msra.gmra.mxu1 %v2410_v34  ;;  %v9184_v34 = vld [vmem:[#allocation5 + $0x1cc] ss:$16 sps:$4 sm:$0xff]  }
 0xe77   :  { %2538 = vmatpush1.bf16.msra.mxu0 %v9079_v1  ;;  %2579 = vmatpush1.bf16.msra.mxu1 %v9082_v2  ;;  %11933 = vst [vmem:[#allocation41_spill] sm:$0xff] %v9184_v34 }
 0xe78   :  { %2539 = vmatprep.subr.bf16.mxu0 %v9085_v9  ;;  %2580 = vmatprep.subr.bf16.mxu1 %v9088_v6 }
 0xe7b   :  { %2540 = vmatpush1.bf16.msra.mxu0 %v9091_v20  ;;  %2581 = vmatpush1.bf16.msra.mxu1 %v9094_v11 }
 0xe7c   :  { %2541 = vmatprep.subr.bf16.mxu0 %v9097_v12  ;;  %2582 = vmatprep.subr.bf16.mxu1 %v9100_v49 }
 0xe7f   :  { %2542 = vmatpush1.bf16.msra.mxu0 %v9103_v33  ;;  %2583 = vmatpush1.bf16.msra.mxu1 %v9106_v53 }
 0xe80   :  { %2543 = vmatprep.subr.bf16.mxu0 %v9109_v10  ;;  %2584 = vmatprep.subr.bf16.mxu1 %v9112_v51 }
 0xe83   :  { %2544 = vmatpush1.bf16.msra.mxu0 %v9115_v46  ;;  %2585 = vmatpush1.bf16.msra.mxu1 %v9118_v0 }
 0xe84   :  { %2545 = vmatprep.subr.bf16.mxu0 %v9121_v56  ;;  %2586 = vmatprep.subr.bf16.mxu1 %v9124_v43 }
 0xe87   :  { %2546 = vmatpush1.bf16.msra.mxu0 %v9127_v26  ;;  %2587 = vmatpush1.bf16.msra.mxu1 %v9130_v44 }
 0xe88   :  { %2547 = vmatprep.subr.bf16.mxu0 %v9133_v14  ;;  %2588 = vmatprep.subr.bf16.mxu1 %v9136_v7 }
 0xe8b   :  { %2548 = vmatpush1.bf16.msra.mxu0 %v9139_v18  ;;  %2589 = vmatpush1.bf16.msra.mxu1 %v9142_v57 }
 0xe8c   :  { %2549 = vmatprep.subr.bf16.mxu0 %v9145_v60  ;;  %2590 = vmatprep.subr.bf16.mxu1 %v9148_v39 }
 0xe8f   :  { %2550 = vmatpush1.bf16.msra.mxu0 %v9151_v24  ;;  %2591 = vmatpush1.bf16.msra.mxu1 %v9154_v61 }
 0xe90   :  { %2551 = vmatprep.subr.bf16.mxu0 %v9157_v4  ;;  %2592 = vmatprep.subr.bf16.mxu1 %v9160_v3 }
 0xe93   :  { %2552 = vmatpush1.bf16.msra.mxu0 %v9163_v45  ;;  %2593 = vmatpush1.bf16.msra.mxu1 %v9166_v36 }
 0xe94   :  { %2553 = vmatprep.subr.bf16.mxu0 %v9169_v30  ;;  %2594 = vmatprep.subr.bf16.mxu1 %v9172_v16  ;;  %v9190_v16 = vld [vmem:[#allocation5 + $0x1c8] ss:$16 sps:$4 sm:$0xff]  }
 0xe95   :  { %11935 = vst [vmem:[#allocation25_spill] sm:$0xff] %v9190_v16 }
 0xe97   :  { %2554 = vmatpush2.bf16.msra.mxu0 %v9175_v38  ;;  %2595 = vmatpush2.bf16.msra.mxu1 %v9178_v41  ;;  %v9193_v38 = vld [vmem:[#allocation5 + $0x1a4] ss:$16 sps:$4 sm:$0xff]   ;;  %v9196_v41 = vld [vmem:[#allocation5 + $0x1ac] ss:$16 sps:$4 sm:$0xff]  }
 0xe98   :  { %2555 = vmatprep.subr.bf16.mxu0 %v9181_v42  ;;  %2596 = vmatprep.subr.bf16.mxu1 %v9184_v34  ;;  %11936 = vst [vmem:[#allocation44_spill] sm:$0xff] %v9193_v38  ;;  %11937 = vst [vmem:[#allocation64_spill] sm:$0xff] %v9196_v41  ;;  %v9199_v42 = vld [vmem:[#allocation5 + $0x1a0] ss:$16 sps:$4 sm:$0xff]   ;;  %v9202_v34 = vld [vmem:[#allocation5 + $0x1a8] ss:$16 sps:$4 sm:$0xff]  }
 0xe99   :  { %11938 = vst [vmem:[#allocation45_spill] sm:$0xff] %v9199_v42  ;;  %11939 = vst [vmem:[#allocation46_spill] sm:$0xff] %v9202_v34 }
 0xe9b   :  { %2556 = vmatpush2.bf16.msra.mxu0 %v9187_v55  ;;  %2597 = vmatpush2.bf16.msra.mxu1 %v9190_v16  ;;  %v9205_v55 = vld [vmem:[#allocation5 + $0x184] ss:$16 sps:$4 sm:$0xff]   ;;  %v9208_v16 = vld [vmem:[#allocation5 + $0x18c] ss:$16 sps:$4 sm:$0xff]  }
 0xe9c   :  { %2557 = vmatprep.subr.bf16.mxu0 %v9193_v38  ;;  %2598 = vmatprep.subr.bf16.mxu1 %v9196_v41  ;;  %11940 = vst [vmem:[#allocation47_spill] sm:$0xff] %v9205_v55  ;;  %11941 = vst [vmem:[#allocation48_spill] sm:$0xff] %v9208_v16  ;;  %v9211_v38 = vld [vmem:[#allocation5 + $0x180] ss:$16 sps:$4 sm:$0xff]   ;;  %v9214_v41 = vld [vmem:[#allocation5 + $0x188] ss:$16 sps:$4 sm:$0xff]  }
 0xe9d   :  { %11942 = vst [vmem:[#allocation49_spill] sm:$0xff] %v9211_v38  ;;  %11943 = vst [vmem:[#allocation50_spill] sm:$0xff] %v9214_v41 }
 0xe9f   :  { %2558 = vmatpush2.bf16.msra.mxu0 %v9199_v42  ;;  %2599 = vmatpush2.bf16.msra.mxu1 %v9202_v34  ;;  %v9217_v42 = vld [vmem:[#allocation5 + $0x164] ss:$16 sps:$4 sm:$0xff]   ;;  %v9220_v34 = vld [vmem:[#allocation5 + $0x16c] ss:$16 sps:$4 sm:$0xff]  }
 0xea0   :  { %2559 = vmatprep.subr.bf16.mxu0 %v9205_v55  ;;  %2600 = vmatprep.subr.bf16.mxu1 %v9208_v16  ;;  %11944 = vst [vmem:[#allocation51_spill] sm:$0xff] %v9217_v42  ;;  %11945 = vst [vmem:[#allocation52_spill] sm:$0xff] %v9220_v34  ;;  %v9223_v55 = vld [vmem:[#allocation5 + $0x160] ss:$16 sps:$4 sm:$0xff]   ;;  %v9226_v16 = vld [vmem:[#allocation5 + $0x168] ss:$16 sps:$4 sm:$0xff]  }
 0xea1   :  { %11946 = vst [vmem:[#allocation53_spill] sm:$0xff] %v9223_v55  ;;  %11947 = vst [vmem:[#allocation54_spill] sm:$0xff] %v9226_v16 }
 0xea3   :  { %2560 = vmatpush2.bf16.msra.mxu0 %v9211_v38  ;;  %2601 = vmatpush2.bf16.msra.mxu1 %v9214_v41  ;;  %v9229_v38 = vld [vmem:[#allocation5 + $0x144] ss:$16 sps:$4 sm:$0xff]   ;;  %v9232_v41 = vld [vmem:[#allocation5 + $0x14c] ss:$16 sps:$4 sm:$0xff]  }
 0xea4   :  { %2561 = vmatprep.subr.bf16.mxu0 %v9217_v42  ;;  %2602 = vmatprep.subr.bf16.mxu1 %v9220_v34  ;;  %11948 = vst [vmem:[#allocation55_spill] sm:$0xff] %v9229_v38  ;;  %11949 = vst [vmem:[#allocation56_spill] sm:$0xff] %v9232_v41  ;;  %v9235_v42 = vld [vmem:[#allocation5 + $0x140] ss:$16 sps:$4 sm:$0xff]   ;;  %v9238_v34 = vld [vmem:[#allocation5 + $0x148] ss:$16 sps:$4 sm:$0xff]  }
 0xea5   :  { %11950 = vst [vmem:[#allocation57_spill] sm:$0xff] %v9235_v42  ;;  %11951 = vst [vmem:[#allocation58_spill] sm:$0xff] %v9238_v34 }
 0xea7   :  { %2562 = vmatpush2.bf16.msra.mxu0 %v9223_v55  ;;  %2603 = vmatpush2.bf16.msra.mxu1 %v9226_v16  ;;  %v9241_v55 = vld [vmem:[#allocation5 + $0x124] ss:$16 sps:$4 sm:$0xff]   ;;  %v9244_v16 = vld [vmem:[#allocation5 + $0x12c] ss:$16 sps:$4 sm:$0xff]  }
 0xea8   :  { %2563 = vmatprep.subr.bf16.mxu0 %v9229_v38  ;;  %2604 = vmatprep.subr.bf16.mxu1 %v9232_v41  ;;  %11952 = vst [vmem:[#allocation59_spill] sm:$0xff] %v9241_v55  ;;  %11953 = vst [vmem:[#allocation60_spill] sm:$0xff] %v9244_v16  ;;  %v9247_v38 = vld [vmem:[#allocation5 + $0x120] ss:$16 sps:$4 sm:$0xff]   ;;  %v9250_v41 = vld [vmem:[#allocation5 + $0x128] ss:$16 sps:$4 sm:$0xff]  }
 0xea9   :  { %11954 = vst [vmem:[#allocation61_spill] sm:$0xff] %v9247_v38  ;;  %11955 = vst [vmem:[#allocation62_spill] sm:$0xff] %v9250_v41 }
 0xeab   :  { %2564 = vmatpush2.bf16.msra.mxu0 %v9235_v42  ;;  %2605 = vmatpush2.bf16.msra.mxu1 %v9238_v34  ;;  %v9253_v42 = vld [vmem:[#allocation5 + $0x104] ss:$16 sps:$4 sm:$0xff]   ;;  %v9256_v34 = vld [vmem:[#allocation5 + $0x10c] ss:$16 sps:$4 sm:$0xff]  }
 0xeac   :  { %2565 = vmatprep.subr.bf16.mxu0 %v9241_v55  ;;  %2606 = vmatprep.subr.bf16.mxu1 %v9244_v16  ;;  %11956 = vst [vmem:[#allocation65_spill] sm:$0xff] %v9253_v42  ;;  %11957 = vst [vmem:[#allocation66_spill] sm:$0xff] %v9256_v34  ;;  %v9259_v55 = vld [vmem:[#allocation5 + $0x100] ss:$16 sps:$4 sm:$0xff]   ;;  %v9262_v16 = vld [vmem:[#allocation5 + $0x108] ss:$16 sps:$4 sm:$0xff]  }
 0xead   :  { %11958 = vst [vmem:[#allocation67_spill] sm:$0xff] %v9259_v55  ;;  %11959 = vst [vmem:[#allocation68_spill] sm:$0xff] %v9262_v16 }
 0xeaf   :  { %2566 = vmatpush2.bf16.msra.mxu0 %v9247_v38  ;;  %2607 = vmatpush2.bf16.msra.mxu1 %v9250_v41  ;;  %v7182_v38 = vld [vmem:[#allocation2 + $0xe4] ss:$16 sps:$4 sm:$0xff]  }
 0xeb0   :  { %2567 = vmatprep.subr.bf16.mxu0 %v9253_v42  ;;  %2608 = vmatprep.subr.bf16.mxu1 %v9256_v34 }
 0xeb3   :  { %2568 = vmatpush2.bf16.msra.mxu0 %v9259_v55  ;;  %2609 = vmatpush2.bf16.msra.mxu1 %v9262_v16 }
 0xeb4   :  { %2644 = vmatprep.subr.bf16.mxu0 %v7182_v38  ;;  %2685 = vmatprep.subr.bf16.mxu1 %v11907_v17 }
 0xf16   :  { %v2338_v41 = vpop.f32.mrf.mxu0  ;;  %v2379_v30 = vpop.f32.mrf.mxu1 }
 0xf17   :  { %v2339_v42 = vadd.f32 %v2338_v41, %v11908_v48  ;;  %v2380_v60 = vadd.f32 %v2379_v30, %v11911_v40 }
 0xf18   :  { %v2340_v36 = vpop.f32.mrf.mxu0  ;;  %v2381_v45 = vpop.f32.mrf.mxu1 }
 0xf19   :  { %v5854_v3 = vmul.f32 -1.442695, %v2339_v42  ;;  %v2341_v34 = vadd.f32 %v2340_v36, %v11909_v5  ;;  %v2382_v38 = vadd.f32 %v2381_v45, %v11910_v37 }
 0xf1a   :  { %v2342_v4 = vpop.f32.mrf.mxu0  ;;  %v2383_v61 = vpop.f32.mrf.mxu1 }
 0xf1b   :  { %6646 = vpow2.f32 %v5854_v3  ;;  %v5855_v55 = vmul.f32 -1.442695, %v2341_v34  ;;  %v5856_v16 = vmul.f32 -1.442695, %v2382_v38  ;;  %v11960_v4 = vld [vmem:[#allocation42_spill] sm:$0xff]  ;;  %v11961_v61 = vld [vmem:[#allocation99_spill] sm:$0xff] }
 0xf1c   :  { %v2343_v24 = vpop.f32.mrf.mxu0  ;;  %v2384_v39 = vpop.f32.mrf.mxu1  ;;  %v322_v3 = vadd.f32 %v11961_v61, %v11960_v4 }
 0xf1d   :  { %6648 = vpow2.f32 %v5855_v55  ;;  %v11962_v55 = vld [vmem:[#allocation100_spill] sm:$0xff] }
 0xf1e   :  { %6650 = vpow2.f32 %v5856_v16  ;;  %v324_v45 = vadd.f32 %v11962_v55, %v11699_v63 }
 0xf28   :  { %v6647_v17 = vpop.eup %6646 }
 0xf29   :  { %v2389_v57 = vadd.f32 1.0, %v6647_v17 }
 0xf2a   :  { %v6649_v41 = vpop.eup %6648 }
 0xf2b   :  { %6652 = vrcp.f32 %v2389_v57  ;;  %v2395_v42 = vadd.f32 1.0, %v6649_v41  ;;  %v6651_v39 = vpop.eup %6650 }
 0xf2c   :  { %6654 = vtanh.f32 %v2380_v60  ;;  %v2402_v41 = vadd.f32 1.0, %v6651_v39 }
 0xf2d   :  { %6656 = vrcp.f32 %v2395_v42 }
 0xf36   :  { %v2445_v36 = vpop.f32.mrf.mxu0  ;;  %v2486_v24 = vpop.f32.mrf.mxu1 }
 0xf37   :  { %v2493_v34 = vadd.f32 %v2445_v36, %v322_v3  ;;  %v11963_v3 = vld [vmem:[#allocation39_spill] sm:$0xff] }
 0xf38   :  { %v6653_v38 = vpop.eup %6652  ;;  %v2447_v37 = vpop.f32.mrf.mxu0 }
 0xf39   :  { %v2488_v30 = vpop.f32.mrf.mxu1  ;;  %v6655_v17 = vpop.eup %6654  ;;  %v5857_v40 = vmul.f32 -1.442695, %v2493_v34  ;;  %v2494_v16 = vadd.f32 %v2447_v37, %v324_v45  ;;  %v11964_v37 = vld [vmem:[#allocation36_spill] sm:$0xff] }
 0xf3a   :  { %v6657_v57 = vpop.eup %6656  ;;  %v2449_v60 = vpop.f32.mrf.mxu0  ;;  %v2406_v5 = vmul.f32 %v6655_v17, %v6653_v38  ;;  %v2496_v36 = vadd.f32 %v2488_v30, %v11963_v3  ;;  %v2495_v45 = vadd.f32 %v2486_v24, %v11964_v37 }
 0xf3b   :  { %v2490_v42 = vpop.f32.mrf.mxu1  ;;  %v2405_v61 = vmul.f32 %v6657_v57, %v9028_v31  ;;  %6658 = vpow2.f32 %v5857_v40  ;;  %v5858_v4 = vmul.f32 -1.442695, %v2494_v16 }
 0xf3c   :  { %v2450_v48 = vpop.f32.mrf.mxu0  ;;  %v5859_v39 = vmul.f32 -1.442695, %v2496_v36 }
 0xf3d   :  { %v2491_v18 = vpop.f32.mrf.mxu1  ;;  %6660 = vpow2.f32 %v5858_v4  ;;  %v9275_v55 = vadd.f32 %v2406_v5, %v2405_v61 }
 0xf3e   :  { %6662 = vrcp.f32 %v2402_v41 }
 0xf3f   :  { %6664 = vtanh.f32 %v9275_v55 }
 0xf40   :  { %6666 = vtanh.f32 %v2495_v45 }
 0xf41   :  { %6668 = vpow2.f32 %v5859_v39 }
 0xf48   :  { %v6659_v34 = vpop.eup %6658 }
 0xf49   :  { %v2500_v60 = vadd.f32 1.0, %v6659_v34 }
 0xf4a   :  { %v6661_v38 = vpop.eup %6660 }
 0xf4b   :  { %v6663_v40 = vpop.eup %6662  ;;  %6670 = vrcp.f32 %v2500_v60  ;;  %v2506_v48 = vadd.f32 1.0, %v6661_v38 }
 0xf4c   :  { %v6665_v31 = vpop.eup %6664 }
 0xf4d   :  { %6672 = vrcp.f32 %v2506_v48  ;;  %v2409_v5 = vmul.f32 %v6665_v31, %v6663_v40  ;;  %v6667_v4 = vpop.eup %6666 }
 0xf4e   :  { %v6669_v17 = vpop.eup %6668 }
 0xf4f   :  { %v2536_v18 = vpack.c.bf16 %v2409_v5, %v2409_v5  ;;  %v2513_v57 = vadd.f32 1.0, %v6669_v17  ;;  %v9292_v5 = vld [vmem:[%s11008_s4] ss:$0 sm:$0xff] }
 0xf51   :  { %2569 = vmatprep.mubr.bf16.mxu0 %v2536_v18  ;;  %2610 = vmatprep.mubr.bf16.mxu1 %v2536_v18  ;;  %6674 = vrcp.f32 %v2513_v57  ;;  %v7187_v57 = vld [vmem:[#allocation2 + $0xc0] ss:$16 sps:$4 sm:$0xff]  }
 0xf58   :  { %v6671_v30 = vpop.eup %6670 }
 0xf59   :  { %v2517_v16 = vmul.f32 %v6671_v30, %v6667_v4  ;;  %v9298_v4 = vld [vmem:[%s11009_s5] ss:$0 sm:$0xff] }
 0xf5a   :  { %v6673_v24 = vpop.eup %6672 }
 0xf5b   :  { %v2516_v41 = vmul.f32 %v6673_v24, %v9035_v47  ;;  %v7186_v24 = vld [vmem:[#allocation2 + $0xc4] ss:$16 sps:$4 sm:$0xff]  }
 0xf5d   :  { %v9281_v42 = vadd.f32 %v2517_v16, %v2516_v41  ;;  %v7185_v16 = vld [vmem:[#allocation2 + $0xe0] ss:$16 sps:$4 sm:$0xff]   ;;  %v7188_v41 = vld [vmem:[#allocation2 + $0xa4] ss:$16 sps:$4 sm:$0xff]  }
 0xf5e   :  { %v6675_v61 = vpop.eup %6674 }
 0xf5f   :  { %6676 = vtanh.f32 %v9281_v42 }
 0xf6c   :  { %v6677_v3 = vpop.eup %6676 }
 0xf6d   :  { %v9284_v36 = vmul.f32 %v6677_v3, %v6675_v61  ;;  %v7189_v61 = vld [vmem:[#allocation2 + $0xa0] ss:$16 sps:$4 sm:$0xff]   ;;  %v7192_v3 = vld [vmem:[#allocation2 + $0x64] ss:$16 sps:$4 sm:$0xff]  }
 0xf6f   :  { %2521 = vadd.xlane.f32.xlu0 %v9284_v36 }
 0xff8   :  { %v2522_v37 = vpop.xlane.xlu0 %2521 }
 0xff9   :  { %v2523_v45 = vmul.f32 0.015625, %v2522_v37  ;;  %v11993_v37 = vld [vmem:[#allocation53_spill] sm:$0xff] }
 0xffb   :  { %v2524_v39 = vsub.f32 %v9284_v36, %v2523_v45  ;;  %v11994_v45 = vld [vmem:[#allocation54_spill] sm:$0xff] }
 0xffd   :  { %v2525_v34 = vmul.f32 %v11704_v22, %v2524_v39  ;;  %v11995_v39 = vld [vmem:[#allocation55_spill] sm:$0xff] }
 0xfff   :  { %v2526_v60 = vmul.f32 %v2525_v34, %v2525_v34 }
0x1001   :  { %2527 = vadd.xlane.f32.xlu1 %v2526_v60  ;;  %v11997_v60 = vld [vmem:[#allocation57_spill] sm:$0xff] }
0x108a   :  { %v2528_v47 = vpop.xlane.xlu1 %2527 }
0x108b   :  { %v2529_v38 = vmul.f32 0.015625, %v2528_v47  ;;  %v11998_v47 = vld [vmem:[#allocation58_spill] sm:$0xff] }
0x108d   :  { %v2530_v40 = vadd.f32 1e-05, %v2529_v38  ;;  %v11999_v38 = vld [vmem:[#allocation59_spill] sm:$0xff] }
0x108f   :  { %6678 = vrsqrt.f32 %v2530_v40  ;;  %v12000_v40 = vld [vmem:[#allocation60_spill] sm:$0xff] }
0x109c   :  { %v6679_v48 = vpop.eup %6678 }
0x109d   :  { %v2532_v31 = vmul.f32 %v6679_v48, %v2525_v34  ;;  %v11996_v34 = vld [vmem:[#allocation56_spill] sm:$0xff]  ;;  %v12001_v48 = vld [vmem:[#allocation61_spill] sm:$0xff] }
0x109f   :  { %v2533_v18 = vmul.f32 %v9292_v5, %v2532_v31  ;;  %v12002_v31 = vld [vmem:[#allocation62_spill] sm:$0xff] }
0x10a1   :  { %v2534_v17 = vadd.f32 %v9298_v4, %v2533_v18  ;;  %v12003_v18 = vld [vmem:[#allocation65_spill] sm:$0xff] }
0x10a3   :  { %v2535_v30 = vpack.c.bf16 %v2534_v17, %v2534_v17  ;;  %v12004_v17 = vld [vmem:[#allocation66_spill] sm:$0xff] }
0x10a5   :  { %2570 = vmatmul.mubr.bf16.vlgmr.msra.gmra.mxu0 %v2535_v30  ;;  %2611 = vmatmul.mubr.bf16.vlgmr.msra.gmra.mxu1 %v2535_v30  ;;  %v12005_v30 = vld [vmem:[#allocation67_spill] sm:$0xff] }
0x10a6   :  { %2645 = vmatpush1.bf16.msra.mxu0 %v7185_v16  ;;  %2686 = vmatpush1.bf16.msra.mxu1 %v8890_v28  ;;  %v7190_v28 = vld [vmem:[#allocation2 + $0x84] ss:$16 sps:$4 sm:$0xff]  }
0x10a7   :  { %2646 = vmatprep.subr.bf16.mxu0 %v7186_v24  ;;  %2687 = vmatprep.subr.bf16.mxu1 %v8894_v25  ;;  %v7191_v25 = vld [vmem:[#allocation2 + $0x80] ss:$16 sps:$4 sm:$0xff]  }
0x10a8   :  { %2676 = vmatprep.mubr.bf16.mxu0 %v11649_v59  ;;  %2717 = vmatprep.mubr.bf16.mxu1 %v11649_v59  ;;  %v12006_v16 = vld [vmem:[#allocation68_spill] sm:$0xff] }
0x10aa   :  { %2647 = vmatpush1.bf16.msra.mxu0 %v7187_v57  ;;  %2688 = vmatpush1.bf16.msra.mxu1 %v8900_v52  ;;  %v7193_v52 = vld [vmem:[#allocation2 + $0x60] ss:$16 sps:$4 sm:$0xff]  }
0x10ab   :  { %2648 = vmatprep.subr.bf16.mxu0 %v7188_v41  ;;  %2689 = vmatprep.subr.bf16.mxu1 %v8904_v54  ;;  %v7194_v54 = vld [vmem:[#allocation2 + $0x44] ss:$16 sps:$4 sm:$0xff]  }
0x10ac   :  { %v12007_v41 = vld [vmem:[#allocation102_spill] sm:$0xff] }
0x10ae   :  { %2649 = vmatpush1.bf16.msra.mxu0 %v7189_v61  ;;  %2690 = vmatpush1.bf16.msra.mxu1 %v8908_v27  ;;  %v7195_v27 = vld [vmem:[#allocation2 + $0x40] ss:$16 sps:$4 sm:$0xff]  }
0x10af   :  { %2650 = vmatprep.subr.bf16.mxu0 %v7190_v28  ;;  %2691 = vmatprep.subr.bf16.mxu1 %v8912_v58  ;;  %v7196_v58 = vld [vmem:[#allocation2 + $0x24] ss:$16 sps:$4 sm:$0xff]  }
0x10b2   :  { %2651 = vmatpush1.bf16.msra.mxu0 %v7191_v25  ;;  %2692 = vmatpush1.bf16.msra.mxu1 %v8916_v29  ;;  %v7197_v29 = vld [vmem:[#allocation2 + $0x20] ss:$16 sps:$4 sm:$0xff]  }
0x10b3   :  { %2652 = vmatprep.subr.bf16.mxu0 %v7192_v3  ;;  %2693 = vmatprep.subr.bf16.mxu1 %v8920_v23  ;;  %v7198_v23 = vld [vmem:[#allocation2 + $0x4] ss:$16 sps:$4 sm:$0xff]  }
0x10b6   :  { %2653 = vmatpush1.bf16.msra.mxu0 %v7193_v52  ;;  %2694 = vmatpush1.bf16.msra.mxu1 %v8924_v19  ;;  %v7199_v19 = vld [vmem:[#allocation2] ss:$16 sps:$4 sm:$0xff]  }
0x10b7   :  { %2654 = vmatprep.subr.bf16.mxu0 %v7194_v54  ;;  %2695 = vmatprep.subr.bf16.mxu1 %v8928_v50  ;;  %v2643_v50 = vpack.c.bf16 %v9284_v36, %v9284_v36  ;;  %v11992_v36 = vld [vmem:[#allocation52_spill] sm:$0xff] }
0x10b8   :  { %v12008_v52 = vld [vmem:[#allocation104_spill] sm:$0xff] }
0x10ba   :  { %2655 = vmatpush1.bf16.msra.mxu0 %v7195_v27  ;;  %2696 = vmatpush1.bf16.msra.mxu1 %v8932_v62  ;;  %v11965_v62 = vld [vmem:[#allocation88_spill] sm:$0xff] }
0x10bb   :  { %2656 = vmatprep.subr.bf16.mxu0 %v7196_v58  ;;  %2697 = vmatprep.subr.bf16.mxu1 %v8936_v13  ;;  %v11966_v13 = vld [vmem:[#allocation89_spill] sm:$0xff] }
0x10be   :  { %2657 = vmatpush1.bf16.msra.mxu0 %v7197_v29  ;;  %2698 = vmatpush1.bf16.msra.mxu1 %v8940_v35  ;;  %v11967_v35 = vld [vmem:[#allocation90_spill] sm:$0xff] }
0x10bf   :  { %2658 = vmatprep.subr.bf16.mxu0 %v7198_v23  ;;  %2699 = vmatprep.subr.bf16.mxu1 %v8944_v21  ;;  %v11968_v21 = vld [vmem:[#allocation91_spill] sm:$0xff] }
0x10c2   :  { %2659 = vmatpush1.bf16.msra.mxu0 %v7199_v19  ;;  %2700 = vmatpush1.bf16.msra.mxu1 %v8948_v8  ;;  %v11969_v8 = vld [vmem:[#allocation92_spill] sm:$0xff] }
0x10c3   :  { %2770 = vmatprep.subr.bf16.mxu0 %v9073_v32  ;;  %2811 = vmatprep.subr.bf16.mxu1 %v9076_v15  ;;  %v11970_v32 = vld [vmem:[#allocation29_spill] sm:$0xff]  ;;  %v11971_v15 = vld [vmem:[#allocation28_spill] sm:$0xff] }
0x10c5   :  { %2677 = vmatmul.mubr.bf16.vlgmr.msra.gmra.mxu0 %v2643_v50  ;;  %2718 = vmatmul.mubr.bf16.vlgmr.msra.gmra.mxu1 %v2643_v50  ;;  %v12009_v50 = vld [vmem:[#allocation105_spill] sm:$0xff] }
0x10c6   :  { %2771 = vmatpush1.bf16.msra.mxu0 %v9079_v1  ;;  %2812 = vmatpush1.bf16.msra.mxu1 %v9082_v2  ;;  %v11972_v1 = vld [vmem:[#allocation93_spill] sm:$0xff]  ;;  %v11973_v2 = vld [vmem:[#allocation94_spill] sm:$0xff] }
0x10c7   :  { %2772 = vmatprep.subr.bf16.mxu0 %v9085_v9  ;;  %2813 = vmatprep.subr.bf16.mxu1 %v9088_v6  ;;  %v11974_v9 = vld [vmem:[#allocation31_spill] sm:$0xff]  ;;  %v11975_v6 = vld [vmem:[#allocation30_spill] sm:$0xff] }
0x10ca   :  { %2773 = vmatpush1.bf16.msra.mxu0 %v9091_v20  ;;  %2814 = vmatpush1.bf16.msra.mxu1 %v9094_v11  ;;  %v11976_v20 = vld [vmem:[#allocation95_spill] sm:$0xff]  ;;  %v11977_v11 = vld [vmem:[#allocation96_spill] sm:$0xff] }
0x10cb   :  { %2774 = vmatprep.subr.bf16.mxu0 %v9097_v12  ;;  %2815 = vmatprep.subr.bf16.mxu1 %v9100_v49  ;;  %v11978_v12 = vld [vmem:[#allocation33_spill] sm:$0xff]  ;;  %v11979_v49 = vld [vmem:[#allocation32_spill] sm:$0xff] }
0x10ce   :  { %2775 = vmatpush1.bf16.msra.mxu0 %v9103_v33  ;;  %2816 = vmatpush1.bf16.msra.mxu1 %v9106_v53  ;;  %v11980_v33 = vld [vmem:[#allocation41_spill] sm:$0xff]  ;;  %v11981_v53 = vld [vmem:[#allocation26_spill] sm:$0xff] }
0x10cf   :  { %2776 = vmatprep.subr.bf16.mxu0 %v9109_v10  ;;  %2817 = vmatprep.subr.bf16.mxu1 %v9112_v51  ;;  %v11982_v10 = vld [vmem:[#allocation25_spill] sm:$0xff]  ;;  %v11983_v51 = vld [vmem:[#allocation44_spill] sm:$0xff] }
0x10d2   :  { %2777 = vmatpush1.bf16.msra.mxu0 %v9115_v46  ;;  %2818 = vmatpush1.bf16.msra.mxu1 %v9118_v0  ;;  %v11984_v46 = vld [vmem:[#allocation64_spill] sm:$0xff]  ;;  %v11985_v0 = vld [vmem:[#allocation45_spill] sm:$0xff] }
0x10d3   :  { %2778 = vmatprep.subr.bf16.mxu0 %v9121_v56  ;;  %2819 = vmatprep.subr.bf16.mxu1 %v9124_v43  ;;  %v11986_v56 = vld [vmem:[#allocation46_spill] sm:$0xff]  ;;  %v11987_v43 = vld [vmem:[#allocation47_spill] sm:$0xff] }
0x10d6   :  { %2779 = vmatpush1.bf16.msra.mxu0 %v9127_v26  ;;  %2820 = vmatpush1.bf16.msra.mxu1 %v9130_v44  ;;  %v11988_v26 = vld [vmem:[#allocation48_spill] sm:$0xff]  ;;  %v11989_v44 = vld [vmem:[#allocation49_spill] sm:$0xff] }
0x10d7   :  { %2780 = vmatprep.subr.bf16.mxu0 %v9133_v14  ;;  %2821 = vmatprep.subr.bf16.mxu1 %v9136_v7  ;;  %v11990_v14 = vld [vmem:[#allocation50_spill] sm:$0xff]  ;;  %v11991_v7 = vld [vmem:[#allocation51_spill] sm:$0xff] }
0x10da   :  { %2781 = vmatpush1.bf16.msra.mxu0 %v11965_v62  ;;  %2822 = vmatpush1.bf16.msra.mxu1 %v11966_v13 }
0x10db   :  { %2782 = vmatprep.subr.bf16.mxu0 %v11967_v35  ;;  %2823 = vmatprep.subr.bf16.mxu1 %v11968_v21  ;;  %v12010_v21 = vld [vmem:[#allocation106_spill] sm:$0xff] }
0x10de   :  { %2783 = vmatpush1.bf16.msra.mxu0 %v11969_v8  ;;  %2824 = vmatpush1.bf16.msra.mxu1 %v11970_v32 }
0x10df   :  { %2784 = vmatprep.subr.bf16.mxu0 %v11971_v15  ;;  %2825 = vmatprep.subr.bf16.mxu1 %v11972_v1 }
0x10e2   :  { %2785 = vmatpush1.bf16.msra.mxu0 %v11973_v2  ;;  %2826 = vmatpush1.bf16.msra.mxu1 %v11974_v9  ;;  %v12011_v2 = vld [vmem:[#allocation42_spill] sm:$0xff]  ;;  %v12012_v9 = vld [vmem:[#allocation101_spill] sm:$0xff] }
0x10e3   :  { %2786 = vmatprep.subr.bf16.mxu0 %v11975_v6  ;;  %2827 = vmatprep.subr.bf16.mxu1 %v11976_v20  ;;  %v326_v6 = vadd.f32 %v12012_v9, %v12011_v2 }
0x10e6   :  { %2787 = vmatpush2.bf16.msra.mxu0 %v11977_v11  ;;  %2828 = vmatpush2.bf16.msra.mxu1 %v11978_v12 }
0x10e7   :  { %2788 = vmatprep.subr.bf16.mxu0 %v11979_v49  ;;  %2829 = vmatprep.subr.bf16.mxu1 %v11980_v33  ;;  %v12013_v49 = vld [vmem:[#allocation103_spill] sm:$0xff] }
0x10e8   :  { %v328_v33 = vadd.f32 %v12013_v49, %v11699_v63 }
0x10ea   :  { %2789 = vmatpush2.bf16.msra.mxu0 %v11981_v53  ;;  %2830 = vmatpush2.bf16.msra.mxu1 %v11982_v10 }
0x10eb   :  { %2790 = vmatprep.subr.bf16.mxu0 %v11983_v51  ;;  %2831 = vmatprep.subr.bf16.mxu1 %v11984_v46 }
0x10ee   :  { %2791 = vmatpush2.bf16.msra.mxu0 %v11985_v0  ;;  %2832 = vmatpush2.bf16.msra.mxu1 %v11986_v56 }
0x10ef   :  { %2792 = vmatprep.subr.bf16.mxu0 %v11987_v43  ;;  %2833 = vmatprep.subr.bf16.mxu1 %v11988_v26 }
0x10f2   :  { %2793 = vmatpush2.bf16.msra.mxu0 %v11989_v44  ;;  %2834 = vmatpush2.bf16.msra.mxu1 %v11990_v14 }
0x10f3   :  { %2794 = vmatprep.subr.bf16.mxu0 %v11991_v7  ;;  %2835 = vmatprep.subr.bf16.mxu1 %v11992_v36 }
0x10f6   :  { %2795 = vmatpush2.bf16.msra.mxu0 %v11993_v37  ;;  %2836 = vmatpush2.bf16.msra.mxu1 %v11994_v45 }
0x10f7   :  { %2796 = vmatprep.subr.bf16.mxu0 %v11995_v39  ;;  %2837 = vmatprep.subr.bf16.mxu1 %v11996_v34 }
0x10fa   :  { %2797 = vmatpush2.bf16.msra.mxu0 %v11997_v60  ;;  %2838 = vmatpush2.bf16.msra.mxu1 %v11998_v47  ;;  %v12014_v60 = vld [vmem:[#allocation27_spill] sm:$0xff] }
0x10fb   :  { %2798 = vmatprep.subr.bf16.mxu0 %v11999_v38  ;;  %2839 = vmatprep.subr.bf16.mxu1 %v12000_v40  ;;  %v12015_v47 = vld [vmem:[#allocation43_spill] sm:$0xff] }
0x10fc   :  { %v401_v38 = vadd.f32 %v12015_v47, %v12014_v60 }
0x10fe   :  { %2799 = vmatpush2.bf16.msra.mxu0 %v12001_v48  ;;  %2840 = vmatpush2.bf16.msra.mxu1 %v12002_v31  ;;  %v12016_v48 = vld [vmem:[#allocation40_spill] sm:$0xff] }
0x10ff   :  { %2800 = vmatprep.subr.bf16.mxu0 %v12003_v18  ;;  %2841 = vmatprep.subr.bf16.mxu1 %v12004_v17 }
0x1102   :  { %2801 = vmatpush2.bf16.msra.mxu0 %v12005_v30  ;;  %2842 = vmatpush2.bf16.msra.mxu1 %v12006_v16 }
0x1165   :  { %v2571_v24 = vpop.f32.mrf.mxu0  ;;  %v2612_v57 = vpop.f32.mrf.mxu1 }
0x1166   :  { %v2572_v61 = vadd.f32 %v2571_v24, %v12007_v41  ;;  %v2613_v8 = vadd.f32 %v2612_v57, %v12010_v21 }
0x1167   :  { %v2573_v28 = vpop.f32.mrf.mxu0  ;;  %v2614_v25 = vpop.f32.mrf.mxu1 }
0x1168   :  { %v5860_v3 = vmul.f32 -1.442695, %v2572_v61  ;;  %v2574_v54 = vadd.f32 %v2573_v28, %v12008_v52  ;;  %v2615_v62 = vadd.f32 %v2614_v25, %v12009_v50 }
0x1169   :  { %v2575_v27 = vpop.f32.mrf.mxu0  ;;  %v2616_v58 = vpop.f32.mrf.mxu1 }
0x116a   :  { %6680 = vpow2.f32 %v5860_v3  ;;  %v5861_v29 = vmul.f32 -1.442695, %v2574_v54  ;;  %v5862_v13 = vmul.f32 -1.442695, %v2615_v62 }
0x116b   :  { %v2576_v23 = vpop.f32.mrf.mxu0  ;;  %v2617_v19 = vpop.f32.mrf.mxu1 }
0x116c   :  { %6682 = vpow2.f32 %v5861_v29 }
0x116d   :  { %6684 = vpow2.f32 %v5862_v13 }
0x1177   :  { %v6681_v35 = vpop.eup %6680 }
0x1178   :  { %v2622_v32 = vadd.f32 1.0, %v6681_v35 }
0x1179   :  { %v6683_v15 = vpop.eup %6682 }
0x117a   :  { %6686 = vrcp.f32 %v2622_v32  ;;  %v2628_v1 = vadd.f32 1.0, %v6683_v15  ;;  %v6685_v12 = vpop.eup %6684 }
0x117b   :  { %6688 = vtanh.f32 %v2613_v8  ;;  %v2635_v44 = vadd.f32 1.0, %v6685_v12 }
0x117c   :  { %6690 = vrcp.f32 %v2628_v1 }
0x1185   :  { %v2678_v20 = vpop.f32.mrf.mxu0  ;;  %v2719_v11 = vpop.f32.mrf.mxu1 }
0x1186   :  { %v2726_v53 = vadd.f32 %v2678_v20, %v326_v6  ;;  %v2728_v31 = vadd.f32 %v2719_v11, %v12016_v48 }
0x1187   :  { %v6687_v10 = vpop.eup %6686  ;;  %v2680_v51 = vpop.f32.mrf.mxu0 }
0x1188   :  { %v2721_v46 = vpop.f32.mrf.mxu1  ;;  %v6689_v0 = vpop.eup %6688  ;;  %v5863_v56 = vmul.f32 -1.442695, %v2726_v53  ;;  %v2727_v43 = vadd.f32 %v2680_v51, %v328_v33 }
0x1189   :  { %v6691_v26 = vpop.eup %6690  ;;  %v2682_v14 = vpop.f32.mrf.mxu0  ;;  %v2639_v36 = vmul.f32 %v6689_v0, %v6687_v10  ;;  %v2729_v40 = vadd.f32 %v2721_v46, %v401_v38 }
0x118a   :  { %v2723_v7 = vpop.f32.mrf.mxu1  ;;  %v2638_v37 = vmul.f32 %v6691_v26, %v9275_v55  ;;  %6692 = vpow2.f32 %v5863_v56  ;;  %v5864_v45 = vmul.f32 -1.442695, %v2727_v43 }
0x118b   :  { %v2683_v39 = vpop.f32.mrf.mxu0  ;;  %v5865_v18 = vmul.f32 -1.442695, %v2729_v40 }
0x118c   :  { %v2724_v34 = vpop.f32.mrf.mxu1  ;;  %6694 = vpow2.f32 %v5864_v45  ;;  %v9393_v63 = vadd.f32 %v2639_v36, %v2638_v37 }
0x118d   :  { %6696 = vrcp.f32 %v2635_v44 }
0x118e   :  { %6698 = vtanh.f32 %v9393_v63 }
0x118f   :  { %6700 = vtanh.f32 %v2728_v31 }
0x1190   :  { %6702 = vpow2.f32 %v5865_v18 }
0x1197   :  { %v6693_v17 = vpop.eup %6692 }
0x1198   :  { %v2733_v30 = vadd.f32 1.0, %v6693_v17  ;;  %v6258_v17 = vld [vmem:[#allocation8 + $0xe0] ss:$16 sps:$4 sm:$0xff]  }
0x1199   :  { %v6695_v55 = vpop.eup %6694 }
0x119a   :  { %v6697_v16 = vpop.eup %6696  ;;  %6704 = vrcp.f32 %v2733_v30  ;;  %v2739_v24 = vadd.f32 1.0, %v6695_v55  ;;  %v6260_v30 = vld [vmem:[#allocation8 + $0xe4] ss:$16 sps:$4 sm:$0xff]   ;;  %v6261_v55 = vld [vmem:[#allocation8 + $0xe8] ss:$16 sps:$4 sm:$0xff]  }
0x119b   :  { %v6699_v57 = vpop.eup %6698  ;;  %3117 = vmatprep.subr.bf16.mxu0 %v6260_v30  ;;  %v9457_v30 = vld [vmem:[#allocation10 + $0x80] ss:$16 sps:$4 sm:$0xff]  }
0x119c   :  { %6706 = vrcp.f32 %v2739_v24  ;;  %v2642_v61 = vmul.f32 %v6699_v57, %v6697_v16  ;;  %v6701_v25 = vpop.eup %6700  ;;  %v6263_v16 = vld [vmem:[#allocation8 + $0xec] ss:$16 sps:$4 sm:$0xff]   ;;  %v6266_v24 = vld [vmem:[#allocation8 + $0xc4] ss:$16 sps:$4 sm:$0xff]  }
0x119d   :  { %v6703_v3 = vpop.eup %6702  ;;  %v6269_v57 = vld [vmem:[#allocation8 + $0xcc] ss:$16 sps:$4 sm:$0xff]   ;;  %3158 = vmatprep.subr.bf16.mxu1 %v6263_v16  ;;  %v9463_v16 = vld [vmem:[#allocation10 + $0x64] ss:$16 sps:$4 sm:$0xff]  }
0x119e   :  { %v2769_v28 = vpack.c.bf16 %v2642_v61, %v2642_v61  ;;  %v2746_v29 = vadd.f32 1.0, %v6703_v3  ;;  %v6264_v61 = vld [vmem:[#allocation8 + $0xc0] ss:$16 sps:$4 sm:$0xff]  }
0x11a0   :  { %2802 = vmatprep.mubr.bf16.mxu0 %v2769_v28  ;;  %2843 = vmatprep.mubr.bf16.mxu1 %v2769_v28  ;;  %6708 = vrcp.f32 %v2746_v29  ;;  %v12017_v28 = vld [vmem:[#allocation63_spill] sm:$0xff] }
0x11a1   :  { %vm175_vm3 = vcmp.lt.s32.totalorder %v12017_v28, 32  ;;  %v9477_v28 = vld [vmem:[#allocation10 + $0x4c] ss:$16 sps:$4 sm:$0xff]  }
0x11a7   :  { %v6705_v54 = vpop.eup %6704 }
0x11a8   :  { %v2750_v27 = vmul.f32 %v6705_v54, %v6701_v25  ;;  %v12018_v54 = vmov 0.0  }
0x11a9   :  { %v6707_v58 = vpop.eup %6706 }
0x11aa   :  { %v2749_v23 = vmul.f32 %v6707_v58, %v9281_v42 }
0x11ac   :  { %v2751_v19 = vadd.f32 %v2750_v27, %v2749_v23  ;;  %v5708_v27 = vsel %vm175_vm3, 1.0, %v12018_v54  ;;  %v9487_v54 = vld [vmem:[#allocation10 + $0x24] ss:$16 sps:$4 sm:$0xff]  }
0x11ad   :  { %v6709_v62 = vpop.eup %6708 }
0x11ae   :  { %6710 = vtanh.f32 %v2751_v19  ;;  %v6272_v19 = vld [vmem:[#allocation8 + $0xa4] ss:$16 sps:$4 sm:$0xff]  }
0x11bb   :  { %v6711_v13 = vpop.eup %6710 }
0x11bc   :  { %v2753_v35 = vmul.f32 %v6711_v13, %v6709_v62  ;;  %v6275_v62 = vld [vmem:[#allocation8 + $0xac] ss:$16 sps:$4 sm:$0xff]   ;;  %v6270_v13 = vld [vmem:[#allocation8 + $0xa0] ss:$16 sps:$4 sm:$0xff]  }
0x11be   :  { %2754 = vadd.xlane.f32.xlu0 %v2753_v35 }
0x1247   :  { %v2755_v8 = vpop.xlane.xlu0 %2754 }
0x1248   :  { %v2756_v32 = vmul.f32 0.015625, %v2755_v8  ;;  %v6276_v8 = vld [vmem:[#allocation8 + $0x80] ss:$16 sps:$4 sm:$0xff]  }
0x124a   :  { %v2757_v15 = vsub.f32 %v2753_v35, %v2756_v32  ;;  %v6273_v35 = vld [vmem:[#allocation8 + $0xa8] ss:$16 sps:$4 sm:$0xff]   ;;  %v6278_v32 = vld [vmem:[#allocation8 + $0x84] ss:$16 sps:$4 sm:$0xff]  }
0x124c   :  { %v2758_v1 = vmul.f32 %v11704_v22, %v2757_v15  ;;  %v6279_v15 = vld [vmem:[#allocation8 + $0x88] ss:$16 sps:$4 sm:$0xff]  }
0x124e   :  { %v2759_v2 = vmul.f32 %v2758_v1, %v2758_v1 }
0x1250   :  { %2760 = vadd.xlane.f32.xlu1 %v2759_v2  ;;  %v6284_v2 = vld [vmem:[#allocation8 + $0x64] ss:$16 sps:$4 sm:$0xff]  }
0x12d9   :  { %v2761_v9 = vpop.xlane.xlu1 %2760 }
0x12da   :  { %v2762_v6 = vmul.f32 0.015625, %v2761_v9  ;;  %v6287_v9 = vld [vmem:[#allocation8 + $0x6c] ss:$16 sps:$4 sm:$0xff]  }
0x12dc   :  { %v2763_v20 = vadd.f32 1e-05, %v2762_v6  ;;  %v6282_v6 = vld [vmem:[#allocation8 + $0x60] ss:$16 sps:$4 sm:$0xff]  }
0x12de   :  { %6712 = vrsqrt.f32 %v2763_v20  ;;  %v6285_v20 = vld [vmem:[#allocation8 + $0x68] ss:$16 sps:$4 sm:$0xff]  }
0x12eb   :  { %v6713_v11 = vpop.eup %6712 }
0x12ec   :  { %v2765_v42 = vmul.f32 %v6713_v11, %v2758_v1  ;;  %v6281_v1 = vld [vmem:[#allocation8 + $0x8c] ss:$16 sps:$4 sm:$0xff]   ;;  %v6290_v11 = vld [vmem:[#allocation8 + $0x44] ss:$16 sps:$4 sm:$0xff]  }
0x12ee   :  { %v2766_v12 = vmul.f32 %v9292_v5, %v2765_v42  ;;  %v6293_v42 = vld [vmem:[#allocation8 + $0x4c] ss:$16 sps:$4 sm:$0xff]  }
0x12f0   :  { %v2767_v49 = vadd.f32 %v9298_v4, %v2766_v12  ;;  %v6288_v12 = vld [vmem:[#allocation8 + $0x40] ss:$16 sps:$4 sm:$0xff]  }
0x12f2   :  { %v2768_v33 = vpack.c.bf16 %v2767_v49, %v2767_v49  ;;  %v6291_v49 = vld [vmem:[#allocation8 + $0x48] ss:$16 sps:$4 sm:$0xff]  }
0x12f4   :  { %2803 = vmatmul.mubr.bf16.vlgmr.msra.gmra.mxu0 %v2768_v33  ;;  %2844 = vmatmul.mubr.bf16.vlgmr.msra.gmra.mxu1 %v2768_v33  ;;  %v6296_v33 = vld [vmem:[#allocation8 + $0x24] ss:$16 sps:$4 sm:$0xff]  }
0x12f5   :  { %3149 = vmatprep.mubr.bf16.mxu0 %v11649_v59  ;;  %3190 = vmatprep.mubr.bf16.mxu1 %v11649_v59 }
0x12f6   :  { %3118 = vmatpush1.bf16.msra.mxu0 %v6258_v17  ;;  %3159 = vmatpush1.bf16.msra.mxu1 %v6261_v55  ;;  %v9453_v17 = vld [vmem:[#allocation10 + $0x8c] ss:$16 sps:$4 sm:$0xff]   ;;  %v9459_v55 = vld [vmem:[#allocation10 + $0x88] ss:$16 sps:$4 sm:$0xff]  }
0x12f7   :  { %3119 = vmatprep.subr.bf16.mxu0 %v6266_v24  ;;  %3160 = vmatprep.subr.bf16.mxu1 %v6269_v57  ;;  %v9465_v24 = vld [vmem:[#allocation10 + $0x6c] ss:$16 sps:$4 sm:$0xff]   ;;  %v9469_v57 = vld [vmem:[#allocation10 + $0x60] ss:$16 sps:$4 sm:$0xff]  }
0x12fa   :  { %3120 = vmatpush1.bf16.msra.mxu0 %v6264_v61  ;;  %v9471_v61 = vld [vmem:[#allocation10 + $0x68] ss:$16 sps:$4 sm:$0xff]  }
0x12fb   :  { %3121 = vmatprep.subr.bf16.mxu0 %v6272_v19  ;;  %v9501_v19 = vld [vmem:[#allocation10 + $0xc] ss:$16 sps:$4 sm:$0xff]  }
0x12fe   :  { %3122 = vmatpush1.bf16.msra.mxu0 %v6270_v13  ;;  %v9507_v13 = vld [vmem:[#allocation10 + $0x8] ss:$16 sps:$4 sm:$0xff]  }
0x12ff   :  { %3123 = vmatprep.subr.bf16.mxu0 %v6278_v32  ;;  %v9519_v32 = vld [vmem:[#allocation13 + $0xec] ss:$16 sps:$4 sm:$0xff]  }
0x1302   :  { %3124 = vmatpush1.bf16.msra.mxu0 %v6276_v8  ;;  %v9517_v8 = vld [vmem:[#allocation13 + $0xe4] ss:$16 sps:$4 sm:$0xff]  }
0x1303   :  { %3125 = vmatprep.subr.bf16.mxu0 %v6284_v2  ;;  %v9525_v2 = vld [vmem:[#allocation13 + $0xc4] ss:$16 sps:$4 sm:$0xff]  }
0x1306   :  { %3126 = vmatpush1.bf16.msra.mxu0 %v6282_v6  ;;  %v9533_v6 = vld [vmem:[#allocation13 + $0xc0] ss:$16 sps:$4 sm:$0xff]  }
0x1307   :  { %3127 = vmatprep.subr.bf16.mxu0 %v6290_v11  ;;  %v9541_v11 = vld [vmem:[#allocation13 + $0xa4] ss:$16 sps:$4 sm:$0xff]  }
0x1308   :  { %12022 = vst [vmem:[#allocation71_spill] sm:$0xff] %v9541_v11 }
0x130a   :  { %3128 = vmatpush1.bf16.msra.mxu0 %v6288_v12  ;;  %v9545_v12 = vld [vmem:[#allocation13 + $0xa0] ss:$16 sps:$4 sm:$0xff]  }
0x130b   :  { %3129 = vmatprep.subr.bf16.mxu0 %v6296_v33  ;;  %12024 = vst [vmem:[#allocation73_spill] sm:$0xff] %v9545_v12  ;;  %v9553_v33 = vld [vmem:[#allocation13 + $0x84] ss:$16 sps:$4 sm:$0xff]  }
0x130c   :  { %12026 = vst [vmem:[#allocation75_spill] sm:$0xff] %v9553_v33 }
0x13b4   :  { %v2804_v22 = vpop.f32.mrf.mxu0  ;;  %v2845_v53 = vpop.f32.mrf.mxu1 }
0x13b5   :  { %v2805_v10 = vadd.f32 %v2804_v22, %v12007_v41  ;;  %v2846_v37 = vadd.f32 %v2845_v53, %v12010_v21  ;;  %v6299_v22 = vld [vmem:[#allocation8 + $0x2c] ss:$16 sps:$4 sm:$0xff]   ;;  %v6294_v53 = vld [vmem:[#allocation8 + $0x20] ss:$16 sps:$4 sm:$0xff]  }
0x13b6   :  { %v2806_v51 = vpop.f32.mrf.mxu0  ;;  %v2847_v46 = vpop.f32.mrf.mxu1  ;;  %3130 = vmatpush1.bf16.msra.mxu0 %v6294_v53  ;;  %v9557_v53 = vld [vmem:[#allocation13 + $0x80] ss:$16 sps:$4 sm:$0xff]  }
0x13b7   :  { %v5866_v0 = vmul.f32 -1.442695, %v2805_v10  ;;  %v2807_v56 = vadd.f32 %v2806_v51, %v12008_v52  ;;  %v2848_v14 = vadd.f32 %v2847_v46, %v12009_v50  ;;  %v6297_v10 = vld [vmem:[#allocation8 + $0x28] ss:$16 sps:$4 sm:$0xff]   ;;  %v6302_v51 = vld [vmem:[#allocation8 + $0x4] ss:$16 sps:$4 sm:$0xff]  }
0x13b8   :  { %v2808_v43 = vpop.f32.mrf.mxu0  ;;  %v2849_v5 = vpop.f32.mrf.mxu1  ;;  %v6305_v46 = vld [vmem:[#allocation8 + $0xc] ss:$16 sps:$4 sm:$0xff]   ;;  %3131 = vmatprep.subr.bf16.mxu0 %v6302_v51  ;;  %12028 = vst [vmem:[#allocation77_spill] sm:$0xff] %v9557_v53  ;;  %v9565_v51 = vld [vmem:[#allocation13 + $0x64] ss:$16 sps:$4 sm:$0xff]  }
0x13b9   :  { %6714 = vpow2.f32 %v5866_v0  ;;  %v5867_v4 = vmul.f32 -1.442695, %v2807_v56  ;;  %v5868_v7 = vmul.f32 -1.442695, %v2848_v14  ;;  %v6300_v0 = vld [vmem:[#allocation8] ss:$16 sps:$4 sm:$0xff]  }
0x13ba   :  { %v2809_v26 = vpop.f32.mrf.mxu0  ;;  %v2850_v44 = vpop.f32.mrf.mxu1  ;;  %v6303_v56 = vld [vmem:[#allocation8 + $0x8] ss:$16 sps:$4 sm:$0xff]   ;;  %v9412_v43 = vld [vmem:[#allocation10 + $0xe4] ss:$16 sps:$4 sm:$0xff]   ;;  %v9414_v5 = vld [vmem:[#allocation10 + $0xec] ss:$16 sps:$4 sm:$0xff]   ;;  %3132 = vmatpush1.bf16.msra.mxu0 %v6300_v0 }
0x13bb   :  { %6716 = vpow2.f32 %v5867_v4  ;;  %12019 = vst [vmem:[#allocation69_spill] sm:$0xff] %v9412_v43  ;;  %12020 = vst [vmem:[#allocation70_spill] sm:$0xff] %v9414_v5  ;;  %3391 = vmatprep.subr.bf16.mxu0 %v9412_v43  ;;  %v9569_v0 = vld [vmem:[#allocation13 + $0x60] ss:$16 sps:$4 sm:$0xff]  }
0x13bc   :  { %6718 = vpow2.f32 %v5868_v7  ;;  %v5869_v7 = vld [vmem:[%s11012_s8] ss:$0 sm:$0xff]  ;;  %12030 = vst [vmem:[#allocation79_spill] sm:$0xff] %v9565_v51  ;;  %12032 = vst [vmem:[#allocation81_spill] sm:$0xff] %v9569_v0 }
0x13c6   :  { %v6715_v36 = vpop.eup %6714 }
0x13c7   :  { %v2855_v45 = vadd.f32 1.0, %v6715_v36 }
0x13c8   :  { %v6717_v41 = vpop.eup %6716 }
0x13c9   :  { %6720 = vrcp.f32 %v2855_v45  ;;  %v2861_v39 = vadd.f32 1.0, %v6717_v41  ;;  %v6719_v52 = vpop.eup %6718 }
0x13ca   :  { %6722 = vtanh.f32 %v2846_v37  ;;  %v2868_v38 = vadd.f32 1.0, %v6719_v52  ;;  %v5870_v37 = vld [vmem:[#allocation7] ss:$0 sm:$0xff]  ;;  %v9423_v52 = vld [vmem:[#allocation10 + $0xe8] ss:$16 sps:$4 sm:$0xff]  }
0x13cb   :  { %6724 = vrcp.f32 %v2861_v39  ;;  %v9421_v39 = vld [vmem:[#allocation10 + $0xe0] ss:$16 sps:$4 sm:$0xff]  }
0x13cc   :  { %6726 = vrcp.f32 %v2868_v38  ;;  %v9431_v38 = vld [vmem:[#allocation10 + $0xc0] ss:$16 sps:$4 sm:$0xff]  }
0x13d6   :  { %v6721_v34 = vpop.eup %6720 }
0x13d7   :  { %v6723_v60 = vpop.eup %6722 }
0x13d8   :  { %v6725_v47 = vpop.eup %6724  ;;  %v2872_v40 = vmul.f32 %v6723_v60, %v6721_v34  ;;  %v9425_v60 = vld [vmem:[#allocation10 + $0xc4] ss:$16 sps:$4 sm:$0xff]  }
0x13d9   :  { %v2871_v48 = vmul.f32 %v6725_v47, %v9393_v63  ;;  %v6727_v31 = vpop.eup %6726  ;;  %v6267_v63 = vld [vmem:[#allocation8 + $0xc8] ss:$16 sps:$4 sm:$0xff]   ;;  %v9427_v47 = vld [vmem:[#allocation10 + $0xcc] ss:$16 sps:$4 sm:$0xff]  }
0x13da   :  { %3161 = vmatpush1.bf16.msra.mxu1 %v6267_v63  ;;  %v9475_v63 = vld [vmem:[#allocation10 + $0x44] ss:$16 sps:$4 sm:$0xff]  }
0x13db   :  { %v2873_v50 = vadd.f32 %v2872_v40, %v2871_v48  ;;  %3162 = vmatprep.subr.bf16.mxu1 %v6275_v62  ;;  %v9433_v40 = vld [vmem:[#allocation10 + $0xc8] ss:$16 sps:$4 sm:$0xff]   ;;  %v9437_v48 = vld [vmem:[#allocation10 + $0xa4] ss:$16 sps:$4 sm:$0xff]   ;;  %v9505_v62 = vld [vmem:[#allocation10] ss:$16 sps:$4 sm:$0xff]  }
0x13dd   :  { %6728 = vtanh.f32 %v2873_v50  ;;  %v9439_v50 = vld [vmem:[#allocation10 + $0xac] ss:$16 sps:$4 sm:$0xff]  }
0x13de   :  { %3163 = vmatpush1.bf16.msra.mxu1 %v6273_v35  ;;  %v12021_v35 = vmov 0.0|0.0  }
0x13df   :  { %3164 = vmatprep.subr.bf16.mxu1 %v6281_v1  ;;  %v9523_v1 = vld [vmem:[#allocation13 + $0xe8] ss:$16 sps:$4 sm:$0xff]  }
0x13e2   :  { %3165 = vmatpush1.bf16.msra.mxu1 %v6279_v15  ;;  %v9521_v15 = vld [vmem:[#allocation13 + $0xe0] ss:$16 sps:$4 sm:$0xff]  }
0x13e3   :  { %3166 = vmatprep.subr.bf16.mxu1 %v6287_v9  ;;  %v9527_v9 = vld [vmem:[#allocation13 + $0xcc] ss:$16 sps:$4 sm:$0xff]  }
0x13e6   :  { %3167 = vmatpush1.bf16.msra.mxu1 %v6285_v20  ;;  %v9535_v20 = vld [vmem:[#allocation13 + $0xc8] ss:$16 sps:$4 sm:$0xff]  }
0x13e7   :  { %3168 = vmatprep.subr.bf16.mxu1 %v6293_v42  ;;  %v9543_v42 = vld [vmem:[#allocation13 + $0xac] ss:$16 sps:$4 sm:$0xff]  }
0x13e8   :  { %12023 = vst [vmem:[#allocation72_spill] sm:$0xff] %v9543_v42 }
0x13ea   :  { %v6729_v21 = vpop.eup %6728  ;;  %3169 = vmatpush1.bf16.msra.mxu1 %v6291_v49  ;;  %v9547_v49 = vld [vmem:[#allocation13 + $0xa8] ss:$16 sps:$4 sm:$0xff]  }
0x13eb   :  { %v2875_v18 = vmul.f32 %v6729_v21, %v6727_v31  ;;  %3170 = vmatprep.subr.bf16.mxu1 %v6299_v22  ;;  %v9445_v31 = vld [vmem:[#allocation10 + $0xa0] ss:$16 sps:$4 sm:$0xff]   ;;  %v9447_v21 = vld [vmem:[#allocation10 + $0xa8] ss:$16 sps:$4 sm:$0xff]   ;;  %12025 = vst [vmem:[#allocation74_spill] sm:$0xff] %v9547_v49 }
0x13ec   :  { %v9555_v22 = vld [vmem:[#allocation13 + $0x8c] ss:$16 sps:$4 sm:$0xff]  }
0x13ed   :  { %2876 = vadd.xlane.f32.xlu0 %v2875_v18  ;;  %12027 = vst [vmem:[#allocation76_spill] sm:$0xff] %v9555_v22 }
0x13ee   :  { %3171 = vmatpush1.bf16.msra.mxu1 %v6297_v10  ;;  %v9559_v10 = vld [vmem:[#allocation13 + $0x88] ss:$16 sps:$4 sm:$0xff]  }
0x13ef   :  { %3172 = vmatprep.subr.bf16.mxu1 %v6305_v46  ;;  %12029 = vst [vmem:[#allocation78_spill] sm:$0xff] %v9559_v10  ;;  %v9567_v46 = vld [vmem:[#allocation13 + $0x6c] ss:$16 sps:$4 sm:$0xff]  }
0x13f0   :  { %12031 = vst [vmem:[#allocation80_spill] sm:$0xff] %v9567_v46 }
0x13f2   :  { %3173 = vmatpush1.bf16.msra.mxu1 %v6303_v56  ;;  %v9571_v56 = vld [vmem:[#allocation13 + $0x68] ss:$16 sps:$4 sm:$0xff]  }
0x13f3   :  { %3432 = vmatprep.subr.bf16.mxu1 %v9414_v5  ;;  %12033 = vst [vmem:[#allocation82_spill] sm:$0xff] %v9571_v56 }
0x1476   :  { %v2877_v25 = vpop.xlane.xlu0 %2876 }
0x1477   :  { %v2879_v3 = vmul.f32 0.03125, %v2877_v25  ;;  %v9481_v25 = vld [vmem:[#allocation10 + $0x40] ss:$16 sps:$4 sm:$0xff]  }
0x1479   :  { %v2880_v58 = vsub.f32 %v2875_v18, %v2879_v3  ;;  %v9451_v18 = vld [vmem:[#allocation10 + $0x84] ss:$16 sps:$4 sm:$0xff]   ;;  %v9483_v3 = vld [vmem:[#allocation10 + $0x48] ss:$16 sps:$4 sm:$0xff]  }
0x147b   :  { %v2881_v29 = vmul.f32 %v5708_v27, %v2880_v58  ;;  %v9489_v27 = vld [vmem:[#allocation10 + $0x2c] ss:$16 sps:$4 sm:$0xff]   ;;  %v9493_v58 = vld [vmem:[#allocation10 + $0x20] ss:$16 sps:$4 sm:$0xff]  }
0x147d   :  { %v2882_v23 = vmul.f32 %v2881_v29, %v2881_v29 }
0x147f   :  { %2883 = vadd.xlane.f32.xlu1 %v2882_v23  ;;  %v9499_v23 = vld [vmem:[#allocation10 + $0x4] ss:$16 sps:$4 sm:$0xff]  }
0x1508   :  { %v2884_v4 = vpop.xlane.xlu1 %2883 }
0x1509   :  { %v2885_v26 = vmul.f32 0.03125, %v2884_v4  ;;  %v9577_v4 = vld [vmem:[#allocation13 + $0x44] ss:$16 sps:$4 sm:$0xff]  }
0x150a   :  { %12034 = vst [vmem:[#allocation83_spill] sm:$0xff] %v9577_v4 }
0x150b   :  { %v2886_v44 = vadd.f32 1e-05, %v2885_v26  ;;  %v9579_v26 = vld [vmem:[#allocation13 + $0x4c] ss:$16 sps:$4 sm:$0xff]  }
0x150c   :  { %12035 = vst [vmem:[#allocation84_spill] sm:$0xff] %v9579_v26 }
0x150d   :  { %6730 = vrsqrt.f32 %v2886_v44  ;;  %v9581_v44 = vld [vmem:[#allocation13 + $0x40] ss:$16 sps:$4 sm:$0xff]  }
0x150e   :  { %12036 = vst [vmem:[#allocation85_spill] sm:$0xff] %v9581_v44 }
0x151a   :  { %v6731_v14 = vpop.eup %6730 }
0x151b   :  { %v2888_v36 = vmul.f32 %v6731_v14, %v2881_v29  ;;  %v9495_v29 = vld [vmem:[#allocation10 + $0x28] ss:$16 sps:$4 sm:$0xff]   ;;  %v9583_v14 = vld [vmem:[#allocation13 + $0x48] ss:$16 sps:$4 sm:$0xff]  }
0x151c   :  { %12037 = vst [vmem:[#allocation86_spill] sm:$0xff] %v9583_v14 }
0x151d   :  { %v2895_v45 = vmul.f32 %v5869_v7, %v2888_v36  ;;  %v9589_v7 = vld [vmem:[#allocation13 + $0x24] ss:$16 sps:$4 sm:$0xff]   ;;  %v9591_v36 = vld [vmem:[#allocation13 + $0x2c] ss:$16 sps:$4 sm:$0xff]  }
0x151e   :  { %12038 = vst [vmem:[#allocation87_spill] sm:$0xff] %v9589_v7  ;;  %12039 = vst [vmem:[#allocation97_spill] sm:$0xff] %v9591_v36 }
0x151f   :  { %v2902_v41 = vadd.f32 %v5870_v37, %v2895_v45  ;;  %v9593_v37 = vld [vmem:[#allocation13 + $0x20] ss:$16 sps:$4 sm:$0xff]   ;;  %v9595_v45 = vld [vmem:[#allocation13 + $0x28] ss:$16 sps:$4 sm:$0xff]  }
0x1520   :  { %12040 = vst [vmem:[#allocation98_spill] sm:$0xff] %v9593_v37  ;;  %12041 = vst [vmem:[#allocation35_spill] sm:$0xff] %v9595_v45 }
0x1521   :  { %v2903_v34 = vpack.c.bf16 %v2902_v41, %v2902_v41  ;;  %v9601_v41 = vld [vmem:[#allocation13 + $0x4] ss:$16 sps:$4 sm:$0xff]  }
0x1522   :  { %12042 = vst [vmem:[#allocation34_spill] sm:$0xff] %v9601_v41 }
0x1523   :  { %3150 = vmatmul.mubr.bf16.vlgmr.msra.gmra.mxu0 %v2903_v34  ;;  %3191 = vmatmul.mubr.bf16.vlgmr.msra.gmra.mxu1 %v2903_v34  ;;  %v9603_v34 = vld [vmem:[#allocation13 + $0xc] ss:$16 sps:$4 sm:$0xff]  }
0x1524   :  { %3392 = vmatpush1.bf16.msra.mxu0 %v9421_v39  ;;  %3433 = vmatpush1.bf16.msra.mxu1 %v9423_v52  ;;  %12043 = vst [vmem:[#allocation99_spill] sm:$0xff] %v9603_v34 }
0x1525   :  { %3393 = vmatprep.subr.bf16.mxu0 %v9425_v60  ;;  %3434 = vmatprep.subr.bf16.mxu1 %v9427_v47 }
0x1526   :  { %3423 = vmatprep.mubr.bf16.mxu0 %v11649_v59  ;;  %3464 = vmatprep.mubr.bf16.mxu1 %v11649_v59 }
0x1528   :  { %3394 = vmatpush1.bf16.msra.mxu0 %v9431_v38  ;;  %3435 = vmatpush1.bf16.msra.mxu1 %v9433_v40 }
0x1529   :  { %3395 = vmatprep.subr.bf16.mxu0 %v9437_v48  ;;  %3436 = vmatprep.subr.bf16.mxu1 %v9439_v50 }
0x152c   :  { %3396 = vmatpush1.bf16.msra.mxu0 %v9445_v31  ;;  %3437 = vmatpush1.bf16.msra.mxu1 %v9447_v21 }
0x152d   :  { %3397 = vmatprep.subr.bf16.mxu0 %v9451_v18  ;;  %3438 = vmatprep.subr.bf16.mxu1 %v9453_v17 }
0x1530   :  { %3398 = vmatpush1.bf16.msra.mxu0 %v9457_v30  ;;  %3439 = vmatpush1.bf16.msra.mxu1 %v9459_v55 }
0x1531   :  { %3399 = vmatprep.subr.bf16.mxu0 %v9463_v16  ;;  %3440 = vmatprep.subr.bf16.mxu1 %v9465_v24 }
0x1534   :  { %3400 = vmatpush1.bf16.msra.mxu0 %v9469_v57  ;;  %3441 = vmatpush1.bf16.msra.mxu1 %v9471_v61 }
0x1535   :  { %3401 = vmatprep.subr.bf16.mxu0 %v9475_v63  ;;  %3442 = vmatprep.subr.bf16.mxu1 %v9477_v28 }
0x1538   :  { %3402 = vmatpush1.bf16.msra.mxu0 %v9481_v25  ;;  %3443 = vmatpush1.bf16.msra.mxu1 %v9483_v3 }
0x1539   :  { %3403 = vmatprep.subr.bf16.mxu0 %v9487_v54  ;;  %3444 = vmatprep.subr.bf16.mxu1 %v9489_v27 }
0x153c   :  { %3404 = vmatpush1.bf16.msra.mxu0 %v9493_v58  ;;  %3445 = vmatpush1.bf16.msra.mxu1 %v9495_v29 }
0x153d   :  { %3405 = vmatprep.subr.bf16.mxu0 %v9499_v23  ;;  %3446 = vmatprep.subr.bf16.mxu1 %v9501_v19 }
0x1540   :  { %3406 = vmatpush1.bf16.msra.mxu0 %v9505_v62  ;;  %3447 = vmatpush1.bf16.msra.mxu1 %v9507_v13 }
0x1541   :  { %3907 = vmatprep.subr.bf16.mxu0 %v9517_v8  ;;  %3948 = vmatprep.subr.bf16.mxu1 %v9519_v32 }
0x1543   :  { %3424 = vmatmul.mubr.bf16.vlgmr.msra.gmra.mxu0 %v11649_v59  ;;  %3465 = vmatmul.mubr.bf16.vlgmr.msra.gmra.mxu1 %v11649_v59 }
0x1544   :  { %3939 = vmatprep.mubr.bf16.mxu0 %v12021_v35  ;;  %3980 = vmatprep.mubr.bf16.mxu1 %v12021_v35  ;;  %v9605_v35 = vld [vmem:[#allocation13] ss:$16 sps:$4 sm:$0xff]  }
0x1545   :  { %3908 = vmatpush1.bf16.msra.mxu0 %v9521_v15  ;;  %3949 = vmatpush1.bf16.msra.mxu1 %v9523_v1  ;;  %12044 = vst [vmem:[#allocation100_spill] sm:$0xff] %v9605_v35 }
0x1546   :  { %3909 = vmatprep.subr.bf16.mxu0 %v9525_v2  ;;  %3950 = vmatprep.subr.bf16.mxu1 %v9527_v9 }
0x1549   :  { %3910 = vmatpush1.bf16.msra.mxu0 %v9533_v6  ;;  %3951 = vmatpush1.bf16.msra.mxu1 %v9535_v20 }
0x154a   :  { %3911 = vmatprep.subr.bf16.mxu0 %v9541_v11  ;;  %3952 = vmatprep.subr.bf16.mxu1 %v9543_v42 }
0x154d   :  { %3912 = vmatpush1.bf16.msra.mxu0 %v9545_v12  ;;  %3953 = vmatpush1.bf16.msra.mxu1 %v9547_v49 }
0x154e   :  { %3913 = vmatprep.subr.bf16.mxu0 %v9553_v33  ;;  %3954 = vmatprep.subr.bf16.mxu1 %v9555_v22 }
0x1551   :  { %3914 = vmatpush1.bf16.msra.mxu0 %v9557_v53  ;;  %3955 = vmatpush1.bf16.msra.mxu1 %v9559_v10 }
0x1552   :  { %3915 = vmatprep.subr.bf16.mxu0 %v9565_v51  ;;  %3956 = vmatprep.subr.bf16.mxu1 %v9567_v46 }
0x1555   :  { %3916 = vmatpush1.bf16.msra.mxu0 %v9569_v0  ;;  %3957 = vmatpush1.bf16.msra.mxu1 %v9571_v56  ;;  %v167_v0 = vld [vmem:[#allocation11] sm:$0xf] }
0x1556   :  { %3917 = vmatprep.subr.bf16.mxu0 %v9577_v4  ;;  %3958 = vmatprep.subr.bf16.mxu1 %v9579_v26  ;;  %v9671_v26 = vld [vmem:[#allocation13 + $0x14c] ss:$16 sps:$4 sm:$0xff]  }
0x1557   :  { %12067 = vst [vmem:[#allocation45_spill] sm:$0xff] %v9671_v26 }
0x1559   :  { %3918 = vmatpush1.bf16.msra.mxu0 %v9581_v44  ;;  %3959 = vmatpush1.bf16.msra.mxu1 %v9583_v14  ;;  %v9607_v14 = vld [vmem:[#allocation13 + $0x8] ss:$16 sps:$4 sm:$0xff]   ;;  %v9669_v44 = vld [vmem:[#allocation13 + $0x144] ss:$16 sps:$4 sm:$0xff]  }
0x155a   :  { %3919 = vmatprep.subr.bf16.mxu0 %v9589_v7  ;;  %3960 = vmatprep.subr.bf16.mxu1 %v9591_v36  ;;  %12045 = vst [vmem:[#allocation39_spill] sm:$0xff] %v9607_v14  ;;  %v9613_v36 = vld [vmem:[#allocation13 + $0x1e4] ss:$16 sps:$4 sm:$0xff]   ;;  %v9619_v7 = vld [vmem:[#allocation13 + $0x1e8] ss:$16 sps:$4 sm:$0xff]   ;;  %12066 = vst [vmem:[#allocation64_spill] sm:$0xff] %v9669_v44 }
0x155b   :  { %12046 = vst [vmem:[#allocation36_spill] sm:$0xff] %v9613_v36  ;;  %12049 = vst [vmem:[#allocation90_spill] sm:$0xff] %v9619_v7 }
0x155d   :  { %3920 = vmatpush1.bf16.msra.mxu0 %v9593_v37  ;;  %3961 = vmatpush1.bf16.msra.mxu1 %v9595_v45  ;;  %v9615_v37 = vld [vmem:[#allocation13 + $0x1ec] ss:$16 sps:$4 sm:$0xff]   ;;  %v9617_v45 = vld [vmem:[#allocation13 + $0x1e0] ss:$16 sps:$4 sm:$0xff]  }
0x155e   :  { %3921 = vmatprep.subr.bf16.mxu0 %v9601_v41  ;;  %3962 = vmatprep.subr.bf16.mxu1 %v9603_v34  ;;  %12047 = vst [vmem:[#allocation88_spill] sm:$0xff] %v9615_v37  ;;  %12048 = vst [vmem:[#allocation89_spill] sm:$0xff] %v9617_v45  ;;  %v9625_v34 = vld [vmem:[#allocation13 + $0x1c4] ss:$16 sps:$4 sm:$0xff]   ;;  %v9631_v41 = vld [vmem:[#allocation13 + $0x1c8] ss:$16 sps:$4 sm:$0xff]  }
0x155f   :  { %12050 = vst [vmem:[#allocation91_spill] sm:$0xff] %v9625_v34  ;;  %12053 = vst [vmem:[#allocation28_spill] sm:$0xff] %v9631_v41 }
0x1561   :  { %3922 = vmatpush1.bf16.msra.mxu0 %v9605_v35  ;;  %3963 = vmatpush1.bf16.msra.mxu1 %v9607_v14  ;;  %v9627_v35 = vld [vmem:[#allocation13 + $0x1cc] ss:$16 sps:$4 sm:$0xff]   ;;  %v9629_v14 = vld [vmem:[#allocation13 + $0x1c0] ss:$16 sps:$4 sm:$0xff]  }
0x1562   :  { %3923 = vmatprep.subr.bf16.mxu0 %v9613_v36  ;;  %3964 = vmatprep.subr.bf16.mxu1 %v9615_v37  ;;  %12051 = vst [vmem:[#allocation92_spill] sm:$0xff] %v9627_v35  ;;  %12052 = vst [vmem:[#allocation29_spill] sm:$0xff] %v9629_v14  ;;  %v9637_v37 = vld [vmem:[#allocation13 + $0x1a4] ss:$16 sps:$4 sm:$0xff]   ;;  %v9643_v36 = vld [vmem:[#allocation13 + $0x1a8] ss:$16 sps:$4 sm:$0xff]  }
0x1563   :  { %12054 = vst [vmem:[#allocation93_spill] sm:$0xff] %v9637_v37  ;;  %12057 = vst [vmem:[#allocation30_spill] sm:$0xff] %v9643_v36 }
0x1565   :  { %3924 = vmatpush2.bf16.msra.mxu0 %v9617_v45  ;;  %3965 = vmatpush2.bf16.msra.mxu1 %v9619_v7  ;;  %v9639_v45 = vld [vmem:[#allocation13 + $0x1ac] ss:$16 sps:$4 sm:$0xff]   ;;  %v9641_v7 = vld [vmem:[#allocation13 + $0x1a0] ss:$16 sps:$4 sm:$0xff]  }
0x1566   :  { %3925 = vmatprep.subr.bf16.mxu0 %v9625_v34  ;;  %3966 = vmatprep.subr.bf16.mxu1 %v9627_v35  ;;  %12055 = vst [vmem:[#allocation94_spill] sm:$0xff] %v9639_v45  ;;  %12056 = vst [vmem:[#allocation31_spill] sm:$0xff] %v9641_v7  ;;  %v9649_v35 = vld [vmem:[#allocation13 + $0x184] ss:$16 sps:$4 sm:$0xff]   ;;  %v9655_v34 = vld [vmem:[#allocation13 + $0x188] ss:$16 sps:$4 sm:$0xff]  }
0x1567   :  { %12058 = vst [vmem:[#allocation95_spill] sm:$0xff] %v9649_v35  ;;  %12061 = vst [vmem:[#allocation32_spill] sm:$0xff] %v9655_v34 }
0x1569   :  { %3926 = vmatpush2.bf16.msra.mxu0 %v9629_v14  ;;  %3967 = vmatpush2.bf16.msra.mxu1 %v9631_v41  ;;  %v9651_v14 = vld [vmem:[#allocation13 + $0x18c] ss:$16 sps:$4 sm:$0xff]   ;;  %v9653_v41 = vld [vmem:[#allocation13 + $0x180] ss:$16 sps:$4 sm:$0xff]  }
0x156a   :  { %3927 = vmatprep.subr.bf16.mxu0 %v9637_v37  ;;  %3968 = vmatprep.subr.bf16.mxu1 %v9639_v45  ;;  %12059 = vst [vmem:[#allocation96_spill] sm:$0xff] %v9651_v14  ;;  %12060 = vst [vmem:[#allocation33_spill] sm:$0xff] %v9653_v41  ;;  %v9661_v45 = vld [vmem:[#allocation13 + $0x164] ss:$16 sps:$4 sm:$0xff]   ;;  %v9667_v37 = vld [vmem:[#allocation13 + $0x168] ss:$16 sps:$4 sm:$0xff]  }
0x156b   :  { %12062 = vst [vmem:[#allocation41_spill] sm:$0xff] %v9661_v45  ;;  %12065 = vst [vmem:[#allocation44_spill] sm:$0xff] %v9667_v37 }
0x156d   :  { %3928 = vmatpush2.bf16.msra.mxu0 %v9641_v7  ;;  %3969 = vmatpush2.bf16.msra.mxu1 %v9643_v36  ;;  %v9663_v7 = vld [vmem:[#allocation13 + $0x16c] ss:$16 sps:$4 sm:$0xff]   ;;  %v9665_v36 = vld [vmem:[#allocation13 + $0x160] ss:$16 sps:$4 sm:$0xff]  }
0x156e   :  { %3929 = vmatprep.subr.bf16.mxu0 %v9649_v35  ;;  %3970 = vmatprep.subr.bf16.mxu1 %v9651_v14  ;;  %12063 = vst [vmem:[#allocation26_spill] sm:$0xff] %v9663_v7  ;;  %12064 = vst [vmem:[#allocation25_spill] sm:$0xff] %v9665_v36  ;;  %v9683_v14 = vld [vmem:[#allocation13 + $0x124] ss:$16 sps:$4 sm:$0xff]   ;;  %v9685_v35 = vld [vmem:[#allocation13 + $0x12c] ss:$16 sps:$4 sm:$0xff]  }
0x156f   :  { %12070 = vst [vmem:[#allocation48_spill] sm:$0xff] %v9683_v14  ;;  %12071 = vst [vmem:[#allocation49_spill] sm:$0xff] %v9685_v35 }
0x1571   :  { %3930 = vmatpush2.bf16.msra.mxu0 %v9653_v41  ;;  %3971 = vmatpush2.bf16.msra.mxu1 %v9655_v34  ;;  %v9677_v34 = vld [vmem:[#allocation13 + $0x140] ss:$16 sps:$4 sm:$0xff]   ;;  %v9679_v41 = vld [vmem:[#allocation13 + $0x148] ss:$16 sps:$4 sm:$0xff]  }
0x1572   :  { %3931 = vmatprep.subr.bf16.mxu0 %v9661_v45  ;;  %3972 = vmatprep.subr.bf16.mxu1 %v9663_v7  ;;  %12068 = vst [vmem:[#allocation46_spill] sm:$0xff] %v9677_v34  ;;  %12069 = vst [vmem:[#allocation47_spill] sm:$0xff] %v9679_v41  ;;  %v9689_v7 = vld [vmem:[#allocation13 + $0x120] ss:$16 sps:$4 sm:$0xff]  }
0x1573   :  { %12072 = vst [vmem:[#allocation50_spill] sm:$0xff] %v9689_v7 }
0x1575   :  { %3932 = vmatpush2.bf16.msra.mxu0 %v9665_v36  ;;  %3973 = vmatpush2.bf16.msra.mxu1 %v9667_v37  ;;  %v9691_v36 = vld [vmem:[#allocation13 + $0x128] ss:$16 sps:$4 sm:$0xff]   ;;  %v9695_v37 = vld [vmem:[#allocation13 + $0x104] ss:$16 sps:$4 sm:$0xff]  }
0x1576   :  { %3933 = vmatprep.subr.bf16.mxu0 %v9669_v44  ;;  %3974 = vmatprep.subr.bf16.mxu1 %v9671_v26  ;;  %12073 = vst [vmem:[#allocation51_spill] sm:$0xff] %v9691_v36  ;;  %12074 = vst [vmem:[#allocation52_spill] sm:$0xff] %v9695_v37  ;;  %v9697_v44 = vld [vmem:[#allocation13 + $0x10c] ss:$16 sps:$4 sm:$0xff]   ;;  %v9701_v26 = vld [vmem:[#allocation13 + $0x100] ss:$16 sps:$4 sm:$0xff]  }
0x1577   :  { %12075 = vst [vmem:[#allocation53_spill] sm:$0xff] %v9697_v44  ;;  %12076 = vst [vmem:[#allocation54_spill] sm:$0xff] %v9701_v26 }
0x1579   :  { %3934 = vmatpush2.bf16.msra.mxu0 %v9677_v34  ;;  %3975 = vmatpush2.bf16.msra.mxu1 %v9679_v41  ;;  %v9703_v34 = vld [vmem:[#allocation13 + $0x108] ss:$16 sps:$4 sm:$0xff]  }
0x157a   :  { %3935 = vmatprep.subr.bf16.mxu0 %v9683_v14  ;;  %3976 = vmatprep.subr.bf16.mxu1 %v9685_v35  ;;  %12077 = vst [vmem:[#allocation55_spill] sm:$0xff] %v9703_v34 }
0x157d   :  { %3936 = vmatpush2.bf16.msra.mxu0 %v9689_v7  ;;  %3977 = vmatpush2.bf16.msra.mxu1 %v9691_v36 }
0x157e   :  { %3937 = vmatprep.subr.bf16.mxu0 %v9695_v37  ;;  %3978 = vmatprep.subr.bf16.mxu1 %v9697_v44  ;;  %v12078_v37 = vld [vmem:[#allocation38_spill] sm:$0xff]  ;;  %v12079_v44 = vld [vmem:[#allocation37_spill] sm:$0xff] }
0x157f   :  { %v2940_v46 = vrot.slane %v167_v0, %v12078_v37  ;;  %v2944_v51 = vrot.slane %v167_v0, %v12079_v44  ;;  %v12081_v37 = vld [vmem:[#allocation24_spill] sm:$0xff] }
0x1580   :  { %v2952_v49 = vrot.slane %v167_v0, %v12081_v37 }
0x1581   :  { %3938 = vmatpush2.bf16.msra.mxu0 %v9701_v26  ;;  %3979 = vmatpush2.bf16.msra.mxu1 %v9703_v34 }
0x1582   :  { %4013 = vmatprep.subr.bf16.mxu0 %v9412_v43  ;;  %4054 = vmatprep.subr.bf16.mxu1 %v9414_v5 }
0x15e3   :  { %v3151_v35 = vpop.f32.mrf.mxu0  ;;  %v3192_v7 = vpop.f32.mrf.mxu1 }
0x15e4   :  { %v9713_v26 = vadd.f32 %v3151_v35, %v2940_v46 }
0x15e5   :  { %v3153_v14 = vpop.f32.mrf.mxu0  ;;  %v3194_v36 = vpop.f32.mrf.mxu1 }
0x15e6   :  { %12080 = vst [vmem:[#allocation56_spill] sm:$0xff] %v9713_v26  ;;  %v9715_v43 = vadd.f32 %v3153_v14, %v2944_v51  ;;  %v9720_v35 = vadd.f32 %v3194_v36, %v2952_v49  ;;  %v12082_v51 = vld [vmem:[#allocation23_spill] sm:$0xff] }
0x15e7   :  { %v3155_v41 = vpop.f32.mrf.mxu0  ;;  %v3196_v45 = vpop.f32.mrf.mxu1  ;;  %v2948_v14 = vrot.slane %v167_v0, %v12082_v51 }
0x15e9   :  { %v3156_v4 = vpop.f32.mrf.mxu0  ;;  %v3197_v56 = vpop.f32.mrf.mxu1 }
0x1603   :  { %v3425_v34 = vpop.f32.mrf.mxu0  ;;  %v3466_v10 = vpop.f32.mrf.mxu1 }
0x1604   :  { %v3473_v5 = vadd.f32 %v3425_v34, %v9713_v26  ;;  %v9724_v26 = vadd.f32 %v3192_v7, %v2948_v14 }
0x1605   :  { %v3427_v53 = vpop.f32.mrf.mxu0  ;;  %v3468_v22 = vpop.f32.mrf.mxu1 }
0x1606   :  { %v5935_v33 = vmul.f32 -1.442695, %v3473_v5  ;;  %v3474_v45 = vadd.f32 %v3427_v53, %v9715_v43  ;;  %v3476_v34 = vadd.f32 %v3468_v22, %v9720_v35  ;;  %v3475_v53 = vadd.f32 %v3466_v10, %v9724_v26 }
0x1607   :  { %v3429_v4 = vpop.f32.mrf.mxu0  ;;  %v3470_v56 = vpop.f32.mrf.mxu1 }
0x1608   :  { %6732 = vpow2.f32 %v5935_v33  ;;  %v5936_v41 = vmul.f32 -1.442695, %v3474_v45  ;;  %v5937_v5 = vmul.f32 -1.442695, %v3476_v34  ;;  %v12083_v34 = vld [vmem:[#allocation73_spill] sm:$0xff] }
0x1609   :  { %v3430_v44 = vpop.f32.mrf.mxu0  ;;  %v3471_v46 = vpop.f32.mrf.mxu1 }
0x160a   :  { %6734 = vpow2.f32 %v5936_v41 }
0x160b   :  { %6736 = vpow2.f32 %v5937_v5  ;;  %v12084_v5 = vld [vmem:[#allocation74_spill] sm:$0xff] }
0x1615   :  { %v6733_v12 = vpop.eup %6732 }
0x1616   :  { %v3480_v4 = vadd.f32 1.0, %v6733_v12 }
0x1617   :  { %v6735_v33 = vpop.eup %6734 }
0x1618   :  { %6738 = vrcp.f32 %v3480_v4  ;;  %v3486_v45 = vadd.f32 1.0, %v6735_v33  ;;  %v6737_v44 = vpop.eup %6736  ;;  %v12086_v4 = vld [vmem:[#allocation76_spill] sm:$0xff]  ;;  %v12087_v33 = vld [vmem:[#allocation77_spill] sm:$0xff] }
0x1619   :  { %6740 = vtanh.f32 %v3475_v53  ;;  %v3493_v0 = vadd.f32 1.0, %v6737_v44  ;;  %v12085_v53 = vld [vmem:[#allocation75_spill] sm:$0xff] }
0x161a   :  { %6742 = vrcp.f32 %v3486_v45  ;;  %v12088_v45 = vld [vmem:[#allocation78_spill] sm:$0xff]  ;;  %v12089_v44 = vld [vmem:[#allocation79_spill] sm:$0xff] }
0x161b   :  { %6744 = vrcp.f32 %v3493_v0  ;;  %v12093_v0 = vld [vmem:[#allocation83_spill] sm:$0xff] }
0x1625   :  { %v6739_v49 = vpop.eup %6738 }
0x1626   :  { %v6741_v36 = vpop.eup %6740 }
0x1627   :  { %v6743_v56 = vpop.eup %6742  ;;  %v3497_v22 = vmul.f32 %v6741_v36, %v6739_v49  ;;  %v12090_v49 = vld [vmem:[#allocation80_spill] sm:$0xff]  ;;  %v12091_v36 = vld [vmem:[#allocation81_spill] sm:$0xff] }
0x1628   :  { %v3496_v41 = vmul.f32 0.0, %v6743_v56  ;;  %v6745_v10 = vpop.eup %6744  ;;  %v12092_v56 = vld [vmem:[#allocation82_spill] sm:$0xff] }
0x162a   :  { %v9727_v7 = vadd.f32 %v3497_v22, %v3496_v41  ;;  %v12094_v41 = vld [vmem:[#allocation84_spill] sm:$0xff]  ;;  %v12095_v22 = vld [vmem:[#allocation85_spill] sm:$0xff] }
0x162c   :  { %6746 = vtanh.f32 %v9727_v7 }
0x1639   :  { %v6747_v12 = vpop.eup %6746 }
0x163a   :  { %v3500_v46 = vmul.f32 %v6747_v12, %v6745_v10  ;;  %v12096_v10 = vld [vmem:[#allocation86_spill] sm:$0xff]  ;;  %v12097_v12 = vld [vmem:[#allocation87_spill] sm:$0xff] }
0x163c   :  { %v3501_v14 = vpack.c.bf16 %v3500_v46, %v3500_v46  ;;  %v12098_v46 = vld [vmem:[#allocation97_spill] sm:$0xff] }
0x163e   :  { %3940 = vmatmul.mubr.bf16.vlgmr.msra.gmra.mxu0 %v3501_v14  ;;  %3981 = vmatmul.mubr.bf16.vlgmr.msra.gmra.mxu1 %v3501_v14 }
0x163f   :  { %4014 = vmatpush1.bf16.msra.mxu0 %v9421_v39  ;;  %4055 = vmatpush1.bf16.msra.mxu1 %v9423_v52 }
0x1640   :  { %4015 = vmatprep.subr.bf16.mxu0 %v9425_v60  ;;  %4056 = vmatprep.subr.bf16.mxu1 %v9427_v47 }
0x1641   :  { %4045 = vmatprep.mubr.bf16.mxu0 %v11649_v59  ;;  %4086 = vmatprep.mubr.bf16.mxu1 %v11649_v59 }
0x1643   :  { %4016 = vmatpush1.bf16.msra.mxu0 %v9431_v38  ;;  %4057 = vmatpush1.bf16.msra.mxu1 %v9433_v40 }
0x1644   :  { %4017 = vmatprep.subr.bf16.mxu0 %v9437_v48  ;;  %4058 = vmatprep.subr.bf16.mxu1 %v9439_v50 }
0x1647   :  { %4018 = vmatpush1.bf16.msra.mxu0 %v9445_v31  ;;  %4059 = vmatpush1.bf16.msra.mxu1 %v9447_v21 }
0x1648   :  { %4019 = vmatprep.subr.bf16.mxu0 %v9451_v18  ;;  %4060 = vmatprep.subr.bf16.mxu1 %v9453_v17 }
0x164b   :  { %4020 = vmatpush1.bf16.msra.mxu0 %v9457_v30  ;;  %4061 = vmatpush1.bf16.msra.mxu1 %v9459_v55 }
0x164c   :  { %4021 = vmatprep.subr.bf16.mxu0 %v9463_v16  ;;  %4062 = vmatprep.subr.bf16.mxu1 %v9465_v24 }
0x164f   :  { %4022 = vmatpush1.bf16.msra.mxu0 %v9469_v57  ;;  %4063 = vmatpush1.bf16.msra.mxu1 %v9471_v61 }
0x1650   :  { %4023 = vmatprep.subr.bf16.mxu0 %v9475_v63  ;;  %4064 = vmatprep.subr.bf16.mxu1 %v9477_v28 }
0x1653   :  { %4024 = vmatpush1.bf16.msra.mxu0 %v9481_v25  ;;  %4065 = vmatpush1.bf16.msra.mxu1 %v9483_v3 }
0x1654   :  { %4025 = vmatprep.subr.bf16.mxu0 %v9487_v54  ;;  %4066 = vmatprep.subr.bf16.mxu1 %v9489_v27 }
0x1657   :  { %4026 = vmatpush1.bf16.msra.mxu0 %v9493_v58  ;;  %4067 = vmatpush1.bf16.msra.mxu1 %v9495_v29 }
0x1658   :  { %4027 = vmatprep.subr.bf16.mxu0 %v9499_v23  ;;  %4068 = vmatprep.subr.bf16.mxu1 %v9501_v19 }
0x165b   :  { %4028 = vmatpush1.bf16.msra.mxu0 %v9505_v62  ;;  %4069 = vmatpush1.bf16.msra.mxu1 %v9507_v13 }
0x165c   :  { %4125 = vmatprep.subr.bf16.mxu0 %v9517_v8  ;;  %4166 = vmatprep.subr.bf16.mxu1 %v9519_v32 }
0x165e   :  { %4046 = vmatmul.mubr.bf16.vlgmr.msra.gmra.mxu0 %v3501_v14  ;;  %4087 = vmatmul.mubr.bf16.vlgmr.msra.gmra.mxu1 %v3501_v14  ;;  %v12099_v14 = vld [vmem:[#allocation98_spill] sm:$0xff] }
0x165f   :  { %4126 = vmatpush1.bf16.msra.mxu0 %v9521_v15  ;;  %4167 = vmatpush1.bf16.msra.mxu1 %v9523_v1 }
0x1660   :  { %4127 = vmatprep.subr.bf16.mxu0 %v9525_v2  ;;  %4168 = vmatprep.subr.bf16.mxu1 %v9527_v9 }
0x1663   :  { %4128 = vmatpush1.bf16.msra.mxu0 %v9533_v6  ;;  %4169 = vmatpush1.bf16.msra.mxu1 %v9535_v20 }
0x1664   :  { %4129 = vmatprep.subr.bf16.mxu0 %v9541_v11  ;;  %4170 = vmatprep.subr.bf16.mxu1 %v9543_v42 }
0x1667   :  { %4130 = vmatpush1.bf16.msra.mxu0 %v12083_v34  ;;  %4171 = vmatpush1.bf16.msra.mxu1 %v12084_v5 }
0x1668   :  { %4131 = vmatprep.subr.bf16.mxu0 %v12085_v53  ;;  %4172 = vmatprep.subr.bf16.mxu1 %v12086_v4 }
0x166b   :  { %4132 = vmatpush1.bf16.msra.mxu0 %v12087_v33  ;;  %4173 = vmatpush1.bf16.msra.mxu1 %v12088_v45 }
0x166c   :  { %4133 = vmatprep.subr.bf16.mxu0 %v12089_v44  ;;  %4174 = vmatprep.subr.bf16.mxu1 %v12090_v49  ;;  %v12100_v44 = vld [vmem:[#allocation35_spill] sm:$0xff]  ;;  %v12101_v49 = vld [vmem:[#allocation34_spill] sm:$0xff] }
0x166f   :  { %4134 = vmatpush1.bf16.msra.mxu0 %v12091_v36  ;;  %4175 = vmatpush1.bf16.msra.mxu1 %v12092_v56  ;;  %v12102_v36 = vld [vmem:[#allocation99_spill] sm:$0xff]  ;;  %v12103_v56 = vld [vmem:[#allocation100_spill] sm:$0xff] }
0x1670   :  { %4135 = vmatprep.subr.bf16.mxu0 %v12093_v0  ;;  %4176 = vmatprep.subr.bf16.mxu1 %v12094_v41  ;;  %v12104_v0 = vld [vmem:[#allocation39_spill] sm:$0xff]  ;;  %v12105_v41 = vld [vmem:[#allocation36_spill] sm:$0xff] }
0x1673   :  { %4136 = vmatpush1.bf16.msra.mxu0 %v12095_v22  ;;  %4177 = vmatpush1.bf16.msra.mxu1 %v12096_v10  ;;  %v12106_v22 = vld [vmem:[#allocation88_spill] sm:$0xff]  ;;  %v12107_v10 = vld [vmem:[#allocation89_spill] sm:$0xff] }
0x1674   :  { %4137 = vmatprep.subr.bf16.mxu0 %v12097_v12  ;;  %4178 = vmatprep.subr.bf16.mxu1 %v12098_v46  ;;  %v12108_v12 = vld [vmem:[#allocation90_spill] sm:$0xff]  ;;  %v12109_v46 = vld [vmem:[#allocation91_spill] sm:$0xff] }
0x1677   :  { %4138 = vmatpush1.bf16.msra.mxu0 %v12099_v14  ;;  %4179 = vmatpush1.bf16.msra.mxu1 %v12100_v44  ;;  %v12110_v14 = vld [vmem:[#allocation92_spill] sm:$0xff]  ;;  %v12111_v44 = vld [vmem:[#allocation29_spill] sm:$0xff] }
0x1678   :  { %4139 = vmatprep.subr.bf16.mxu0 %v12101_v49  ;;  %4180 = vmatprep.subr.bf16.mxu1 %v12102_v36  ;;  %v12112_v49 = vld [vmem:[#allocation28_spill] sm:$0xff]  ;;  %v12113_v36 = vld [vmem:[#allocation93_spill] sm:$0xff] }
0x167b   :  { %4140 = vmatpush1.bf16.msra.mxu0 %v12103_v56  ;;  %4181 = vmatpush1.bf16.msra.mxu1 %v12104_v0  ;;  %v12114_v56 = vld [vmem:[#allocation94_spill] sm:$0xff]  ;;  %v12115_v0 = vld [vmem:[#allocation31_spill] sm:$0xff] }
0x167c   :  { %4141 = vmatprep.subr.bf16.mxu0 %v12105_v41  ;;  %4182 = vmatprep.subr.bf16.mxu1 %v12106_v22  ;;  %v12116_v41 = vld [vmem:[#allocation30_spill] sm:$0xff]  ;;  %v12117_v22 = vld [vmem:[#allocation95_spill] sm:$0xff] }
0x167f   :  { %4142 = vmatpush2.bf16.msra.mxu0 %v12107_v10  ;;  %4183 = vmatpush2.bf16.msra.mxu1 %v12108_v12  ;;  %v12118_v10 = vld [vmem:[#allocation96_spill] sm:$0xff]  ;;  %v12119_v12 = vld [vmem:[#allocation33_spill] sm:$0xff] }
0x1680   :  { %4143 = vmatprep.subr.bf16.mxu0 %v12109_v46  ;;  %4184 = vmatprep.subr.bf16.mxu1 %v12110_v14  ;;  %v12120_v46 = vld [vmem:[#allocation32_spill] sm:$0xff]  ;;  %v12121_v14 = vld [vmem:[#allocation41_spill] sm:$0xff] }
0x1683   :  { %4144 = vmatpush2.bf16.msra.mxu0 %v12111_v44  ;;  %4185 = vmatpush2.bf16.msra.mxu1 %v12112_v49  ;;  %v12122_v44 = vld [vmem:[#allocation26_spill] sm:$0xff]  ;;  %v12123_v49 = vld [vmem:[#allocation25_spill] sm:$0xff] }
0x1684   :  { %4145 = vmatprep.subr.bf16.mxu0 %v12113_v36  ;;  %4186 = vmatprep.subr.bf16.mxu1 %v12114_v56  ;;  %v12124_v36 = vld [vmem:[#allocation44_spill] sm:$0xff] }
0x1685   :  { %v12125_v56 = vld [vmem:[#allocation64_spill] sm:$0xff] }
0x1687   :  { %4146 = vmatpush2.bf16.msra.mxu0 %v12115_v0  ;;  %4187 = vmatpush2.bf16.msra.mxu1 %v12116_v41  ;;  %v12126_v0 = vld [vmem:[#allocation45_spill] sm:$0xff]  ;;  %v12127_v41 = vld [vmem:[#allocation46_spill] sm:$0xff] }
0x1688   :  { %4147 = vmatprep.subr.bf16.mxu0 %v12117_v22  ;;  %4188 = vmatprep.subr.bf16.mxu1 %v12118_v10  ;;  %v12128_v22 = vld [vmem:[#allocation47_spill] sm:$0xff]  ;;  %v12129_v10 = vld [vmem:[#allocation48_spill] sm:$0xff] }
0x168b   :  { %4148 = vmatpush2.bf16.msra.mxu0 %v12119_v12  ;;  %4189 = vmatpush2.bf16.msra.mxu1 %v12120_v46  ;;  %v12130_v12 = vld [vmem:[#allocation49_spill] sm:$0xff]  ;;  %v12131_v46 = vld [vmem:[#allocation50_spill] sm:$0xff] }
0x168c   :  { %4149 = vmatprep.subr.bf16.mxu0 %v12121_v14  ;;  %4190 = vmatprep.subr.bf16.mxu1 %v12122_v44  ;;  %v12132_v14 = vld [vmem:[#allocation51_spill] sm:$0xff]  ;;  %v12133_v44 = vld [vmem:[#allocation52_spill] sm:$0xff] }
0x168f   :  { %4150 = vmatpush2.bf16.msra.mxu0 %v12123_v49  ;;  %4191 = vmatpush2.bf16.msra.mxu1 %v12124_v36  ;;  %v12134_v49 = vld [vmem:[#allocation53_spill] sm:$0xff]  ;;  %v12135_v36 = vld [vmem:[#allocation54_spill] sm:$0xff] }
0x1690   :  { %4151 = vmatprep.subr.bf16.mxu0 %v12125_v56  ;;  %4192 = vmatprep.subr.bf16.mxu1 %v12126_v0  ;;  %v12136_v56 = vld [vmem:[#allocation55_spill] sm:$0xff]  ;;  %v12137_v0 = vld [vmem:[#allocation69_spill] sm:$0xff] }
0x1693   :  { %4152 = vmatpush2.bf16.msra.mxu0 %v12127_v41  ;;  %4193 = vmatpush2.bf16.msra.mxu1 %v12128_v22  ;;  %v12138_v41 = vld [vmem:[#allocation70_spill] sm:$0xff] }
0x1694   :  { %4153 = vmatprep.subr.bf16.mxu0 %v12129_v10  ;;  %4194 = vmatprep.subr.bf16.mxu1 %v12130_v12  ;;  %v168_v22 = vld [vmem:[#allocation14] sm:$0xf]  ;;  %v12141_v12 = vld [vmem:[#allocation37_spill] sm:$0xff] }
0x1695   :  { %v12139_v10 = vld [vmem:[#allocation38_spill] sm:$0xff]  ;;  %v9841_v42 = vrot.slane %v168_v22, %v12082_v51 }
0x1696   :  { %v9829_v45 = vrot.slane %v168_v22, %v12139_v10  ;;  %v9837_v10 = vrot.slane %v168_v22, %v12081_v37 }
0x1697   :  { %4154 = vmatpush2.bf16.msra.mxu0 %v12131_v46  ;;  %4195 = vmatpush2.bf16.msra.mxu1 %v12132_v14  ;;  %v9832_v46 = vrot.slane %v168_v22, %v12141_v12  ;;  %12144 = vst [vmem:[#allocation60_spill] sm:$0xff] %v9841_v42 }
0x1698   :  { %4155 = vmatprep.subr.bf16.mxu0 %v12133_v44  ;;  %4196 = vmatprep.subr.bf16.mxu1 %v12134_v49  ;;  %12140 = vst [vmem:[#allocation57_spill] sm:$0xff] %v9829_v45  ;;  %12143 = vst [vmem:[#allocation59_spill] sm:$0xff] %v9837_v10 }
0x1699   :  { %12142 = vst [vmem:[#allocation58_spill] sm:$0xff] %v9832_v46 }
0x169b   :  { %4156 = vmatpush2.bf16.msra.mxu0 %v12135_v36  ;;  %4197 = vmatpush2.bf16.msra.mxu1 %v12136_v56 }
0x169c   :  { %4231 = vmatprep.subr.bf16.mxu0 %v12137_v0  ;;  %4272 = vmatprep.subr.bf16.mxu1 %v12138_v41 }
0x16fe   :  { %v3941_v14 = vpop.f32.mrf.mxu0  ;;  %v3982_v33 = vpop.f32.mrf.mxu1 }
0x16ff   :  { %v3942_v44 = vadd.f32 %v3941_v14, %v9829_v45 }
0x1700   :  { %v3943_v49 = vpop.f32.mrf.mxu0  ;;  %v3984_v4 = vpop.f32.mrf.mxu1 }
0x1701   :  { %v6002_v36 = vmul.f32 -1.442695, %v3942_v44  ;;  %v3944_v56 = vadd.f32 %v3943_v49, %v9832_v46  ;;  %v3985_v12 = vadd.f32 %v3984_v4, %v9837_v10  ;;  %v3983_v44 = vadd.f32 %v3982_v33, %v9841_v42 }
0x1702   :  { %v3945_v53 = vpop.f32.mrf.mxu0  ;;  %v3986_v0 = vpop.f32.mrf.mxu1 }
0x1703   :  { %6748 = vpow2.f32 %v6002_v36  ;;  %v6003_v41 = vmul.f32 -1.442695, %v3944_v56  ;;  %v6004_v14 = vmul.f32 -1.442695, %v3985_v12  ;;  %v12145_v56 = vld [vmem:[#allocation56_spill] sm:$0xff] }
0x1704   :  { %v3946_v5 = vpop.f32.mrf.mxu0  ;;  %v3987_v34 = vpop.f32.mrf.mxu1 }
0x1705   :  { %6750 = vpow2.f32 %v6003_v41 }
0x1706   :  { %6752 = vpow2.f32 %v6004_v14 }
0x1710   :  { %v6749_v45 = vpop.eup %6748 }
0x1711   :  { %v3992_v49 = vadd.f32 1.0, %v6749_v45 }
0x1712   :  { %v6751_v53 = vpop.eup %6750 }
0x1713   :  { %6754 = vrcp.f32 %v3992_v49  ;;  %v3998_v36 = vadd.f32 1.0, %v6751_v53  ;;  %v6753_v37 = vpop.eup %6752 }
0x1714   :  { %6756 = vtanh.f32 %v3983_v44  ;;  %v4005_v45 = vadd.f32 1.0, %v6753_v37 }
0x1715   :  { %6758 = vrcp.f32 %v3998_v36 }
0x171e   :  { %v4047_v34 = vpop.f32.mrf.mxu0  ;;  %v4088_v5 = vpop.f32.mrf.mxu1 }
0x171f   :  { %v4095_v0 = vadd.f32 %v4047_v34, %v12145_v56  ;;  %v4097_v37 = vadd.f32 %v4088_v5, %v9724_v26 }
0x1720   :  { %v6755_v4 = vpop.eup %6754  ;;  %v4049_v41 = vpop.f32.mrf.mxu0 }
0x1721   :  { %v4090_v51 = vpop.f32.mrf.mxu1  ;;  %v6757_v22 = vpop.eup %6756  ;;  %v6005_v12 = vmul.f32 -1.442695, %v4095_v0  ;;  %v4096_v10 = vadd.f32 %v4049_v41, %v9715_v43 }
0x1722   :  { %v6759_v33 = vpop.eup %6758  ;;  %v4051_v42 = vpop.f32.mrf.mxu0  ;;  %v4009_v53 = vmul.f32 %v6757_v22, %v6755_v4  ;;  %v4098_v34 = vadd.f32 %v4090_v51, %v9720_v35 }
0x1723   :  { %v4092_v14 = vpop.f32.mrf.mxu1  ;;  %v4008_v49 = vmul.f32 0.0, %v6759_v33  ;;  %6760 = vpow2.f32 %v6005_v12  ;;  %v6006_v44 = vmul.f32 -1.442695, %v4096_v10 }
0x1724   :  { %v4052_v36 = vpop.f32.mrf.mxu0  ;;  %v6007_v0 = vmul.f32 -1.442695, %v4098_v34 }
0x1725   :  { %v4093_v46 = vpop.f32.mrf.mxu1  ;;  %v9846_v11 = vadd.f32 %v4009_v53, %v4008_v49  ;;  %6762 = vpow2.f32 %v6006_v44 }
0x1726   :  { %6764 = vrcp.f32 %v4005_v45 }
0x1727   :  { %6766 = vtanh.f32 %v9846_v11 }
0x1728   :  { %6768 = vpow2.f32 %v6007_v0 }
0x1730   :  { %v6761_v41 = vpop.eup %6760 }
0x1731   :  { %v4102_v42 = vadd.f32 1.0, %v6761_v41 }
0x1732   :  { %v6763_v14 = vpop.eup %6762 }
0x1733   :  { %v6765_v4 = vpop.eup %6764  ;;  %6770 = vrcp.f32 %v4102_v42  ;;  %v4108_v10 = vadd.f32 1.0, %v6763_v14  ;;  %v12186_v42 = vld [vmem:[#allocation32_spill] sm:$0xff]  ;;  %v12187_v14 = vld [vmem:[#allocation41_spill] sm:$0xff] }
0x1734   :  { %v6767_v22 = vpop.eup %6766  ;;  %6772 = vtanh.f32 %v4097_v37 }
0x1735   :  { %6774 = vrcp.f32 %v4108_v10  ;;  %v9851_v46 = vmul.f32 %v6767_v22, %v6765_v4  ;;  %v6769_v51 = vpop.eup %6768  ;;  %v12188_v4 = vld [vmem:[#allocation26_spill] sm:$0xff]  ;;  %v12189_v10 = vld [vmem:[#allocation25_spill] sm:$0xff]  ;;  %v12190_v22 = vld [vmem:[#allocation44_spill] sm:$0xff] }
0x1736   :  { %v4115_v49 = vadd.f32 1.0, %v6769_v51  ;;  %v12192_v51 = vld [vmem:[#allocation45_spill] sm:$0xff] }
0x1737   :  { %12146 = vst [vmem:[#allocation61_spill] sm:$0xff] %v9851_v46  ;;  %v4124_v12 = vpack.c.bf16 %v9851_v46, %v9851_v46  ;;  %v10139_v46 = vld [vmem:[#allocation13 + $0x44] ss:$16 sps:$4 sm:$0xff]  }
0x1738   :  { %6776 = vrcp.f32 %v4115_v49  ;;  %v12196_v49 = vld [vmem:[#allocation49_spill] sm:$0xff]  ;;  %12224 = vst [vmem:[#allocation23_spill] sm:$0xff] %v10139_v46 }
0x1739   :  { %4157 = vmatprep.mubr.bf16.mxu0 %v4124_v12  ;;  %4198 = vmatprep.mubr.bf16.mxu1 %v4124_v12  ;;  %v12191_v12 = vld [vmem:[#allocation64_spill] sm:$0xff] }
0x1740   :  { %v6771_v33 = vpop.eup %6770 }
0x1741   :  { %v6773_v45 = vpop.eup %6772 }
0x1742   :  { %v6775_v5 = vpop.eup %6774  ;;  %v4119_v53 = vmul.f32 %v6773_v45, %v6771_v33  ;;  %v12193_v33 = vld [vmem:[#allocation46_spill] sm:$0xff]  ;;  %v12194_v45 = vld [vmem:[#allocation47_spill] sm:$0xff] }
0x1743   :  { %v4118_v44 = vmul.f32 %v6775_v5, %v9727_v7  ;;  %v12185_v7 = vld [vmem:[#allocation33_spill] sm:$0xff]  ;;  %v12195_v5 = vld [vmem:[#allocation48_spill] sm:$0xff] }
0x1745   :  { %v9856_v36 = vadd.f32 %v4119_v53, %v4118_v44  ;;  %v6777_v34 = vpop.eup %6776  ;;  %v12197_v53 = vld [vmem:[#allocation50_spill] sm:$0xff]  ;;  %v12198_v44 = vld [vmem:[#allocation51_spill] sm:$0xff] }
0x1747   :  { %6778 = vtanh.f32 %v9856_v36 }
0x1754   :  { %v6779_v0 = vpop.eup %6778 }
0x1755   :  { %v4122_v41 = vmul.f32 %v6779_v0, %v6777_v34  ;;  %v12199_v34 = vld [vmem:[#allocation52_spill] sm:$0xff]  ;;  %v12200_v0 = vld [vmem:[#allocation53_spill] sm:$0xff] }
0x1757   :  { %v4123_v37 = vpack.c.bf16 %v4122_v41, %v4122_v41  ;;  %v12201_v41 = vld [vmem:[#allocation54_spill] sm:$0xff] }
0x1759   :  { %4158 = vmatmul.mubr.bf16.vlgmr.msra.gmra.mxu0 %v4123_v37  ;;  %4199 = vmatmul.mubr.bf16.vlgmr.msra.gmra.mxu1 %v4123_v37 }
0x175a   :  { %4232 = vmatpush1.bf16.msra.mxu0 %v9421_v39  ;;  %4273 = vmatpush1.bf16.msra.mxu1 %v9423_v52  ;;  %v12147_v39 = vld [vmem:[#allocation71_spill] sm:$0xff]  ;;  %v12148_v52 = vld [vmem:[#allocation72_spill] sm:$0xff] }
0x175b   :  { %4233 = vmatprep.subr.bf16.mxu0 %v9425_v60  ;;  %4274 = vmatprep.subr.bf16.mxu1 %v9427_v47  ;;  %v12149_v60 = vld [vmem:[#allocation73_spill] sm:$0xff]  ;;  %v12150_v47 = vld [vmem:[#allocation74_spill] sm:$0xff] }
0x175c   :  { %4263 = vmatprep.mubr.bf16.mxu0 %v11649_v59  ;;  %4304 = vmatprep.mubr.bf16.mxu1 %v11649_v59 }
0x175e   :  { %4234 = vmatpush1.bf16.msra.mxu0 %v9431_v38  ;;  %4275 = vmatpush1.bf16.msra.mxu1 %v9433_v40  ;;  %v12151_v38 = vld [vmem:[#allocation75_spill] sm:$0xff]  ;;  %v12152_v40 = vld [vmem:[#allocation76_spill] sm:$0xff] }
0x175f   :  { %4235 = vmatprep.subr.bf16.mxu0 %v9437_v48  ;;  %4276 = vmatprep.subr.bf16.mxu1 %v9439_v50  ;;  %v12153_v48 = vld [vmem:[#allocation77_spill] sm:$0xff]  ;;  %v12154_v50 = vld [vmem:[#allocation78_spill] sm:$0xff] }
0x1762   :  { %4236 = vmatpush1.bf16.msra.mxu0 %v9445_v31  ;;  %4277 = vmatpush1.bf16.msra.mxu1 %v9447_v21  ;;  %v12155_v31 = vld [vmem:[#allocation79_spill] sm:$0xff]  ;;  %v12156_v21 = vld [vmem:[#allocation80_spill] sm:$0xff] }
0x1763   :  { %4237 = vmatprep.subr.bf16.mxu0 %v9451_v18  ;;  %4278 = vmatprep.subr.bf16.mxu1 %v9453_v17  ;;  %v12157_v18 = vld [vmem:[#allocation81_spill] sm:$0xff]  ;;  %v12158_v17 = vld [vmem:[#allocation82_spill] sm:$0xff] }
0x1766   :  { %4238 = vmatpush1.bf16.msra.mxu0 %v9457_v30  ;;  %4279 = vmatpush1.bf16.msra.mxu1 %v9459_v55  ;;  %v12159_v30 = vld [vmem:[#allocation83_spill] sm:$0xff]  ;;  %v12160_v55 = vld [vmem:[#allocation84_spill] sm:$0xff] }
0x1767   :  { %4239 = vmatprep.subr.bf16.mxu0 %v9463_v16  ;;  %4280 = vmatprep.subr.bf16.mxu1 %v9465_v24  ;;  %v12161_v16 = vld [vmem:[#allocation85_spill] sm:$0xff]  ;;  %v12162_v24 = vld [vmem:[#allocation86_spill] sm:$0xff] }
0x176a   :  { %4240 = vmatpush1.bf16.msra.mxu0 %v9469_v57  ;;  %4281 = vmatpush1.bf16.msra.mxu1 %v9471_v61  ;;  %v12163_v57 = vld [vmem:[#allocation87_spill] sm:$0xff]  ;;  %v12164_v61 = vld [vmem:[#allocation97_spill] sm:$0xff] }
0x176b   :  { %4241 = vmatprep.subr.bf16.mxu0 %v9475_v63  ;;  %4282 = vmatprep.subr.bf16.mxu1 %v9477_v28  ;;  %v12165_v63 = vld [vmem:[#allocation98_spill] sm:$0xff]  ;;  %v12166_v28 = vld [vmem:[#allocation35_spill] sm:$0xff] }
0x176e   :  { %4242 = vmatpush1.bf16.msra.mxu0 %v9481_v25  ;;  %4283 = vmatpush1.bf16.msra.mxu1 %v9483_v3  ;;  %v12167_v25 = vld [vmem:[#allocation34_spill] sm:$0xff]  ;;  %v12168_v3 = vld [vmem:[#allocation99_spill] sm:$0xff] }
0x176f   :  { %4243 = vmatprep.subr.bf16.mxu0 %v9487_v54  ;;  %4284 = vmatprep.subr.bf16.mxu1 %v9489_v27  ;;  %v12169_v54 = vld [vmem:[#allocation100_spill] sm:$0xff]  ;;  %v12170_v27 = vld [vmem:[#allocation39_spill] sm:$0xff] }
0x1772   :  { %4244 = vmatpush1.bf16.msra.mxu0 %v9493_v58  ;;  %4285 = vmatpush1.bf16.msra.mxu1 %v9495_v29  ;;  %v12171_v58 = vld [vmem:[#allocation36_spill] sm:$0xff] }
0x1773   :  { %4245 = vmatprep.subr.bf16.mxu0 %v9499_v23  ;;  %4286 = vmatprep.subr.bf16.mxu1 %v9501_v19  ;;  %v12172_v29 = vld [vmem:[#allocation88_spill] sm:$0xff]  ;;  %v12173_v23 = vld [vmem:[#allocation89_spill] sm:$0xff]  ;;  %v12174_v19 = vld [vmem:[#allocation90_spill] sm:$0xff] }
0x1776   :  { %4246 = vmatpush1.bf16.msra.mxu0 %v9505_v62  ;;  %4287 = vmatpush1.bf16.msra.mxu1 %v9507_v13  ;;  %v12175_v62 = vld [vmem:[#allocation91_spill] sm:$0xff]  ;;  %v12176_v13 = vld [vmem:[#allocation92_spill] sm:$0xff] }
0x1777   :  { %4343 = vmatprep.subr.bf16.mxu0 %v9517_v8  ;;  %4384 = vmatprep.subr.bf16.mxu1 %v9519_v32  ;;  %v12177_v8 = vld [vmem:[#allocation29_spill] sm:$0xff]  ;;  %v12178_v32 = vld [vmem:[#allocation28_spill] sm:$0xff] }
0x1779   :  { %4264 = vmatmul.mubr.bf16.vlgmr.msra.gmra.mxu0 %v4123_v37  ;;  %4305 = vmatmul.mubr.bf16.vlgmr.msra.gmra.mxu1 %v4123_v37  ;;  %v12202_v37 = vld [vmem:[#allocation55_spill] sm:$0xff] }
0x177a   :  { %4344 = vmatpush1.bf16.msra.mxu0 %v9521_v15  ;;  %4385 = vmatpush1.bf16.msra.mxu1 %v9523_v1  ;;  %v12179_v15 = vld [vmem:[#allocation93_spill] sm:$0xff]  ;;  %v12180_v1 = vld [vmem:[#allocation94_spill] sm:$0xff] }
0x177b   :  { %4345 = vmatprep.subr.bf16.mxu0 %v9525_v2  ;;  %4386 = vmatprep.subr.bf16.mxu1 %v9527_v9  ;;  %v12181_v2 = vld [vmem:[#allocation31_spill] sm:$0xff]  ;;  %v12182_v9 = vld [vmem:[#allocation30_spill] sm:$0xff] }
0x177e   :  { %4346 = vmatpush1.bf16.msra.mxu0 %v9533_v6  ;;  %4387 = vmatpush1.bf16.msra.mxu1 %v9535_v20  ;;  %v12183_v6 = vld [vmem:[#allocation95_spill] sm:$0xff]  ;;  %v12184_v20 = vld [vmem:[#allocation96_spill] sm:$0xff] }
0x177f   :  { %4347 = vmatprep.subr.bf16.mxu0 %v12147_v39  ;;  %4388 = vmatprep.subr.bf16.mxu1 %v12148_v52  ;;  %v9955_v39 = vld [vmem:[#allocation10 + $0xe4] ss:$16 sps:$4 sm:$0xff]   ;;  %v9958_v52 = vld [vmem:[#allocation10 + $0xec] ss:$16 sps:$4 sm:$0xff]  }
0x1780   :  { %12203 = vst [vmem:[#allocation62_spill] sm:$0xff] %v9955_v39  ;;  %12204 = vst [vmem:[#allocation65_spill] sm:$0xff] %v9958_v52 }
0x1782   :  { %4348 = vmatpush1.bf16.msra.mxu0 %v12149_v60  ;;  %4389 = vmatpush1.bf16.msra.mxu1 %v12150_v47 }
0x1783   :  { %4349 = vmatprep.subr.bf16.mxu0 %v12151_v38  ;;  %4390 = vmatprep.subr.bf16.mxu1 %v12152_v40  ;;  %v12205_v38 = vld [vmem:[#allocation57_spill] sm:$0xff] }
0x1786   :  { %4350 = vmatpush1.bf16.msra.mxu0 %v12153_v48  ;;  %4391 = vmatpush1.bf16.msra.mxu1 %v12154_v50 }
0x1787   :  { %4351 = vmatprep.subr.bf16.mxu0 %v12155_v31  ;;  %4392 = vmatprep.subr.bf16.mxu1 %v12156_v21  ;;  %v12206_v21 = vld [vmem:[#allocation58_spill] sm:$0xff] }
0x178a   :  { %4352 = vmatpush1.bf16.msra.mxu0 %v12157_v18  ;;  %4393 = vmatpush1.bf16.msra.mxu1 %v12158_v17 }
0x178b   :  { %4353 = vmatprep.subr.bf16.mxu0 %v12159_v30  ;;  %4394 = vmatprep.subr.bf16.mxu1 %v12160_v55 }
0x178e   :  { %4354 = vmatpush1.bf16.msra.mxu0 %v12161_v16  ;;  %4395 = vmatpush1.bf16.msra.mxu1 %v12162_v24 }
0x178f   :  { %4355 = vmatprep.subr.bf16.mxu0 %v12163_v57  ;;  %4396 = vmatprep.subr.bf16.mxu1 %v12164_v61  ;;  %v12207_v57 = vld [vmem:[#allocation59_spill] sm:$0xff] }
0x1792   :  { %4356 = vmatpush1.bf16.msra.mxu0 %v12165_v63  ;;  %4397 = vmatpush1.bf16.msra.mxu1 %v12166_v28 }
0x1793   :  { %4357 = vmatprep.subr.bf16.mxu0 %v12167_v25  ;;  %4398 = vmatprep.subr.bf16.mxu1 %v12168_v3  ;;  %v12208_v25 = vld [vmem:[#allocation60_spill] sm:$0xff] }
0x1796   :  { %4358 = vmatpush1.bf16.msra.mxu0 %v12169_v54  ;;  %4399 = vmatpush1.bf16.msra.mxu1 %v12170_v27 }
0x1797   :  { %4359 = vmatprep.subr.bf16.mxu0 %v12171_v58  ;;  %4400 = vmatprep.subr.bf16.mxu1 %v12172_v29 }
0x179a   :  { %4360 = vmatpush2.bf16.msra.mxu0 %v12173_v23  ;;  %4401 = vmatpush2.bf16.msra.mxu1 %v12174_v19 }
0x179b   :  { %4361 = vmatprep.subr.bf16.mxu0 %v12175_v62  ;;  %4402 = vmatprep.subr.bf16.mxu1 %v12176_v13 }
0x179e   :  { %4362 = vmatpush2.bf16.msra.mxu0 %v12177_v8  ;;  %4403 = vmatpush2.bf16.msra.mxu1 %v12178_v32 }
0x179f   :  { %4363 = vmatprep.subr.bf16.mxu0 %v12179_v15  ;;  %4404 = vmatprep.subr.bf16.mxu1 %v12180_v1 }
0x17a2   :  { %4364 = vmatpush2.bf16.msra.mxu0 %v12181_v2  ;;  %4405 = vmatpush2.bf16.msra.mxu1 %v12182_v9 }
0x17a3   :  { %4365 = vmatprep.subr.bf16.mxu0 %v12183_v6  ;;  %4406 = vmatprep.subr.bf16.mxu1 %v12184_v20 }
0x17a6   :  { %4366 = vmatpush2.bf16.msra.mxu0 %v12185_v7  ;;  %4407 = vmatpush2.bf16.msra.mxu1 %v12186_v42 }
0x17a7   :  { %4367 = vmatprep.subr.bf16.mxu0 %v12187_v14  ;;  %4408 = vmatprep.subr.bf16.mxu1 %v12188_v4 }
0x17aa   :  { %4368 = vmatpush2.bf16.msra.mxu0 %v12189_v10  ;;  %4409 = vmatpush2.bf16.msra.mxu1 %v12190_v22 }
0x17ab   :  { %4369 = vmatprep.subr.bf16.mxu0 %v12191_v12  ;;  %4410 = vmatprep.subr.bf16.mxu1 %v12192_v51 }
0x17ae   :  { %4370 = vmatpush2.bf16.msra.mxu0 %v12193_v33  ;;  %4411 = vmatpush2.bf16.msra.mxu1 %v12194_v45 }
0x17af   :  { %4371 = vmatprep.subr.bf16.mxu0 %v12195_v5  ;;  %4412 = vmatprep.subr.bf16.mxu1 %v12196_v49 }
0x17b2   :  { %4372 = vmatpush2.bf16.msra.mxu0 %v12197_v53  ;;  %4413 = vmatpush2.bf16.msra.mxu1 %v12198_v44 }
0x17b3   :  { %4373 = vmatprep.subr.bf16.mxu0 %v12199_v34  ;;  %4414 = vmatprep.subr.bf16.mxu1 %v12200_v0 }
0x17b6   :  { %4374 = vmatpush2.bf16.msra.mxu0 %v12201_v41  ;;  %4415 = vmatpush2.bf16.msra.mxu1 %v12202_v37 }
0x17b7   :  { %4449 = vmatprep.subr.bf16.mxu0 %v9955_v39  ;;  %4490 = vmatprep.subr.bf16.mxu1 %v9958_v52 }
0x1819   :  { %v4159_v60 = vpop.f32.mrf.mxu0  ;;  %v4200_v47 = vpop.f32.mrf.mxu1 }
0x181a   :  { %v4160_v40 = vadd.f32 %v4159_v60, %v12205_v38  ;;  %v4201_v3 = vadd.f32 %v4200_v47, %v12208_v25 }
0x181b   :  { %v4161_v48 = vpop.f32.mrf.mxu0  ;;  %v4202_v50 = vpop.f32.mrf.mxu1 }
0x181c   :  { %v6008_v31 = vmul.f32 -1.442695, %v4160_v40  ;;  %v4162_v18 = vadd.f32 %v4161_v48, %v12206_v21  ;;  %v4203_v61 = vadd.f32 %v4202_v50, %v12207_v57 }
0x181d   :  { %v4163_v17 = vpop.f32.mrf.mxu0  ;;  %v4204_v30 = vpop.f32.mrf.mxu1 }
0x181e   :  { %6780 = vpow2.f32 %v6008_v31  ;;  %v6009_v55 = vmul.f32 -1.442695, %v4162_v18  ;;  %v6010_v63 = vmul.f32 -1.442695, %v4203_v61  ;;  %v9988_v61 = vld [vmem:[#allocation10 + $0xe8] ss:$16 sps:$4 sm:$0xff]  }
0x181f   :  { %v4164_v16 = vpop.f32.mrf.mxu0  ;;  %v4205_v24 = vpop.f32.mrf.mxu1 }
0x1820   :  { %6782 = vpow2.f32 %v6009_v55  ;;  %v9985_v24 = vld [vmem:[#allocation10 + $0xe0] ss:$16 sps:$4 sm:$0xff]  }
0x1821   :  { %6784 = vpow2.f32 %v6010_v63  ;;  %v9994_v63 = vld [vmem:[#allocation10 + $0xcc] ss:$16 sps:$4 sm:$0xff]  }
0x182b   :  { %v6781_v28 = vpop.eup %6780 }
0x182c   :  { %v4210_v54 = vadd.f32 1.0, %v6781_v28  ;;  %v9999_v28 = vld [vmem:[#allocation10 + $0xc0] ss:$16 sps:$4 sm:$0xff]  }
0x182d   :  { %v6783_v27 = vpop.eup %6782 }
0x182e   :  { %6786 = vrcp.f32 %v4210_v54  ;;  %v4216_v58 = vadd.f32 1.0, %v6783_v27  ;;  %v6785_v19 = vpop.eup %6784  ;;  %v10005_v54 = vld [vmem:[#allocation10 + $0xa4] ss:$16 sps:$4 sm:$0xff]   ;;  %v10008_v27 = vld [vmem:[#allocation10 + $0xac] ss:$16 sps:$4 sm:$0xff]  }
0x182f   :  { %6788 = vtanh.f32 %v4201_v3  ;;  %v4223_v6 = vadd.f32 1.0, %v6785_v19  ;;  %v10002_v3 = vld [vmem:[#allocation10 + $0xc8] ss:$16 sps:$4 sm:$0xff]   ;;  %v10020_v19 = vld [vmem:[#allocation10 + $0x8c] ss:$16 sps:$4 sm:$0xff]  }
0x1830   :  { %6790 = vrcp.f32 %v4216_v58  ;;  %v10011_v58 = vld [vmem:[#allocation10 + $0xa0] ss:$16 sps:$4 sm:$0xff]  }
0x1839   :  { %v4265_v29 = vpop.f32.mrf.mxu0  ;;  %v4306_v23 = vpop.f32.mrf.mxu1 }
0x183a   :  { %v4313_v62 = vadd.f32 %v4265_v29, %v12145_v56  ;;  %v4315_v5 = vadd.f32 %v4306_v23, %v9724_v26  ;;  %v10014_v29 = vld [vmem:[#allocation10 + $0xa8] ss:$16 sps:$4 sm:$0xff]   ;;  %v10017_v23 = vld [vmem:[#allocation10 + $0x84] ss:$16 sps:$4 sm:$0xff]  }
0x183b   :  { %v6787_v13 = vpop.eup %6786  ;;  %v4267_v8 = vpop.f32.mrf.mxu0 }
0x183c   :  { %v4308_v32 = vpop.f32.mrf.mxu1  ;;  %v6789_v15 = vpop.eup %6788  ;;  %v6011_v1 = vmul.f32 -1.442695, %v4313_v62  ;;  %v4314_v2 = vadd.f32 %v4267_v8, %v9715_v43  ;;  %v10023_v62 = vld [vmem:[#allocation10 + $0x80] ss:$16 sps:$4 sm:$0xff]   ;;  %v10029_v8 = vld [vmem:[#allocation10 + $0x64] ss:$16 sps:$4 sm:$0xff]  }
0x183d   :  { %v6791_v9 = vpop.eup %6790  ;;  %v4269_v20 = vpop.f32.mrf.mxu0  ;;  %v4227_v42 = vmul.f32 %v6789_v15, %v6787_v13  ;;  %v4316_v51 = vadd.f32 %v4308_v32, %v9720_v35  ;;  %v10026_v13 = vld [vmem:[#allocation10 + $0x88] ss:$16 sps:$4 sm:$0xff]   ;;  %v10032_v32 = vld [vmem:[#allocation10 + $0x6c] ss:$16 sps:$4 sm:$0xff]   ;;  %v10035_v15 = vld [vmem:[#allocation10 + $0x60] ss:$16 sps:$4 sm:$0xff]  }
0x183e   :  { %v4310_v7 = vpop.f32.mrf.mxu1  ;;  %v4226_v14 = vmul.f32 %v6791_v9, %v9846_v11  ;;  %6792 = vpow2.f32 %v6011_v1  ;;  %v6012_v4 = vmul.f32 -1.442695, %v4314_v2  ;;  %v10038_v1 = vld [vmem:[#allocation10 + $0x68] ss:$16 sps:$4 sm:$0xff]   ;;  %v10041_v2 = vld [vmem:[#allocation10 + $0x44] ss:$16 sps:$4 sm:$0xff]  }
0x183f   :  { %v4270_v10 = vpop.f32.mrf.mxu0  ;;  %v6013_v33 = vmul.f32 -1.442695, %v4316_v51  ;;  %v10044_v9 = vld [vmem:[#allocation10 + $0x4c] ss:$16 sps:$4 sm:$0xff]   ;;  %v10050_v20 = vld [vmem:[#allocation10 + $0x48] ss:$16 sps:$4 sm:$0xff]  }
0x1840   :  { %v4311_v22 = vpop.f32.mrf.mxu1  ;;  %v9968_v12 = vadd.f32 %v4227_v42, %v4226_v14  ;;  %6794 = vpow2.f32 %v6012_v4  ;;  %v10053_v7 = vld [vmem:[#allocation10 + $0x24] ss:$16 sps:$4 sm:$0xff]   ;;  %v10056_v42 = vld [vmem:[#allocation10 + $0x2c] ss:$16 sps:$4 sm:$0xff]   ;;  %v10059_v14 = vld [vmem:[#allocation10 + $0x20] ss:$16 sps:$4 sm:$0xff]  }
0x1841   :  { %6796 = vrcp.f32 %v4223_v6  ;;  %v10047_v6 = vld [vmem:[#allocation10 + $0x40] ss:$16 sps:$4 sm:$0xff]   ;;  %v10062_v4 = vld [vmem:[#allocation10 + $0x28] ss:$16 sps:$4 sm:$0xff]   ;;  %v10065_v10 = vld [vmem:[#allocation10 + $0x4] ss:$16 sps:$4 sm:$0xff]  }
0x1842   :  { %6798 = vtanh.f32 %v9968_v12  ;;  %v10068_v22 = vld [vmem:[#allocation10 + $0xc] ss:$16 sps:$4 sm:$0xff]   ;;  %v10071_v51 = vld [vmem:[#allocation10] ss:$16 sps:$4 sm:$0xff]  }
0x1843   :  { %6800 = vpow2.f32 %v6013_v33  ;;  %v10074_v33 = vld [vmem:[#allocation10 + $0x8] ss:$16 sps:$4 sm:$0xff]  }
0x184b   :  { %v6793_v45 = vpop.eup %6792 }
0x184c   :  { %v4320_v49 = vadd.f32 1.0, %v6793_v45  ;;  %v10077_v45 = vld [vmem:[#allocation13 + $0xe4] ss:$16 sps:$4 sm:$0xff]  }
0x184d   :  { %v6795_v53 = vpop.eup %6794 }
0x184e   :  { %v6797_v11 = vpop.eup %6796  ;;  %6802 = vrcp.f32 %v4320_v49  ;;  %v4326_v44 = vadd.f32 1.0, %v6795_v53  ;;  %v10085_v49 = vld [vmem:[#allocation13 + $0xe0] ss:$16 sps:$4 sm:$0xff]   ;;  %v10088_v53 = vld [vmem:[#allocation13 + $0xe8] ss:$16 sps:$4 sm:$0xff]  }
0x184f   :  { %v6799_v34 = vpop.eup %6798  ;;  %6804 = vtanh.f32 %v4315_v5  ;;  %v10080_v5 = vld [vmem:[#allocation13 + $0xec] ss:$16 sps:$4 sm:$0xff]  }
0x1850   :  { %6806 = vrcp.f32 %v4326_v44  ;;  %v9973_v0 = vmul.f32 %v6799_v34, %v6797_v11  ;;  %v6801_v37 = vpop.eup %6800  ;;  %v10091_v11 = vld [vmem:[#allocation13 + $0xc4] ss:$16 sps:$4 sm:$0xff]   ;;  %v10094_v44 = vld [vmem:[#allocation13 + $0xcc] ss:$16 sps:$4 sm:$0xff]   ;;  %v10097_v34 = vld [vmem:[#allocation13 + $0xc0] ss:$16 sps:$4 sm:$0xff]  }
0x1851   :  { %v4333_v48 = vadd.f32 1.0, %v6801_v37  ;;  %12210 = vst [vmem:[#allocation67_spill] sm:$0xff] %v10097_v34  ;;  %v10103_v37 = vld [vmem:[#allocation13 + $0xa4] ss:$16 sps:$4 sm:$0xff]  }
0x1852   :  { %12209 = vst [vmem:[#allocation66_spill] sm:$0xff] %v9973_v0  ;;  %v4342_v41 = vpack.c.bf16 %v9973_v0, %v9973_v0  ;;  %12212 = vst [vmem:[#allocation102_spill] sm:$0xff] %v10103_v37  ;;  %v10136_v0 = vld [vmem:[#allocation13 + $0x68] ss:$16 sps:$4 sm:$0xff]  }
0x1853   :  { %6808 = vrcp.f32 %v4333_v48  ;;  %v10115_v48 = vld [vmem:[#allocation13 + $0x84] ss:$16 sps:$4 sm:$0xff]   ;;  %12223 = vst [vmem:[#allocation24_spill] sm:$0xff] %v10136_v0 }
0x1854   :  { %4375 = vmatprep.mubr.bf16.mxu0 %v4342_v41  ;;  %4416 = vmatprep.mubr.bf16.mxu1 %v4342_v41  ;;  %v10100_v41 = vld [vmem:[#allocation13 + $0xc8] ss:$16 sps:$4 sm:$0xff]   ;;  %12216 = vst [vmem:[#allocation42_spill] sm:$0xff] %v10115_v48 }
0x1855   :  { %12211 = vst [vmem:[#allocation68_spill] sm:$0xff] %v10100_v41 }
0x185b   :  { %v6803_v60 = vpop.eup %6802 }
0x185c   :  { %v6805_v47 = vpop.eup %6804 }
0x185d   :  { %v6807_v40 = vpop.eup %6806  ;;  %v4337_v50 = vmul.f32 %v6805_v47, %v6803_v60  ;;  %v10106_v60 = vld [vmem:[#allocation13 + $0xac] ss:$16 sps:$4 sm:$0xff]   ;;  %v10109_v47 = vld [vmem:[#allocation13 + $0xa0] ss:$16 sps:$4 sm:$0xff]  }
0x185e   :  { %v4336_v31 = vmul.f32 %v6807_v40, %v9856_v36  ;;  %v9991_v36 = vld [vmem:[#allocation10 + $0xc4] ss:$16 sps:$4 sm:$0xff]   ;;  %12213 = vst [vmem:[#allocation104_spill] sm:$0xff] %v10106_v60  ;;  %12214 = vst [vmem:[#allocation105_spill] sm:$0xff] %v10109_v47  ;;  %v10112_v40 = vld [vmem:[#allocation13 + $0xa8] ss:$16 sps:$4 sm:$0xff]  }
0x185f   :  { %12215 = vst [vmem:[#allocation106_spill] sm:$0xff] %v10112_v40 }
0x1860   :  { %v9978_v18 = vadd.f32 %v4337_v50, %v4336_v31  ;;  %v6809_v17 = vpop.eup %6808  ;;  %v10118_v50 = vld [vmem:[#allocation13 + $0x8c] ss:$16 sps:$4 sm:$0xff]   ;;  %v10121_v31 = vld [vmem:[#allocation13 + $0x80] ss:$16 sps:$4 sm:$0xff]  }
0x1861   :  { %12217 = vst [vmem:[#allocation101_spill] sm:$0xff] %v10118_v50  ;;  %12218 = vst [vmem:[#allocation103_spill] sm:$0xff] %v10121_v31 }
0x1862   :  { %6810 = vtanh.f32 %v9978_v18 }
0x186f   :  { %v6811_v30 = vpop.eup %6810 }
0x1870   :  { %v4340_v55 = vmul.f32 %v6811_v30, %v6809_v17  ;;  %v10124_v17 = vld [vmem:[#allocation13 + $0x88] ss:$16 sps:$4 sm:$0xff]   ;;  %v10127_v30 = vld [vmem:[#allocation13 + $0x64] ss:$16 sps:$4 sm:$0xff]  }
0x1871   :  { %12219 = vst [vmem:[#allocation27_spill] sm:$0xff] %v10124_v17  ;;  %12220 = vst [vmem:[#allocation43_spill] sm:$0xff] %v10127_v30 }
0x1872   :  { %v9981_v16 = vpack.c.bf16 %v4340_v55, %v4340_v55  ;;  %v10130_v55 = vld [vmem:[#allocation13 + $0x6c] ss:$16 sps:$4 sm:$0xff]  }
0x1873   :  { %12221 = vst [vmem:[#allocation40_spill] sm:$0xff] %v10130_v55 }
0x1874   :  { %4376 = vmatmul.mubr.bf16.vlgmr.msra.gmra.mxu0 %v9981_v16  ;;  %4417 = vmatmul.mubr.bf16.vlgmr.msra.gmra.mxu1 %v9981_v16 }
0x1875   :  { %4450 = vmatpush1.bf16.msra.mxu0 %v9985_v24  ;;  %4491 = vmatpush1.bf16.msra.mxu1 %v9988_v61 }
0x1876   :  { %4451 = vmatprep.subr.bf16.mxu0 %v9991_v36  ;;  %4492 = vmatprep.subr.bf16.mxu1 %v9994_v63 }
0x1877   :  { %4481 = vmatprep.mubr.bf16.mxu0 %v11649_v59  ;;  %4522 = vmatprep.mubr.bf16.mxu1 %v11649_v59 }
0x1879   :  { %4452 = vmatpush1.bf16.msra.mxu0 %v9999_v28  ;;  %4493 = vmatpush1.bf16.msra.mxu1 %v10002_v3 }
0x187a   :  { %4453 = vmatprep.subr.bf16.mxu0 %v10005_v54  ;;  %4494 = vmatprep.subr.bf16.mxu1 %v10008_v27 }
0x187d   :  { %4454 = vmatpush1.bf16.msra.mxu0 %v10011_v58  ;;  %4495 = vmatpush1.bf16.msra.mxu1 %v10014_v29 }
0x187e   :  { %4455 = vmatprep.subr.bf16.mxu0 %v10017_v23  ;;  %4496 = vmatprep.subr.bf16.mxu1 %v10020_v19 }
0x1881   :  { %4456 = vmatpush1.bf16.msra.mxu0 %v10023_v62  ;;  %4497 = vmatpush1.bf16.msra.mxu1 %v10026_v13 }
0x1882   :  { %4457 = vmatprep.subr.bf16.mxu0 %v10029_v8  ;;  %4498 = vmatprep.subr.bf16.mxu1 %v10032_v32 }
0x1885   :  { %4458 = vmatpush1.bf16.msra.mxu0 %v10035_v15  ;;  %4499 = vmatpush1.bf16.msra.mxu1 %v10038_v1 }
0x1886   :  { %4459 = vmatprep.subr.bf16.mxu0 %v10041_v2  ;;  %4500 = vmatprep.subr.bf16.mxu1 %v10044_v9 }
0x1889   :  { %4460 = vmatpush1.bf16.msra.mxu0 %v10047_v6  ;;  %4501 = vmatpush1.bf16.msra.mxu1 %v10050_v20 }
0x188a   :  { %4461 = vmatprep.subr.bf16.mxu0 %v10053_v7  ;;  %4502 = vmatprep.subr.bf16.mxu1 %v10056_v42 }
0x188d   :  { %4462 = vmatpush1.bf16.msra.mxu0 %v10059_v14  ;;  %4503 = vmatpush1.bf16.msra.mxu1 %v10062_v4 }
0x188e   :  { %4463 = vmatprep.subr.bf16.mxu0 %v10065_v10  ;;  %4504 = vmatprep.subr.bf16.mxu1 %v10068_v22 }
0x1891   :  { %4464 = vmatpush1.bf16.msra.mxu0 %v10071_v51  ;;  %4505 = vmatpush1.bf16.msra.mxu1 %v10074_v33 }
0x1892   :  { %4561 = vmatprep.subr.bf16.mxu0 %v10077_v45  ;;  %4602 = vmatprep.subr.bf16.mxu1 %v10080_v5 }
0x1894   :  { %4482 = vmatmul.mubr.bf16.vlgmr.msra.gmra.mxu0 %v9981_v16  ;;  %4523 = vmatmul.mubr.bf16.vlgmr.msra.gmra.mxu1 %v9981_v16  ;;  %v10133_v16 = vld [vmem:[#allocation13 + $0x60] ss:$16 sps:$4 sm:$0xff]  }
0x1895   :  { %4562 = vmatpush1.bf16.msra.mxu0 %v10085_v49  ;;  %4603 = vmatpush1.bf16.msra.mxu1 %v10088_v53  ;;  %12222 = vst [vmem:[#allocation63_spill] sm:$0xff] %v10133_v16 }
0x1896   :  { %4563 = vmatprep.subr.bf16.mxu0 %v10091_v11  ;;  %4604 = vmatprep.subr.bf16.mxu1 %v10094_v44 }
0x1899   :  { %4564 = vmatpush1.bf16.msra.mxu0 %v10097_v34  ;;  %4605 = vmatpush1.bf16.msra.mxu1 %v10100_v41 }
0x189a   :  { %4565 = vmatprep.subr.bf16.mxu0 %v10103_v37  ;;  %4606 = vmatprep.subr.bf16.mxu1 %v10106_v60 }
0x189d   :  { %4566 = vmatpush1.bf16.msra.mxu0 %v10109_v47  ;;  %4607 = vmatpush1.bf16.msra.mxu1 %v10112_v40 }
0x189e   :  { %4567 = vmatprep.subr.bf16.mxu0 %v10115_v48  ;;  %4608 = vmatprep.subr.bf16.mxu1 %v10118_v50 }
0x18a1   :  { %4568 = vmatpush1.bf16.msra.mxu0 %v10121_v31  ;;  %4609 = vmatpush1.bf16.msra.mxu1 %v10124_v17  ;;  %v10142_v17 = vld [vmem:[#allocation13 + $0x4c] ss:$16 sps:$4 sm:$0xff]  }
0x18a2   :  { %4569 = vmatprep.subr.bf16.mxu0 %v10127_v30  ;;  %4610 = vmatprep.subr.bf16.mxu1 %v10130_v55  ;;  %12225 = vst [vmem:[#allocation69_spill] sm:$0xff] %v10142_v17  ;;  %v10145_v30 = vld [vmem:[#allocation13 + $0x40] ss:$16 sps:$4 sm:$0xff]   ;;  %v10148_v55 = vld [vmem:[#allocation13 + $0x48] ss:$16 sps:$4 sm:$0xff]  }
0x18a3   :  { %12226 = vst [vmem:[#allocation70_spill] sm:$0xff] %v10145_v30  ;;  %12227 = vst [vmem:[#allocation38_spill] sm:$0xff] %v10148_v55 }
0x18a5   :  { %4570 = vmatpush1.bf16.msra.mxu0 %v10133_v16  ;;  %4611 = vmatpush1.bf16.msra.mxu1 %v10136_v0  ;;  %v10151_v16 = vld [vmem:[#allocation13 + $0x24] ss:$16 sps:$4 sm:$0xff]   ;;  %v10154_v0 = vld [vmem:[#allocation13 + $0x2c] ss:$16 sps:$4 sm:$0xff]  }
0x18a6   :  { %4571 = vmatprep.subr.bf16.mxu0 %v10139_v46  ;;  %4612 = vmatprep.subr.bf16.mxu1 %v10142_v17  ;;  %12228 = vst [vmem:[#allocation37_spill] sm:$0xff] %v10151_v16  ;;  %12229 = vst [vmem:[#allocation56_spill] sm:$0xff] %v10154_v0  ;;  %v10157_v46 = vld [vmem:[#allocation13 + $0x20] ss:$16 sps:$4 sm:$0xff]   ;;  %v10160_v17 = vld [vmem:[#allocation13 + $0x28] ss:$16 sps:$4 sm:$0xff]  }
0x18a7   :  { %12230 = vst [vmem:[#allocation71_spill] sm:$0xff] %v10157_v46  ;;  %12231 = vst [vmem:[#allocation72_spill] sm:$0xff] %v10160_v17 }
0x18a9   :  { %4572 = vmatpush1.bf16.msra.mxu0 %v10145_v30  ;;  %4613 = vmatpush1.bf16.msra.mxu1 %v10148_v55  ;;  %v10163_v30 = vld [vmem:[#allocation13 + $0x4] ss:$16 sps:$4 sm:$0xff]   ;;  %v10166_v55 = vld [vmem:[#allocation13 + $0xc] ss:$16 sps:$4 sm:$0xff]  }
0x18aa   :  { %4573 = vmatprep.subr.bf16.mxu0 %v10151_v16  ;;  %4614 = vmatprep.subr.bf16.mxu1 %v10154_v0  ;;  %12232 = vst [vmem:[#allocation73_spill] sm:$0xff] %v10163_v30  ;;  %12233 = vst [vmem:[#allocation74_spill] sm:$0xff] %v10166_v55  ;;  %v10169_v16 = vld [vmem:[#allocation13] ss:$16 sps:$4 sm:$0xff]   ;;  %v10172_v0 = vld [vmem:[#allocation13 + $0x8] ss:$16 sps:$4 sm:$0xff]  }
0x18ab   :  { %12234 = vst [vmem:[#allocation75_spill] sm:$0xff] %v10169_v16  ;;  %12235 = vst [vmem:[#allocation76_spill] sm:$0xff] %v10172_v0 }
0x18ad   :  { %4574 = vmatpush1.bf16.msra.mxu0 %v10157_v46  ;;  %4615 = vmatpush1.bf16.msra.mxu1 %v10160_v17  ;;  %v10175_v46 = vld [vmem:[#allocation13 + $0x1e4] ss:$16 sps:$4 sm:$0xff]   ;;  %v10178_v17 = vld [vmem:[#allocation13 + $0x1ec] ss:$16 sps:$4 sm:$0xff]  }
0x18ae   :  { %4575 = vmatprep.subr.bf16.mxu0 %v10163_v30  ;;  %4616 = vmatprep.subr.bf16.mxu1 %v10166_v55  ;;  %12236 = vst [vmem:[#allocation77_spill] sm:$0xff] %v10175_v46  ;;  %12237 = vst [vmem:[#allocation78_spill] sm:$0xff] %v10178_v17  ;;  %v10181_v30 = vld [vmem:[#allocation13 + $0x1e0] ss:$16 sps:$4 sm:$0xff]   ;;  %v10184_v55 = vld [vmem:[#allocation13 + $0x1e8] ss:$16 sps:$4 sm:$0xff]  }
0x18af   :  { %12238 = vst [vmem:[#allocation79_spill] sm:$0xff] %v10181_v30  ;;  %12239 = vst [vmem:[#allocation80_spill] sm:$0xff] %v10184_v55 }
0x18b1   :  { %4576 = vmatpush1.bf16.msra.mxu0 %v10169_v16  ;;  %4617 = vmatpush1.bf16.msra.mxu1 %v10172_v0  ;;  %v10187_v16 = vld [vmem:[#allocation13 + $0x1c4] ss:$16 sps:$4 sm:$0xff]   ;;  %v10190_v0 = vld [vmem:[#allocation13 + $0x1cc] ss:$16 sps:$4 sm:$0xff]  }
0x18b2   :  { %4577 = vmatprep.subr.bf16.mxu0 %v10175_v46  ;;  %4618 = vmatprep.subr.bf16.mxu1 %v10178_v17  ;;  %12240 = vst [vmem:[#allocation81_spill] sm:$0xff] %v10187_v16  ;;  %12241 = vst [vmem:[#allocation82_spill] sm:$0xff] %v10190_v0  ;;  %v10193_v46 = vld [vmem:[#allocation13 + $0x1c0] ss:$16 sps:$4 sm:$0xff]   ;;  %v10196_v17 = vld [vmem:[#allocation13 + $0x1c8] ss:$16 sps:$4 sm:$0xff]  }
0x18b3   :  { %12242 = vst [vmem:[#allocation83_spill] sm:$0xff] %v10193_v46  ;;  %12243 = vst [vmem:[#allocation84_spill] sm:$0xff] %v10196_v17 }
0x18b5   :  { %4578 = vmatpush2.bf16.msra.mxu0 %v10181_v30  ;;  %4619 = vmatpush2.bf16.msra.mxu1 %v10184_v55  ;;  %v10199_v30 = vld [vmem:[#allocation13 + $0x1a4] ss:$16 sps:$4 sm:$0xff]   ;;  %v10202_v55 = vld [vmem:[#allocation13 + $0x1ac] ss:$16 sps:$4 sm:$0xff]  }
0x18b6   :  { %4579 = vmatprep.subr.bf16.mxu0 %v10187_v16  ;;  %4620 = vmatprep.subr.bf16.mxu1 %v10190_v0  ;;  %12244 = vst [vmem:[#allocation85_spill] sm:$0xff] %v10199_v30  ;;  %12245 = vst [vmem:[#allocation86_spill] sm:$0xff] %v10202_v55  ;;  %v10205_v16 = vld [vmem:[#allocation13 + $0x1a0] ss:$16 sps:$4 sm:$0xff]   ;;  %v10208_v0 = vld [vmem:[#allocation13 + $0x1a8] ss:$16 sps:$4 sm:$0xff]  }
0x18b7   :  { %12246 = vst [vmem:[#allocation87_spill] sm:$0xff] %v10205_v16  ;;  %12247 = vst [vmem:[#allocation97_spill] sm:$0xff] %v10208_v0 }
0x18b9   :  { %4580 = vmatpush2.bf16.msra.mxu0 %v10193_v46  ;;  %4621 = vmatpush2.bf16.msra.mxu1 %v10196_v17  ;;  %v10211_v46 = vld [vmem:[#allocation13 + $0x184] ss:$16 sps:$4 sm:$0xff]   ;;  %v10214_v17 = vld [vmem:[#allocation13 + $0x18c] ss:$16 sps:$4 sm:$0xff]  }
0x18ba   :  { %4581 = vmatprep.subr.bf16.mxu0 %v10199_v30  ;;  %4622 = vmatprep.subr.bf16.mxu1 %v10202_v55  ;;  %12248 = vst [vmem:[#allocation98_spill] sm:$0xff] %v10211_v46  ;;  %12249 = vst [vmem:[#allocation35_spill] sm:$0xff] %v10214_v17  ;;  %v10217_v30 = vld [vmem:[#allocation13 + $0x180] ss:$16 sps:$4 sm:$0xff]   ;;  %v10220_v55 = vld [vmem:[#allocation13 + $0x188] ss:$16 sps:$4 sm:$0xff]  }
0x18bb   :  { %12250 = vst [vmem:[#allocation34_spill] sm:$0xff] %v10217_v30  ;;  %12251 = vst [vmem:[#allocation99_spill] sm:$0xff] %v10220_v55 }
0x18bd   :  { %4582 = vmatpush2.bf16.msra.mxu0 %v10205_v16  ;;  %4623 = vmatpush2.bf16.msra.mxu1 %v10208_v0  ;;  %v10223_v16 = vld [vmem:[#allocation13 + $0x164] ss:$16 sps:$4 sm:$0xff]   ;;  %v10226_v0 = vld [vmem:[#allocation13 + $0x16c] ss:$16 sps:$4 sm:$0xff]  }
0x18be   :  { %4583 = vmatprep.subr.bf16.mxu0 %v10211_v46  ;;  %4624 = vmatprep.subr.bf16.mxu1 %v10214_v17  ;;  %12252 = vst [vmem:[#allocation100_spill] sm:$0xff] %v10223_v16  ;;  %12253 = vst [vmem:[#allocation39_spill] sm:$0xff] %v10226_v0  ;;  %v10229_v46 = vld [vmem:[#allocation13 + $0x160] ss:$16 sps:$4 sm:$0xff]   ;;  %v10232_v17 = vld [vmem:[#allocation13 + $0x168] ss:$16 sps:$4 sm:$0xff]  }
0x18bf   :  { %12254 = vst [vmem:[#allocation36_spill] sm:$0xff] %v10229_v46  ;;  %12255 = vst [vmem:[#allocation88_spill] sm:$0xff] %v10232_v17 }
0x18c1   :  { %4584 = vmatpush2.bf16.msra.mxu0 %v10217_v30  ;;  %4625 = vmatpush2.bf16.msra.mxu1 %v10220_v55  ;;  %v10235_v30 = vld [vmem:[#allocation13 + $0x144] ss:$16 sps:$4 sm:$0xff]   ;;  %v10238_v55 = vld [vmem:[#allocation13 + $0x14c] ss:$16 sps:$4 sm:$0xff]  }
0x18c2   :  { %4585 = vmatprep.subr.bf16.mxu0 %v10223_v16  ;;  %4626 = vmatprep.subr.bf16.mxu1 %v10226_v0  ;;  %12256 = vst [vmem:[#allocation89_spill] sm:$0xff] %v10235_v30  ;;  %12257 = vst [vmem:[#allocation90_spill] sm:$0xff] %v10238_v55  ;;  %v10241_v16 = vld [vmem:[#allocation13 + $0x140] ss:$16 sps:$4 sm:$0xff]   ;;  %v10244_v0 = vld [vmem:[#allocation13 + $0x148] ss:$16 sps:$4 sm:$0xff]  }
0x18c3   :  { %12258 = vst [vmem:[#allocation91_spill] sm:$0xff] %v10241_v16  ;;  %12259 = vst [vmem:[#allocation92_spill] sm:$0xff] %v10244_v0 }
0x18c5   :  { %4586 = vmatpush2.bf16.msra.mxu0 %v10229_v46  ;;  %4627 = vmatpush2.bf16.msra.mxu1 %v10232_v17  ;;  %v10247_v46 = vld [vmem:[#allocation13 + $0x124] ss:$16 sps:$4 sm:$0xff]   ;;  %v10250_v17 = vld [vmem:[#allocation13 + $0x12c] ss:$16 sps:$4 sm:$0xff]  }
0x18c6   :  { %4587 = vmatprep.subr.bf16.mxu0 %v10235_v30  ;;  %4628 = vmatprep.subr.bf16.mxu1 %v10238_v55  ;;  %12260 = vst [vmem:[#allocation29_spill] sm:$0xff] %v10247_v46  ;;  %12261 = vst [vmem:[#allocation28_spill] sm:$0xff] %v10250_v17  ;;  %v10253_v30 = vld [vmem:[#allocation13 + $0x120] ss:$16 sps:$4 sm:$0xff]   ;;  %v10256_v55 = vld [vmem:[#allocation13 + $0x128] ss:$16 sps:$4 sm:$0xff]  }
0x18c7   :  { %12262 = vst [vmem:[#allocation93_spill] sm:$0xff] %v10253_v30  ;;  %12263 = vst [vmem:[#allocation94_spill] sm:$0xff] %v10256_v55 }
0x18c9   :  { %4588 = vmatpush2.bf16.msra.mxu0 %v10241_v16  ;;  %4629 = vmatpush2.bf16.msra.mxu1 %v10244_v0  ;;  %v10259_v16 = vld [vmem:[#allocation13 + $0x104] ss:$16 sps:$4 sm:$0xff]   ;;  %v10262_v0 = vld [vmem:[#allocation13 + $0x10c] ss:$16 sps:$4 sm:$0xff]  }
0x18ca   :  { %4589 = vmatprep.subr.bf16.mxu0 %v10247_v46  ;;  %4630 = vmatprep.subr.bf16.mxu1 %v10250_v17  ;;  %12264 = vst [vmem:[#allocation31_spill] sm:$0xff] %v10259_v16  ;;  %12265 = vst [vmem:[#allocation30_spill] sm:$0xff] %v10262_v0  ;;  %v10265_v46 = vld [vmem:[#allocation13 + $0x100] ss:$16 sps:$4 sm:$0xff]   ;;  %v10268_v17 = vld [vmem:[#allocation13 + $0x108] ss:$16 sps:$4 sm:$0xff]  }
0x18cb   :  { %12266 = vst [vmem:[#allocation95_spill] sm:$0xff] %v10265_v46  ;;  %12267 = vst [vmem:[#allocation96_spill] sm:$0xff] %v10268_v17 }
0x18cd   :  { %4590 = vmatpush2.bf16.msra.mxu0 %v10253_v30  ;;  %4631 = vmatpush2.bf16.msra.mxu1 %v10256_v55 }
0x18ce   :  { %4591 = vmatprep.subr.bf16.mxu0 %v10259_v16  ;;  %4632 = vmatprep.subr.bf16.mxu1 %v10262_v0 }
0x18d1   :  { %4592 = vmatpush2.bf16.msra.mxu0 %v10265_v46  ;;  %4633 = vmatpush2.bf16.msra.mxu1 %v10268_v17 }
0x18d2   :  { %4667 = vmatprep.subr.bf16.mxu0 %v9955_v39  ;;  %4708 = vmatprep.subr.bf16.mxu1 %v9958_v52 }
0x1934   :  { %v4377_v55 = vpop.f32.mrf.mxu0  ;;  %v4418_v30 = vpop.f32.mrf.mxu1 }
0x1935   :  { %v4378_v16 = vadd.f32 %v4377_v55, %v12205_v38  ;;  %v4419_v41 = vadd.f32 %v4418_v30, %v12208_v25 }
0x1936   :  { %v4379_v31 = vpop.f32.mrf.mxu0  ;;  %v4420_v50 = vpop.f32.mrf.mxu1 }
0x1937   :  { %v6014_v48 = vmul.f32 -1.442695, %v4378_v16  ;;  %v4380_v0 = vadd.f32 %v4379_v31, %v12206_v21  ;;  %v4421_v39 = vadd.f32 %v4420_v50, %v12207_v57 }
0x1938   :  { %v4381_v40 = vpop.f32.mrf.mxu0  ;;  %v4422_v47 = vpop.f32.mrf.mxu1 }
0x1939   :  { %6812 = vpow2.f32 %v6014_v48  ;;  %v6015_v46 = vmul.f32 -1.442695, %v4380_v0  ;;  %v6016_v17 = vmul.f32 -1.442695, %v4421_v39 }
0x193a   :  { %v4382_v60 = vpop.f32.mrf.mxu0  ;;  %v4423_v37 = vpop.f32.mrf.mxu1 }
0x193b   :  { %6814 = vpow2.f32 %v6015_v46 }
0x193c   :  { %6816 = vpow2.f32 %v6016_v17 }
0x1946   :  { %v6813_v52 = vpop.eup %6812 }
0x1947   :  { %v4428_v34 = vadd.f32 1.0, %v6813_v52 }
0x1948   :  { %v6815_v55 = vpop.eup %6814 }
0x1949   :  { %6818 = vrcp.f32 %v4428_v34  ;;  %v4434_v16 = vadd.f32 1.0, %v6815_v55  ;;  %v6817_v48 = vpop.eup %6816 }
0x194a   :  { %6820 = vtanh.f32 %v4419_v41  ;;  %v4441_v52 = vadd.f32 1.0, %v6817_v48 }
0x194b   :  { %6822 = vrcp.f32 %v4434_v16 }
0x1954   :  { %v4483_v40 = vpop.f32.mrf.mxu0  ;;  %v4524_v47 = vpop.f32.mrf.mxu1 }
0x1955   :  { %v4531_v0 = vadd.f32 %v4483_v40, %v12145_v56 }
0x1956   :  { %v6819_v37 = vpop.eup %6818  ;;  %v4485_v46 = vpop.f32.mrf.mxu0 }
0x1957   :  { %v4526_v60 = vpop.f32.mrf.mxu1  ;;  %v6821_v50 = vpop.eup %6820  ;;  %v6017_v39 = vmul.f32 -1.442695, %v4531_v0  ;;  %v4532_v31 = vadd.f32 %v4485_v46, %v9715_v43 }
0x1958   :  { %v6823_v30 = vpop.eup %6822  ;;  %v4487_v25 = vpop.f32.mrf.mxu0  ;;  %v4445_v34 = vmul.f32 %v6821_v50, %v6819_v37  ;;  %v4534_v40 = vadd.f32 %v4526_v60, %v9720_v35 }
0x1959   :  { %v4528_v17 = vpop.f32.mrf.mxu1  ;;  %v4444_v41 = vmul.f32 %v6823_v30, %v9968_v12  ;;  %6824 = vpow2.f32 %v6017_v39  ;;  %v6018_v55 = vmul.f32 -1.442695, %v4532_v31  ;;  %v4533_v25 = vadd.f32 %v4524_v47, %v9724_v26 }
0x195a   :  { %v4488_v16 = vpop.f32.mrf.mxu0  ;;  %v6019_v0 = vmul.f32 -1.442695, %v4534_v40 }
0x195b   :  { %v4529_v57 = vpop.f32.mrf.mxu1  ;;  %v10280_v21 = vadd.f32 %v4445_v34, %v4444_v41  ;;  %6826 = vpow2.f32 %v6018_v55 }
0x195c   :  { %6828 = vrcp.f32 %v4441_v52 }
0x195d   :  { %6830 = vtanh.f32 %v10280_v21 }
0x195e   :  { %6832 = vpow2.f32 %v6019_v0 }
0x1966   :  { %v6825_v46 = vpop.eup %6824 }
0x1967   :  { %v4538_v48 = vadd.f32 1.0, %v6825_v46 }
0x1968   :  { %v6827_v37 = vpop.eup %6826 }
0x1969   :  { %v6829_v12 = vpop.eup %6828  ;;  %6834 = vrcp.f32 %v4538_v48  ;;  %v4544_v50 = vadd.f32 1.0, %v6827_v37  ;;  %v12271_v48 = vld [vmem:[#allocation102_spill] sm:$0xff]  ;;  %v12272_v37 = vld [vmem:[#allocation104_spill] sm:$0xff] }
0x196a   :  { %v6831_v39 = vpop.eup %6830  ;;  %6836 = vtanh.f32 %v4533_v25  ;;  %v12270_v25 = vld [vmem:[#allocation68_spill] sm:$0xff] }
0x196b   :  { %6838 = vrcp.f32 %v4544_v50  ;;  %v10285_v57 = vmul.f32 %v6831_v39, %v6829_v12  ;;  %v6833_v60 = vpop.eup %6832  ;;  %v12273_v12 = vld [vmem:[#allocation105_spill] sm:$0xff]  ;;  %v12274_v50 = vld [vmem:[#allocation106_spill] sm:$0xff] }
0x196c   :  { %v4551_v17 = vadd.f32 1.0, %v6833_v60  ;;  %v12275_v39 = vld [vmem:[#allocation42_spill] sm:$0xff]  ;;  %v12277_v60 = vld [vmem:[#allocation103_spill] sm:$0xff] }
0x196d   :  { %12268 = vst [vmem:[#allocation33_spill] sm:$0xff] %v10285_v57  ;;  %v4560_v31 = vpack.c.bf16 %v10285_v57, %v10285_v57  ;;  %v12288_v57 = vld [vmem:[#allocation56_spill] sm:$0xff] }
0x196e   :  { %6840 = vrcp.f32 %v4551_v17  ;;  %v12281_v17 = vld [vmem:[#allocation63_spill] sm:$0xff] }
0x196f   :  { %4593 = vmatprep.mubr.bf16.mxu0 %v4560_v31  ;;  %4634 = vmatprep.mubr.bf16.mxu1 %v4560_v31  ;;  %v12276_v31 = vld [vmem:[#allocation101_spill] sm:$0xff] }
0x1976   :  { %v6835_v30 = vpop.eup %6834 }
0x1977   :  { %v6837_v52 = vpop.eup %6836 }
0x1978   :  { %v6839_v47 = vpop.eup %6838  ;;  %v4555_v34 = vmul.f32 %v6837_v52, %v6835_v30  ;;  %v12278_v30 = vld [vmem:[#allocation27_spill] sm:$0xff] }
0x1979   :  { %v4554_v41 = vmul.f32 %v6839_v47, %v9978_v18  ;;  %v12269_v18 = vld [vmem:[#allocation67_spill] sm:$0xff]  ;;  %v12280_v47 = vld [vmem:[#allocation40_spill] sm:$0xff] }
0x197a   :  { %v12279_v52 = vld [vmem:[#allocation43_spill] sm:$0xff] }
0x197b   :  { %v10290_v55 = vadd.f32 %v4555_v34, %v4554_v41  ;;  %v6841_v16 = vpop.eup %6840  ;;  %v12282_v34 = vld [vmem:[#allocation24_spill] sm:$0xff]  ;;  %v12283_v41 = vld [vmem:[#allocation23_spill] sm:$0xff] }
0x197d   :  { %6842 = vtanh.f32 %v10290_v55 }
0x198a   :  { %v6843_v40 = vpop.eup %6842 }
0x198b   :  { %v4558_v0 = vmul.f32 %v6843_v40, %v6841_v16  ;;  %v12284_v16 = vld [vmem:[#allocation69_spill] sm:$0xff]  ;;  %v12285_v40 = vld [vmem:[#allocation70_spill] sm:$0xff] }
0x198d   :  { %v4559_v46 = vpack.c.bf16 %v4558_v0, %v4558_v0  ;;  %v12286_v0 = vld [vmem:[#allocation38_spill] sm:$0xff] }
0x198f   :  { %4594 = vmatmul.mubr.bf16.vlgmr.msra.gmra.mxu0 %v4559_v46  ;;  %4635 = vmatmul.mubr.bf16.vlgmr.msra.gmra.mxu1 %v4559_v46 }
0x1990   :  { %4668 = vmatpush1.bf16.msra.mxu0 %v9985_v24  ;;  %4709 = vmatpush1.bf16.msra.mxu1 %v9988_v61 }
0x1991   :  { %4669 = vmatprep.subr.bf16.mxu0 %v9991_v36  ;;  %4710 = vmatprep.subr.bf16.mxu1 %v9994_v63 }
0x1992   :  { %4699 = vmatprep.mubr.bf16.mxu0 %v11649_v59  ;;  %4740 = vmatprep.mubr.bf16.mxu1 %v11649_v59 }
0x1994   :  { %4670 = vmatpush1.bf16.msra.mxu0 %v9999_v28  ;;  %4711 = vmatpush1.bf16.msra.mxu1 %v10002_v3 }
0x1995   :  { %4671 = vmatprep.subr.bf16.mxu0 %v10005_v54  ;;  %4712 = vmatprep.subr.bf16.mxu1 %v10008_v27 }
0x1998   :  { %4672 = vmatpush1.bf16.msra.mxu0 %v10011_v58  ;;  %4713 = vmatpush1.bf16.msra.mxu1 %v10014_v29 }
0x1999   :  { %4673 = vmatprep.subr.bf16.mxu0 %v10017_v23  ;;  %4714 = vmatprep.subr.bf16.mxu1 %v10020_v19 }
0x199c   :  { %4674 = vmatpush1.bf16.msra.mxu0 %v10023_v62  ;;  %4715 = vmatpush1.bf16.msra.mxu1 %v10026_v13 }
0x199d   :  { %4675 = vmatprep.subr.bf16.mxu0 %v10029_v8  ;;  %4716 = vmatprep.subr.bf16.mxu1 %v10032_v32 }
0x19a0   :  { %4676 = vmatpush1.bf16.msra.mxu0 %v10035_v15  ;;  %4717 = vmatpush1.bf16.msra.mxu1 %v10038_v1 }
0x19a1   :  { %4677 = vmatprep.subr.bf16.mxu0 %v10041_v2  ;;  %4718 = vmatprep.subr.bf16.mxu1 %v10044_v9 }
0x19a4   :  { %4678 = vmatpush1.bf16.msra.mxu0 %v10047_v6  ;;  %4719 = vmatpush1.bf16.msra.mxu1 %v10050_v20 }
0x19a5   :  { %4679 = vmatprep.subr.bf16.mxu0 %v10053_v7  ;;  %4720 = vmatprep.subr.bf16.mxu1 %v10056_v42 }
0x19a8   :  { %4680 = vmatpush1.bf16.msra.mxu0 %v10059_v14  ;;  %4721 = vmatpush1.bf16.msra.mxu1 %v10062_v4 }
0x19a9   :  { %4681 = vmatprep.subr.bf16.mxu0 %v10065_v10  ;;  %4722 = vmatprep.subr.bf16.mxu1 %v10068_v22 }
0x19ac   :  { %4682 = vmatpush1.bf16.msra.mxu0 %v10071_v51  ;;  %4723 = vmatpush1.bf16.msra.mxu1 %v10074_v33 }
0x19ad   :  { %4779 = vmatprep.subr.bf16.mxu0 %v10077_v45  ;;  %4820 = vmatprep.subr.bf16.mxu1 %v10080_v5 }
0x19af   :  { %4700 = vmatmul.mubr.bf16.vlgmr.msra.gmra.mxu0 %v4559_v46  ;;  %4741 = vmatmul.mubr.bf16.vlgmr.msra.gmra.mxu1 %v4559_v46  ;;  %v12287_v46 = vld [vmem:[#allocation37_spill] sm:$0xff] }
0x19b0   :  { %4780 = vmatpush1.bf16.msra.mxu0 %v10085_v49  ;;  %4821 = vmatpush1.bf16.msra.mxu1 %v10088_v53 }
0x19b1   :  { %4781 = vmatprep.subr.bf16.mxu0 %v10091_v11  ;;  %4822 = vmatprep.subr.bf16.mxu1 %v10094_v44 }
0x19b4   :  { %4782 = vmatpush1.bf16.msra.mxu0 %v12269_v18  ;;  %4823 = vmatpush1.bf16.msra.mxu1 %v12270_v25 }
0x19b5   :  { %4783 = vmatprep.subr.bf16.mxu0 %v12271_v48  ;;  %4824 = vmatprep.subr.bf16.mxu1 %v12272_v37  ;;  %v12331_v48 = vld [vmem:[#allocation60_spill] sm:$0xff] }
0x19b8   :  { %4784 = vmatpush1.bf16.msra.mxu0 %v12273_v12  ;;  %4825 = vmatpush1.bf16.msra.mxu1 %v12274_v50 }
0x19b9   :  { %4785 = vmatprep.subr.bf16.mxu0 %v12275_v39  ;;  %4826 = vmatprep.subr.bf16.mxu1 %v12276_v31 }
0x19bc   :  { %4786 = vmatpush1.bf16.msra.mxu0 %v12277_v60  ;;  %4827 = vmatpush1.bf16.msra.mxu1 %v12278_v30  ;;  %v12289_v30 = vld [vmem:[#allocation71_spill] sm:$0xff] }
0x19bd   :  { %4787 = vmatprep.subr.bf16.mxu0 %v12279_v52  ;;  %4828 = vmatprep.subr.bf16.mxu1 %v12280_v47  ;;  %v12290_v52 = vld [vmem:[#allocation72_spill] sm:$0xff]  ;;  %v12291_v47 = vld [vmem:[#allocation73_spill] sm:$0xff] }
0x19c0   :  { %4788 = vmatpush1.bf16.msra.mxu0 %v12281_v17  ;;  %4829 = vmatpush1.bf16.msra.mxu1 %v12282_v34  ;;  %v12292_v17 = vld [vmem:[#allocation74_spill] sm:$0xff]  ;;  %v12293_v34 = vld [vmem:[#allocation75_spill] sm:$0xff] }
0x19c1   :  { %4789 = vmatprep.subr.bf16.mxu0 %v12283_v41  ;;  %4830 = vmatprep.subr.bf16.mxu1 %v12284_v16  ;;  %v12294_v41 = vld [vmem:[#allocation76_spill] sm:$0xff]  ;;  %v12295_v16 = vld [vmem:[#allocation77_spill] sm:$0xff] }
0x19c4   :  { %4790 = vmatpush1.bf16.msra.mxu0 %v12285_v40  ;;  %4831 = vmatpush1.bf16.msra.mxu1 %v12286_v0  ;;  %v12296_v40 = vld [vmem:[#allocation78_spill] sm:$0xff]  ;;  %v12297_v0 = vld [vmem:[#allocation79_spill] sm:$0xff] }
0x19c5   :  { %4791 = vmatprep.subr.bf16.mxu0 %v12287_v46  ;;  %4832 = vmatprep.subr.bf16.mxu1 %v12288_v57  ;;  %v12298_v46 = vld [vmem:[#allocation80_spill] sm:$0xff]  ;;  %v12299_v57 = vld [vmem:[#allocation81_spill] sm:$0xff] }
0x19c8   :  { %4792 = vmatpush1.bf16.msra.mxu0 %v12289_v30  ;;  %4833 = vmatpush1.bf16.msra.mxu1 %v12290_v52  ;;  %v12300_v30 = vld [vmem:[#allocation82_spill] sm:$0xff]  ;;  %v12301_v52 = vld [vmem:[#allocation83_spill] sm:$0xff] }
0x19c9   :  { %4793 = vmatprep.subr.bf16.mxu0 %v12291_v47  ;;  %4834 = vmatprep.subr.bf16.mxu1 %v12292_v17  ;;  %v12302_v47 = vld [vmem:[#allocation84_spill] sm:$0xff]  ;;  %v12303_v17 = vld [vmem:[#allocation85_spill] sm:$0xff] }
0x19cc   :  { %4794 = vmatpush1.bf16.msra.mxu0 %v12293_v34  ;;  %4835 = vmatpush1.bf16.msra.mxu1 %v12294_v41  ;;  %v12304_v34 = vld [vmem:[#allocation86_spill] sm:$0xff]  ;;  %v12305_v41 = vld [vmem:[#allocation87_spill] sm:$0xff] }
0x19cd   :  { %4795 = vmatprep.subr.bf16.mxu0 %v12295_v16  ;;  %4836 = vmatprep.subr.bf16.mxu1 %v12296_v40  ;;  %v12306_v16 = vld [vmem:[#allocation97_spill] sm:$0xff]  ;;  %v12307_v40 = vld [vmem:[#allocation98_spill] sm:$0xff] }
0x19d0   :  { %4796 = vmatpush2.bf16.msra.mxu0 %v12297_v0  ;;  %4837 = vmatpush2.bf16.msra.mxu1 %v12298_v46  ;;  %v12308_v0 = vld [vmem:[#allocation35_spill] sm:$0xff]  ;;  %v12309_v46 = vld [vmem:[#allocation34_spill] sm:$0xff] }
0x19d1   :  { %4797 = vmatprep.subr.bf16.mxu0 %v12299_v57  ;;  %4838 = vmatprep.subr.bf16.mxu1 %v12300_v30  ;;  %v12310_v57 = vld [vmem:[#allocation99_spill] sm:$0xff]  ;;  %v12311_v30 = vld [vmem:[#allocation100_spill] sm:$0xff] }
0x19d4   :  { %4798 = vmatpush2.bf16.msra.mxu0 %v12301_v52  ;;  %4839 = vmatpush2.bf16.msra.mxu1 %v12302_v47  ;;  %v12312_v52 = vld [vmem:[#allocation39_spill] sm:$0xff]  ;;  %v12313_v47 = vld [vmem:[#allocation36_spill] sm:$0xff] }
0x19d5   :  { %4799 = vmatprep.subr.bf16.mxu0 %v12303_v17  ;;  %4840 = vmatprep.subr.bf16.mxu1 %v12304_v34  ;;  %v12314_v17 = vld [vmem:[#allocation88_spill] sm:$0xff]  ;;  %v12315_v34 = vld [vmem:[#allocation89_spill] sm:$0xff] }
0x19d8   :  { %4800 = vmatpush2.bf16.msra.mxu0 %v12305_v41  ;;  %4841 = vmatpush2.bf16.msra.mxu1 %v12306_v16  ;;  %v12316_v41 = vld [vmem:[#allocation90_spill] sm:$0xff]  ;;  %v12317_v16 = vld [vmem:[#allocation91_spill] sm:$0xff] }
0x19d9   :  { %4801 = vmatprep.subr.bf16.mxu0 %v12307_v40  ;;  %4842 = vmatprep.subr.bf16.mxu1 %v12308_v0  ;;  %v12318_v40 = vld [vmem:[#allocation92_spill] sm:$0xff]  ;;  %v12319_v0 = vld [vmem:[#allocation29_spill] sm:$0xff] }
0x19dc   :  { %4802 = vmatpush2.bf16.msra.mxu0 %v12309_v46  ;;  %4843 = vmatpush2.bf16.msra.mxu1 %v12310_v57  ;;  %v12320_v46 = vld [vmem:[#allocation28_spill] sm:$0xff]  ;;  %v12321_v57 = vld [vmem:[#allocation93_spill] sm:$0xff] }
0x19dd   :  { %4803 = vmatprep.subr.bf16.mxu0 %v12311_v30  ;;  %4844 = vmatprep.subr.bf16.mxu1 %v12312_v52  ;;  %v12322_v30 = vld [vmem:[#allocation94_spill] sm:$0xff]  ;;  %v12323_v52 = vld [vmem:[#allocation31_spill] sm:$0xff] }
0x19e0   :  { %4804 = vmatpush2.bf16.msra.mxu0 %v12313_v47  ;;  %4845 = vmatpush2.bf16.msra.mxu1 %v12314_v17  ;;  %v12324_v47 = vld [vmem:[#allocation30_spill] sm:$0xff]  ;;  %v12325_v17 = vld [vmem:[#allocation95_spill] sm:$0xff] }
0x19e1   :  { %4805 = vmatprep.subr.bf16.mxu0 %v12315_v34  ;;  %4846 = vmatprep.subr.bf16.mxu1 %v12316_v41  ;;  %v12326_v34 = vld [vmem:[#allocation96_spill] sm:$0xff]  ;;  %v12327_v41 = vld [vmem:[#allocation62_spill] sm:$0xff] }
0x19e4   :  { %4806 = vmatpush2.bf16.msra.mxu0 %v12317_v16  ;;  %4847 = vmatpush2.bf16.msra.mxu1 %v12318_v40  ;;  %v12328_v16 = vld [vmem:[#allocation65_spill] sm:$0xff] }
0x19e5   :  { %4807 = vmatprep.subr.bf16.mxu0 %v12319_v0  ;;  %4848 = vmatprep.subr.bf16.mxu1 %v12320_v46 }
0x19e8   :  { %4808 = vmatpush2.bf16.msra.mxu0 %v12321_v57  ;;  %4849 = vmatpush2.bf16.msra.mxu1 %v12322_v30  ;;  %v12329_v30 = vld [vmem:[#allocation58_spill] sm:$0xff] }
0x19e9   :  { %4809 = vmatprep.subr.bf16.mxu0 %v12323_v52  ;;  %4850 = vmatprep.subr.bf16.mxu1 %v12324_v47 }
0x19ec   :  { %4810 = vmatpush2.bf16.msra.mxu0 %v12325_v17  ;;  %4851 = vmatpush2.bf16.msra.mxu1 %v12326_v34  ;;  %v12330_v34 = vld [vmem:[#allocation59_spill] sm:$0xff] }
0x19ed   :  { %4885 = vmatprep.subr.bf16.mxu0 %v12327_v41  ;;  %4926 = vmatprep.subr.bf16.mxu1 %v12328_v16 }
0x1a4f   :  { %v4595_v40 = vpop.f32.mrf.mxu0  ;;  %v4636_v0 = vpop.f32.mrf.mxu1 }
0x1a50   :  { %v4596_v46 = vadd.f32 %v4595_v40, %v12205_v38  ;;  %v4637_v25 = vadd.f32 %v4636_v0, %v12331_v48 }
0x1a51   :  { %v4597_v60 = vpop.f32.mrf.mxu0  ;;  %v4638_v57 = vpop.f32.mrf.mxu1 }
0x1a52   :  { %v6020_v31 = vmul.f32 -1.442695, %v4596_v46  ;;  %v4598_v39 = vadd.f32 %v4597_v60, %v12329_v30  ;;  %v4639_v41 = vadd.f32 %v4638_v57, %v12330_v34 }
0x1a53   :  { %v4599_v52 = vpop.f32.mrf.mxu0  ;;  %v4640_v50 = vpop.f32.mrf.mxu1 }
0x1a54   :  { %6844 = vpow2.f32 %v6020_v31  ;;  %v6021_v47 = vmul.f32 -1.442695, %v4598_v39  ;;  %v6022_v37 = vmul.f32 -1.442695, %v4639_v41 }
0x1a55   :  { %v4600_v17 = vpop.f32.mrf.mxu0  ;;  %v4641_v12 = vpop.f32.mrf.mxu1 }
0x1a56   :  { %6846 = vpow2.f32 %v6021_v47 }
0x1a57   :  { %6848 = vpow2.f32 %v6022_v37 }
0x1a61   :  { %v6845_v16 = vpop.eup %6844 }
0x1a62   :  { %v4646_v18 = vadd.f32 1.0, %v6845_v16 }
0x1a63   :  { %v6847_v40 = vpop.eup %6846 }
0x1a64   :  { %6850 = vrcp.f32 %v4646_v18  ;;  %v4652_v46 = vadd.f32 1.0, %v6847_v40  ;;  %v6849_v31 = vpop.eup %6848 }
0x1a65   :  { %6852 = vtanh.f32 %v4637_v25  ;;  %v4659_v16 = vadd.f32 1.0, %v6849_v31 }
0x1a66   :  { %6854 = vrcp.f32 %v4652_v46 }
0x1a6f   :  { %v4701_v60 = vpop.f32.mrf.mxu0  ;;  %v4742_v50 = vpop.f32.mrf.mxu1 }
0x1a70   :  { %v4749_v39 = vadd.f32 %v4701_v60, %v12145_v56 }
0x1a71   :  { %v6851_v12 = vpop.eup %6850  ;;  %v4703_v52 = vpop.f32.mrf.mxu0 }
0x1a72   :  { %v4744_v47 = vpop.f32.mrf.mxu1  ;;  %v6853_v57 = vpop.eup %6852  ;;  %v6023_v17 = vmul.f32 -1.442695, %v4749_v39  ;;  %v4750_v41 = vadd.f32 %v4703_v52, %v9715_v43 }
0x1a73   :  { %v6855_v0 = vpop.eup %6854  ;;  %v4705_v48 = vpop.f32.mrf.mxu0  ;;  %v4663_v18 = vmul.f32 %v6853_v57, %v6851_v12  ;;  %v4752_v60 = vadd.f32 %v4744_v47, %v9720_v35 }
0x1a74   :  { %v4746_v37 = vpop.f32.mrf.mxu1  ;;  %v4662_v25 = vmul.f32 %v6855_v0, %v10280_v21  ;;  %6856 = vpow2.f32 %v6023_v17  ;;  %v6024_v40 = vmul.f32 -1.442695, %v4750_v41  ;;  %v4751_v48 = vadd.f32 %v4742_v50, %v9724_v26 }
0x1a75   :  { %v4706_v46 = vpop.f32.mrf.mxu0  ;;  %v6025_v39 = vmul.f32 -1.442695, %v4752_v60 }
0x1a76   :  { %v4747_v34 = vpop.f32.mrf.mxu1  ;;  %v10398_v30 = vadd.f32 %v4663_v18, %v4662_v25  ;;  %6858 = vpow2.f32 %v6024_v40 }
0x1a77   :  { %6860 = vrcp.f32 %v4659_v16 }
0x1a78   :  { %6862 = vtanh.f32 %v10398_v30 }
0x1a79   :  { %6864 = vpow2.f32 %v6025_v39 }
0x1a81   :  { %v6857_v52 = vpop.eup %6856 }
0x1a82   :  { %v4756_v31 = vadd.f32 1.0, %v6857_v52 }
0x1a83   :  { %v6859_v12 = vpop.eup %6858 }
0x1a84   :  { %v6861_v21 = vpop.eup %6860  ;;  %6866 = vrcp.f32 %v4756_v31  ;;  %v4762_v57 = vadd.f32 1.0, %v6859_v12  ;;  %v12371_v31 = vld [vmem:[#allocation98_spill] sm:$0xff]  ;;  %v12372_v12 = vld [vmem:[#allocation35_spill] sm:$0xff] }
0x1a85   :  { %v6863_v17 = vpop.eup %6862  ;;  %6868 = vtanh.f32 %v4751_v48  ;;  %v12370_v48 = vld [vmem:[#allocation97_spill] sm:$0xff] }
0x1a86   :  { %6870 = vrcp.f32 %v4762_v57  ;;  %v10403_v34 = vmul.f32 %v6863_v17, %v6861_v21  ;;  %v6865_v47 = vpop.eup %6864  ;;  %v12373_v21 = vld [vmem:[#allocation34_spill] sm:$0xff]  ;;  %v12374_v57 = vld [vmem:[#allocation99_spill] sm:$0xff]  ;;  %v12375_v17 = vld [vmem:[#allocation100_spill] sm:$0xff] }
0x1a87   :  { %v4769_v37 = vadd.f32 1.0, %v6865_v47  ;;  %v12377_v47 = vld [vmem:[#allocation36_spill] sm:$0xff] }
0x1a88   :  { %12332 = vst [vmem:[#allocation32_spill] sm:$0xff] %v10403_v34  ;;  %v4778_v41 = vpack.c.bf16 %v10403_v34, %v10403_v34  ;;  %v10691_v34 = vld [vmem:[#allocation13 + $0x44] ss:$16 sps:$4 sm:$0xff]  }
0x1a89   :  { %6872 = vrcp.f32 %v4769_v37  ;;  %v12381_v37 = vld [vmem:[#allocation91_spill] sm:$0xff]  ;;  %12409 = vst [vmem:[#allocation55_spill] sm:$0xff] %v10691_v34 }
0x1a8a   :  { %4811 = vmatprep.mubr.bf16.mxu0 %v4778_v41  ;;  %4852 = vmatprep.mubr.bf16.mxu1 %v4778_v41  ;;  %v12376_v41 = vld [vmem:[#allocation39_spill] sm:$0xff] }
0x1a91   :  { %v6867_v0 = vpop.eup %6866 }
0x1a92   :  { %v6869_v16 = vpop.eup %6868 }
0x1a93   :  { %v6871_v50 = vpop.eup %6870  ;;  %v4773_v18 = vmul.f32 %v6869_v16, %v6867_v0  ;;  %v12378_v0 = vld [vmem:[#allocation88_spill] sm:$0xff]  ;;  %v12379_v16 = vld [vmem:[#allocation89_spill] sm:$0xff] }
0x1a94   :  { %v4772_v25 = vmul.f32 %v6871_v50, %v10290_v55  ;;  %v12369_v55 = vld [vmem:[#allocation87_spill] sm:$0xff]  ;;  %v12380_v50 = vld [vmem:[#allocation90_spill] sm:$0xff] }
0x1a96   :  { %v10408_v40 = vadd.f32 %v4773_v18, %v4772_v25  ;;  %v6873_v46 = vpop.eup %6872  ;;  %v12382_v18 = vld [vmem:[#allocation92_spill] sm:$0xff]  ;;  %v12383_v25 = vld [vmem:[#allocation29_spill] sm:$0xff] }
0x1a98   :  { %6874 = vtanh.f32 %v10408_v40 }
0x1aa5   :  { %v6875_v60 = vpop.eup %6874 }
0x1aa6   :  { %v4776_v39 = vmul.f32 %v6875_v60, %v6873_v46  ;;  %v12384_v46 = vld [vmem:[#allocation28_spill] sm:$0xff]  ;;  %v12385_v60 = vld [vmem:[#allocation93_spill] sm:$0xff] }
0x1aa8   :  { %v4777_v52 = vpack.c.bf16 %v4776_v39, %v4776_v39  ;;  %v12386_v39 = vld [vmem:[#allocation94_spill] sm:$0xff] }
0x1aaa   :  { %4812 = vmatmul.mubr.bf16.vlgmr.msra.gmra.mxu0 %v4777_v52  ;;  %4853 = vmatmul.mubr.bf16.vlgmr.msra.gmra.mxu1 %v4777_v52 }
0x1aab   :  { %4886 = vmatpush1.bf16.msra.mxu0 %v9985_v24  ;;  %4927 = vmatpush1.bf16.msra.mxu1 %v9988_v61  ;;  %v12333_v24 = vld [vmem:[#allocation67_spill] sm:$0xff]  ;;  %v12334_v61 = vld [vmem:[#allocation68_spill] sm:$0xff] }
0x1aac   :  { %4887 = vmatprep.subr.bf16.mxu0 %v9991_v36  ;;  %4928 = vmatprep.subr.bf16.mxu1 %v9994_v63  ;;  %v12335_v36 = vld [vmem:[#allocation102_spill] sm:$0xff]  ;;  %v12336_v63 = vld [vmem:[#allocation104_spill] sm:$0xff] }
0x1aad   :  { %4917 = vmatprep.mubr.bf16.mxu0 %v11649_v59  ;;  %4958 = vmatprep.mubr.bf16.mxu1 %v11649_v59 }
0x1aaf   :  { %4888 = vmatpush1.bf16.msra.mxu0 %v9999_v28  ;;  %4929 = vmatpush1.bf16.msra.mxu1 %v10002_v3  ;;  %v12337_v28 = vld [vmem:[#allocation105_spill] sm:$0xff]  ;;  %v12338_v3 = vld [vmem:[#allocation106_spill] sm:$0xff] }
0x1ab0   :  { %4889 = vmatprep.subr.bf16.mxu0 %v10005_v54  ;;  %4930 = vmatprep.subr.bf16.mxu1 %v10008_v27  ;;  %v12339_v54 = vld [vmem:[#allocation42_spill] sm:$0xff]  ;;  %v12340_v27 = vld [vmem:[#allocation101_spill] sm:$0xff] }
0x1ab3   :  { %4890 = vmatpush1.bf16.msra.mxu0 %v10011_v58  ;;  %4931 = vmatpush1.bf16.msra.mxu1 %v10014_v29  ;;  %v12341_v58 = vld [vmem:[#allocation103_spill] sm:$0xff] }
0x1ab4   :  { %4891 = vmatprep.subr.bf16.mxu0 %v10017_v23  ;;  %4932 = vmatprep.subr.bf16.mxu1 %v10020_v19  ;;  %v12342_v29 = vld [vmem:[#allocation27_spill] sm:$0xff]  ;;  %v12344_v19 = vld [vmem:[#allocation40_spill] sm:$0xff] }
0x1ab5   :  { %v12343_v23 = vld [vmem:[#allocation43_spill] sm:$0xff] }
0x1ab7   :  { %4892 = vmatpush1.bf16.msra.mxu0 %v10023_v62  ;;  %4933 = vmatpush1.bf16.msra.mxu1 %v10026_v13  ;;  %v12345_v62 = vld [vmem:[#allocation63_spill] sm:$0xff]  ;;  %v12346_v13 = vld [vmem:[#allocation24_spill] sm:$0xff] }
0x1ab8   :  { %4893 = vmatprep.subr.bf16.mxu0 %v10029_v8  ;;  %4934 = vmatprep.subr.bf16.mxu1 %v10032_v32  ;;  %v12347_v8 = vld [vmem:[#allocation23_spill] sm:$0xff]  ;;  %v12348_v32 = vld [vmem:[#allocation69_spill] sm:$0xff] }
0x1abb   :  { %4894 = vmatpush1.bf16.msra.mxu0 %v10035_v15  ;;  %4935 = vmatpush1.bf16.msra.mxu1 %v10038_v1  ;;  %v12349_v15 = vld [vmem:[#allocation70_spill] sm:$0xff] }
0x1abc   :  { %4895 = vmatprep.subr.bf16.mxu0 %v10041_v2  ;;  %4936 = vmatprep.subr.bf16.mxu1 %v10044_v9  ;;  %v12350_v1 = vld [vmem:[#allocation38_spill] sm:$0xff]  ;;  %v12351_v2 = vld [vmem:[#allocation37_spill] sm:$0xff]  ;;  %v12352_v9 = vld [vmem:[#allocation56_spill] sm:$0xff] }
0x1abf   :  { %4896 = vmatpush1.bf16.msra.mxu0 %v10047_v6  ;;  %4937 = vmatpush1.bf16.msra.mxu1 %v10050_v20  ;;  %v12353_v6 = vld [vmem:[#allocation71_spill] sm:$0xff]  ;;  %v12354_v20 = vld [vmem:[#allocation72_spill] sm:$0xff] }
0x1ac0   :  { %4897 = vmatprep.subr.bf16.mxu0 %v10053_v7  ;;  %4938 = vmatprep.subr.bf16.mxu1 %v10056_v42  ;;  %v12355_v7 = vld [vmem:[#allocation73_spill] sm:$0xff]  ;;  %v12356_v42 = vld [vmem:[#allocation74_spill] sm:$0xff] }
0x1ac3   :  { %4898 = vmatpush1.bf16.msra.mxu0 %v10059_v14  ;;  %4939 = vmatpush1.bf16.msra.mxu1 %v10062_v4  ;;  %v12357_v14 = vld [vmem:[#allocation75_spill] sm:$0xff]  ;;  %v12358_v4 = vld [vmem:[#allocation76_spill] sm:$0xff] }
0x1ac4   :  { %4899 = vmatprep.subr.bf16.mxu0 %v10065_v10  ;;  %4940 = vmatprep.subr.bf16.mxu1 %v10068_v22  ;;  %v12359_v10 = vld [vmem:[#allocation77_spill] sm:$0xff]  ;;  %v12360_v22 = vld [vmem:[#allocation78_spill] sm:$0xff] }
0x1ac7   :  { %4900 = vmatpush1.bf16.msra.mxu0 %v10071_v51  ;;  %4941 = vmatpush1.bf16.msra.mxu1 %v10074_v33  ;;  %v12361_v51 = vld [vmem:[#allocation79_spill] sm:$0xff]  ;;  %v12362_v33 = vld [vmem:[#allocation80_spill] sm:$0xff] }
0x1ac8   :  { %4997 = vmatprep.subr.bf16.mxu0 %v10077_v45  ;;  %5038 = vmatprep.subr.bf16.mxu1 %v10080_v5  ;;  %v12363_v45 = vld [vmem:[#allocation81_spill] sm:$0xff]  ;;  %v12364_v5 = vld [vmem:[#allocation82_spill] sm:$0xff] }
0x1aca   :  { %4918 = vmatmul.mubr.bf16.vlgmr.msra.gmra.mxu0 %v4777_v52  ;;  %4959 = vmatmul.mubr.bf16.vlgmr.msra.gmra.mxu1 %v4777_v52  ;;  %v12387_v52 = vld [vmem:[#allocation31_spill] sm:$0xff] }
0x1acb   :  { %4998 = vmatpush1.bf16.msra.mxu0 %v10085_v49  ;;  %5039 = vmatpush1.bf16.msra.mxu1 %v10088_v53  ;;  %v12365_v49 = vld [vmem:[#allocation83_spill] sm:$0xff]  ;;  %v12366_v53 = vld [vmem:[#allocation84_spill] sm:$0xff] }
0x1acc   :  { %4999 = vmatprep.subr.bf16.mxu0 %v10091_v11  ;;  %5040 = vmatprep.subr.bf16.mxu1 %v10094_v44  ;;  %v12367_v11 = vld [vmem:[#allocation85_spill] sm:$0xff]  ;;  %v12368_v44 = vld [vmem:[#allocation86_spill] sm:$0xff] }
0x1acf   :  { %5000 = vmatpush1.bf16.msra.mxu0 %v12333_v24  ;;  %5041 = vmatpush1.bf16.msra.mxu1 %v12334_v61  ;;  %v12388_v24 = vld [vmem:[#allocation30_spill] sm:$0xff]  ;;  %v12389_v61 = vld [vmem:[#allocation95_spill] sm:$0xff] }
0x1ad0   :  { %5001 = vmatprep.subr.bf16.mxu0 %v12335_v36  ;;  %5042 = vmatprep.subr.bf16.mxu1 %v12336_v63  ;;  %v12390_v36 = vld [vmem:[#allocation96_spill] sm:$0xff] }
0x1ad1   :  { %v10507_v63 = vld [vmem:[#allocation10 + $0xe4] ss:$16 sps:$4 sm:$0xff]  }
0x1ad3   :  { %5002 = vmatpush1.bf16.msra.mxu0 %v12337_v28  ;;  %5043 = vmatpush1.bf16.msra.mxu1 %v12338_v3  ;;  %v10510_v28 = vld [vmem:[#allocation10 + $0xec] ss:$16 sps:$4 sm:$0xff]  }
0x1ad4   :  { %5003 = vmatprep.subr.bf16.mxu0 %v12339_v54  ;;  %5044 = vmatprep.subr.bf16.mxu1 %v12340_v27 }
0x1ad7   :  { %5004 = vmatpush1.bf16.msra.mxu0 %v12341_v58  ;;  %5045 = vmatpush1.bf16.msra.mxu1 %v12342_v29 }
0x1ad8   :  { %5005 = vmatprep.subr.bf16.mxu0 %v12343_v23  ;;  %5046 = vmatprep.subr.bf16.mxu1 %v12344_v19  ;;  %v12391_v19 = vld [vmem:[#allocation58_spill] sm:$0xff] }
0x1adb   :  { %5006 = vmatpush1.bf16.msra.mxu0 %v12345_v62  ;;  %5047 = vmatpush1.bf16.msra.mxu1 %v12346_v13 }
0x1adc   :  { %5007 = vmatprep.subr.bf16.mxu0 %v12347_v8  ;;  %5048 = vmatprep.subr.bf16.mxu1 %v12348_v32 }
0x1adf   :  { %5008 = vmatpush1.bf16.msra.mxu0 %v12349_v15  ;;  %5049 = vmatpush1.bf16.msra.mxu1 %v12350_v1 }
0x1ae0   :  { %5009 = vmatprep.subr.bf16.mxu0 %v12351_v2  ;;  %5050 = vmatprep.subr.bf16.mxu1 %v12352_v9  ;;  %v12392_v2 = vld [vmem:[#allocation59_spill] sm:$0xff] }
0x1ae3   :  { %5010 = vmatpush1.bf16.msra.mxu0 %v12353_v6  ;;  %5051 = vmatpush1.bf16.msra.mxu1 %v12354_v20 }
0x1ae4   :  { %5011 = vmatprep.subr.bf16.mxu0 %v12355_v7  ;;  %5052 = vmatprep.subr.bf16.mxu1 %v12356_v42  ;;  %v12393_v7 = vld [vmem:[#allocation60_spill] sm:$0xff] }
0x1ae7   :  { %5012 = vmatpush1.bf16.msra.mxu0 %v12357_v14  ;;  %5053 = vmatpush1.bf16.msra.mxu1 %v12358_v4 }
0x1ae8   :  { %5013 = vmatprep.subr.bf16.mxu0 %v12359_v10  ;;  %5054 = vmatprep.subr.bf16.mxu1 %v12360_v22 }
0x1aeb   :  { %5014 = vmatpush2.bf16.msra.mxu0 %v12361_v51  ;;  %5055 = vmatpush2.bf16.msra.mxu1 %v12362_v33 }
0x1aec   :  { %5015 = vmatprep.subr.bf16.mxu0 %v12363_v45  ;;  %5056 = vmatprep.subr.bf16.mxu1 %v12364_v5 }
0x1aef   :  { %5016 = vmatpush2.bf16.msra.mxu0 %v12365_v49  ;;  %5057 = vmatpush2.bf16.msra.mxu1 %v12366_v53 }
0x1af0   :  { %5017 = vmatprep.subr.bf16.mxu0 %v12367_v11  ;;  %5058 = vmatprep.subr.bf16.mxu1 %v12368_v44 }
0x1af3   :  { %5018 = vmatpush2.bf16.msra.mxu0 %v12369_v55  ;;  %5059 = vmatpush2.bf16.msra.mxu1 %v12370_v48 }
0x1af4   :  { %5019 = vmatprep.subr.bf16.mxu0 %v12371_v31  ;;  %5060 = vmatprep.subr.bf16.mxu1 %v12372_v12 }
0x1af7   :  { %5020 = vmatpush2.bf16.msra.mxu0 %v12373_v21  ;;  %5061 = vmatpush2.bf16.msra.mxu1 %v12374_v57 }
0x1af8   :  { %5021 = vmatprep.subr.bf16.mxu0 %v12375_v17  ;;  %5062 = vmatprep.subr.bf16.mxu1 %v12376_v41 }
0x1afb   :  { %5022 = vmatpush2.bf16.msra.mxu0 %v12377_v47  ;;  %5063 = vmatpush2.bf16.msra.mxu1 %v12378_v0 }
0x1afc   :  { %5023 = vmatprep.subr.bf16.mxu0 %v12379_v16  ;;  %5064 = vmatprep.subr.bf16.mxu1 %v12380_v50 }
0x1aff   :  { %5024 = vmatpush2.bf16.msra.mxu0 %v12381_v37  ;;  %5065 = vmatpush2.bf16.msra.mxu1 %v12382_v18 }
0x1b00   :  { %5025 = vmatprep.subr.bf16.mxu0 %v12383_v25  ;;  %5066 = vmatprep.subr.bf16.mxu1 %v12384_v46 }
0x1b03   :  { %5026 = vmatpush2.bf16.msra.mxu0 %v12385_v60  ;;  %5067 = vmatpush2.bf16.msra.mxu1 %v12386_v39 }
0x1b04   :  { %5027 = vmatprep.subr.bf16.mxu0 %v12387_v52  ;;  %5068 = vmatprep.subr.bf16.mxu1 %v12388_v24 }
0x1b07   :  { %5028 = vmatpush2.bf16.msra.mxu0 %v12389_v61  ;;  %5069 = vmatpush2.bf16.msra.mxu1 %v12390_v36 }
0x1b08   :  { %5103 = vmatprep.subr.bf16.mxu0 %v10507_v63  ;;  %5144 = vmatprep.subr.bf16.mxu1 %v10510_v28 }
0x1b6a   :  { %v4813_v3 = vpop.f32.mrf.mxu0  ;;  %v4854_v54 = vpop.f32.mrf.mxu1 }
0x1b6b   :  { %v4814_v27 = vadd.f32 %v4813_v3, %v12205_v38  ;;  %v4855_v42 = vadd.f32 %v4854_v54, %v12393_v7 }
0x1b6c   :  { %v4815_v58 = vpop.f32.mrf.mxu0  ;;  %v4856_v29 = vpop.f32.mrf.mxu1 }
0x1b6d   :  { %v6026_v23 = vmul.f32 -1.442695, %v4814_v27  ;;  %v4816_v62 = vadd.f32 %v4815_v58, %v12391_v19  ;;  %v4857_v9 = vadd.f32 %v4856_v29, %v12392_v2 }
0x1b6e   :  { %v4817_v13 = vpop.f32.mrf.mxu0  ;;  %v4858_v8 = vpop.f32.mrf.mxu1 }
0x1b6f   :  { %6876 = vpow2.f32 %v6026_v23  ;;  %v6027_v32 = vmul.f32 -1.442695, %v4816_v62  ;;  %v6028_v6 = vmul.f32 -1.442695, %v4857_v9  ;;  %v10540_v9 = vld [vmem:[#allocation10 + $0xe8] ss:$16 sps:$4 sm:$0xff]  }
0x1b70   :  { %v4818_v15 = vpop.f32.mrf.mxu0  ;;  %v4859_v1 = vpop.f32.mrf.mxu1 }
0x1b71   :  { %6878 = vpow2.f32 %v6027_v32  ;;  %v10537_v1 = vld [vmem:[#allocation10 + $0xe0] ss:$16 sps:$4 sm:$0xff]  }
0x1b72   :  { %6880 = vpow2.f32 %v6028_v6  ;;  %v10546_v6 = vld [vmem:[#allocation10 + $0xcc] ss:$16 sps:$4 sm:$0xff]  }
0x1b7c   :  { %v6877_v20 = vpop.eup %6876 }
0x1b7d   :  { %v4864_v14 = vadd.f32 1.0, %v6877_v20  ;;  %v10551_v20 = vld [vmem:[#allocation10 + $0xc0] ss:$16 sps:$4 sm:$0xff]  }
0x1b7e   :  { %v6879_v4 = vpop.eup %6878 }
0x1b7f   :  { %6882 = vrcp.f32 %v4864_v14  ;;  %v4870_v10 = vadd.f32 1.0, %v6879_v4  ;;  %v6881_v33 = vpop.eup %6880  ;;  %v10557_v14 = vld [vmem:[#allocation10 + $0xa4] ss:$16 sps:$4 sm:$0xff]   ;;  %v10560_v4 = vld [vmem:[#allocation10 + $0xac] ss:$16 sps:$4 sm:$0xff]  }
0x1b80   :  { %6884 = vtanh.f32 %v4855_v42  ;;  %v4877_v31 = vadd.f32 1.0, %v6881_v33  ;;  %v10554_v42 = vld [vmem:[#allocation10 + $0xc8] ss:$16 sps:$4 sm:$0xff]   ;;  %v10572_v33 = vld [vmem:[#allocation10 + $0x8c] ss:$16 sps:$4 sm:$0xff]  }
0x1b81   :  { %6886 = vrcp.f32 %v4870_v10  ;;  %v10563_v10 = vld [vmem:[#allocation10 + $0xa0] ss:$16 sps:$4 sm:$0xff]  }
0x1b8a   :  { %v4919_v22 = vpop.f32.mrf.mxu0  ;;  %v4960_v51 = vpop.f32.mrf.mxu1 }
0x1b8b   :  { %v4967_v45 = vadd.f32 %v4919_v22, %v12145_v56  ;;  %v4969_v25 = vadd.f32 %v4960_v51, %v9724_v26  ;;  %v10566_v22 = vld [vmem:[#allocation10 + $0xa8] ss:$16 sps:$4 sm:$0xff]   ;;  %v10569_v51 = vld [vmem:[#allocation10 + $0x84] ss:$16 sps:$4 sm:$0xff]  }
0x1b8c   :  { %v6883_v5 = vpop.eup %6882  ;;  %v4921_v49 = vpop.f32.mrf.mxu0 }
0x1b8d   :  { %v4962_v53 = vpop.f32.mrf.mxu1  ;;  %v6885_v11 = vpop.eup %6884  ;;  %v6029_v44 = vmul.f32 -1.442695, %v4967_v45  ;;  %v4968_v55 = vadd.f32 %v4921_v49, %v9715_v43  ;;  %v10575_v45 = vld [vmem:[#allocation10 + $0x80] ss:$16 sps:$4 sm:$0xff]   ;;  %v10581_v49 = vld [vmem:[#allocation10 + $0x64] ss:$16 sps:$4 sm:$0xff]  }
0x1b8e   :  { %v6887_v48 = vpop.eup %6886  ;;  %v4923_v12 = vpop.f32.mrf.mxu0  ;;  %v4881_v57 = vmul.f32 %v6885_v11, %v6883_v5  ;;  %v4970_v50 = vadd.f32 %v4962_v53, %v9720_v35  ;;  %v10578_v5 = vld [vmem:[#allocation10 + $0x88] ss:$16 sps:$4 sm:$0xff]   ;;  %v10584_v53 = vld [vmem:[#allocation10 + $0x6c] ss:$16 sps:$4 sm:$0xff]   ;;  %v10587_v11 = vld [vmem:[#allocation10 + $0x60] ss:$16 sps:$4 sm:$0xff]  }
0x1b8f   :  { %v4964_v21 = vpop.f32.mrf.mxu1  ;;  %v4880_v17 = vmul.f32 %v6887_v48, %v10398_v30  ;;  %6888 = vpow2.f32 %v6029_v44  ;;  %v6030_v41 = vmul.f32 -1.442695, %v4968_v55  ;;  %v10590_v44 = vld [vmem:[#allocation10 + $0x68] ss:$16 sps:$4 sm:$0xff]   ;;  %v10593_v55 = vld [vmem:[#allocation10 + $0x44] ss:$16 sps:$4 sm:$0xff]  }
0x1b90   :  { %v4924_v47 = vpop.f32.mrf.mxu0  ;;  %v6031_v37 = vmul.f32 -1.442695, %v4970_v50  ;;  %v10596_v48 = vld [vmem:[#allocation10 + $0x4c] ss:$16 sps:$4 sm:$0xff]   ;;  %v10602_v12 = vld [vmem:[#allocation10 + $0x48] ss:$16 sps:$4 sm:$0xff]  }
0x1b91   :  { %v4965_v0 = vpop.f32.mrf.mxu1  ;;  %v10520_v16 = vadd.f32 %v4881_v57, %v4880_v17  ;;  %6890 = vpow2.f32 %v6030_v41  ;;  %v10605_v21 = vld [vmem:[#allocation10 + $0x24] ss:$16 sps:$4 sm:$0xff]   ;;  %v10608_v57 = vld [vmem:[#allocation10 + $0x2c] ss:$16 sps:$4 sm:$0xff]   ;;  %v10611_v17 = vld [vmem:[#allocation10 + $0x20] ss:$16 sps:$4 sm:$0xff]  }
0x1b92   :  { %6892 = vrcp.f32 %v4877_v31  ;;  %v10599_v31 = vld [vmem:[#allocation10 + $0x40] ss:$16 sps:$4 sm:$0xff]   ;;  %v10614_v41 = vld [vmem:[#allocation10 + $0x28] ss:$16 sps:$4 sm:$0xff]   ;;  %v10617_v47 = vld [vmem:[#allocation10 + $0x4] ss:$16 sps:$4 sm:$0xff]  }
0x1b93   :  { %6894 = vtanh.f32 %v10520_v16  ;;  %v10620_v0 = vld [vmem:[#allocation10 + $0xc] ss:$16 sps:$4 sm:$0xff]   ;;  %v10623_v50 = vld [vmem:[#allocation10] ss:$16 sps:$4 sm:$0xff]  }
0x1b94   :  { %6896 = vpow2.f32 %v6031_v37  ;;  %v10626_v37 = vld [vmem:[#allocation10 + $0x8] ss:$16 sps:$4 sm:$0xff]  }
0x1b9c   :  { %v6889_v18 = vpop.eup %6888 }
0x1b9d   :  { %v4974_v46 = vadd.f32 1.0, %v6889_v18  ;;  %v10629_v18 = vld [vmem:[#allocation13 + $0xe4] ss:$16 sps:$4 sm:$0xff]  }
0x1b9e   :  { %v6891_v60 = vpop.eup %6890 }
0x1b9f   :  { %v6893_v30 = vpop.eup %6892  ;;  %6898 = vrcp.f32 %v4974_v46  ;;  %v4980_v39 = vadd.f32 1.0, %v6891_v60  ;;  %v10637_v46 = vld [vmem:[#allocation13 + $0xe0] ss:$16 sps:$4 sm:$0xff]   ;;  %v10640_v60 = vld [vmem:[#allocation13 + $0xe8] ss:$16 sps:$4 sm:$0xff]  }
0x1ba0   :  { %v6895_v52 = vpop.eup %6894  ;;  %6900 = vtanh.f32 %v4969_v25  ;;  %v10632_v25 = vld [vmem:[#allocation13 + $0xec] ss:$16 sps:$4 sm:$0xff]  }
0x1ba1   :  { %6902 = vrcp.f32 %v4980_v39  ;;  %v10525_v24 = vmul.f32 %v6895_v52, %v6893_v30  ;;  %v6897_v36 = vpop.eup %6896  ;;  %v10643_v30 = vld [vmem:[#allocation13 + $0xc4] ss:$16 sps:$4 sm:$0xff]   ;;  %v10646_v39 = vld [vmem:[#allocation13 + $0xcc] ss:$16 sps:$4 sm:$0xff]   ;;  %v10649_v52 = vld [vmem:[#allocation13 + $0xc0] ss:$16 sps:$4 sm:$0xff]  }
0x1ba2   :  { %v4987_v58 = vadd.f32 1.0, %v6897_v36  ;;  %12395 = vst [vmem:[#allocation26_spill] sm:$0xff] %v10649_v52  ;;  %v10655_v36 = vld [vmem:[#allocation13 + $0xa4] ss:$16 sps:$4 sm:$0xff]  }
0x1ba3   :  { %12394 = vst [vmem:[#allocation41_spill] sm:$0xff] %v10525_v24  ;;  %v4996_v61 = vpack.c.bf16 %v10525_v24, %v10525_v24  ;;  %12397 = vst [vmem:[#allocation44_spill] sm:$0xff] %v10655_v36  ;;  %v10688_v24 = vld [vmem:[#allocation13 + $0x68] ss:$16 sps:$4 sm:$0xff]  }
0x1ba4   :  { %6904 = vrcp.f32 %v4987_v58  ;;  %v10667_v58 = vld [vmem:[#allocation13 + $0x84] ss:$16 sps:$4 sm:$0xff]   ;;  %12408 = vst [vmem:[#allocation54_spill] sm:$0xff] %v10688_v24 }
0x1ba5   :  { %5029 = vmatprep.mubr.bf16.mxu0 %v4996_v61  ;;  %5070 = vmatprep.mubr.bf16.mxu1 %v4996_v61  ;;  %v10652_v61 = vld [vmem:[#allocation13 + $0xc8] ss:$16 sps:$4 sm:$0xff]   ;;  %12401 = vst [vmem:[#allocation47_spill] sm:$0xff] %v10667_v58 }
0x1ba6   :  { %12396 = vst [vmem:[#allocation25_spill] sm:$0xff] %v10652_v61 }
0x1bac   :  { %v6899_v3 = vpop.eup %6898 }
0x1bad   :  { %v6901_v54 = vpop.eup %6900 }
0x1bae   :  { %v6903_v27 = vpop.eup %6902  ;;  %v4991_v29 = vmul.f32 %v6901_v54, %v6899_v3  ;;  %v10658_v3 = vld [vmem:[#allocation13 + $0xac] ss:$16 sps:$4 sm:$0xff]   ;;  %v10661_v54 = vld [vmem:[#allocation13 + $0xa0] ss:$16 sps:$4 sm:$0xff]  }
0x1baf   :  { %v4990_v23 = vmul.f32 %v6903_v27, %v10408_v40  ;;  %v10543_v40 = vld [vmem:[#allocation10 + $0xc4] ss:$16 sps:$4 sm:$0xff]   ;;  %12398 = vst [vmem:[#allocation64_spill] sm:$0xff] %v10658_v3  ;;  %12399 = vst [vmem:[#allocation45_spill] sm:$0xff] %v10661_v54  ;;  %v10664_v27 = vld [vmem:[#allocation13 + $0xa8] ss:$16 sps:$4 sm:$0xff]  }
0x1bb0   :  { %12400 = vst [vmem:[#allocation46_spill] sm:$0xff] %v10664_v27 }
0x1bb1   :  { %v10530_v62 = vadd.f32 %v4991_v29, %v4990_v23  ;;  %v6905_v13 = vpop.eup %6904  ;;  %v10670_v29 = vld [vmem:[#allocation13 + $0x8c] ss:$16 sps:$4 sm:$0xff]   ;;  %v10673_v23 = vld [vmem:[#allocation13 + $0x80] ss:$16 sps:$4 sm:$0xff]  }
0x1bb2   :  { %12402 = vst [vmem:[#allocation48_spill] sm:$0xff] %v10670_v29  ;;  %12403 = vst [vmem:[#allocation49_spill] sm:$0xff] %v10673_v23 }
0x1bb3   :  { %6906 = vtanh.f32 %v10530_v62 }
0x1bc0   :  { %v6907_v8 = vpop.eup %6906 }
0x1bc1   :  { %v4994_v32 = vmul.f32 %v6907_v8, %v6905_v13  ;;  %v10676_v13 = vld [vmem:[#allocation13 + $0x88] ss:$16 sps:$4 sm:$0xff]   ;;  %v10679_v8 = vld [vmem:[#allocation13 + $0x64] ss:$16 sps:$4 sm:$0xff]  }
0x1bc2   :  { %12404 = vst [vmem:[#allocation50_spill] sm:$0xff] %v10676_v13  ;;  %12405 = vst [vmem:[#allocation51_spill] sm:$0xff] %v10679_v8 }
0x1bc3   :  { %v10533_v15 = vpack.c.bf16 %v4994_v32, %v4994_v32  ;;  %v10682_v32 = vld [vmem:[#allocation13 + $0x6c] ss:$16 sps:$4 sm:$0xff]  }
0x1bc4   :  { %12406 = vst [vmem:[#allocation52_spill] sm:$0xff] %v10682_v32 }
0x1bc5   :  { %5030 = vmatmul.mubr.bf16.vlgmr.msra.gmra.mxu0 %v10533_v15  ;;  %5071 = vmatmul.mubr.bf16.vlgmr.msra.gmra.mxu1 %v10533_v15 }
0x1bc6   :  { %5104 = vmatpush1.bf16.msra.mxu0 %v10537_v1  ;;  %5145 = vmatpush1.bf16.msra.mxu1 %v10540_v9 }
0x1bc7   :  { %5105 = vmatprep.subr.bf16.mxu0 %v10543_v40  ;;  %5146 = vmatprep.subr.bf16.mxu1 %v10546_v6 }
0x1bc8   :  { %5135 = vmatprep.mubr.bf16.mxu0 %v11649_v59  ;;  %5176 = vmatprep.mubr.bf16.mxu1 %v11649_v59 }
0x1bca   :  { %5106 = vmatpush1.bf16.msra.mxu0 %v10551_v20  ;;  %5147 = vmatpush1.bf16.msra.mxu1 %v10554_v42 }
0x1bcb   :  { %5107 = vmatprep.subr.bf16.mxu0 %v10557_v14  ;;  %5148 = vmatprep.subr.bf16.mxu1 %v10560_v4 }
0x1bce   :  { %5108 = vmatpush1.bf16.msra.mxu0 %v10563_v10  ;;  %5149 = vmatpush1.bf16.msra.mxu1 %v10566_v22 }
0x1bcf   :  { %5109 = vmatprep.subr.bf16.mxu0 %v10569_v51  ;;  %5150 = vmatprep.subr.bf16.mxu1 %v10572_v33 }
0x1bd2   :  { %5110 = vmatpush1.bf16.msra.mxu0 %v10575_v45  ;;  %5151 = vmatpush1.bf16.msra.mxu1 %v10578_v5 }
0x1bd3   :  { %5111 = vmatprep.subr.bf16.mxu0 %v10581_v49  ;;  %5152 = vmatprep.subr.bf16.mxu1 %v10584_v53 }
0x1bd6   :  { %5112 = vmatpush1.bf16.msra.mxu0 %v10587_v11  ;;  %5153 = vmatpush1.bf16.msra.mxu1 %v10590_v44 }
0x1bd7   :  { %5113 = vmatprep.subr.bf16.mxu0 %v10593_v55  ;;  %5154 = vmatprep.subr.bf16.mxu1 %v10596_v48 }
0x1bda   :  { %5114 = vmatpush1.bf16.msra.mxu0 %v10599_v31  ;;  %5155 = vmatpush1.bf16.msra.mxu1 %v10602_v12 }
0x1bdb   :  { %5115 = vmatprep.subr.bf16.mxu0 %v10605_v21  ;;  %5156 = vmatprep.subr.bf16.mxu1 %v10608_v57 }
0x1bde   :  { %5116 = vmatpush1.bf16.msra.mxu0 %v10611_v17  ;;  %5157 = vmatpush1.bf16.msra.mxu1 %v10614_v41 }
0x1bdf   :  { %5117 = vmatprep.subr.bf16.mxu0 %v10617_v47  ;;  %5158 = vmatprep.subr.bf16.mxu1 %v10620_v0 }
0x1be2   :  { %5118 = vmatpush1.bf16.msra.mxu0 %v10623_v50  ;;  %5159 = vmatpush1.bf16.msra.mxu1 %v10626_v37 }
0x1be3   :  { %5215 = vmatprep.subr.bf16.mxu0 %v10629_v18  ;;  %5256 = vmatprep.subr.bf16.mxu1 %v10632_v25 }
0x1be5   :  { %5136 = vmatmul.mubr.bf16.vlgmr.msra.gmra.mxu0 %v10533_v15  ;;  %5177 = vmatmul.mubr.bf16.vlgmr.msra.gmra.mxu1 %v10533_v15  ;;  %v10685_v15 = vld [vmem:[#allocation13 + $0x60] ss:$16 sps:$4 sm:$0xff]  }
0x1be6   :  { %5216 = vmatpush1.bf16.msra.mxu0 %v10637_v46  ;;  %5257 = vmatpush1.bf16.msra.mxu1 %v10640_v60  ;;  %12407 = vst [vmem:[#allocation53_spill] sm:$0xff] %v10685_v15 }
0x1be7   :  { %5217 = vmatprep.subr.bf16.mxu0 %v10643_v30  ;;  %5258 = vmatprep.subr.bf16.mxu1 %v10646_v39 }
0x1bea   :  { %5218 = vmatpush1.bf16.msra.mxu0 %v10649_v52  ;;  %5259 = vmatpush1.bf16.msra.mxu1 %v10652_v61 }
0x1beb   :  { %5219 = vmatprep.subr.bf16.mxu0 %v10655_v36  ;;  %5260 = vmatprep.subr.bf16.mxu1 %v10658_v3 }
0x1bee   :  { %5220 = vmatpush1.bf16.msra.mxu0 %v10661_v54  ;;  %5261 = vmatpush1.bf16.msra.mxu1 %v10664_v27 }
0x1bef   :  { %5221 = vmatprep.subr.bf16.mxu0 %v10667_v58  ;;  %5262 = vmatprep.subr.bf16.mxu1 %v10670_v29 }
0x1bf2   :  { %5222 = vmatpush1.bf16.msra.mxu0 %v10673_v23  ;;  %5263 = vmatpush1.bf16.msra.mxu1 %v10676_v13  ;;  %v10694_v13 = vld [vmem:[#allocation13 + $0x4c] ss:$16 sps:$4 sm:$0xff]  }
0x1bf3   :  { %5223 = vmatprep.subr.bf16.mxu0 %v10679_v8  ;;  %5264 = vmatprep.subr.bf16.mxu1 %v10682_v32  ;;  %12410 = vst [vmem:[#allocation57_spill] sm:$0xff] %v10694_v13  ;;  %v10697_v8 = vld [vmem:[#allocation13 + $0x40] ss:$16 sps:$4 sm:$0xff]   ;;  %v10700_v32 = vld [vmem:[#allocation13 + $0x48] ss:$16 sps:$4 sm:$0xff]  }
0x1bf4   :  { %12411 = vst [vmem:[#allocation62_spill] sm:$0xff] %v10697_v8  ;;  %12412 = vst [vmem:[#allocation65_spill] sm:$0xff] %v10700_v32 }
0x1bf6   :  { %5224 = vmatpush1.bf16.msra.mxu0 %v10685_v15  ;;  %5265 = vmatpush1.bf16.msra.mxu1 %v10688_v24  ;;  %v10703_v15 = vld [vmem:[#allocation13 + $0x24] ss:$16 sps:$4 sm:$0xff]   ;;  %v10706_v24 = vld [vmem:[#allocation13 + $0x2c] ss:$16 sps:$4 sm:$0xff]  }
0x1bf7   :  { %5225 = vmatprep.subr.bf16.mxu0 %v10691_v34  ;;  %5266 = vmatprep.subr.bf16.mxu1 %v10694_v13  ;;  %12413 = vst [vmem:[#allocation67_spill] sm:$0xff] %v10703_v15  ;;  %12414 = vst [vmem:[#allocation68_spill] sm:$0xff] %v10706_v24  ;;  %v10709_v34 = vld [vmem:[#allocation13 + $0x20] ss:$16 sps:$4 sm:$0xff]   ;;  %v10712_v13 = vld [vmem:[#allocation13 + $0x28] ss:$16 sps:$4 sm:$0xff]  }
0x1bf8   :  { %12415 = vst [vmem:[#allocation102_spill] sm:$0xff] %v10709_v34  ;;  %12416 = vst [vmem:[#allocation104_spill] sm:$0xff] %v10712_v13 }
0x1bfa   :  { %5226 = vmatpush1.bf16.msra.mxu0 %v10697_v8  ;;  %5267 = vmatpush1.bf16.msra.mxu1 %v10700_v32  ;;  %v10715_v8 = vld [vmem:[#allocation13 + $0x4] ss:$16 sps:$4 sm:$0xff]   ;;  %v10718_v32 = vld [vmem:[#allocation13 + $0xc] ss:$16 sps:$4 sm:$0xff]  }
0x1bfb   :  { %5227 = vmatprep.subr.bf16.mxu0 %v10703_v15  ;;  %5268 = vmatprep.subr.bf16.mxu1 %v10706_v24  ;;  %12417 = vst [vmem:[#allocation105_spill] sm:$0xff] %v10715_v8  ;;  %12418 = vst [vmem:[#allocation106_spill] sm:$0xff] %v10718_v32  ;;  %v10721_v15 = vld [vmem:[#allocation13] ss:$16 sps:$4 sm:$0xff]   ;;  %v10724_v24 = vld [vmem:[#allocation13 + $0x8] ss:$16 sps:$4 sm:$0xff]  }
0x1bfc   :  { %12419 = vst [vmem:[#allocation42_spill] sm:$0xff] %v10721_v15  ;;  %12420 = vst [vmem:[#allocation101_spill] sm:$0xff] %v10724_v24 }
0x1bfe   :  { %5228 = vmatpush1.bf16.msra.mxu0 %v10709_v34  ;;  %5269 = vmatpush1.bf16.msra.mxu1 %v10712_v13  ;;  %v10727_v34 = vld [vmem:[#allocation13 + $0x1e4] ss:$16 sps:$4 sm:$0xff]   ;;  %v10730_v13 = vld [vmem:[#allocation13 + $0x1ec] ss:$16 sps:$4 sm:$0xff]  }
0x1bff   :  { %5229 = vmatprep.subr.bf16.mxu0 %v10715_v8  ;;  %5270 = vmatprep.subr.bf16.mxu1 %v10718_v32  ;;  %12421 = vst [vmem:[#allocation103_spill] sm:$0xff] %v10727_v34  ;;  %12422 = vst [vmem:[#allocation27_spill] sm:$0xff] %v10730_v13  ;;  %v10733_v8 = vld [vmem:[#allocation13 + $0x1e0] ss:$16 sps:$4 sm:$0xff]   ;;  %v10736_v32 = vld [vmem:[#allocation13 + $0x1e8] ss:$16 sps:$4 sm:$0xff]  }
0x1c00   :  { %12423 = vst [vmem:[#allocation43_spill] sm:$0xff] %v10733_v8  ;;  %12424 = vst [vmem:[#allocation40_spill] sm:$0xff] %v10736_v32 }
0x1c02   :  { %5230 = vmatpush1.bf16.msra.mxu0 %v10721_v15  ;;  %5271 = vmatpush1.bf16.msra.mxu1 %v10724_v24  ;;  %v10739_v15 = vld [vmem:[#allocation13 + $0x1c4] ss:$16 sps:$4 sm:$0xff]   ;;  %v10742_v24 = vld [vmem:[#allocation13 + $0x1cc] ss:$16 sps:$4 sm:$0xff]  }
0x1c03   :  { %5231 = vmatprep.subr.bf16.mxu0 %v10727_v34  ;;  %5272 = vmatprep.subr.bf16.mxu1 %v10730_v13  ;;  %12425 = vst [vmem:[#allocation63_spill] sm:$0xff] %v10739_v15  ;;  %12426 = vst [vmem:[#allocation24_spill] sm:$0xff] %v10742_v24  ;;  %v10745_v34 = vld [vmem:[#allocation13 + $0x1c0] ss:$16 sps:$4 sm:$0xff]   ;;  %v10748_v13 = vld [vmem:[#allocation13 + $0x1c8] ss:$16 sps:$4 sm:$0xff]  }
0x1c04   :  { %12427 = vst [vmem:[#allocation23_spill] sm:$0xff] %v10745_v34  ;;  %12428 = vst [vmem:[#allocation69_spill] sm:$0xff] %v10748_v13 }
0x1c06   :  { %5232 = vmatpush2.bf16.msra.mxu0 %v10733_v8  ;;  %5273 = vmatpush2.bf16.msra.mxu1 %v10736_v32  ;;  %v10751_v8 = vld [vmem:[#allocation13 + $0x1a4] ss:$16 sps:$4 sm:$0xff]   ;;  %v10754_v32 = vld [vmem:[#allocation13 + $0x1ac] ss:$16 sps:$4 sm:$0xff]  }
0x1c07   :  { %5233 = vmatprep.subr.bf16.mxu0 %v10739_v15  ;;  %5274 = vmatprep.subr.bf16.mxu1 %v10742_v24  ;;  %12429 = vst [vmem:[#allocation70_spill] sm:$0xff] %v10751_v8  ;;  %12430 = vst [vmem:[#allocation38_spill] sm:$0xff] %v10754_v32  ;;  %v10757_v15 = vld [vmem:[#allocation13 + $0x1a0] ss:$16 sps:$4 sm:$0xff]   ;;  %v10760_v24 = vld [vmem:[#allocation13 + $0x1a8] ss:$16 sps:$4 sm:$0xff]  }
0x1c08   :  { %12431 = vst [vmem:[#allocation37_spill] sm:$0xff] %v10757_v15  ;;  %12432 = vst [vmem:[#allocation56_spill] sm:$0xff] %v10760_v24 }
0x1c0a   :  { %5234 = vmatpush2.bf16.msra.mxu0 %v10745_v34  ;;  %5275 = vmatpush2.bf16.msra.mxu1 %v10748_v13  ;;  %v10763_v34 = vld [vmem:[#allocation13 + $0x184] ss:$16 sps:$4 sm:$0xff]   ;;  %v10766_v13 = vld [vmem:[#allocation13 + $0x18c] ss:$16 sps:$4 sm:$0xff]  }
0x1c0b   :  { %5235 = vmatprep.subr.bf16.mxu0 %v10751_v8  ;;  %5276 = vmatprep.subr.bf16.mxu1 %v10754_v32  ;;  %12433 = vst [vmem:[#allocation71_spill] sm:$0xff] %v10763_v34  ;;  %12434 = vst [vmem:[#allocation72_spill] sm:$0xff] %v10766_v13  ;;  %v10769_v8 = vld [vmem:[#allocation13 + $0x180] ss:$16 sps:$4 sm:$0xff]   ;;  %v10772_v32 = vld [vmem:[#allocation13 + $0x188] ss:$16 sps:$4 sm:$0xff]  }
0x1c0c   :  { %12435 = vst [vmem:[#allocation73_spill] sm:$0xff] %v10769_v8  ;;  %12436 = vst [vmem:[#allocation74_spill] sm:$0xff] %v10772_v32 }
0x1c0e   :  { %5236 = vmatpush2.bf16.msra.mxu0 %v10757_v15  ;;  %5277 = vmatpush2.bf16.msra.mxu1 %v10760_v24  ;;  %v10775_v15 = vld [vmem:[#allocation13 + $0x164] ss:$16 sps:$4 sm:$0xff]   ;;  %v10778_v24 = vld [vmem:[#allocation13 + $0x16c] ss:$16 sps:$4 sm:$0xff]  }
0x1c0f   :  { %5237 = vmatprep.subr.bf16.mxu0 %v10763_v34  ;;  %5278 = vmatprep.subr.bf16.mxu1 %v10766_v13  ;;  %12437 = vst [vmem:[#allocation75_spill] sm:$0xff] %v10775_v15  ;;  %12438 = vst [vmem:[#allocation76_spill] sm:$0xff] %v10778_v24  ;;  %v10781_v34 = vld [vmem:[#allocation13 + $0x160] ss:$16 sps:$4 sm:$0xff]   ;;  %v10784_v13 = vld [vmem:[#allocation13 + $0x168] ss:$16 sps:$4 sm:$0xff]  }
0x1c10   :  { %12439 = vst [vmem:[#allocation77_spill] sm:$0xff] %v10781_v34  ;;  %12440 = vst [vmem:[#allocation78_spill] sm:$0xff] %v10784_v13 }
0x1c12   :  { %5238 = vmatpush2.bf16.msra.mxu0 %v10769_v8  ;;  %5279 = vmatpush2.bf16.msra.mxu1 %v10772_v32  ;;  %v10787_v8 = vld [vmem:[#allocation13 + $0x144] ss:$16 sps:$4 sm:$0xff]   ;;  %v10790_v32 = vld [vmem:[#allocation13 + $0x14c] ss:$16 sps:$4 sm:$0xff]  }
0x1c13   :  { %5239 = vmatprep.subr.bf16.mxu0 %v10775_v15  ;;  %5280 = vmatprep.subr.bf16.mxu1 %v10778_v24  ;;  %12441 = vst [vmem:[#allocation79_spill] sm:$0xff] %v10787_v8  ;;  %12442 = vst [vmem:[#allocation80_spill] sm:$0xff] %v10790_v32  ;;  %v10793_v15 = vld [vmem:[#allocation13 + $0x140] ss:$16 sps:$4 sm:$0xff]   ;;  %v10796_v24 = vld [vmem:[#allocation13 + $0x148] ss:$16 sps:$4 sm:$0xff]  }
0x1c14   :  { %12443 = vst [vmem:[#allocation81_spill] sm:$0xff] %v10793_v15  ;;  %12444 = vst [vmem:[#allocation82_spill] sm:$0xff] %v10796_v24 }
0x1c16   :  { %5240 = vmatpush2.bf16.msra.mxu0 %v10781_v34  ;;  %5281 = vmatpush2.bf16.msra.mxu1 %v10784_v13  ;;  %v10799_v34 = vld [vmem:[#allocation13 + $0x124] ss:$16 sps:$4 sm:$0xff]   ;;  %v10802_v13 = vld [vmem:[#allocation13 + $0x12c] ss:$16 sps:$4 sm:$0xff]  }
0x1c17   :  { %5241 = vmatprep.subr.bf16.mxu0 %v10787_v8  ;;  %5282 = vmatprep.subr.bf16.mxu1 %v10790_v32  ;;  %12445 = vst [vmem:[#allocation83_spill] sm:$0xff] %v10799_v34  ;;  %12446 = vst [vmem:[#allocation84_spill] sm:$0xff] %v10802_v13  ;;  %v10805_v8 = vld [vmem:[#allocation13 + $0x120] ss:$16 sps:$4 sm:$0xff]   ;;  %v10808_v32 = vld [vmem:[#allocation13 + $0x128] ss:$16 sps:$4 sm:$0xff]  }
0x1c18   :  { %12447 = vst [vmem:[#allocation85_spill] sm:$0xff] %v10805_v8  ;;  %12448 = vst [vmem:[#allocation86_spill] sm:$0xff] %v10808_v32 }
0x1c1a   :  { %5242 = vmatpush2.bf16.msra.mxu0 %v10793_v15  ;;  %5283 = vmatpush2.bf16.msra.mxu1 %v10796_v24  ;;  %v10811_v15 = vld [vmem:[#allocation13 + $0x104] ss:$16 sps:$4 sm:$0xff]   ;;  %v10814_v24 = vld [vmem:[#allocation13 + $0x10c] ss:$16 sps:$4 sm:$0xff]  }
0x1c1b   :  { %5243 = vmatprep.subr.bf16.mxu0 %v10799_v34  ;;  %5284 = vmatprep.subr.bf16.mxu1 %v10802_v13  ;;  %12449 = vst [vmem:[#allocation87_spill] sm:$0xff] %v10811_v15  ;;  %12450 = vst [vmem:[#allocation97_spill] sm:$0xff] %v10814_v24  ;;  %v10817_v34 = vld [vmem:[#allocation13 + $0x100] ss:$16 sps:$4 sm:$0xff]   ;;  %v10820_v13 = vld [vmem:[#allocation13 + $0x108] ss:$16 sps:$4 sm:$0xff]  }
0x1c1c   :  { %12451 = vst [vmem:[#allocation98_spill] sm:$0xff] %v10817_v34  ;;  %12452 = vst [vmem:[#allocation35_spill] sm:$0xff] %v10820_v13 }
0x1c1e   :  { %5244 = vmatpush2.bf16.msra.mxu0 %v10805_v8  ;;  %5285 = vmatpush2.bf16.msra.mxu1 %v10808_v32 }
0x1c1f   :  { %5245 = vmatprep.subr.bf16.mxu0 %v10811_v15  ;;  %5286 = vmatprep.subr.bf16.mxu1 %v10814_v24 }
0x1c22   :  { %5246 = vmatpush2.bf16.msra.mxu0 %v10817_v34  ;;  %5287 = vmatpush2.bf16.msra.mxu1 %v10820_v13 }
0x1c23   :  { %5321 = vmatprep.subr.bf16.mxu0 %v10507_v63  ;;  %5362 = vmatprep.subr.bf16.mxu1 %v10510_v28 }
0x1c85   :  { %v5031_v32 = vpop.f32.mrf.mxu0  ;;  %v5072_v8 = vpop.f32.mrf.mxu1 }
0x1c86   :  { %v5032_v15 = vadd.f32 %v5031_v32, %v12205_v38  ;;  %v5073_v61 = vadd.f32 %v5072_v8, %v12393_v7 }
0x1c87   :  { %v5033_v23 = vpop.f32.mrf.mxu0  ;;  %v5074_v29 = vpop.f32.mrf.mxu1 }
0x1c88   :  { %v6032_v58 = vmul.f32 -1.442695, %v5032_v15  ;;  %v5034_v24 = vadd.f32 %v5033_v23, %v12391_v19  ;;  %v5075_v63 = vadd.f32 %v5074_v29, %v12392_v2 }
0x1c89   :  { %v5035_v27 = vpop.f32.mrf.mxu0  ;;  %v5076_v54 = vpop.f32.mrf.mxu1 }
0x1c8a   :  { %6908 = vpow2.f32 %v6032_v58  ;;  %v6033_v34 = vmul.f32 -1.442695, %v5034_v24  ;;  %v6034_v13 = vmul.f32 -1.442695, %v5075_v63 }
0x1c8b   :  { %v5036_v3 = vpop.f32.mrf.mxu0  ;;  %v5077_v36 = vpop.f32.mrf.mxu1 }
0x1c8c   :  { %6910 = vpow2.f32 %v6033_v34 }
0x1c8d   :  { %6912 = vpow2.f32 %v6034_v13 }
0x1c97   :  { %v6909_v28 = vpop.eup %6908 }
0x1c98   :  { %v5082_v52 = vadd.f32 1.0, %v6909_v28 }
0x1c99   :  { %v6911_v32 = vpop.eup %6910 }
0x1c9a   :  { %6914 = vrcp.f32 %v5082_v52  ;;  %v5088_v15 = vadd.f32 1.0, %v6911_v32  ;;  %v6913_v58 = vpop.eup %6912 }
0x1c9b   :  { %6916 = vtanh.f32 %v5073_v61  ;;  %v5095_v28 = vadd.f32 1.0, %v6913_v58 }
0x1c9c   :  { %6918 = vrcp.f32 %v5088_v15 }
0x1ca5   :  { %v5137_v27 = vpop.f32.mrf.mxu0  ;;  %v5178_v54 = vpop.f32.mrf.mxu1 }
0x1ca6   :  { %v5185_v24 = vadd.f32 %v5137_v27, %v12145_v56 }
0x1ca7   :  { %v6915_v36 = vpop.eup %6914  ;;  %v5139_v34 = vpop.f32.mrf.mxu0 }
0x1ca8   :  { %v5180_v3 = vpop.f32.mrf.mxu1  ;;  %v6917_v29 = vpop.eup %6916  ;;  %v6035_v23 = vmul.f32 -1.442695, %v5185_v24  ;;  %v5186_v63 = vadd.f32 %v5139_v34, %v9715_v43 }
0x1ca9   :  { %v6919_v8 = vpop.eup %6918  ;;  %v5141_v7 = vpop.f32.mrf.mxu0  ;;  %v5099_v52 = vmul.f32 %v6917_v29, %v6915_v36  ;;  %v5188_v27 = vadd.f32 %v5180_v3, %v9720_v35 }
0x1caa   :  { %v5182_v13 = vpop.f32.mrf.mxu1  ;;  %v5098_v61 = vmul.f32 %v6919_v8, %v10520_v16  ;;  %6920 = vpow2.f32 %v6035_v23  ;;  %v6036_v32 = vmul.f32 -1.442695, %v5186_v63  ;;  %v5187_v7 = vadd.f32 %v5178_v54, %v9724_v26 }
0x1cab   :  { %v5142_v15 = vpop.f32.mrf.mxu0  ;;  %v6037_v24 = vmul.f32 -1.442695, %v5188_v27 }
0x1cac   :  { %v5183_v2 = vpop.f32.mrf.mxu1  ;;  %v10832_v19 = vadd.f32 %v5099_v52, %v5098_v61  ;;  %6922 = vpow2.f32 %v6036_v32 }
0x1cad   :  { %6924 = vrcp.f32 %v5095_v28 }
0x1cae   :  { %6926 = vtanh.f32 %v10832_v19 }
0x1caf   :  { %6928 = vpow2.f32 %v6037_v24 }
0x1cb7   :  { %v6921_v34 = vpop.eup %6920 }
0x1cb8   :  { %v5192_v58 = vadd.f32 1.0, %v6921_v34 }
0x1cb9   :  { %v6923_v36 = vpop.eup %6922 }
0x1cba   :  { %v6925_v16 = vpop.eup %6924  ;;  %6930 = vrcp.f32 %v5192_v58  ;;  %v5198_v29 = vadd.f32 1.0, %v6923_v36  ;;  %v12492_v58 = vld [vmem:[#allocation72_spill] sm:$0xff]  ;;  %v12493_v36 = vld [vmem:[#allocation73_spill] sm:$0xff] }
0x1cbb   :  { %v6927_v23 = vpop.eup %6926  ;;  %6932 = vtanh.f32 %v5187_v7  ;;  %v12491_v7 = vld [vmem:[#allocation71_spill] sm:$0xff] }
0x1cbc   :  { %6934 = vrcp.f32 %v5198_v29  ;;  %v10837_v2 = vmul.f32 %v6927_v23, %v6925_v16  ;;  %v6929_v3 = vpop.eup %6928  ;;  %v12494_v16 = vld [vmem:[#allocation74_spill] sm:$0xff]  ;;  %v12495_v29 = vld [vmem:[#allocation75_spill] sm:$0xff]  ;;  %v12496_v23 = vld [vmem:[#allocation76_spill] sm:$0xff] }
0x1cbd   :  { %v5205_v13 = vadd.f32 1.0, %v6929_v3  ;;  %v12498_v3 = vld [vmem:[#allocation78_spill] sm:$0xff] }
0x1cbe   :  { %v5214_v63 = vpack.c.bf16 %v10837_v2, %v10837_v2 }
0x1cbf   :  { %6936 = vrcp.f32 %v5205_v13  ;;  %v12502_v13 = vld [vmem:[#allocation82_spill] sm:$0xff] }
0x1cc0   :  { %5247 = vmatprep.mubr.bf16.mxu0 %v5214_v63  ;;  %5288 = vmatprep.mubr.bf16.mxu1 %v5214_v63  ;;  %v12497_v63 = vld [vmem:[#allocation77_spill] sm:$0xff] }
0x1cc7   :  { %v6931_v8 = vpop.eup %6930 }
0x1cc8   :  { %v6933_v28 = vpop.eup %6932 }
0x1cc9   :  { %v6935_v54 = vpop.eup %6934  ;;  %v5209_v52 = vmul.f32 %v6933_v28, %v6931_v8  ;;  %v12499_v8 = vld [vmem:[#allocation79_spill] sm:$0xff]  ;;  %v12500_v28 = vld [vmem:[#allocation80_spill] sm:$0xff] }
0x1cca   :  { %v5208_v61 = vmul.f32 %v6935_v54, %v10530_v62  ;;  %v12454_v62 = vld [vmem:[#allocation25_spill] sm:$0xff] }
0x1ccb   :  { %v12501_v54 = vld [vmem:[#allocation81_spill] sm:$0xff] }
0x1ccc   :  { %v10842_v32 = vadd.f32 %v5209_v52, %v5208_v61  ;;  %v6937_v15 = vpop.eup %6936  ;;  %v12503_v52 = vld [vmem:[#allocation83_spill] sm:$0xff]  ;;  %v12504_v61 = vld [vmem:[#allocation84_spill] sm:$0xff] }
0x1cce   :  { %6938 = vtanh.f32 %v10842_v32 }
0x1cdb   :  { %v6939_v27 = vpop.eup %6938 }
0x1cdc   :  { %v5212_v24 = vmul.f32 %v6939_v27, %v6937_v15  ;;  %v12505_v15 = vld [vmem:[#allocation85_spill] sm:$0xff]  ;;  %v12506_v27 = vld [vmem:[#allocation86_spill] sm:$0xff] }
0x1cde   :  { %v5213_v34 = vpack.c.bf16 %v5212_v24, %v5212_v24  ;;  %v12507_v24 = vld [vmem:[#allocation87_spill] sm:$0xff] }
0x1ce0   :  { %5248 = vmatmul.mubr.bf16.vlgmr.msra.gmra.mxu0 %v5213_v34  ;;  %5289 = vmatmul.mubr.bf16.vlgmr.msra.gmra.mxu1 %v5213_v34 }
0x1ce1   :  { %5322 = vmatpush1.bf16.msra.mxu0 %v10537_v1  ;;  %5363 = vmatpush1.bf16.msra.mxu1 %v10540_v9  ;;  %v12455_v1 = vld [vmem:[#allocation44_spill] sm:$0xff] }
0x1ce2   :  { %5323 = vmatprep.subr.bf16.mxu0 %v10543_v40  ;;  %5364 = vmatprep.subr.bf16.mxu1 %v10546_v6  ;;  %v12456_v9 = vld [vmem:[#allocation64_spill] sm:$0xff]  ;;  %v12457_v40 = vld [vmem:[#allocation45_spill] sm:$0xff]  ;;  %v12458_v6 = vld [vmem:[#allocation46_spill] sm:$0xff] }
0x1ce3   :  { %5353 = vmatprep.mubr.bf16.mxu0 %v11649_v59  ;;  %5394 = vmatprep.mubr.bf16.mxu1 %v11649_v59  ;;  %v12453_v59 = vld [vmem:[#allocation26_spill] sm:$0xff] }
0x1ce5   :  { %5324 = vmatpush1.bf16.msra.mxu0 %v10551_v20  ;;  %5365 = vmatpush1.bf16.msra.mxu1 %v10554_v42  ;;  %v12459_v20 = vld [vmem:[#allocation47_spill] sm:$0xff]  ;;  %v12460_v42 = vld [vmem:[#allocation48_spill] sm:$0xff] }
0x1ce6   :  { %5325 = vmatprep.subr.bf16.mxu0 %v10557_v14  ;;  %5366 = vmatprep.subr.bf16.mxu1 %v10560_v4  ;;  %v12461_v14 = vld [vmem:[#allocation49_spill] sm:$0xff]  ;;  %v12462_v4 = vld [vmem:[#allocation50_spill] sm:$0xff] }
0x1ce9   :  { %5326 = vmatpush1.bf16.msra.mxu0 %v10563_v10  ;;  %5367 = vmatpush1.bf16.msra.mxu1 %v10566_v22  ;;  %v12463_v10 = vld [vmem:[#allocation51_spill] sm:$0xff]  ;;  %v12464_v22 = vld [vmem:[#allocation52_spill] sm:$0xff] }
0x1cea   :  { %5327 = vmatprep.subr.bf16.mxu0 %v10569_v51  ;;  %5368 = vmatprep.subr.bf16.mxu1 %v10572_v33  ;;  %v12465_v51 = vld [vmem:[#allocation53_spill] sm:$0xff]  ;;  %v12466_v33 = vld [vmem:[#allocation54_spill] sm:$0xff] }
0x1ced   :  { %5328 = vmatpush1.bf16.msra.mxu0 %v10575_v45  ;;  %5369 = vmatpush1.bf16.msra.mxu1 %v10578_v5  ;;  %v12467_v45 = vld [vmem:[#allocation55_spill] sm:$0xff]  ;;  %v12468_v5 = vld [vmem:[#allocation57_spill] sm:$0xff] }
0x1cee   :  { %5329 = vmatprep.subr.bf16.mxu0 %v10581_v49  ;;  %5370 = vmatprep.subr.bf16.mxu1 %v10584_v53  ;;  %v12469_v49 = vld [vmem:[#allocation62_spill] sm:$0xff]  ;;  %v12470_v53 = vld [vmem:[#allocation65_spill] sm:$0xff] }
0x1cf1   :  { %5330 = vmatpush1.bf16.msra.mxu0 %v10587_v11  ;;  %5371 = vmatpush1.bf16.msra.mxu1 %v10590_v44  ;;  %v12471_v11 = vld [vmem:[#allocation67_spill] sm:$0xff]  ;;  %v12472_v44 = vld [vmem:[#allocation68_spill] sm:$0xff] }
0x1cf2   :  { %5331 = vmatprep.subr.bf16.mxu0 %v10593_v55  ;;  %5372 = vmatprep.subr.bf16.mxu1 %v10596_v48  ;;  %v12473_v55 = vld [vmem:[#allocation102_spill] sm:$0xff]  ;;  %v12474_v48 = vld [vmem:[#allocation104_spill] sm:$0xff] }
0x1cf5   :  { %5332 = vmatpush1.bf16.msra.mxu0 %v10599_v31  ;;  %5373 = vmatpush1.bf16.msra.mxu1 %v10602_v12  ;;  %v12475_v31 = vld [vmem:[#allocation105_spill] sm:$0xff]  ;;  %v12476_v12 = vld [vmem:[#allocation106_spill] sm:$0xff] }
0x1cf6   :  { %5333 = vmatprep.subr.bf16.mxu0 %v10605_v21  ;;  %5374 = vmatprep.subr.bf16.mxu1 %v10608_v57  ;;  %v12477_v21 = vld [vmem:[#allocation42_spill] sm:$0xff]  ;;  %v12478_v57 = vld [vmem:[#allocation101_spill] sm:$0xff] }
0x1cf9   :  { %5334 = vmatpush1.bf16.msra.mxu0 %v10611_v17  ;;  %5375 = vmatpush1.bf16.msra.mxu1 %v10614_v41  ;;  %v12479_v17 = vld [vmem:[#allocation103_spill] sm:$0xff] }
0x1cfa   :  { %5335 = vmatprep.subr.bf16.mxu0 %v10617_v47  ;;  %5376 = vmatprep.subr.bf16.mxu1 %v10620_v0  ;;  %v12480_v41 = vld [vmem:[#allocation27_spill] sm:$0xff]  ;;  %v12482_v0 = vld [vmem:[#allocation40_spill] sm:$0xff] }
0x1cfb   :  { %v12481_v47 = vld [vmem:[#allocation43_spill] sm:$0xff] }
0x1cfd   :  { %5336 = vmatpush1.bf16.msra.mxu0 %v10623_v50  ;;  %5377 = vmatpush1.bf16.msra.mxu1 %v10626_v37  ;;  %v12483_v50 = vld [vmem:[#allocation63_spill] sm:$0xff]  ;;  %v12484_v37 = vld [vmem:[#allocation24_spill] sm:$0xff] }
0x1cfe   :  { %5433 = vmatprep.subr.bf16.mxu0 %v10629_v18  ;;  %5474 = vmatprep.subr.bf16.mxu1 %v10632_v25  ;;  %v12485_v18 = vld [vmem:[#allocation23_spill] sm:$0xff]  ;;  %v12486_v25 = vld [vmem:[#allocation69_spill] sm:$0xff] }
0x1d00   :  { %5354 = vmatmul.mubr.bf16.vlgmr.msra.gmra.mxu0 %v5213_v34  ;;  %5395 = vmatmul.mubr.bf16.vlgmr.msra.gmra.mxu1 %v5213_v34  ;;  %v12508_v34 = vld [vmem:[#allocation97_spill] sm:$0xff] }
0x1d01   :  { %5434 = vmatpush1.bf16.msra.mxu0 %v10637_v46  ;;  %5475 = vmatpush1.bf16.msra.mxu1 %v10640_v60  ;;  %v12487_v46 = vld [vmem:[#allocation70_spill] sm:$0xff] }
0x1d02   :  { %5435 = vmatprep.subr.bf16.mxu0 %v10643_v30  ;;  %5476 = vmatprep.subr.bf16.mxu1 %v10646_v39  ;;  %v12488_v60 = vld [vmem:[#allocation38_spill] sm:$0xff]  ;;  %v12489_v30 = vld [vmem:[#allocation37_spill] sm:$0xff]  ;;  %v12490_v39 = vld [vmem:[#allocation56_spill] sm:$0xff] }
0x1d05   :  { %5436 = vmatpush1.bf16.msra.mxu0 %v12453_v59  ;;  %5477 = vmatpush1.bf16.msra.mxu1 %v12454_v62  ;;  %v12509_v59 = vld [vmem:[#allocation98_spill] sm:$0xff]  ;;  %v12510_v62 = vld [vmem:[#allocation35_spill] sm:$0xff] }
0x1d06   :  { %5437 = vmatprep.subr.bf16.mxu0 %v12455_v1  ;;  %5478 = vmatprep.subr.bf16.mxu1 %v12456_v9  ;;  %v10944_v1 = vld [vmem:[%s11019_s15 + $0x38] sm:$0xff]  }
0x1d09   :  { %5438 = vmatpush1.bf16.msra.mxu0 %v12457_v40  ;;  %5479 = vmatpush1.bf16.msra.mxu1 %v12458_v6 }
0x1d0a   :  { %5439 = vmatprep.subr.bf16.mxu0 %v12459_v20  ;;  %5480 = vmatprep.subr.bf16.mxu1 %v12460_v42 }
0x1d0d   :  { %5440 = vmatpush1.bf16.msra.mxu0 %v12461_v14  ;;  %5481 = vmatpush1.bf16.msra.mxu1 %v12462_v4  ;;  %v12511_v4 = vld [vmem:[#allocation58_spill] sm:$0xff] }
0x1d0e   :  { %5441 = vmatprep.subr.bf16.mxu0 %v12463_v10  ;;  %5482 = vmatprep.subr.bf16.mxu1 %v12464_v22 }
0x1d11   :  { %5442 = vmatpush1.bf16.msra.mxu0 %v12465_v51  ;;  %5483 = vmatpush1.bf16.msra.mxu1 %v12466_v33 }
0x1d12   :  { %5443 = vmatprep.subr.bf16.mxu0 %v12467_v45  ;;  %5484 = vmatprep.subr.bf16.mxu1 %v12468_v5 }
0x1d15   :  { %5444 = vmatpush1.bf16.msra.mxu0 %v12469_v49  ;;  %5485 = vmatpush1.bf16.msra.mxu1 %v12470_v53  ;;  %v12512_v49 = vld [vmem:[#allocation59_spill] sm:$0xff] }
0x1d16   :  { %5445 = vmatprep.subr.bf16.mxu0 %v12471_v11  ;;  %5486 = vmatprep.subr.bf16.mxu1 %v12472_v44 }
0x1d19   :  { %5446 = vmatpush1.bf16.msra.mxu0 %v12473_v55  ;;  %5487 = vmatpush1.bf16.msra.mxu1 %v12474_v48  ;;  %v12513_v55 = vld [vmem:[#allocation60_spill] sm:$0xff] }
0x1d1a   :  { %5447 = vmatprep.subr.bf16.mxu0 %v12475_v31  ;;  %5488 = vmatprep.subr.bf16.mxu1 %v12476_v12 }
0x1d1d   :  { %5448 = vmatpush1.bf16.msra.mxu0 %v12477_v21  ;;  %5489 = vmatpush1.bf16.msra.mxu1 %v12478_v57 }
0x1d1e   :  { %5449 = vmatprep.subr.bf16.mxu0 %v12479_v17  ;;  %5490 = vmatprep.subr.bf16.mxu1 %v12480_v41 }
0x1d21   :  { %5450 = vmatpush2.bf16.msra.mxu0 %v12481_v47  ;;  %5491 = vmatpush2.bf16.msra.mxu1 %v12482_v0 }
0x1d22   :  { %5451 = vmatprep.subr.bf16.mxu0 %v12483_v50  ;;  %5492 = vmatprep.subr.bf16.mxu1 %v12484_v37 }
0x1d25   :  { %5452 = vmatpush2.bf16.msra.mxu0 %v12485_v18  ;;  %5493 = vmatpush2.bf16.msra.mxu1 %v12486_v25 }
0x1d26   :  { %5453 = vmatprep.subr.bf16.mxu0 %v12487_v46  ;;  %5494 = vmatprep.subr.bf16.mxu1 %v12488_v60 }
0x1d29   :  { %5454 = vmatpush2.bf16.msra.mxu0 %v12489_v30  ;;  %5495 = vmatpush2.bf16.msra.mxu1 %v12490_v39 }
0x1d2a   :  { %5455 = vmatprep.subr.bf16.mxu0 %v12491_v7  ;;  %5496 = vmatprep.subr.bf16.mxu1 %v12492_v58 }
0x1d2d   :  { %5456 = vmatpush2.bf16.msra.mxu0 %v12493_v36  ;;  %5497 = vmatpush2.bf16.msra.mxu1 %v12494_v16 }
0x1d2e   :  { %5457 = vmatprep.subr.bf16.mxu0 %v12495_v29  ;;  %5498 = vmatprep.subr.bf16.mxu1 %v12496_v23 }
0x1d31   :  { %5458 = vmatpush2.bf16.msra.mxu0 %v12497_v63  ;;  %5499 = vmatpush2.bf16.msra.mxu1 %v12498_v3 }
0x1d32   :  { %5459 = vmatprep.subr.bf16.mxu0 %v12499_v8  ;;  %5500 = vmatprep.subr.bf16.mxu1 %v12500_v28 }
0x1d35   :  { %5460 = vmatpush2.bf16.msra.mxu0 %v12501_v54  ;;  %5501 = vmatpush2.bf16.msra.mxu1 %v12502_v13 }
0x1d36   :  { %5461 = vmatprep.subr.bf16.mxu0 %v12503_v52  ;;  %5502 = vmatprep.subr.bf16.mxu1 %v12504_v61 }
0x1d39   :  { %5462 = vmatpush2.bf16.msra.mxu0 %v12505_v15  ;;  %5503 = vmatpush2.bf16.msra.mxu1 %v12506_v27 }
0x1d3a   :  { %5463 = vmatprep.subr.bf16.mxu0 %v12507_v24  ;;  %5504 = vmatprep.subr.bf16.mxu1 %v12508_v34 }
0x1d3d   :  { %5464 = vmatpush2.bf16.msra.mxu0 %v12509_v59  ;;  %5505 = vmatpush2.bf16.msra.mxu1 %v12510_v62 }
0x1d3e   :  { %6068 = vmatprep.subr.bf16.mxu0 %v10944_v1 }
0x1da0   :  { %v5249_v9 = vpop.f32.mrf.mxu0  ;;  %v5290_v40 = vpop.f32.mrf.mxu1 }
0x1da1   :  { %v5250_v6 = vadd.f32 %v5249_v9, %v12205_v38  ;;  %v5291_v48 = vadd.f32 %v5290_v40, %v12513_v55 }
0x1da2   :  { %v5251_v20 = vpop.f32.mrf.mxu0  ;;  %v5292_v42 = vpop.f32.mrf.mxu1 }
0x1da3   :  { %v6038_v14 = vmul.f32 -1.442695, %v5250_v6  ;;  %v5252_v10 = vadd.f32 %v5251_v20, %v12511_v4  ;;  %v5293_v53 = vadd.f32 %v5292_v42, %v12512_v49 }
0x1da4   :  { %v5253_v22 = vpop.f32.mrf.mxu0  ;;  %v5294_v51 = vpop.f32.mrf.mxu1 }
0x1da5   :  { %6940 = vpow2.f32 %v6038_v14  ;;  %v6039_v33 = vmul.f32 -1.442695, %v5252_v10  ;;  %v6040_v11 = vmul.f32 -1.442695, %v5293_v53  ;;  %v6451_v14 = vld [vmem:[%s11019_s15 + $0x30] sm:$0xff]   ;;  %v12514_v10 = vld [vmem:[#allocation61_spill] sm:$0xff] }
0x1da6   :  { %v5254_v45 = vpop.f32.mrf.mxu0  ;;  %v5295_v5 = vpop.f32.mrf.mxu1  ;;  %v12515_v22 = vld [vmem:[#allocation66_spill] sm:$0xff] }
0x1da7   :  { %6942 = vpow2.f32 %v6039_v33  ;;  %v5539_v51 = vpack.c.bf16 %v12515_v22, %v12514_v10  ;;  %v6453_v33 = vld [vmem:[%s11019_s15 + $0x20] sm:$0xff]   ;;  %v6454_v45 = vld [vmem:[%s11019_s15 + $0x18] sm:$0xff]   ;;  %v6456_v5 = vld [vmem:[%s11019_s15 + $0x8] sm:$0xff]  }
0x1da8   :  { %6944 = vpow2.f32 %v6040_v11  ;;  %v6457_v53 = vld [vmem:[%s11019_s15] sm:$0xff]  }
0x1da9   :  { %v12516_v11 = vld [vmem:[#allocation33_spill] sm:$0xff] }
0x1db2   :  { %v6941_v44 = vpop.eup %6940 }
0x1db3   :  { %v5300_v31 = vadd.f32 1.0, %v6941_v44  ;;  %v12517_v44 = vld [vmem:[#allocation32_spill] sm:$0xff] }
0x1db4   :  { %v6943_v12 = vpop.eup %6942 }
0x1db5   :  { %6946 = vrcp.f32 %v5300_v31  ;;  %v5306_v21 = vadd.f32 1.0, %v6943_v12  ;;  %v6945_v41 = vpop.eup %6944  ;;  %v12518_v31 = vld [vmem:[#allocation41_spill] sm:$0xff] }
0x1db6   :  { %6948 = vtanh.f32 %v5291_v48  ;;  %v5313_v30 = vadd.f32 1.0, %v6945_v41  ;;  %v5540_v48 = vpack.c.bf16 %v12517_v44, %v12516_v11  ;;  %v5541_v12 = vpack.c.bf16 %v10837_v2, %v12518_v31 }
0x1db7   :  { %6950 = vrcp.f32 %v5306_v21 }
0x1dc0   :  { %v5355_v57 = vpop.f32.mrf.mxu0  ;;  %v5396_v17 = vpop.f32.mrf.mxu1 }
0x1dc1   :  { %v5403_v47 = vadd.f32 %v5355_v57, %v12145_v56  ;;  %v5405_v8 = vadd.f32 %v5396_v17, %v9724_v26 }
0x1dc2   :  { %v6947_v0 = vpop.eup %6946  ;;  %v5357_v50 = vpop.f32.mrf.mxu0 }
0x1dc3   :  { %v5398_v37 = vpop.f32.mrf.mxu1  ;;  %v6949_v18 = vpop.eup %6948  ;;  %v6041_v25 = vmul.f32 -1.442695, %v5403_v47  ;;  %v5404_v46 = vadd.f32 %v5357_v50, %v9715_v43 }
0x1dc4   :  { %v6951_v60 = vpop.eup %6950  ;;  %v5359_v39 = vpop.f32.mrf.mxu0  ;;  %v5317_v58 = vmul.f32 %v6949_v18, %v6947_v0  ;;  %v5406_v56 = vadd.f32 %v5398_v37, %v9720_v35 }
0x1dc5   :  { %v5400_v7 = vpop.f32.mrf.mxu1  ;;  %v5316_v36 = vmul.f32 %v6951_v60, %v10832_v19  ;;  %6952 = vpow2.f32 %v6041_v25  ;;  %v6042_v16 = vmul.f32 -1.442695, %v5404_v46 }
0x1dc6   :  { %v5360_v29 = vpop.f32.mrf.mxu0  ;;  %v6043_v43 = vmul.f32 -1.442695, %v5406_v56 }
0x1dc7   :  { %v5401_v23 = vpop.f32.mrf.mxu1  ;;  %v10954_v63 = vadd.f32 %v5317_v58, %v5316_v36  ;;  %6954 = vpow2.f32 %v6042_v16 }
0x1dc8   :  { %6956 = vrcp.f32 %v5313_v30 }
0x1dc9   :  { %6958 = vtanh.f32 %v10954_v63 }
0x1dca   :  { %6960 = vpow2.f32 %v6043_v43 }
0x1dd2   :  { %v6953_v3 = vpop.eup %6952 }
0x1dd3   :  { %v5410_v28 = vadd.f32 1.0, %v6953_v3 }
0x1dd4   :  { %v6955_v54 = vpop.eup %6954 }
0x1dd5   :  { %v6957_v19 = vpop.eup %6956  ;;  %6962 = vrcp.f32 %v5410_v28  ;;  %v5416_v13 = vadd.f32 1.0, %v6955_v54 }
0x1dd6   :  { %v6959_v52 = vpop.eup %6958  ;;  %6964 = vtanh.f32 %v5405_v8 }
0x1dd7   :  { %6966 = vrcp.f32 %v5416_v13  ;;  %v10959_v61 = vmul.f32 %v6959_v52, %v6957_v19  ;;  %v6961_v35 = vpop.eup %6960 }
0x1dd8   :  { %v5423_v34 = vadd.f32 1.0, %v6961_v35 }
0x1dd9   :  { %v5432_v15 = vpack.c.bf16 %v10959_v61, %v10959_v61 }
0x1dda   :  { %6968 = vrcp.f32 %v5423_v34 }
0x1ddb   :  { %5465 = vmatprep.mubr.bf16.mxu0 %v5432_v15  ;;  %5506 = vmatprep.mubr.bf16.mxu1 %v5432_v15 }
0x1de2   :  { %v6963_v27 = vpop.eup %6962 }
0x1de3   :  { %v6965_v24 = vpop.eup %6964 }
0x1de4   :  { %v6967_v26 = vpop.eup %6966  ;;  %v5427_v59 = vmul.f32 %v6965_v24, %v6963_v27 }
0x1de5   :  { %v5426_v62 = vmul.f32 %v6967_v26, %v10842_v32  ;;  %v6452_v32 = vld [vmem:[%s11019_s15 + $0x28] sm:$0xff]  }
0x1de7   :  { %v5428_v9 = vadd.f32 %v5427_v59, %v5426_v62  ;;  %v6969_v40 = vpop.eup %6968 }
0x1de9   :  { %6970 = vtanh.f32 %v5428_v9 }
0x1df6   :  { %v6971_v6 = vpop.eup %6970 }
0x1df7   :  { %v5430_v20 = vmul.f32 %v6971_v6, %v6969_v40 }
0x1df9   :  { %v5431_v42 = vpack.c.bf16 %v5430_v20, %v5430_v20 }
0x1dfb   :  { %5466 = vmatmul.mubr.bf16.vlgmr.msra.gmra.mxu0 %v5431_v42  ;;  %5507 = vmatmul.mubr.bf16.vlgmr.msra.gmra.mxu1 %v5431_v42 }
0x1dfc   :  { %6069 = vmatpush3.bf16.msra.mxu0 %v10944_v1  ;;  %6084 = vmatprep.mubr.bf16.mxu0 %v5539_v51  ;;  %v6455_v1 = vld [vmem:[%s11019_s15 + $0x10] sm:$0xff]  }
0x1dfd   :  { %6070 = vmatprep.subr.bf16.mxu0 %v6451_v14 }
0x1e00   :  { %6071 = vmatpush3.bf16.msra.mxu0 %v6451_v14 }
0x1e01   :  { %6072 = vmatprep.subr.bf16.mxu0 %v6452_v32 }
0x1e04   :  { %6073 = vmatpush3.bf16.msra.mxu0 %v6452_v32 }
0x1e05   :  { %6074 = vmatprep.subr.bf16.mxu0 %v6453_v33 }
0x1e08   :  { %6075 = vmatpush3.bf16.msra.mxu0 %v6453_v33 }
0x1e09   :  { %6076 = vmatprep.subr.bf16.mxu0 %v6454_v45 }
0x1e0c   :  { %6077 = vmatpush3.bf16.msra.mxu0 %v6454_v45 }
0x1e0d   :  { %6078 = vmatprep.subr.bf16.mxu0 %v6455_v1 }
0x1e10   :  { %6079 = vmatpush3.bf16.msra.mxu0 %v6455_v1 }
0x1e11   :  { %6080 = vmatprep.subr.bf16.mxu0 %v6456_v5 }
0x1e14   :  { %6081 = vmatpush3.bf16.msra.mxu0 %v6456_v5 }
0x1e15   :  { %6082 = vmatprep.subr.bf16.mxu0 %v6457_v53 }
0x1e18   :  { %6083 = vmatpush3.bf16.msra.mxu0 %v6457_v53 }
0x1e1b   :  { %6085 = vmatmul.mubr.bf16.vlgmr.msra.gmra.mxu0 %v5540_v48 }
0x1e1c   :  { %6088 = vmatprep.mubr.bf16.mxu0 %v5541_v12 }
0x1ebb   :  { %v5467_v21 = vpop.f32.mrf.mxu0  ;;  %v5508_v57 = vpop.f32.mrf.mxu1 }
0x1ebc   :  { %v5468_v17 = vadd.f32 %v5467_v21, %v12205_v38  ;;  %v5509_v7 = vadd.f32 %v5508_v57, %v12513_v55 }
0x1ebd   :  { %v5469_v41 = vpop.f32.mrf.mxu0  ;;  %v5510_v47 = vpop.f32.mrf.mxu1 }
0x1ebe   :  { %v6044_v0 = vmul.f32 -1.442695, %v5468_v17  ;;  %v5470_v50 = vadd.f32 %v5469_v41, %v12511_v4  ;;  %v5511_v2 = vadd.f32 %v5510_v47, %v12512_v49  ;;  %v6047_v4 = vld [vmem:[%s11020_s16] ss:$0 sm:$0xff]  ;;  %s7597_s16 = smov [#allocation16]  }
0x1ebf   :  { %v5471_v37 = vpop.f32.mrf.mxu0  ;;  %v5512_v18 = vpop.f32.mrf.mxu1  ;;  %s5691_s22 = sshll.u32 %s7597_s16, 4  ;;  %s5692_s22 = int_to_ptr.vmem [resolvable:$true] %s5691_s22 }
0x1ec0   :  { %6972 = vpow2.f32 %v6044_v0  ;;  %v6045_v25 = vmul.f32 -1.442695, %v5470_v50  ;;  %v6046_v30 = vmul.f32 -1.442695, %v5511_v2  ;;  %s7552_s7 = scalar_lea.vmem %s5692_s22, 1024  ;;  %p7557_p13 = scmp.lt.s32.totalorder %s5692_s22, %s5692_s22 }
0x1ec1   :  { %v5472_v46 = vpop.f32.mrf.mxu0  ;;  %v5513_v60 = vpop.f32.mrf.mxu1  ;;  %p7553_p12 = scmp.ne.s32.totalorder %s5692_s22, %s7552_s7  ;;  %p7558_p0 = scmp.lt.s32.totalorder %s7552_s7, %s7552_s7 }
0x1ec2   :  { %6974 = vpow2.f32 %v6045_v25 }
0x1ec3   :  { %6976 = vpow2.f32 %v6046_v30  ;;  %p7559_p1 = por %p7558_p0, %p7557_p13 }
0x1ec5   :  { %p7560_p2 = pnand %p7559_p1, %p7553_p12 }
0x1ecd   :  { %v6973_v39 = vpop.eup %6972 }
0x1ece   :  { %v5518_v58 = vadd.f32 1.0, %v6973_v39 }
0x1ecf   :  { %v6975_v38 = vpop.eup %6974 }
0x1ed0   :  { %6978 = vrcp.f32 %v5518_v58  ;;  %v5524_v36 = vadd.f32 1.0, %v6975_v38  ;;  %v6977_v29 = vpop.eup %6976 }
0x1ed1   :  { %6980 = vtanh.f32 %v5509_v7  ;;  %v5531_v8 = vadd.f32 1.0, %v6977_v29 }
0x1ed2   :  { %6982 = vrcp.f32 %v5524_v36 }
0x1ed3   :  { %6984 = vrcp.f32 %v5531_v8 }
0x1edb   :  { %v6086_v16 = vpop.f32.mrf.mxu0 }
0x1edc   :  { %v5656_v23 = vadd.f32 %v6086_v16, %v6047_v4 }
0x1edd   :  { %v6979_v56 = vpop.eup %6978  ;;  %v5647_v49 = vpop.f32.mrf.mxu0 }
0x1ede   :  { %v6981_v43 = vpop.eup %6980  ;;  %5680 = vst [vmem:[#allocation16 + $0x10] sm:$0xff] %v5656_v23  ;;  %v5648_v3 = vadd.f32 %v6047_v4, %v5647_v49 }
0x1edf   :  { %v6983_v55 = vpop.eup %6982  ;;  %v6087_v28 = vpop.f32.mrf.mxu0  ;;  %v5535_v54 = vmul.f32 %v6981_v43, %v6979_v56 }
0x1ee0   :  { %v5534_v19 = vmul.f32 %v6983_v55, %v10954_v63  ;;  %5678 = vst [vmem:[#allocation16] sm:$0xff] %v5648_v3  ;;  %v5659_v13 = vadd.f32 %v6087_v28, %v6047_v4  ;;  %v6985_v27 = vpop.eup %6984 }
0x1ee1   :  { %v5650_v52 = vpop.f32.mrf.mxu0 }
0x1ee2   :  { %v5536_v15 = vadd.f32 %v5535_v54, %v5534_v19  ;;  %5681 = vst [vmem:[#allocation16 + $0x18] sm:$0xff] %v5659_v13  ;;  %v5651_v35 = vadd.f32 %v6047_v4, %v5650_v52 }
0x1ee4   :  { %6986 = vtanh.f32 %v5536_v15  ;;  %5679 = vst [vmem:[#allocation16 + $0x8] sm:$0xff] %v5651_v35 }
0x1ef1   :  { %v6987_v24 = vpop.eup %6986 }
0x1ef2   :  { %v5538_v26 = vmul.f32 %v6987_v24, %v6985_v27 }
0x1ef4   :  { %v5542_v34 = vpack.c.bf16 %v5538_v26, %v10959_v61 }
0x1ef6   :  { %6089 = vmatmul.mubr.bf16.gmra.mxu0 %v5542_v34 }
0x1fb6   :  { %v6090_v59 = vpop.f32.mrf.mxu0 }
0x1fb7   :  { %v5672_v62 = vadd.f32 %v6090_v59, %v6047_v4 }
0x1fb8   :  { %v5663_v9 = vpop.f32.mrf.mxu0 }
0x1fb9   :  { %5684 = vst [vmem:[#allocation16 + $0x30] sm:$0xff] %v5672_v62  ;;  %v5664_v63 = vadd.f32 %v6047_v4, %v5663_v9 }
0x1fba   :  { %v6091_v40 = vpop.f32.mrf.mxu0 }
0x1fbb   :  { %5682 = vst [vmem:[#allocation16 + $0x20] sm:$0xff] %v5664_v63  ;;  %v5675_v6 = vadd.f32 %v6091_v40, %v6047_v4 }
0x1fbc   :  { %v5666_v20 = vpop.f32.mrf.mxu0 }
0x1fbd   :  { %5685 = vst [vmem:[#allocation16 + $0x38] sm:$0xff] %v5675_v6  ;;  %v5667_v42 = vadd.f32 %v6047_v4, %v5666_v20 }
0x1fbf   :  { %5683 = vst [vmem:[#allocation16 + $0x28] sm:$0xff] %v5667_v42 }
0x1fc0   :  { %7563 = shalt.err (!%p7560_p2)
}
0x1fc1   :  { %s7598_s23 = smov 128   ;;  %s7599_s2 = smov 8  }
0x1fc2   :  { %5697 = dma.vmem_to_hbm [thread:$0]  %s5692_s22, 1024, %s11021_s17, [#allocation4], %s7598_s23, %s7598_s23, %s7599_s2  }
0x1fc3   :  { %7582 = dma.done.wait [#allocation4], 1024  }
0x1fc4   :  { %7583 = vsyncadd [#allocation4], 4294966272 }
0x1fc5   :  { %5701 = vsyncpa [#allocation3], 1 }
0x1fc6   :  { %5702 = vsyncpa [#allocation6], 1 }
0x1fc7   :  { %5703 = vsyncpa [#allocation9], 1 }
0x1fc8   :  { %5704 = vsyncpa [#allocation12], 1 }
0x1fc9   :  { %5705 = vsyncpa [#allocation15], 1 }
0x1fca   :  { %5706 = vsyncpa [#allocation4], 1 }

</bundles_post_ra>
